<compile_context>
chip_gen: v7x
topology: tpu7x:2x2x1
jax: 0.10.0
libtpu: 0.0.40
codegen_flags: <defaults>
</compile_context>

<pallas_src>
import functools

import jax
import jax.numpy as jnp
from jax import lax
from jax.experimental import pallas as pl
from jax.experimental.pallas import tpu as pltpu

NUM_CLASSES = 2  # torch.nn.Linear(64, 2)


def _pick_tile(n, target, mult=8):
    """Largest divisor of n that is <= target (prefer multiples of `mult`).
    Falls back to any divisor (keeps VMEM bounded) rather than the full dim."""
    if n <= target:
        return n
    for cand in range(min(target, n), 0, -1):
        if n % cand == 0 and cand % mult == 0:
            return cand
    for cand in range(min(target, n), 0, -1):
        if n % cand == 0:
            return cand
    return n


# ----------------------------------------------------------------------------
# Fused conv1 (1->64, k5, pad2) + ReLU + 2x2 maxpool
#   patches: (B, 4, 256, 32) bf16, partner-major / parity-split row order
#   output : (B, 256, 64) f32, rows = (pa, pb, a', b') with pooled pos
#            (2a'+pa, 2b'+pb)  -- exactly the layout conv2 wants.
# ----------------------------------------------------------------------------
def _conv1_kernel(p_ref, w_ref, b_ref, o_ref):
    w = w_ref[...]
    m = jnp.dot(p_ref[0, 0], w, preferred_element_type=jnp.float32)
    for s in range(1, 4):
        m = jnp.maximum(
            m, jnp.dot(p_ref[0, s], w, preferred_element_type=jnp.float32))
    # pool(relu(z + b)) == relu(max(z) + b)  (bias + relu are monotone)
    o_ref[0] = jnp.maximum(m + b_ref[...], 0.0).astype(o_ref.dtype)


def conv1_pool(patches, w1mm, b1):
    B = patches.shape[0]
    return pl.pallas_call(
        _conv1_kernel,
        out_shape=jax.ShapeDtypeStruct((B, 256, 64), jnp.float32),
        grid_spec=pltpu.PrefetchScalarGridSpec(
            num_scalar_prefetch=0,
            grid=(B,),
            in_specs=[
                pl.BlockSpec((1, 4, 256, 32), lambda b: (b, 0, 0, 0)),
                pl.BlockSpec((32, 64), lambda b: (0, 0)),
                pl.BlockSpec((1, 64), lambda b: (0, 0)),
            ],
            out_specs=pl.BlockSpec((1, 256, 64), lambda b: (b, 0, 0)),
        ),
        compiler_params=pltpu.CompilerParams(
            dimension_semantics=("parallel",)),
    )(patches, w1mm, b1)


def _conv1_patches(x_bhw):
    """x: (B, 32, 32) bf16 -> (B, 4, 256, 32) bf16 patch tensor.

    partner axis (4): (s, t) = pixel offset inside the 2x2 pool window
    row axis  (256) : (pa, pb, a', b'), pooled position = (2a'+pa, 2b'+pb)
    tap axis   (32) : di*5+dj (25 taps + 7 zero pads)
    """
    B = x_bhw.shape[0]
    xp = jnp.pad(x_bhw, ((0, 0), (2, 2), (2, 2)))                  # (B,36,36)
    taps = [xp[:, di:di + 32, dj:dj + 32] for di in range(5) for dj in range(5)]
    p = jnp.stack(taps, axis=-1)                                   # (B,32,32,25)
    p = p.reshape(B, 8, 2, 2, 8, 2, 2, 25)      # (B, a',pa,s, b',pb,t, tap)
    p = jnp.transpose(p, (0, 3, 6, 2, 5, 1, 4, 7))  # (B, s,t, pa,pb, a',b', tap)
    p = p.reshape(B, 4, 256, 25)
    return jnp.pad(p, ((0, 0), (0, 0), (0, 0), (0, 7)))            # taps 25->32


# ----------------------------------------------------------------------------
# Fused conv2 (64->128, k5, pad2) + ReLU + 2x2 maxpool, im2col done in-kernel
#   x     : (B, 2, 2, 10, 10, 64) f32  parity-split, zero-padded conv1 output
#   w2tap : (25, 64, 128) bf16         tap-major conv2 weight
#   output: (B, 64, 128) bf16  == NHWC (B, 8, 8, 128)
# ----------------------------------------------------------------------------
def _conv2_kernel(x_ref, w_ref, b_ref, o_ref, acc_ref):
    for di in range(5):
        for dj in range(5):
            parts = []
            for s in range(2):
                for t in range(2):
                    ph, oi = (s + di) % 2, (s + di) // 2
                    pw, oj = (t + dj) % 2, (t + dj) // 2
                    win = x_ref[0, ph, pw, oi:oi + 8, oj:oj + 8, :]  # (8,8,64)
                    parts.append(win.reshape(64, 64))
            lhs = jnp.concatenate(parts, axis=0).astype(jnp.bfloat16)  # (256,64)
            contrib = jnp.dot(lhs, w_ref[di * 5 + dj],
                              preferred_element_type=jnp.float32)
            if di == 0 and dj == 0:
                acc_ref[...] = contrib
            else:
                acc_ref[...] += contrib
    acc = acc_ref[...]
    pooled = jnp.maximum(jnp.maximum(acc[0:64], acc[64:128]),
                         jnp.maximum(acc[128:192], acc[192:256]))
    o_ref[0] = jnp.maximum(pooled + b_ref[...], 0.0).astype(o_ref.dtype)


def conv2_pool(y1p, w2tap, b2):
    B = y1p.shape[0]
    return pl.pallas_call(
        _conv2_kernel,
        out_shape=jax.ShapeDtypeStruct((B, 64, 128), jnp.bfloat16),
        grid_spec=pltpu.PrefetchScalarGridSpec(
            num_scalar_prefetch=0,
            grid=(B,),
            in_specs=[
                pl.BlockSpec((1, 2, 2, 10, 10, 64),
                             lambda b: (b, 0, 0, 0, 0, 0)),
                pl.BlockSpec((25, 64, 128), lambda b: (0, 0, 0)),
                pl.BlockSpec((1, 128), lambda b: (0, 0)),
            ],
            out_specs=pl.BlockSpec((1, 64, 128), lambda b: (b, 0, 0)),
            scratch_shapes=[pltpu.VMEM((256, 128), jnp.float32)],
        ),
        compiler_params=pltpu.CompilerParams(
            dimension_semantics=("parallel",)),
    )(y1p, w2tap, b2)


# ----------------------------------------------------------------------------
# Generic matmul + bias (+ReLU): M/N parallel tiles, K streamed ("arbitrary").
# Used for FC1 (8192 -> 1024) with bf16 operands and f32 accumulation.
# ----------------------------------------------------------------------------
def _mm_kernel_single(a_ref, b_ref, bias_ref, o_ref, *, relu):
    r = jnp.dot(a_ref[...], b_ref[...], preferred_element_type=jnp.float32)
    r = r + bias_ref[...]
    if relu:
        r = jnp.maximum(r, 0.0)
    o_ref[...] = r.astype(o_ref.dtype)


def _mm_kernel_ksplit(a_ref, b_ref, bias_ref, o_ref, acc_ref, *, relu):
    k = pl.program_id(2)

    @pl.when(k == 0)
    def _():
        acc_ref[...] = jnp.zeros_like(acc_ref)

    acc_ref[...] += jnp.dot(a_ref[...], b_ref[...],
                            preferred_element_type=jnp.float32)

    @pl.when(k == pl.num_programs(2) - 1)
    def _():
        r = acc_ref[...] + bias_ref[...]
        if relu:
            r = jnp.maximum(r, 0.0)
        o_ref[...] = r.astype(o_ref.dtype)


def matmul_bias_act(a, b, bias2d, *, relu, out_dtype=jnp.float32,
                    tm_target=256, tn=None, tk=None):
    M, K = a.shape
    Kb, N = b.shape
    assert K == Kb and bias2d.shape == (1, N)
    tm = _pick_tile(M, tm_target)
    if tn is None or N % tn != 0:
        tn = N
    if tk is None or K % tk != 0:
        tk = K
    nm, nn, nk = M // tm, N // tn, K // tk

    if nk == 1:
        return pl.pallas_call(
            functools.partial(_mm_kernel_single, relu=relu),
            out_shape=jax.ShapeDtypeStruct((M, N), out_dtype),
            grid_spec=pltpu.PrefetchScalarGridSpec(
                num_scalar_prefetch=0,
                grid=(nm, nn),
                in_specs=[
                    pl.BlockSpec((tm, K), lambda m, n: (m, 0)),
                    pl.BlockSpec((K, tn), lambda m, n: (0, n)),
                    pl.BlockSpec((1, tn), lambda m, n: (0, n)),
                ],
                out_specs=pl.BlockSpec((tm, tn), lambda m, n: (m, n)),
            ),
            compiler_params=pltpu.CompilerParams(
                dimension_semantics=("parallel", "parallel")),
        )(a, b, bias2d)

    return pl.pallas_call(
        functools.partial(_mm_kernel_ksplit, relu=relu),
        out_shape=jax.ShapeDtypeStruct((M, N), out_dtype),
        grid_spec=pltpu.PrefetchScalarGridSpec(
            num_scalar_prefetch=0,
            grid=(nm, nn, nk),
            in_specs=[
                pl.BlockSpec((tm, tk), lambda m, n, k: (m, k)),
                pl.BlockSpec((tk, tn), lambda m, n, k: (k, n)),
                pl.BlockSpec((1, tn), lambda m, n, k: (0, n)),
            ],
            out_specs=pl.BlockSpec((tm, tn), lambda m, n, k: (m, n)),
            scratch_shapes=[pltpu.VMEM((tm, tn), jnp.float32)],
        ),
        compiler_params=pltpu.CompilerParams(
            dimension_semantics=("parallel", "parallel", "arbitrary")),
    )(a, b, bias2d)


# ----------------------------------------------------------------------------
# Fused FC2 (+ReLU) and dense head (64 -> 2, N padded to 128), M-tiled grid.
# ----------------------------------------------------------------------------
def _fc_tail_kernel(x_ref, w2_ref, b2_ref, w3_ref, b3_ref, ft_ref, out_ref):
    h = jnp.dot(x_ref[...], w2_ref[...], preferred_element_type=jnp.float32)
    h = jnp.maximum(h + b2_ref[...], 0.0)
    ft_ref[...] = h.astype(ft_ref.dtype)
    o = jnp.dot(h.astype(w3_ref.dtype), w3_ref[...],
                preferred_element_type=jnp.float32) + b3_ref[...]
    out_ref[...] = o.astype(out_ref.dtype)


def fc_tail(x, w2t, b2_2d, w3p, b3p):
    B, H1 = x.shape
    _, N2 = w2t.shape
    _, N3 = w3p.shape
    tm = _pick_tile(B, 256)
    nm = B // tm
    return pl.pallas_call(
        _fc_tail_kernel,
        out_shape=(jax.ShapeDtypeStruct((B, N2), jnp.float32),
                   jax.ShapeDtypeStruct((B, N3), jnp.float32)),
        grid_spec=pltpu.PrefetchScalarGridSpec(
            num_scalar_prefetch=0,
            grid=(nm,),
            in_specs=[
                pl.BlockSpec((tm, H1), lambda i: (i, 0)),
                pl.BlockSpec((H1, N2), lambda i: (0, 0)),
                pl.BlockSpec((1, N2), lambda i: (0, 0)),
                pl.BlockSpec((N2, N3), lambda i: (0, 0)),
                pl.BlockSpec((1, N3), lambda i: (0, 0)),
            ],
            out_specs=(pl.BlockSpec((tm, N2), lambda i: (i, 0)),
                       pl.BlockSpec((tm, N3), lambda i: (i, 0))),
        ),
        compiler_params=pltpu.CompilerParams(
            dimension_semantics=("parallel",)),
    )(x, w2t, b2_2d, w3p, b3p)


# ----------------------------------------------------------------------------
# One-time parameter preparation: kernel layouts, bf16 weights, permuted FC1.
# ----------------------------------------------------------------------------
def prepare_params(params):
    (w1, b1, w2, b2, fw1, fb1, fw2, fb2, dw, db) = params
    f32, bf16 = jnp.float32, jnp.bfloat16
    # conv1 weight (64,1,5,5) -> (25,64), K padded to 32, bf16
    w1mm = jnp.transpose(w1, (2, 3, 1, 0)).reshape(25, 64)
    w1mm = jnp.pad(w1mm, ((0, 7), (0, 0))).astype(bf16)
    # conv2 weight (128,64,5,5) -> tap-major (25, 64, 128), bf16
    w2tap = jnp.transpose(w2, (2, 3, 1, 0)).reshape(25, 64, 128).astype(bf16)
    # FC1 weight (1024, 8192 in NCHW order) -> rows permuted to the NHWC
    # flatten order produced by the conv2 kernel, pre-transposed, bf16
    fw1t = jnp.transpose(fw1.reshape(1024, 128, 8, 8), (2, 3, 1, 0))
    fw1t = fw1t.reshape(8192, 1024).astype(bf16)
    # FC2 / dense head: pre-transposed bf16, head N padded to 128 lanes
    n3 = 128
    dwp = jnp.zeros((dw.shape[1], n3), bf16).at[:, :dw.shape[0]].set(
        dw.T.astype(bf16))
    dbp = jnp.zeros((1, n3), f32).at[0, :db.shape[0]].set(db)
    return dict(
        w1mm=w1mm, b1=b1.reshape(1, -1).astype(f32),
        w2tap=w2tap, b2=b2.reshape(1, -1).astype(f32),
        fw1t=fw1t, fb1=fb1.reshape(1, -1).astype(f32),
        fw2t=fw2.T.astype(bf16), fb2=fb2.reshape(1, -1).astype(f32),
        dwp=dwp, dbp=dbp,
    )


# ----------------------------------------------------------------------------
# Full LENET forward (matches the PyTorch module: returns (ft, out))
# ----------------------------------------------------------------------------
def lenet_forward(x_nchw, kp):
    B = x_nchw.shape[0]
    x = x_nchw.reshape(B, 32, 32).astype(jnp.bfloat16)     # Cin == 1

    # conv1 + ReLU + pool fused; output rows are parity-split (conv2's layout)
    p1 = _conv1_patches(x)                                  # (B,4,256,32) bf16
    y1 = conv1_pool(p1, kp['w1mm'], kp['b1'])               # (B,256,64) f32

    # zero-pad each parity plane once ('same' padding for conv2)
    y1p = jnp.pad(y1.reshape(B, 2, 2, 8, 8, 64),
                  ((0, 0), (0, 0), (0, 0), (1, 1), (1, 1), (0, 0)))

    # conv2 + ReLU + pool fused, im2col done in-kernel
    y2 = conv2_pool(y1p, kp['w2tap'], kp['b2'])             # (B,64,128) bf16

    # contiguous (free) NHWC flatten; fw1t rows were permuted to match
    flat = y2.reshape(B, 8 * 8 * 128)

    # FC1 (8192->1024) + ReLU: bf16 weight streamed K-tiled, N-tiled for v7x
    ft1 = matmul_bias_act(flat, kp['fw1t'], kp['fb1'], relu=True,
                          out_dtype=jnp.bfloat16, tn=512, tk=2048)
    # FC2 (+ReLU) and the padded dense head fused, M-tiled
    ft, out_p = fc_tail(ft1, kp['fw2t'], kp['fb2'], kp['dwp'], kp['dbp'])
    return ft, out_p[:, :NUM_CLASSES]


# ----------------------------------------------------------------------------
# Pure-JAX reference (mirrors the kernels' bf16 MXU operands, f32 math)
# ----------------------------------------------------------------------------
def _pool_nchw(x):
    B, C, H, W = x.shape
    return x.reshape(B, C, H // 2, 2, W // 2, 2).max(axis=(3, 5))


def _rb(x):
    """Round-trip through bf16 (the kernels feed bf16 operands to the MXU)."""
    return x.astype(jnp.bfloat16).astype(jnp.float32)


def ref_forward(x_nchw, params):
    (w1, b1, w2, b2, fw1, fb1, fw2, fb2, dw, db) = params
    dn = ('NCHW', 'OIHW', 'NCHW')
    hp = lax.Precision.HIGHEST
    y = lax.conv_general_dilated(_rb(x_nchw), _rb(w1), (1, 1), ((2, 2), (2, 2)),
                                 dimension_numbers=dn, precision=hp)
    y = _pool_nchw(jnp.maximum(y + b1[None, :, None, None], 0.0))
    y = lax.conv_general_dilated(_rb(y), _rb(w2), (1, 1), ((2, 2), (2, 2)),
                                 dimension_numbers=dn, precision=hp)
    y = _pool_nchw(jnp.maximum(y + b2[None, :, None, None], 0.0))
    flat = _rb(y.reshape(y.shape[0], -1))
    ft1 = jnp.maximum(jnp.dot(flat, _rb(fw1).T, precision=hp) + fb1, 0.0)
    ft = jnp.maximum(jnp.dot(_rb(ft1), _rb(fw2).T, precision=hp) + fb2, 0.0)
    out = jnp.dot(_rb(ft), _rb(dw).T, precision=hp) + db
    return ft, out


if __name__ == "__main__":
    key = jax.random.PRNGKey(0)
    ks = jax.random.split(key, 11)
    B = 2
    # Input implied by the module: 32x32, 1 channel (view(-1, 8*8*128) after two pools)
    x = jax.random.normal(ks[0], (B, 1, 32, 32), jnp.float32)

    def init(k, shape, fan_in):
        return (jax.random.normal(k, shape, jnp.float32)
                / jnp.sqrt(jnp.float32(fan_in)))

    w1 = init(ks[1], (64, 1, 5, 5), 5 * 5 * 1)
    b1 = init(ks[2], (64,), 5 * 5 * 1)
    w2 = init(ks[3], (128, 64, 5, 5), 5 * 5 * 64)
    b2 = init(ks[4], (128,), 5 * 5 * 64)
    fw1 = init(ks[5], (1024, 128 * 8 * 8), 128 * 8 * 8)
    fb1 = init(ks[6], (1024,), 128 * 8 * 8)
    fw2 = init(ks[7], (64, 1024), 1024)
    fb2 = init(ks[8], (64,), 1024)
    dw = init(ks[9], (2, 64), 64)
    db = init(ks[10], (2,), 64)
    params = (w1, b1, w2, b2, fw1, fb1, fw2, fb2, dw, db)

    # One-time prep (bf16 / permuted / padded kernel-layout weights).
    kp = jax.tree.map(jax.device_put, prepare_params(params))

    ft, out = jax.jit(lenet_forward)(x, kp)
    jax.block_until_ready((ft, out))
    assert ft.shape == (B, 64) and out.shape == (B, 2)

    # Tolerance accounts for occasional 1-ulp bf16 rounding ties of
    # intermediate activations (structural bugs would be O(0.1-1)).
    ft_ref, out_ref = ref_forward(x, params)
    assert jnp.allclose(ft, ft_ref, rtol=1e-2, atol=1e-2), "ft mismatch"
    assert jnp.allclose(out, out_ref, rtol=1e-2, atol=1e-2), "out mismatch"

    print("KERNEL_OK")
</pallas_src>

<mosaic_0001>
module attributes {stable_mosaic.version = 11 : i64} {
  func.func @_conv1_kernel(%arg0: i32, %arg1: memref<1x4x256x32xbf16, #tpu.memory_space<vmem>>, %arg2: memref<32x64xbf16, #tpu.memory_space<vmem>>, %arg3: memref<1x64xf32, #tpu.memory_space<vmem>>, %arg4: memref<1x256x64xf32, #tpu.memory_space<vmem>>) attributes {dimension_semantics = [#tpu.dimension_semantics<parallel>], iteration_bounds = array<i64: 2>, scalar_prefetch = 0 : i64, scratch_operands = 0 : i64, tpu.core_type = #tpu.core_type<tc>, window_params = [{transform_indices = @transform_0, window_bounds = array<i64: 1, 4, 256, 32>}, {pipeline_mode = #tpu.pipeline_mode<synchronous>, transform_indices = @transform_1, window_bounds = array<i64: 32, 64>}, {pipeline_mode = #tpu.pipeline_mode<synchronous>, transform_indices = @transform_2, window_bounds = array<i64: 1, 64>}, {transform_indices = @transform_3, window_bounds = array<i64: 1, 256, 64>}]} {
    %c0 = arith.constant 0 : index
    %c0_0 = arith.constant 0 : index
    %0 = vector.load %arg2[%c0, %c0_0] : memref<32x64xbf16, #tpu.memory_space<vmem>>, vector<32x64xbf16>
    %c0_1 = arith.constant 0 : index
    %c0_2 = arith.constant 0 : index
    %c0_3 = arith.constant 0 : index
    %c0_4 = arith.constant 0 : index
    %1 = vector.load %arg1[%c0_1, %c0_2, %c0_3, %c0_4] : memref<1x4x256x32xbf16, #tpu.memory_space<vmem>>, vector<1x1x256x32xbf16>
    %2 = vector.shape_cast %1 : vector<1x1x256x32xbf16> to vector<256x32xbf16>
    %cst = arith.constant dense<0.000000e+00> : vector<256x64xf32>
    %3 = tpu.matmul %2, %0, %cst {dimension_numbers = #tpu.dot_dimension_numbers<[1], [0], [0], [1], [0, 0, 1, 1], [], []>} : vector<256x32xbf16>, vector<32x64xbf16>, vector<256x64xf32> -> vector<256x64xf32>
    %c0_5 = arith.constant 0 : index
    %c1 = arith.constant 1 : index
    %c0_6 = arith.constant 0 : index
    %c0_7 = arith.constant 0 : index
    %4 = vector.load %arg1[%c0_5, %c1, %c0_6, %c0_7] : memref<1x4x256x32xbf16, #tpu.memory_space<vmem>>, vector<1x1x256x32xbf16>
    %5 = vector.shape_cast %4 : vector<1x1x256x32xbf16> to vector<256x32xbf16>
    %cst_8 = arith.constant dense<0.000000e+00> : vector<256x64xf32>
    %6 = tpu.matmul %5, %0, %cst_8 {dimension_numbers = #tpu.dot_dimension_numbers<[1], [0], [0], [1], [0, 0, 1, 1], [], []>} : vector<256x32xbf16>, vector<32x64xbf16>, vector<256x64xf32> -> vector<256x64xf32>
    %7 = arith.maximumf %3, %6 : vector<256x64xf32>
    %c0_9 = arith.constant 0 : index
    %c2 = arith.constant 2 : index
    %c0_10 = arith.constant 0 : index
    %c0_11 = arith.constant 0 : index
    %8 = vector.load %arg1[%c0_9, %c2, %c0_10, %c0_11] : memref<1x4x256x32xbf16, #tpu.memory_space<vmem>>, vector<1x1x256x32xbf16>
    %9 = vector.shape_cast %8 : vector<1x1x256x32xbf16> to vector<256x32xbf16>
    %cst_12 = arith.constant dense<0.000000e+00> : vector<256x64xf32>
    %10 = tpu.matmul %9, %0, %cst_12 {dimension_numbers = #tpu.dot_dimension_numbers<[1], [0], [0], [1], [0, 0, 1, 1], [], []>} : vector<256x32xbf16>, vector<32x64xbf16>, vector<256x64xf32> -> vector<256x64xf32>
    %11 = arith.maximumf %7, %10 : vector<256x64xf32>
    %c0_13 = arith.constant 0 : index
    %c3 = arith.constant 3 : index
    %c0_14 = arith.constant 0 : index
    %c0_15 = arith.constant 0 : index
    %12 = vector.load %arg1[%c0_13, %c3, %c0_14, %c0_15] : memref<1x4x256x32xbf16, #tpu.memory_space<vmem>>, vector<1x1x256x32xbf16>
    %13 = vector.shape_cast %12 : vector<1x1x256x32xbf16> to vector<256x32xbf16>
    %cst_16 = arith.constant dense<0.000000e+00> : vector<256x64xf32>
    %14 = tpu.matmul %13, %0, %cst_16 {dimension_numbers = #tpu.dot_dimension_numbers<[1], [0], [0], [1], [0, 0, 1, 1], [], []>} : vector<256x32xbf16>, vector<32x64xbf16>, vector<256x64xf32> -> vector<256x64xf32>
    %15 = arith.maximumf %11, %14 : vector<256x64xf32>
    %c0_17 = arith.constant 0 : index
    %c0_18 = arith.constant 0 : index
    %16 = vector.load %arg3[%c0_17, %c0_18] : memref<1x64xf32, #tpu.memory_space<vmem>>, vector<1x64xf32>
    %17 = vector.broadcast %16 : vector<1x64xf32> to vector<256x64xf32>
    %18 = arith.addf %15, %17 : vector<256x64xf32>
    %cst_19 = arith.constant 0.000000e+00 : f32
    %19 = vector.broadcast %cst_19 : f32 to vector<256x64xf32>
    %20 = arith.maximumf %18, %19 : vector<256x64xf32>
    %c0_20 = arith.constant 0 : index
    %c0_21 = arith.constant 0 : index
    %c0_22 = arith.constant 0 : index
    %21 = vector.load %arg4[%c0_20, %c0_21, %c0_22] : memref<1x256x64xf32, #tpu.memory_space<vmem>>, vector<1x256x64xf32>
    %22 = vector.shape_cast %21 : vector<1x256x64xf32> to vector<256x64xf32>
    %23 = vector.shape_cast %20 : vector<256x64xf32> to vector<1x256x64xf32>
    tpu.vector_store %arg4[%c0_20, %c0_21, %c0_22], %23 {strides = array<i32>} : memref<1x256x64xf32, #tpu.memory_space<vmem>>, vector<1x256x64xf32>,
    return
  }
  func.func @transform_0(%arg0: i32) -> (i32, i32, i32, i32) {
    %c0_i32 = arith.constant 0 : i32
    %c0_i32_0 = arith.constant 0 : i32
    %c0_i32_1 = arith.constant 0 : i32
    %c0_i32_2 = arith.constant 0 : i32
    return %arg0, %c0_i32, %c0_i32_0, %c0_i32_1 : i32, i32, i32, i32
  }
  func.func @transform_1(%arg0: i32) -> (i32, i32) {
    %c0_i32 = arith.constant 0 : i32
    %c0_i32_0 = arith.constant 0 : i32
    %c0_i32_1 = arith.constant 0 : i32
    return %c0_i32, %c0_i32_0 : i32, i32
  }
  func.func @transform_2(%arg0: i32) -> (i32, i32) {
    %c0_i32 = arith.constant 0 : i32
    %c0_i32_0 = arith.constant 0 : i32
    %c0_i32_1 = arith.constant 0 : i32
    return %c0_i32, %c0_i32_0 : i32, i32
  }
  func.func @transform_3(%arg0: i32) -> (i32, i32, i32) {
    %c0_i32 = arith.constant 0 : i32
    %c0_i32_0 = arith.constant 0 : i32
    %c0_i32_1 = arith.constant 0 : i32
    return %arg0, %c0_i32, %c0_i32_0 : i32, i32, i32
  }
}

module attributes {stable_mosaic.version = 11 : i64} {
  func.func @_conv2_kernel(%arg0: i32, %arg1: memref<1x2x2x10x10x64xf32, #tpu.memory_space<vmem>>, %arg2: memref<25x64x128xbf16, #tpu.memory_space<vmem>>, %arg3: memref<1x128xf32, #tpu.memory_space<vmem>>, %arg4: memref<1x64x128xbf16, #tpu.memory_space<vmem>>, %arg5: memref<256x128xf32, #tpu.memory_space<vmem>>) attributes {dimension_semantics = [#tpu.dimension_semantics<parallel>], iteration_bounds = array<i64: 2>, scalar_prefetch = 0 : i64, scratch_operands = 1 : i64, tpu.core_type = #tpu.core_type<tc>, window_params = [{transform_indices = @transform_0, window_bounds = array<i64: 1, 2, 2, 10, 10, 64>}, {pipeline_mode = #tpu.pipeline_mode<synchronous>, transform_indices = @transform_1, window_bounds = array<i64: 25, 64, 128>}, {pipeline_mode = #tpu.pipeline_mode<synchronous>, transform_indices = @transform_2, window_bounds = array<i64: 1, 128>}, {transform_indices = @transform_3, window_bounds = array<i64: 1, 64, 128>}]} {
    %c0 = arith.constant 0 : index
    %c0_0 = arith.constant 0 : index
    %c0_1 = arith.constant 0 : index
    %c0_2 = arith.constant 0 : index
    %c0_3 = arith.constant 0 : index
    %c0_4 = arith.constant 0 : index
    %0 = vector.load %arg1[%c0, %c0_0, %c0_1, %c0_2, %c0_3, %c0_4] : memref<1x2x2x10x10x64xf32, #tpu.memory_space<vmem>>, vector<1x1x1x8x8x64xf32>
    %1 = vector.shape_cast %0 : vector<1x1x1x8x8x64xf32> to vector<8x8x64xf32>
    %2 = vector.shape_cast %1 : vector<8x8x64xf32> to vector<64x64xf32>
    %c0_5 = arith.constant 0 : index
    %c0_6 = arith.constant 0 : index
    %c1 = arith.constant 1 : index
    %c0_7 = arith.constant 0 : index
    %c0_8 = arith.constant 0 : index
    %c0_9 = arith.constant 0 : index
    %3 = vector.load %arg1[%c0_5, %c0_6, %c1, %c0_7, %c0_8, %c0_9] : memref<1x2x2x10x10x64xf32, #tpu.memory_space<vmem>>, vector<1x1x1x8x8x64xf32>
    %4 = vector.shape_cast %3 : vector<1x1x1x8x8x64xf32> to vector<8x8x64xf32>
    %5 = vector.shape_cast %4 : vector<8x8x64xf32> to vector<64x64xf32>
    %c0_10 = arith.constant 0 : index
    %c1_11 = arith.constant 1 : index
    %c0_12 = arith.constant 0 : index
    %c0_13 = arith.constant 0 : index
    %c0_14 = arith.constant 0 : index
    %c0_15 = arith.constant 0 : index
    %6 = vector.load %arg1[%c0_10, %c1_11, %c0_12, %c0_13, %c0_14, %c0_15] : memref<1x2x2x10x10x64xf32, #tpu.memory_space<vmem>>, vector<1x1x1x8x8x64xf32>
    %7 = vector.shape_cast %6 : vector<1x1x1x8x8x64xf32> to vector<8x8x64xf32>
    %8 = vector.shape_cast %7 : vector<8x8x64xf32> to vector<64x64xf32>
    %c0_16 = arith.constant 0 : index
    %c1_17 = arith.constant 1 : index
    %c1_18 = arith.constant 1 : index
    %c0_19 = arith.constant 0 : index
    %c0_20 = arith.constant 0 : index
    %c0_21 = arith.constant 0 : index
    %9 = vector.load %arg1[%c0_16, %c1_17, %c1_18, %c0_19, %c0_20, %c0_21] : memref<1x2x2x10x10x64xf32, #tpu.memory_space<vmem>>, vector<1x1x1x8x8x64xf32>
    %10 = vector.shape_cast %9 : vector<1x1x1x8x8x64xf32> to vector<8x8x64xf32>
    %11 = vector.shape_cast %10 : vector<8x8x64xf32> to vector<64x64xf32>
    %12 = tpu.concatenate %2, %5, %8, %11 in 0 : vector<64x64xf32>, vector<64x64xf32>, vector<64x64xf32>, vector<64x64xf32> -> vector<256x64xf32>
    %13 = arith.truncf %12 : vector<256x64xf32> to vector<256x64xbf16>
    %c0_22 = arith.constant 0 : index
    %c0_23 = arith.constant 0 : index
    %c0_24 = arith.constant 0 : index
    %14 = vector.load %arg2[%c0_22, %c0_23, %c0_24] : memref<25x64x128xbf16, #tpu.memory_space<vmem>>, vector<1x64x128xbf16>
    %15 = vector.shape_cast %14 : vector<1x64x128xbf16> to vector<64x128xbf16>
    %cst = arith.constant dense<0.000000e+00> : vector<256x128xf32>
    %16 = tpu.matmul %13, %15, %cst {dimension_numbers = #tpu.dot_dimension_numbers<[1], [0], [0], [1], [0, 0, 1, 1], [], []>} : vector<256x64xbf16>, vector<64x128xbf16>, vector<256x128xf32> -> vector<256x128xf32>
    %c0_25 = arith.constant 0 : index
    %c0_26 = arith.constant 0 : index
    %17 = vector.load %arg5[%c0_25, %c0_26] : memref<256x128xf32, #tpu.memory_space<vmem>>, vector<256x128xf32>
    tpu.vector_store %arg5[%c0_25, %c0_26], %16 {strides = array<i32>} : memref<256x128xf32, #tpu.memory_space<vmem>>, vector<256x128xf32>,
    %c0_27 = arith.constant 0 : index
    %c0_28 = arith.constant 0 : index
    %c1_29 = arith.constant 1 : index
    %c0_30 = arith.constant 0 : index
    %c0_31 = arith.constant 0 : index
    %c0_32 = arith.constant 0 : index
    %18 = vector.load %arg1[%c0_27, %c0_28, %c1_29, %c0_30, %c0_31, %c0_32] : memref<1x2x2x10x10x64xf32, #tpu.memory_space<vmem>>, vector<1x1x1x8x8x64xf32>
    %19 = vector.shape_cast %18 : vector<1x1x1x8x8x64xf32> to vector<8x8x64xf32>
    %20 = vector.shape_cast %19 : vector<8x8x64xf32> to vector<64x64xf32>
    %c0_33 = arith.constant 0 : index
    %c0_34 = arith.constant 0 : index
    %c0_35 = arith.constant 0 : index
    %c0_36 = arith.constant 0 : index
    %c1_37 = arith.constant 1 : index
    %c0_38 = arith.constant 0 : index
    %21 = vector.load %arg1[%c0_33, %c0_34, %c0_35, %c0_36, %c1_37, %c0_38] : memref<1x2x2x10x10x64xf32, #tpu.memory_space<vmem>>, vector<1x1x1x8x8x64xf32>
    %22 = vector.shape_cast %21 : vector<1x1x1x8x8x64xf32> to vector<8x8x64xf32>
    %23 = vector.shape_cast %22 : vector<8x8x64xf32> to vector<64x64xf32>
    %c0_39 = arith.constant 0 : index
    %c1_40 = arith.constant 1 : index
    %c1_41 = arith.constant 1 : index
    %c0_42 = arith.constant 0 : index
    %c0_43 = arith.constant 0 : index
    %c0_44 = arith.constant 0 : index
    %24 = vector.load %arg1[%c0_39, %c1_40, %c1_41, %c0_42, %c0_43, %c0_44] : memref<1x2x2x10x10x64xf32, #tpu.memory_space<vmem>>, vector<1x1x1x8x8x64xf32>
    %25 = vector.shape_cast %24 : vector<1x1x1x8x8x64xf32> to vector<8x8x64xf32>
    %26 = vector.shape_cast %25 : vector<8x8x64xf32> to vector<64x64xf32>
    %c0_45 = arith.constant 0 : index
    %c1_46 = arith.constant 1 : index
    %c0_47 = arith.constant 0 : index
    %c0_48 = arith.constant 0 : index
    %c1_49 = arith.constant 1 : index
    %c0_50 = arith.constant 0 : index
    %27 = vector.load %arg1[%c0_45, %c1_46, %c0_47, %c0_48, %c1_49, %c0_50] : memref<1x2x2x10x10x64xf32, #tpu.memory_space<vmem>>, vector<1x1x1x8x8x64xf32>
    %28 = vector.shape_cast %27 : vector<1x1x1x8x8x64xf32> to vector<8x8x64xf32>
    %29 = vector.shape_cast %28 : vector<8x8x64xf32> to vector<64x64xf32>
    %30 = tpu.concatenate %20, %23, %26, %29 in 0 : vector<64x64xf32>, vector<64x64xf32>, vector<64x64xf32>, vector<64x64xf32> -> vector<256x64xf32>
    %31 = arith.truncf %30 : vector<256x64xf32> to vector<256x64xbf16>
    %c1_51 = arith.constant 1 : index
    %c0_52 = arith.constant 0 : index
    %c0_53 = arith.constant 0 : index
    %32 = vector.load %arg2[%c1_51, %c0_52, %c0_53] : memref<25x64x128xbf16, #tpu.memory_space<vmem>>, vector<1x64x128xbf16>
    %33 = vector.shape_cast %32 : vector<1x64x128xbf16> to vector<64x128xbf16>
    %cst_54 = arith.constant dense<0.000000e+00> : vector<256x128xf32>
    %34 = tpu.matmul %31, %33, %cst_54 {dimension_numbers = #tpu.dot_dimension_numbers<[1], [0], [0], [1], [0, 0, 1, 1], [], []>} : vector<256x64xbf16>, vector<64x128xbf16>, vector<256x128xf32> -> vector<256x128xf32>
    %c0_55 = arith.constant 0 : index
    %c0_56 = arith.constant 0 : index
    %35 = vector.load %arg5[%c0_55, %c0_56] : memref<256x128xf32, #tpu.memory_space<vmem>>, vector<256x128xf32>
    %36 = arith.addf %35, %34 : vector<256x128xf32>
    %c0_57 = arith.constant 0 : index
    %c0_58 = arith.constant 0 : index
    %37 = vector.load %arg5[%c0_57, %c0_58] : memref<256x128xf32, #tpu.memory_space<vmem>>, vector<256x128xf32>
    tpu.vector_store %arg5[%c0_57, %c0_58], %36 {strides = array<i32>} : memref<256x128xf32, #tpu.memory_space<vmem>>, vector<256x128xf32>,
    %c0_59 = arith.constant 0 : index
    %c0_60 = arith.constant 0 : index
    %c0_61 = arith.constant 0 : index
    %c0_62 = arith.constant 0 : index
    %c1_63 = arith.constant 1 : index
    %c0_64 = arith.constant 0 : index
    %38 = vector.load %arg1[%c0_59, %c0_60, %c0_61, %c0_62, %c1_63, %c0_64] : memref<1x2x2x10x10x64xf32, #tpu.memory_space<vmem>>, vector<1x1x1x8x8x64xf32>
    %39 = vector.shape_cast %38 : vector<1x1x1x8x8x64xf32> to vector<8x8x64xf32>
    %40 = vector.shape_cast %39 : vector<8x8x64xf32> to vector<64x64xf32>
    %c0_65 = arith.constant 0 : index
    %c0_66 = arith.constant 0 : index
    %c1_67 = arith.constant 1 : index
    %c0_68 = arith.constant 0 : index
    %c1_69 = arith.constant 1 : index
    %c0_70 = arith.constant 0 : index
    %41 = vector.load %arg1[%c0_65, %c0_66, %c1_67, %c0_68, %c1_69, %c0_70] : memref<1x2x2x10x10x64xf32, #tpu.memory_space<vmem>>, vector<1x1x1x8x8x64xf32>
    %42 = vector.shape_cast %41 : vector<1x1x1x8x8x64xf32> to vector<8x8x64xf32>
    %43 = vector.shape_cast %42 : vector<8x8x64xf32> to vector<64x64xf32>
    %c0_71 = arith.constant 0 : index
    %c1_72 = arith.constant 1 : index
    %c0_73 = arith.constant 0 : index
    %c0_74 = arith.constant 0 : index
    %c1_75 = arith.constant 1 : index
    %c0_76 = arith.constant 0 : index
    %44 = vector.load %arg1[%c0_71, %c1_72, %c0_73, %c0_74, %c1_75, %c0_76] : memref<1x2x2x10x10x64xf32, #tpu.memory_space<vmem>>, vector<1x1x1x8x8x64xf32>
    %45 = vector.shape_cast %44 : vector<1x1x1x8x8x64xf32> to vector<8x8x64xf32>
    %46 = vector.shape_cast %45 : vector<8x8x64xf32> to vector<64x64xf32>
    %c0_77 = arith.constant 0 : index
    %c1_78 = arith.constant 1 : index
    %c1_79 = arith.constant 1 : index
    %c0_80 = arith.constant 0 : index
    %c1_81 = arith.constant 1 : index
    %c0_82 = arith.constant 0 : index
    %47 = vector.load %arg1[%c0_77, %c1_78, %c1_79, %c0_80, %c1_81, %c0_82] : memref<1x2x2x10x10x64xf32, #tpu.memory_space<vmem>>, vector<1x1x1x8x8x64xf32>
    %48 = vector.shape_cast %47 : vector<1x1x1x8x8x64xf32> to vector<8x8x64xf32>
    %49 = vector.shape_cast %48 : vector<8x8x64xf32> to vector<64x64xf32>
    %50 = tpu.concatenate %40, %43, %46, %49 in 0 : vector<64x64xf32>, vector<64x64xf32>, vector<64x64xf32>, vector<64x64xf32> -> vector<256x64xf32>
    %51 = arith.truncf %50 : vector<256x64xf32> to vector<256x64xbf16>
    %c2 = arith.constant 2 : index
    %c0_83 = arith.constant 0 : index
    %c0_84 = arith.constant 0 : index
    %52 = vector.load %arg2[%c2, %c0_83, %c0_84] : memref<25x64x128xbf16, #tpu.memory_space<vmem>>, vector<1x64x128xbf16>
    %53 = vector.shape_cast %52 : vector<1x64x128xbf16> to vector<64x128xbf16>
    %cst_85 = arith.constant dense<0.000000e+00> : vector<256x128xf32>
    %54 = tpu.matmul %51, %53, %cst_85 {dimension_numbers = #tpu.dot_dimension_numbers<[1], [0], [0], [1], [0, 0, 1, 1], [], []>} : vector<256x64xbf16>, vector<64x128xbf16>, vector<256x128xf32> -> vector<256x128xf32>
    %c0_86 = arith.constant 0 : index
    %c0_87 = arith.constant 0 : index
    %55 = vector.load %arg5[%c0_86, %c0_87] : memref<256x128xf32, #tpu.memory_space<vmem>>, vector<256x128xf32>
    %56 = arith.addf %55, %54 : vector<256x128xf32>
    %c0_88 = arith.constant 0 : index
    %c0_89 = arith.constant 0 : index
    %57 = vector.load %arg5[%c0_88, %c0_89] : memref<256x128xf32, #tpu.memory_space<vmem>>, vector<256x128xf32>
    tpu.vector_store %arg5[%c0_88, %c0_89], %56 {strides = array<i32>} : memref<256x128xf32, #tpu.memory_space<vmem>>, vector<256x128xf32>,
    %c0_90 = arith.constant 0 : index
    %c0_91 = arith.constant 0 : index
    %c1_92 = arith.constant 1 : index
    %c0_93 = arith.constant 0 : index
    %c1_94 = arith.constant 1 : index
    %c0_95 = arith.constant 0 : index
    %58 = vector.load %arg1[%c0_90, %c0_91, %c1_92, %c0_93, %c1_94, %c0_95] : memref<1x2x2x10x10x64xf32, #tpu.memory_space<vmem>>, vector<1x1x1x8x8x64xf32>
    %59 = vector.shape_cast %58 : vector<1x1x1x8x8x64xf32> to vector<8x8x64xf32>
    %60 = vector.shape_cast %59 : vector<8x8x64xf32> to vector<64x64xf32>
    %c0_96 = arith.constant 0 : index
    %c0_97 = arith.constant 0 : index
    %c0_98 = arith.constant 0 : index
    %c0_99 = arith.constant 0 : index
    %c2_100 = arith.constant 2 : index
    %c0_101 = arith.constant 0 : index
    %61 = vector.load %arg1[%c0_96, %c0_97, %c0_98, %c0_99, %c2_100, %c0_101] : memref<1x2x2x10x10x64xf32, #tpu.memory_space<vmem>>, vector<1x1x1x8x8x64xf32>
    %62 = vector.shape_cast %61 : vector<1x1x1x8x8x64xf32> to vector<8x8x64xf32>
    %63 = vector.shape_cast %62 : vector<8x8x64xf32> to vector<64x64xf32>
    %c0_102 = arith.constant 0 : index
    %c1_103 = arith.constant 1 : index
    %c1_104 = arith.constant 1 : index
    %c0_105 = arith.constant 0 : index
    %c1_106 = arith.constant 1 : index
    %c0_107 = arith.constant 0 : index
    %64 = vector.load %arg1[%c0_102, %c1_103, %c1_104, %c0_105, %c1_106, %c0_107] : memref<1x2x2x10x10x64xf32, #tpu.memory_space<vmem>>, vector<1x1x1x8x8x64xf32>
    %65 = vector.shape_cast %64 : vector<1x1x1x8x8x64xf32> to vector<8x8x64xf32>
    %66 = vector.shape_cast %65 : vector<8x8x64xf32> to vector<64x64xf32>
    %c0_108 = arith.constant 0 : index
    %c1_109 = arith.constant 1 : index
    %c0_110 = arith.constant 0 : index
    %c0_111 = arith.constant 0 : index
    %c2_112 = arith.constant 2 : index
    %c0_113 = arith.constant 0 : index
    %67 = vector.load %arg1[%c0_108, %c1_109, %c0_110, %c0_111, %c2_112, %c0_113] : memref<1x2x2x10x10x64xf32, #tpu.memory_space<vmem>>, vector<1x1x1x8x8x64xf32>
    %68 = vector.shape_cast %67 : vector<1x1x1x8x8x64xf32> to vector<8x8x64xf32>
    %69 = vector.shape_cast %68 : vector<8x8x64xf32> to vector<64x64xf32>
    %70 = tpu.concatenate %60, %63, %66, %69 in 0 : vector<64x64xf32>, vector<64x64xf32>, vector<64x64xf32>, vector<64x64xf32> -> vector<256x64xf32>
    %71 = arith.truncf %70 : vector<256x64xf32> to vector<256x64xbf16>
    %c3 = arith.constant 3 : index
    %c0_114 = arith.constant 0 : index
    %c0_115 = arith.constant 0 : index
    %72 = vector.load %arg2[%c3, %c0_114, %c0_115] : memref<25x64x128xbf16, #tpu.memory_space<vmem>>, vector<1x64x128xbf16>
    %73 = vector.shape_cast %72 : vector<1x64x128xbf16> to vector<64x128xbf16>
    %cst_116 = arith.constant dense<0.000000e+00> : vector<256x128xf32>
    %74 = tpu.matmul %71, %73, %cst_116 {dimension_numbers = #tpu.dot_dimension_numbers<[1], [0], [0], [1], [0, 0, 1, 1], [], []>} : vector<256x64xbf16>, vector<64x128xbf16>, vector<256x128xf32> -> vector<256x128xf32>
    %c0_117 = arith.constant 0 : index
    %c0_118 = arith.constant 0 : index
    %75 = vector.load %arg5[%c0_117, %c0_118] : memref<256x128xf32, #tpu.memory_space<vmem>>, vector<256x128xf32>
    %76 = arith.addf %75, %74 : vector<256x128xf32>
    %c0_119 = arith.constant 0 : index
    %c0_120 = arith.constant 0 : index
    %77 = vector.load %arg5[%c0_119, %c0_120] : memref<256x128xf32, #tpu.memory_space<vmem>>, vector<256x128xf32>
    tpu.vector_store %arg5[%c0_119, %c0_120], %76 {strides = array<i32>} : memref<256x128xf32, #tpu.memory_space<vmem>>, vector<256x128xf32>,
    %c0_121 = arith.constant 0 : index
    %c0_122 = arith.constant 0 : index
    %c0_123 = arith.constant 0 : index
    %c0_124 = arith.constant 0 : index
    %c2_125 = arith.constant 2 : index
    %c0_126 = arith.constant 0 : index
    %78 = vector.load %arg1[%c0_121, %c0_122, %c0_123, %c0_124, %c2_125, %c0_126] : memref<1x2x2x10x10x64xf32, #tpu.memory_space<vmem>>, vector<1x1x1x8x8x64xf32>
    %79 = vector.shape_cast %78 : vector<1x1x1x8x8x64xf32> to vector<8x8x64xf32>
    %80 = vector.shape_cast %79 : vector<8x8x64xf32> to vector<64x64xf32>
    %c0_127 = arith.constant 0 : index
    %c0_128 = arith.constant 0 : index
    %c1_129 = arith.constant 1 : index
    %c0_130 = arith.constant 0 : index
    %c2_131 = arith.constant 2 : index
    %c0_132 = arith.constant 0 : index
    %81 = vector.load %arg1[%c0_127, %c0_128, %c1_129, %c0_130, %c2_131, %c0_132] : memref<1x2x2x10x10x64xf32, #tpu.memory_space<vmem>>, vector<1x1x1x8x8x64xf32>
    %82 = vector.shape_cast %81 : vector<1x1x1x8x8x64xf32> to vector<8x8x64xf32>
    %83 = vector.shape_cast %82 : vector<8x8x64xf32> to vector<64x64xf32>
    %c0_133 = arith.constant 0 : index
    %c1_134 = arith.constant 1 : index
    %c0_135 = arith.constant 0 : index
    %c0_136 = arith.constant 0 : index
    %c2_137 = arith.constant 2 : index
    %c0_138 = arith.constant 0 : index
    %84 = vector.load %arg1[%c0_133, %c1_134, %c0_135, %c0_136, %c2_137, %c0_138] : memref<1x2x2x10x10x64xf32, #tpu.memory_space<vmem>>, vector<1x1x1x8x8x64xf32>
    %85 = vector.shape_cast %84 : vector<1x1x1x8x8x64xf32> to vector<8x8x64xf32>
    %86 = vector.shape_cast %85 : vector<8x8x64xf32> to vector<64x64xf32>
    %c0_139 = arith.constant 0 : index
    %c1_140 = arith.constant 1 : index
    %c1_141 = arith.constant 1 : index
    %c0_142 = arith.constant 0 : index
    %c2_143 = arith.constant 2 : index
    %c0_144 = arith.constant 0 : index
    %87 = vector.load %arg1[%c0_139, %c1_140, %c1_141, %c0_142, %c2_143, %c0_144] : memref<1x2x2x10x10x64xf32, #tpu.memory_space<vmem>>, vector<1x1x1x8x8x64xf32>
    %88 = vector.shape_cast %87 : vector<1x1x1x8x8x64xf32> to vector<8x8x64xf32>
    %89 = vector.shape_cast %88 : vector<8x8x64xf32> to vector<64x64xf32>
    %90 = tpu.concatenate %80, %83, %86, %89 in 0 : vector<64x64xf32>, vector<64x64xf32>, vector<64x64xf32>, vector<64x64xf32> -> vector<256x64xf32>
    %91 = arith.truncf %90 : vector<256x64xf32> to vector<256x64xbf16>
    %c4 = arith.constant 4 : index
    %c0_145 = arith.constant 0 : index
    %c0_146 = arith.constant 0 : index
    %92 = vector.load %arg2[%c4, %c0_145, %c0_146] : memref<25x64x128xbf16, #tpu.memory_space<vmem>>, vector<1x64x128xbf16>
    %93 = vector.shape_cast %92 : vector<1x64x128xbf16> to vector<64x128xbf16>
    %cst_147 = arith.constant dense<0.000000e+00> : vector<256x128xf32>
    %94 = tpu.matmul %91, %93, %cst_147 {dimension_numbers = #tpu.dot_dimension_numbers<[1], [0], [0], [1], [0, 0, 1, 1], [], []>} : vector<256x64xbf16>, vector<64x128xbf16>, vector<256x128xf32> -> vector<256x128xf32>
    %c0_148 = arith.constant 0 : index
    %c0_149 = arith.constant 0 : index
    %95 = vector.load %arg5[%c0_148, %c0_149] : memref<256x128xf32, #tpu.memory_space<vmem>>, vector<256x128xf32>
    %96 = arith.addf %95, %94 : vector<256x128xf32>
    %c0_150 = arith.constant 0 : index
    %c0_151 = arith.constant 0 : index
    %97 = vector.load %arg5[%c0_150, %c0_151] : memref<256x128xf32, #tpu.memory_space<vmem>>, vector<256x128xf32>
    tpu.vector_store %arg5[%c0_150, %c0_151], %96 {strides = array<i32>} : memref<256x128xf32, #tpu.memory_space<vmem>>, vector<256x128xf32>,
    %c0_152 = arith.constant 0 : index
    %c1_153 = arith.constant 1 : index
    %c0_154 = arith.constant 0 : index
    %c0_155 = arith.constant 0 : index
    %c0_156 = arith.constant 0 : index
    %c0_157 = arith.constant 0 : index
    %98 = vector.load %arg1[%c0_152, %c1_153, %c0_154, %c0_155, %c0_156, %c0_157] : memref<1x2x2x10x10x64xf32, #tpu.memory_space<vmem>>, vector<1x1x1x8x8x64xf32>
    %99 = vector.shape_cast %98 : vector<1x1x1x8x8x64xf32> to vector<8x8x64xf32>
    %100 = vector.shape_cast %99 : vector<8x8x64xf32> to vector<64x64xf32>
    %c0_158 = arith.constant 0 : index
    %c1_159 = arith.constant 1 : index
    %c1_160 = arith.constant 1 : index
    %c0_161 = arith.constant 0 : index
    %c0_162 = arith.constant 0 : index
    %c0_163 = arith.constant 0 : index
    %101 = vector.load %arg1[%c0_158, %c1_159, %c1_160, %c0_161, %c0_162, %c0_163] : memref<1x2x2x10x10x64xf32, #tpu.memory_space<vmem>>, vector<1x1x1x8x8x64xf32>
    %102 = vector.shape_cast %101 : vector<1x1x1x8x8x64xf32> to vector<8x8x64xf32>
    %103 = vector.shape_cast %102 : vector<8x8x64xf32> to vector<64x64xf32>
    %c0_164 = arith.constant 0 : index
    %c0_165 = arith.constant 0 : index
    %c0_166 = arith.constant 0 : index
    %c1_167 = arith.constant 1 : index
    %c0_168 = arith.constant 0 : index
    %c0_169 = arith.constant 0 : index
    %104 = vector.load %arg1[%c0_164, %c0_165, %c0_166, %c1_167, %c0_168, %c0_169] : memref<1x2x2x10x10x64xf32, #tpu.memory_space<vmem>>, vector<1x1x1x8x8x64xf32>
    %105 = vector.shape_cast %104 : vector<1x1x1x8x8x64xf32> to vector<8x8x64xf32>
    %106 = vector.shape_cast %105 : vector<8x8x64xf32> to vector<64x64xf32>
    %c0_170 = arith.constant 0 : index
    %c0_171 = arith.constant 0 : index
    %c1_172 = arith.constant 1 : index
    %c1_173 = arith.constant 1 : index
    %c0_174 = arith.constant 0 : index
    %c0_175 = arith.constant 0 : index
    %107 = vector.load %arg1[%c0_170, %c0_171, %c1_172, %c1_173, %c0_174, %c0_175] : memref<1x2x2x10x10x64xf32, #tpu.memory_space<vmem>>, vector<1x1x1x8x8x64xf32>
    %108 = vector.shape_cast %107 : vector<1x1x1x8x8x64xf32> to vector<8x8x64xf32>
    %109 = vector.shape_cast %108 : vector<8x8x64xf32> to vector<64x64xf32>
    %110 = tpu.concatenate %100, %103, %106, %109 in 0 : vector<64x64xf32>, vector<64x64xf32>, vector<64x64xf32>, vector<64x64xf32> -> vector<256x64xf32>
    %111 = arith.truncf %110 : vector<256x64xf32> to vector<256x64xbf16>
    %c5 = arith.constant 5 : index
    %c0_176 = arith.constant 0 : index
    %c0_177 = arith.constant 0 : index
    %112 = vector.load %arg2[%c5, %c0_176, %c0_177] : memref<25x64x128xbf16, #tpu.memory_space<vmem>>, vector<1x64x128xbf16>
    %113 = vector.shape_cast %112 : vector<1x64x128xbf16> to vector<64x128xbf16>
    %cst_178 = arith.constant dense<0.000000e+00> : vector<256x128xf32>
    %114 = tpu.matmul %111, %113, %cst_178 {dimension_numbers = #tpu.dot_dimension_numbers<[1], [0], [0], [1], [0, 0, 1, 1], [], []>} : vector<256x64xbf16>, vector<64x128xbf16>, vector<256x128xf32> -> vector<256x128xf32>
    %c0_179 = arith.constant 0 : index
    %c0_180 = arith.constant 0 : index
    %115 = vector.load %arg5[%c0_179, %c0_180] : memref<256x128xf32, #tpu.memory_space<vmem>>, vector<256x128xf32>
    %116 = arith.addf %115, %114 : vector<256x128xf32>
    %c0_181 = arith.constant 0 : index
    %c0_182 = arith.constant 0 : index
    %117 = vector.load %arg5[%c0_181, %c0_182] : memref<256x128xf32, #tpu.memory_space<vmem>>, vector<256x128xf32>
    tpu.vector_store %arg5[%c0_181, %c0_182], %116 {strides = array<i32>} : memref<256x128xf32, #tpu.memory_space<vmem>>, vector<256x128xf32>,
    %c0_183 = arith.constant 0 : index
    %c1_184 = arith.constant 1 : index
    %c1_185 = arith.constant 1 : index
    %c0_186 = arith.constant 0 : index
    %c0_187 = arith.constant 0 : index
    %c0_188 = arith.constant 0 : index
    %118 = vector.load %arg1[%c0_183, %c1_184, %c1_185, %c0_186, %c0_187, %c0_188] : memref<1x2x2x10x10x64xf32, #tpu.memory_space<vmem>>, vector<1x1x1x8x8x64xf32>
    %119 = vector.shape_cast %118 : vector<1x1x1x8x8x64xf32> to vector<8x8x64xf32>
    %120 = vector.shape_cast %119 : vector<8x8x64xf32> to vector<64x64xf32>
    %c0_189 = arith.constant 0 : index
    %c1_190 = arith.constant 1 : index
    %c0_191 = arith.constant 0 : index
    %c0_192 = arith.constant 0 : index
    %c1_193 = arith.constant 1 : index
    %c0_194 = arith.constant 0 : index
    %121 = vector.load %arg1[%c0_189, %c1_190, %c0_191, %c0_192, %c1_193, %c0_194] : memref<1x2x2x10x10x64xf32, #tpu.memory_space<vmem>>, vector<1x1x1x8x8x64xf32>
    %122 = vector.shape_cast %121 : vector<1x1x1x8x8x64xf32> to vector<8x8x64xf32>
    %123 = vector.shape_cast %122 : vector<8x8x64xf32> to vector<64x64xf32>
    %c0_195 = arith.constant 0 : index
    %c0_196 = arith.constant 0 : index
    %c1_197 = arith.constant 1 : index
    %c1_198 = arith.constant 1 : index
    %c0_199 = arith.constant 0 : index
    %c0_200 = arith.constant 0 : index
    %124 = vector.load %arg1[%c0_195, %c0_196, %c1_197, %c1_198, %c0_199, %c0_200] : memref<1x2x2x10x10x64xf32, #tpu.memory_space<vmem>>, vector<1x1x1x8x8x64xf32>
    %125 = vector.shape_cast %124 : vector<1x1x1x8x8x64xf32> to vector<8x8x64xf32>
    %126 = vector.shape_cast %125 : vector<8x8x64xf32> to vector<64x64xf32>
    %c0_201 = arith.constant 0 : index
    %c0_202 = arith.constant 0 : index
    %c0_203 = arith.constant 0 : index
    %c1_204 = arith.constant 1 : index
    %c1_205 = arith.constant 1 : index
    %c0_206 = arith.constant 0 : index
    %127 = vector.load %arg1[%c0_201, %c0_202, %c0_203, %c1_204, %c1_205, %c0_206] : memref<1x2x2x10x10x64xf32, #tpu.memory_space<vmem>>, vector<1x1x1x8x8x64xf32>
    %128 = vector.shape_cast %127 : vector<1x1x1x8x8x64xf32> to vector<8x8x64xf32>
    %129 = vector.shape_cast %128 : vector<8x8x64xf32> to vector<64x64xf32>
    %130 = tpu.concatenate %120, %123, %126, %129 in 0 : vector<64x64xf32>, vector<64x64xf32>, vector<64x64xf32>, vector<64x64xf32> -> vector<256x64xf32>
    %131 = arith.truncf %130 : vector<256x64xf32> to vector<256x64xbf16>
    %c6 = arith.constant 6 : index
    %c0_207 = arith.constant 0 : index
    %c0_208 = arith.constant 0 : index
    %132 = vector.load %arg2[%c6, %c0_207, %c0_208] : memref<25x64x128xbf16, #tpu.memory_space<vmem>>, vector<1x64x128xbf16>
    %133 = vector.shape_cast %132 : vector<1x64x128xbf16> to vector<64x128xbf16>
    %cst_209 = arith.constant dense<0.000000e+00> : vector<256x128xf32>
    %134 = tpu.matmul %131, %133, %cst_209 {dimension_numbers = #tpu.dot_dimension_numbers<[1], [0], [0], [1], [0, 0, 1, 1], [], []>} : vector<256x64xbf16>, vector<64x128xbf16>, vector<256x128xf32> -> vector<256x128xf32>
    %c0_210 = arith.constant 0 : index
    %c0_211 = arith.constant 0 : index
    %135 = vector.load %arg5[%c0_210, %c0_211] : memref<256x128xf32, #tpu.memory_space<vmem>>, vector<256x128xf32>
    %136 = arith.addf %135, %134 : vector<256x128xf32>
    %c0_212 = arith.constant 0 : index
    %c0_213 = arith.constant 0 : index
    %137 = vector.load %arg5[%c0_212, %c0_213] : memref<256x128xf32, #tpu.memory_space<vmem>>, vector<256x128xf32>
    tpu.vector_store %arg5[%c0_212, %c0_213], %136 {strides = array<i32>} : memref<256x128xf32, #tpu.memory_space<vmem>>, vector<256x128xf32>,
    %c0_214 = arith.constant 0 : index
    %c1_215 = arith.constant 1 : index
    %c0_216 = arith.constant 0 : index
    %c0_217 = arith.constant 0 : index
    %c1_218 = arith.constant 1 : index
    %c0_219 = arith.constant 0 : index
    %138 = vector.load %arg1[%c0_214, %c1_215, %c0_216, %c0_217, %c1_218, %c0_219] : memref<1x2x2x10x10x64xf32, #tpu.memory_space<vmem>>, vector<1x1x1x8x8x64xf32>
    %139 = vector.shape_cast %138 : vector<1x1x1x8x8x64xf32> to vector<8x8x64xf32>
    %140 = vector.shape_cast %139 : vector<8x8x64xf32> to vector<64x64xf32>
    %c0_220 = arith.constant 0 : index
    %c1_221 = arith.constant 1 : index
    %c1_222 = arith.constant 1 : index
    %c0_223 = arith.constant 0 : index
    %c1_224 = arith.constant 1 : index
    %c0_225 = arith.constant 0 : index
    %141 = vector.load %arg1[%c0_220, %c1_221, %c1_222, %c0_223, %c1_224, %c0_225] : memref<1x2x2x10x10x64xf32, #tpu.memory_space<vmem>>, vector<1x1x1x8x8x64xf32>
    %142 = vector.shape_cast %141 : vector<1x1x1x8x8x64xf32> to vector<8x8x64xf32>
    %143 = vector.shape_cast %142 : vector<8x8x64xf32> to vector<64x64xf32>
    %c0_226 = arith.constant 0 : index
    %c0_227 = arith.constant 0 : index
    %c0_228 = arith.constant 0 : index
    %c1_229 = arith.constant 1 : index
    %c1_230 = arith.constant 1 : index
    %c0_231 = arith.constant 0 : index
    %144 = vector.load %arg1[%c0_226, %c0_227, %c0_228, %c1_229, %c1_230, %c0_231] : memref<1x2x2x10x10x64xf32, #tpu.memory_space<vmem>>, vector<1x1x1x8x8x64xf32>
    %145 = vector.shape_cast %144 : vector<1x1x1x8x8x64xf32> to vector<8x8x64xf32>
    %146 = vector.shape_cast %145 : vector<8x8x64xf32> to vector<64x64xf32>
    %c0_232 = arith.constant 0 : index
    %c0_233 = arith.constant 0 : index
    %c1_234 = arith.constant 1 : index
    %c1_235 = arith.constant 1 : index
    %c1_236 = arith.constant 1 : index
    %c0_237 = arith.constant 0 : index
    %147 = vector.load %arg1[%c0_232, %c0_233, %c1_234, %c1_235, %c1_236, %c0_237] : memref<1x2x2x10x10x64xf32, #tpu.memory_space<vmem>>, vector<1x1x1x8x8x64xf32>
    %148 = vector.shape_cast %147 : vector<1x1x1x8x8x64xf32> to vector<8x8x64xf32>
    %149 = vector.shape_cast %148 : vector<8x8x64xf32> to vector<64x64xf32>
    %150 = tpu.concatenate %140, %143, %146, %149 in 0 : vector<64x64xf32>, vector<64x64xf32>, vector<64x64xf32>, vector<64x64xf32> -> vector<256x64xf32>
    %151 = arith.truncf %150 : vector<256x64xf32> to vector<256x64xbf16>
    %c7 = arith.constant 7 : index
    %c0_238 = arith.constant 0 : index
    %c0_239 = arith.constant 0 : index
    %152 = vector.load %arg2[%c7, %c0_238, %c0_239] : memref<25x64x128xbf16, #tpu.memory_space<vmem>>, vector<1x64x128xbf16>
    %153 = vector.shape_cast %152 : vector<1x64x128xbf16> to vector<64x128xbf16>
    %cst_240 = arith.constant dense<0.000000e+00> : vector<256x128xf32>
    %154 = tpu.matmul %151, %153, %cst_240 {dimension_numbers = #tpu.dot_dimension_numbers<[1], [0], [0], [1], [0, 0, 1, 1], [], []>} : vector<256x64xbf16>, vector<64x128xbf16>, vector<256x128xf32> -> vector<256x128xf32>
    %c0_241 = arith.constant 0 : index
    %c0_242 = arith.constant 0 : index
    %155 = vector.load %arg5[%c0_241, %c0_242] : memref<256x128xf32, #tpu.memory_space<vmem>>, vector<256x128xf32>
    %156 = arith.addf %155, %154 : vector<256x128xf32>
    %c0_243 = arith.constant 0 : index
    %c0_244 = arith.constant 0 : index
    %157 = vector.load %arg5[%c0_243, %c0_244] : memref<256x128xf32, #tpu.memory_space<vmem>>, vector<256x128xf32>
    tpu.vector_store %arg5[%c0_243, %c0_244], %156 {strides = array<i32>} : memref<256x128xf32, #tpu.memory_space<vmem>>, vector<256x128xf32>,
    %c0_245 = arith.constant 0 : index
    %c1_246 = arith.constant 1 : index
    %c1_247 = arith.constant 1 : index
    %c0_248 = arith.constant 0 : index
    %c1_249 = arith.constant 1 : index
    %c0_250 = arith.constant 0 : index
    %158 = vector.load %arg1[%c0_245, %c1_246, %c1_247, %c0_248, %c1_249, %c0_250] : memref<1x2x2x10x10x64xf32, #tpu.memory_space<vmem>>, vector<1x1x1x8x8x64xf32>
    %159 = vector.shape_cast %158 : vector<1x1x1x8x8x64xf32> to vector<8x8x64xf32>
    %160 = vector.shape_cast %159 : vector<8x8x64xf32> to vector<64x64xf32>
    %c0_251 = arith.constant 0 : index
    %c1_252 = arith.constant 1 : index
    %c0_253 = arith.constant 0 : index
    %c0_254 = arith.constant 0 : index
    %c2_255 = arith.constant 2 : index
    %c0_256 = arith.constant 0 : index
    %161 = vector.load %arg1[%c0_251, %c1_252, %c0_253, %c0_254, %c2_255, %c0_256] : memref<1x2x2x10x10x64xf32, #tpu.memory_space<vmem>>, vector<1x1x1x8x8x64xf32>
    %162 = vector.shape_cast %161 : vector<1x1x1x8x8x64xf32> to vector<8x8x64xf32>
    %163 = vector.shape_cast %162 : vector<8x8x64xf32> to vector<64x64xf32>
    %c0_257 = arith.constant 0 : index
    %c0_258 = arith.constant 0 : index
    %c1_259 = arith.constant 1 : index
    %c1_260 = arith.constant 1 : index
    %c1_261 = arith.constant 1 : index
    %c0_262 = arith.constant 0 : index
    %164 = vector.load %arg1[%c0_257, %c0_258, %c1_259, %c1_260, %c1_261, %c0_262] : memref<1x2x2x10x10x64xf32, #tpu.memory_space<vmem>>, vector<1x1x1x8x8x64xf32>
    %165 = vector.shape_cast %164 : vector<1x1x1x8x8x64xf32> to vector<8x8x64xf32>
    %166 = vector.shape_cast %165 : vector<8x8x64xf32> to vector<64x64xf32>
    %c0_263 = arith.constant 0 : index
    %c0_264 = arith.constant 0 : index
    %c0_265 = arith.constant 0 : index
    %c1_266 = arith.constant 1 : index
    %c2_267 = arith.constant 2 : index
    %c0_268 = arith.constant 0 : index
    %167 = vector.load %arg1[%c0_263, %c0_264, %c0_265, %c1_266, %c2_267, %c0_268] : memref<1x2x2x10x10x64xf32, #tpu.memory_space<vmem>>, vector<1x1x1x8x8x64xf32>
    %168 = vector.shape_cast %167 : vector<1x1x1x8x8x64xf32> to vector<8x8x64xf32>
    %169 = vector.shape_cast %168 : vector<8x8x64xf32> to vector<64x64xf32>
    %170 = tpu.concatenate %160, %163, %166, %169 in 0 : vector<64x64xf32>, vector<64x64xf32>, vector<64x64xf32>, vector<64x64xf32> -> vector<256x64xf32>
    %171 = arith.truncf %170 : vector<256x64xf32> to vector<256x64xbf16>
    %c8 = arith.constant 8 : index
    %c0_269 = arith.constant 0 : index
    %c0_270 = arith.constant 0 : index
    %172 = vector.load %arg2[%c8, %c0_269, %c0_270] : memref<25x64x128xbf16, #tpu.memory_space<vmem>>, vector<1x64x128xbf16>
    %173 = vector.shape_cast %172 : vector<1x64x128xbf16> to vector<64x128xbf16>
    %cst_271 = arith.constant dense<0.000000e+00> : vector<256x128xf32>
    %174 = tpu.matmul %171, %173, %cst_271 {dimension_numbers = #tpu.dot_dimension_numbers<[1], [0], [0], [1], [0, 0, 1, 1], [], []>} : vector<256x64xbf16>, vector<64x128xbf16>, vector<256x128xf32> -> vector<256x128xf32>
    %c0_272 = arith.constant 0 : index
    %c0_273 = arith.constant 0 : index
    %175 = vector.load %arg5[%c0_272, %c0_273] : memref<256x128xf32, #tpu.memory_space<vmem>>, vector<256x128xf32>
    %176 = arith.addf %175, %174 : vector<256x128xf32>
    %c0_274 = arith.constant 0 : index
    %c0_275 = arith.constant 0 : index
    %177 = vector.load %arg5[%c0_274, %c0_275] : memref<256x128xf32, #tpu.memory_space<vmem>>, vector<256x128xf32>
    tpu.vector_store %arg5[%c0_274, %c0_275], %176 {strides = array<i32>} : memref<256x128xf32, #tpu.memory_space<vmem>>, vector<256x128xf32>,
    %c0_276 = arith.constant 0 : index
    %c1_277 = arith.constant 1 : index
    %c0_278 = arith.constant 0 : index
    %c0_279 = arith.constant 0 : index
    %c2_280 = arith.constant 2 : index
    %c0_281 = arith.constant 0 : index
    %178 = vector.load %arg1[%c0_276, %c1_277, %c0_278, %c0_279, %c2_280, %c0_281] : memref<1x2x2x10x10x64xf32, #tpu.memory_space<vmem>>, vector<1x1x1x8x8x64xf32>
    %179 = vector.shape_cast %178 : vector<1x1x1x8x8x64xf32> to vector<8x8x64xf32>
    %180 = vector.shape_cast %179 : vector<8x8x64xf32> to vector<64x64xf32>
    %c0_282 = arith.constant 0 : index
    %c1_283 = arith.constant 1 : index
    %c1_284 = arith.constant 1 : index
    %c0_285 = arith.constant 0 : index
    %c2_286 = arith.constant 2 : index
    %c0_287 = arith.constant 0 : index
    %181 = vector.load %arg1[%c0_282, %c1_283, %c1_284, %c0_285, %c2_286, %c0_287] : memref<1x2x2x10x10x64xf32, #tpu.memory_space<vmem>>, vector<1x1x1x8x8x64xf32>
    %182 = vector.shape_cast %181 : vector<1x1x1x8x8x64xf32> to vector<8x8x64xf32>
    %183 = vector.shape_cast %182 : vector<8x8x64xf32> to vector<64x64xf32>
    %c0_288 = arith.constant 0 : index
    %c0_289 = arith.constant 0 : index
    %c0_290 = arith.constant 0 : index
    %c1_291 = arith.constant 1 : index
    %c2_292 = arith.constant 2 : index
    %c0_293 = arith.constant 0 : index
    %184 = vector.load %arg1[%c0_288, %c0_289, %c0_290, %c1_291, %c2_292, %c0_293] : memref<1x2x2x10x10x64xf32, #tpu.memory_space<vmem>>, vector<1x1x1x8x8x64xf32>
    %185 = vector.shape_cast %184 : vector<1x1x1x8x8x64xf32> to vector<8x8x64xf32>
    %186 = vector.shape_cast %185 : vector<8x8x64xf32> to vector<64x64xf32>
    %c0_294 = arith.constant 0 : index
    %c0_295 = arith.constant 0 : index
    %c1_296 = arith.constant 1 : index
    %c1_297 = arith.constant 1 : index
    %c2_298 = arith.constant 2 : index
    %c0_299 = arith.constant 0 : index
    %187 = vector.load %arg1[%c0_294, %c0_295, %c1_296, %c1_297, %c2_298, %c0_299] : memref<1x2x2x10x10x64xf32, #tpu.memory_space<vmem>>, vector<1x1x1x8x8x64xf32>
    %188 = vector.shape_cast %187 : vector<1x1x1x8x8x64xf32> to vector<8x8x64xf32>
    %189 = vector.shape_cast %188 : vector<8x8x64xf32> to vector<64x64xf32>
    %190 = tpu.concatenate %180, %183, %186, %189 in 0 : vector<64x64xf32>, vector<64x64xf32>, vector<64x64xf32>, vector<64x64xf32> -> vector<256x64xf32>
    %191 = arith.truncf %190 : vector<256x64xf32> to vector<256x64xbf16>
    %c9 = arith.constant 9 : index
    %c0_300 = arith.constant 0 : index
    %c0_301 = arith.constant 0 : index
    %192 = vector.load %arg2[%c9, %c0_300, %c0_301] : memref<25x64x128xbf16, #tpu.memory_space<vmem>>, vector<1x64x128xbf16>
    %193 = vector.shape_cast %192 : vector<1x64x128xbf16> to vector<64x128xbf16>
    %cst_302 = arith.constant dense<0.000000e+00> : vector<256x128xf32>
    %194 = tpu.matmul %191, %193, %cst_302 {dimension_numbers = #tpu.dot_dimension_numbers<[1], [0], [0], [1], [0, 0, 1, 1], [], []>} : vector<256x64xbf16>, vector<64x128xbf16>, vector<256x128xf32> -> vector<256x128xf32>
    %c0_303 = arith.constant 0 : index
    %c0_304 = arith.constant 0 : index
    %195 = vector.load %arg5[%c0_303, %c0_304] : memref<256x128xf32, #tpu.memory_space<vmem>>, vector<256x128xf32>
    %196 = arith.addf %195, %194 : vector<256x128xf32>
    %c0_305 = arith.constant 0 : index
    %c0_306 = arith.constant 0 : index
    %197 = vector.load %arg5[%c0_305, %c0_306] : memref<256x128xf32, #tpu.memory_space<vmem>>, vector<256x128xf32>
    tpu.vector_store %arg5[%c0_305, %c0_306], %196 {strides = array<i32>} : memref<256x128xf32, #tpu.memory_space<vmem>>, vector<256x128xf32>,
    %c0_307 = arith.constant 0 : index
    %c0_308 = arith.constant 0 : index
    %c0_309 = arith.constant 0 : index
    %c1_310 = arith.constant 1 : index
    %c0_311 = arith.constant 0 : index
    %c0_312 = arith.constant 0 : index
    %198 = vector.load %arg1[%c0_307, %c0_308, %c0_309, %c1_310, %c0_311, %c0_312] : memref<1x2x2x10x10x64xf32, #tpu.memory_space<vmem>>, vector<1x1x1x8x8x64xf32>
    %199 = vector.shape_cast %198 : vector<1x1x1x8x8x64xf32> to vector<8x8x64xf32>
    %200 = vector.shape_cast %199 : vector<8x8x64xf32> to vector<64x64xf32>
    %c0_313 = arith.constant 0 : index
    %c0_314 = arith.constant 0 : index
    %c1_315 = arith.constant 1 : index
    %c1_316 = arith.constant 1 : index
    %c0_317 = arith.constant 0 : index
    %c0_318 = arith.constant 0 : index
    %201 = vector.load %arg1[%c0_313, %c0_314, %c1_315, %c1_316, %c0_317, %c0_318] : memref<1x2x2x10x10x64xf32, #tpu.memory_space<vmem>>, vector<1x1x1x8x8x64xf32>
    %202 = vector.shape_cast %201 : vector<1x1x1x8x8x64xf32> to vector<8x8x64xf32>
    %203 = vector.shape_cast %202 : vector<8x8x64xf32> to vector<64x64xf32>
    %c0_319 = arith.constant 0 : index
    %c1_320 = arith.constant 1 : index
    %c0_321 = arith.constant 0 : index
    %c1_322 = arith.constant 1 : index
    %c0_323 = arith.constant 0 : index
    %c0_324 = arith.constant 0 : index
    %204 = vector.load %arg1[%c0_319, %c1_320, %c0_321, %c1_322, %c0_323, %c0_324] : memref<1x2x2x10x10x64xf32, #tpu.memory_space<vmem>>, vector<1x1x1x8x8x64xf32>
    %205 = vector.shape_cast %204 : vector<1x1x1x8x8x64xf32> to vector<8x8x64xf32>
    %206 = vector.shape_cast %205 : vector<8x8x64xf32> to vector<64x64xf32>
    %c0_325 = arith.constant 0 : index
    %c1_326 = arith.constant 1 : index
    %c1_327 = arith.constant 1 : index
    %c1_328 = arith.constant 1 : index
    %c0_329 = arith.constant 0 : index
    %c0_330 = arith.constant 0 : index
    %207 = vector.load %arg1[%c0_325, %c1_326, %c1_327, %c1_328, %c0_329, %c0_330] : memref<1x2x2x10x10x64xf32, #tpu.memory_space<vmem>>, vector<1x1x1x8x8x64xf32>
    %208 = vector.shape_cast %207 : vector<1x1x1x8x8x64xf32> to vector<8x8x64xf32>
    %209 = vector.shape_cast %208 : vector<8x8x64xf32> to vector<64x64xf32>
    %210 = tpu.concatenate %200, %203, %206, %209 in 0 : vector<64x64xf32>, vector<64x64xf32>, vector<64x64xf32>, vector<64x64xf32> -> vector<256x64xf32>
    %211 = arith.truncf %210 : vector<256x64xf32> to vector<256x64xbf16>
    %c10 = arith.constant 10 : index
    %c0_331 = arith.constant 0 : index
    %c0_332 = arith.constant 0 : index
    %212 = vector.load %arg2[%c10, %c0_331, %c0_332] : memref<25x64x128xbf16, #tpu.memory_space<vmem>>, vector<1x64x128xbf16>
    %213 = vector.shape_cast %212 : vector<1x64x128xbf16> to vector<64x128xbf16>
    %cst_333 = arith.constant dense<0.000000e+00> : vector<256x128xf32>
    %214 = tpu.matmul %211, %213, %cst_333 {dimension_numbers = #tpu.dot_dimension_numbers<[1], [0], [0], [1], [0, 0, 1, 1], [], []>} : vector<256x64xbf16>, vector<64x128xbf16>, vector<256x128xf32> -> vector<256x128xf32>
    %c0_334 = arith.constant 0 : index
    %c0_335 = arith.constant 0 : index
    %215 = vector.load %arg5[%c0_334, %c0_335] : memref<256x128xf32, #tpu.memory_space<vmem>>, vector<256x128xf32>
    %216 = arith.addf %215, %214 : vector<256x128xf32>
    %c0_336 = arith.constant 0 : index
    %c0_337 = arith.constant 0 : index
    %217 = vector.load %arg5[%c0_336, %c0_337] : memref<256x128xf32, #tpu.memory_space<vmem>>, vector<256x128xf32>
    tpu.vector_store %arg5[%c0_336, %c0_337], %216 {strides = array<i32>} : memref<256x128xf32, #tpu.memory_space<vmem>>, vector<256x128xf32>,
    %c0_338 = arith.constant 0 : index
    %c0_339 = arith.constant 0 : index
    %c1_340 = arith.constant 1 : index
    %c1_341 = arith.constant 1 : index
    %c0_342 = arith.constant 0 : index
    %c0_343 = arith.constant 0 : index
    %218 = vector.load %arg1[%c0_338, %c0_339, %c1_340, %c1_341, %c0_342, %c0_343] : memref<1x2x2x10x10x64xf32, #tpu.memory_space<vmem>>, vector<1x1x1x8x8x64xf32>
    %219 = vector.shape_cast %218 : vector<1x1x1x8x8x64xf32> to vector<8x8x64xf32>
    %220 = vector.shape_cast %219 : vector<8x8x64xf32> to vector<64x64xf32>
    %c0_344 = arith.constant 0 : index
    %c0_345 = arith.constant 0 : index
    %c0_346 = arith.constant 0 : index
    %c1_347 = arith.constant 1 : index
    %c1_348 = arith.constant 1 : index
    %c0_349 = arith.constant 0 : index
    %221 = vector.load %arg1[%c0_344, %c0_345, %c0_346, %c1_347, %c1_348, %c0_349] : memref<1x2x2x10x10x64xf32, #tpu.memory_space<vmem>>, vector<1x1x1x8x8x64xf32>
    %222 = vector.shape_cast %221 : vector<1x1x1x8x8x64xf32> to vector<8x8x64xf32>
    %223 = vector.shape_cast %222 : vector<8x8x64xf32> to vector<64x64xf32>
    %c0_350 = arith.constant 0 : index
    %c1_351 = arith.constant 1 : index
    %c1_352 = arith.constant 1 : index
    %c1_353 = arith.constant 1 : index
    %c0_354 = arith.constant 0 : index
    %c0_355 = arith.constant 0 : index
    %224 = vector.load %arg1[%c0_350, %c1_351, %c1_352, %c1_353, %c0_354, %c0_355] : memref<1x2x2x10x10x64xf32, #tpu.memory_space<vmem>>, vector<1x1x1x8x8x64xf32>
    %225 = vector.shape_cast %224 : vector<1x1x1x8x8x64xf32> to vector<8x8x64xf32>
    %226 = vector.shape_cast %225 : vector<8x8x64xf32> to vector<64x64xf32>
    %c0_356 = arith.constant 0 : index
    %c1_357 = arith.constant 1 : index
    %c0_358 = arith.constant 0 : index
    %c1_359 = arith.constant 1 : index
    %c1_360 = arith.constant 1 : index
    %c0_361 = arith.constant 0 : index
    %227 = vector.load %arg1[%c0_356, %c1_357, %c0_358, %c1_359, %c1_360, %c0_361] : memref<1x2x2x10x10x64xf32, #tpu.memory_space<vmem>>, vector<1x1x1x8x8x64xf32>
    %228 = vector.shape_cast %227 : vector<1x1x1x8x8x64xf32> to vector<8x8x64xf32>
    %229 = vector.shape_cast %228 : vector<8x8x64xf32> to vector<64x64xf32>
    %230 = tpu.concatenate %220, %223, %226, %229 in 0 : vector<64x64xf32>, vector<64x64xf32>, vector<64x64xf32>, vector<64x64xf32> -> vector<256x64xf32>
    %231 = arith.truncf %230 : vector<256x64xf32> to vector<256x64xbf16>
    %c11 = arith.constant 11 : index
    %c0_362 = arith.constant 0 : index
    %c0_363 = arith.constant 0 : index
    %232 = vector.load %arg2[%c11, %c0_362, %c0_363] : memref<25x64x128xbf16, #tpu.memory_space<vmem>>, vector<1x64x128xbf16>
    %233 = vector.shape_cast %232 : vector<1x64x128xbf16> to vector<64x128xbf16>
    %cst_364 = arith.constant dense<0.000000e+00> : vector<256x128xf32>
    %234 = tpu.matmul %231, %233, %cst_364 {dimension_numbers = #tpu.dot_dimension_numbers<[1], [0], [0], [1], [0, 0, 1, 1], [], []>} : vector<256x64xbf16>, vector<64x128xbf16>, vector<256x128xf32> -> vector<256x128xf32>
    %c0_365 = arith.constant 0 : index
    %c0_366 = arith.constant 0 : index
    %235 = vector.load %arg5[%c0_365, %c0_366] : memref<256x128xf32, #tpu.memory_space<vmem>>, vector<256x128xf32>
    %236 = arith.addf %235, %234 : vector<256x128xf32>
    %c0_367 = arith.constant 0 : index
    %c0_368 = arith.constant 0 : index
    %237 = vector.load %arg5[%c0_367, %c0_368] : memref<256x128xf32, #tpu.memory_space<vmem>>, vector<256x128xf32>
    tpu.vector_store %arg5[%c0_367, %c0_368], %236 {strides = array<i32>} : memref<256x128xf32, #tpu.memory_space<vmem>>, vector<256x128xf32>,
    %c0_369 = arith.constant 0 : index
    %c0_370 = arith.constant 0 : index
    %c0_371 = arith.constant 0 : index
    %c1_372 = arith.constant 1 : index
    %c1_373 = arith.constant 1 : index
    %c0_374 = arith.constant 0 : index
    %238 = vector.load %arg1[%c0_369, %c0_370, %c0_371, %c1_372, %c1_373, %c0_374] : memref<1x2x2x10x10x64xf32, #tpu.memory_space<vmem>>, vector<1x1x1x8x8x64xf32>
    %239 = vector.shape_cast %238 : vector<1x1x1x8x8x64xf32> to vector<8x8x64xf32>
    %240 = vector.shape_cast %239 : vector<8x8x64xf32> to vector<64x64xf32>
    %c0_375 = arith.constant 0 : index
    %c0_376 = arith.constant 0 : index
    %c1_377 = arith.constant 1 : index
    %c1_378 = arith.constant 1 : index
    %c1_379 = arith.constant 1 : index
    %c0_380 = arith.constant 0 : index
    %241 = vector.load %arg1[%c0_375, %c0_376, %c1_377, %c1_378, %c1_379, %c0_380] : memref<1x2x2x10x10x64xf32, #tpu.memory_space<vmem>>, vector<1x1x1x8x8x64xf32>
    %242 = vector.shape_cast %241 : vector<1x1x1x8x8x64xf32> to vector<8x8x64xf32>
    %243 = vector.shape_cast %242 : vector<8x8x64xf32> to vector<64x64xf32>
    %c0_381 = arith.constant 0 : index
    %c1_382 = arith.constant 1 : index
    %c0_383 = arith.constant 0 : index
    %c1_384 = arith.constant 1 : index
    %c1_385 = arith.constant 1 : index
    %c0_386 = arith.constant 0 : index
    %244 = vector.load %arg1[%c0_381, %c1_382, %c0_383, %c1_384, %c1_385, %c0_386] : memref<1x2x2x10x10x64xf32, #tpu.memory_space<vmem>>, vector<1x1x1x8x8x64xf32>
    %245 = vector.shape_cast %244 : vector<1x1x1x8x8x64xf32> to vector<8x8x64xf32>
    %246 = vector.shape_cast %245 : vector<8x8x64xf32> to vector<64x64xf32>
    %c0_387 = arith.constant 0 : index
    %c1_388 = arith.constant 1 : index
    %c1_389 = arith.constant 1 : index
    %c1_390 = arith.constant 1 : index
    %c1_391 = arith.constant 1 : index
    %c0_392 = arith.constant 0 : index
    %247 = vector.load %arg1[%c0_387, %c1_388, %c1_389, %c1_390, %c1_391, %c0_392] : memref<1x2x2x10x10x64xf32, #tpu.memory_space<vmem>>, vector<1x1x1x8x8x64xf32>
    %248 = vector.shape_cast %247 : vector<1x1x1x8x8x64xf32> to vector<8x8x64xf32>
    %249 = vector.shape_cast %248 : vector<8x8x64xf32> to vector<64x64xf32>
    %250 = tpu.concatenate %240, %243, %246, %249 in 0 : vector<64x64xf32>, vector<64x64xf32>, vector<64x64xf32>, vector<64x64xf32> -> vector<256x64xf32>
    %251 = arith.truncf %250 : vector<256x64xf32> to vector<256x64xbf16>
    %c12 = arith.constant 12 : index
    %c0_393 = arith.constant 0 : index
    %c0_394 = arith.constant 0 : index
    %252 = vector.load %arg2[%c12, %c0_393, %c0_394] : memref<25x64x128xbf16, #tpu.memory_space<vmem>>, vector<1x64x128xbf16>
    %253 = vector.shape_cast %252 : vector<1x64x128xbf16> to vector<64x128xbf16>
    %cst_395 = arith.constant dense<0.000000e+00> : vector<256x128xf32>
    %254 = tpu.matmul %251, %253, %cst_395 {dimension_numbers = #tpu.dot_dimension_numbers<[1], [0], [0], [1], [0, 0, 1, 1], [], []>} : vector<256x64xbf16>, vector<64x128xbf16>, vector<256x128xf32> -> vector<256x128xf32>
    %c0_396 = arith.constant 0 : index
    %c0_397 = arith.constant 0 : index
    %255 = vector.load %arg5[%c0_396, %c0_397] : memref<256x128xf32, #tpu.memory_space<vmem>>, vector<256x128xf32>
    %256 = arith.addf %255, %254 : vector<256x128xf32>
    %c0_398 = arith.constant 0 : index
    %c0_399 = arith.constant 0 : index
    %257 = vector.load %arg5[%c0_398, %c0_399] : memref<256x128xf32, #tpu.memory_space<vmem>>, vector<256x128xf32>
    tpu.vector_store %arg5[%c0_398, %c0_399], %256 {strides = array<i32>} : memref<256x128xf32, #tpu.memory_space<vmem>>, vector<256x128xf32>,
    %c0_400 = arith.constant 0 : index
    %c0_401 = arith.constant 0 : index
    %c1_402 = arith.constant 1 : index
    %c1_403 = arith.constant 1 : index
    %c1_404 = arith.constant 1 : index
    %c0_405 = arith.constant 0 : index
    %258 = vector.load %arg1[%c0_400, %c0_401, %c1_402, %c1_403, %c1_404, %c0_405] : memref<1x2x2x10x10x64xf32, #tpu.memory_space<vmem>>, vector<1x1x1x8x8x64xf32>
    %259 = vector.shape_cast %258 : vector<1x1x1x8x8x64xf32> to vector<8x8x64xf32>
    %260 = vector.shape_cast %259 : vector<8x8x64xf32> to vector<64x64xf32>
    %c0_406 = arith.constant 0 : index
    %c0_407 = arith.constant 0 : index
    %c0_408 = arith.constant 0 : index
    %c1_409 = arith.constant 1 : index
    %c2_410 = arith.constant 2 : index
    %c0_411 = arith.constant 0 : index
    %261 = vector.load %arg1[%c0_406, %c0_407, %c0_408, %c1_409, %c2_410, %c0_411] : memref<1x2x2x10x10x64xf32, #tpu.memory_space<vmem>>, vector<1x1x1x8x8x64xf32>
    %262 = vector.shape_cast %261 : vector<1x1x1x8x8x64xf32> to vector<8x8x64xf32>
    %263 = vector.shape_cast %262 : vector<8x8x64xf32> to vector<64x64xf32>
    %c0_412 = arith.constant 0 : index
    %c1_413 = arith.constant 1 : index
    %c1_414 = arith.constant 1 : index
    %c1_415 = arith.constant 1 : index
    %c1_416 = arith.constant 1 : index
    %c0_417 = arith.constant 0 : index
    %264 = vector.load %arg1[%c0_412, %c1_413, %c1_414, %c1_415, %c1_416, %c0_417] : memref<1x2x2x10x10x64xf32, #tpu.memory_space<vmem>>, vector<1x1x1x8x8x64xf32>
    %265 = vector.shape_cast %264 : vector<1x1x1x8x8x64xf32> to vector<8x8x64xf32>
    %266 = vector.shape_cast %265 : vector<8x8x64xf32> to vector<64x64xf32>
    %c0_418 = arith.constant 0 : index
    %c1_419 = arith.constant 1 : index
    %c0_420 = arith.constant 0 : index
    %c1_421 = arith.constant 1 : index
    %c2_422 = arith.constant 2 : index
    %c0_423 = arith.constant 0 : index
    %267 = vector.load %arg1[%c0_418, %c1_419, %c0_420, %c1_421, %c2_422, %c0_423] : memref<1x2x2x10x10x64xf32, #tpu.memory_space<vmem>>, vector<1x1x1x8x8x64xf32>
    %268 = vector.shape_cast %267 : vector<1x1x1x8x8x64xf32> to vector<8x8x64xf32>
    %269 = vector.shape_cast %268 : vector<8x8x64xf32> to vector<64x64xf32>
    %270 = tpu.concatenate %260, %263, %266, %269 in 0 : vector<64x64xf32>, vector<64x64xf32>, vector<64x64xf32>, vector<64x64xf32> -> vector<256x64xf32>
    %271 = arith.truncf %270 : vector<256x64xf32> to vector<256x64xbf16>
    %c13 = arith.constant 13 : index
    %c0_424 = arith.constant 0 : index
    %c0_425 = arith.constant 0 : index
    %272 = vector.load %arg2[%c13, %c0_424, %c0_425] : memref<25x64x128xbf16, #tpu.memory_space<vmem>>, vector<1x64x128xbf16>
    %273 = vector.shape_cast %272 : vector<1x64x128xbf16> to vector<64x128xbf16>
    %cst_426 = arith.constant dense<0.000000e+00> : vector<256x128xf32>
    %274 = tpu.matmul %271, %273, %cst_426 {dimension_numbers = #tpu.dot_dimension_numbers<[1], [0], [0], [1], [0, 0, 1, 1], [], []>} : vector<256x64xbf16>, vector<64x128xbf16>, vector<256x128xf32> -> vector<256x128xf32>
    %c0_427 = arith.constant 0 : index
    %c0_428 = arith.constant 0 : index
    %275 = vector.load %arg5[%c0_427, %c0_428] : memref<256x128xf32, #tpu.memory_space<vmem>>, vector<256x128xf32>
    %276 = arith.addf %275, %274 : vector<256x128xf32>
    %c0_429 = arith.constant 0 : index
    %c0_430 = arith.constant 0 : index
    %277 = vector.load %arg5[%c0_429, %c0_430] : memref<256x128xf32, #tpu.memory_space<vmem>>, vector<256x128xf32>
    tpu.vector_store %arg5[%c0_429, %c0_430], %276 {strides = array<i32>} : memref<256x128xf32, #tpu.memory_space<vmem>>, vector<256x128xf32>,
    %c0_431 = arith.constant 0 : index
    %c0_432 = arith.constant 0 : index
    %c0_433 = arith.constant 0 : index
    %c1_434 = arith.constant 1 : index
    %c2_435 = arith.constant 2 : index
    %c0_436 = arith.constant 0 : index
    %278 = vector.load %arg1[%c0_431, %c0_432, %c0_433, %c1_434, %c2_435, %c0_436] : memref<1x2x2x10x10x64xf32, #tpu.memory_space<vmem>>, vector<1x1x1x8x8x64xf32>
    %279 = vector.shape_cast %278 : vector<1x1x1x8x8x64xf32> to vector<8x8x64xf32>
    %280 = vector.shape_cast %279 : vector<8x8x64xf32> to vector<64x64xf32>
    %c0_437 = arith.constant 0 : index
    %c0_438 = arith.constant 0 : index
    %c1_439 = arith.constant 1 : index
    %c1_440 = arith.constant 1 : index
    %c2_441 = arith.constant 2 : index
    %c0_442 = arith.constant 0 : index
    %281 = vector.load %arg1[%c0_437, %c0_438, %c1_439, %c1_440, %c2_441, %c0_442] : memref<1x2x2x10x10x64xf32, #tpu.memory_space<vmem>>, vector<1x1x1x8x8x64xf32>
    %282 = vector.shape_cast %281 : vector<1x1x1x8x8x64xf32> to vector<8x8x64xf32>
    %283 = vector.shape_cast %282 : vector<8x8x64xf32> to vector<64x64xf32>
    %c0_443 = arith.constant 0 : index
    %c1_444 = arith.constant 1 : index
    %c0_445 = arith.constant 0 : index
    %c1_446 = arith.constant 1 : index
    %c2_447 = arith.constant 2 : index
    %c0_448 = arith.constant 0 : index
    %284 = vector.load %arg1[%c0_443, %c1_444, %c0_445, %c1_446, %c2_447, %c0_448] : memref<1x2x2x10x10x64xf32, #tpu.memory_space<vmem>>, vector<1x1x1x8x8x64xf32>
    %285 = vector.shape_cast %284 : vector<1x1x1x8x8x64xf32> to vector<8x8x64xf32>
    %286 = vector.shape_cast %285 : vector<8x8x64xf32> to vector<64x64xf32>
    %c0_449 = arith.constant 0 : index
    %c1_450 = arith.constant 1 : index
    %c1_451 = arith.constant 1 : index
    %c1_452 = arith.constant 1 : index
    %c2_453 = arith.constant 2 : index
    %c0_454 = arith.constant 0 : index
    %287 = vector.load %arg1[%c0_449, %c1_450, %c1_451, %c1_452, %c2_453, %c0_454] : memref<1x2x2x10x10x64xf32, #tpu.memory_space<vmem>>, vector<1x1x1x8x8x64xf32>
    %288 = vector.shape_cast %287 : vector<1x1x1x8x8x64xf32> to vector<8x8x64xf32>
    %289 = vector.shape_cast %288 : vector<8x8x64xf32> to vector<64x64xf32>
    %290 = tpu.concatenate %280, %283, %286, %289 in 0 : vector<64x64xf32>, vector<64x64xf32>, vector<64x64xf32>, vector<64x64xf32> -> vector<256x64xf32>
    %291 = arith.truncf %290 : vector<256x64xf32> to vector<256x64xbf16>
    %c14 = arith.constant 14 : index
    %c0_455 = arith.constant 0 : index
    %c0_456 = arith.constant 0 : index
    %292 = vector.load %arg2[%c14, %c0_455, %c0_456] : memref<25x64x128xbf16, #tpu.memory_space<vmem>>, vector<1x64x128xbf16>
    %293 = vector.shape_cast %292 : vector<1x64x128xbf16> to vector<64x128xbf16>
    %cst_457 = arith.constant dense<0.000000e+00> : vector<256x128xf32>
    %294 = tpu.matmul %291, %293, %cst_457 {dimension_numbers = #tpu.dot_dimension_numbers<[1], [0], [0], [1], [0, 0, 1, 1], [], []>} : vector<256x64xbf16>, vector<64x128xbf16>, vector<256x128xf32> -> vector<256x128xf32>
    %c0_458 = arith.constant 0 : index
    %c0_459 = arith.constant 0 : index
    %295 = vector.load %arg5[%c0_458, %c0_459] : memref<256x128xf32, #tpu.memory_space<vmem>>, vector<256x128xf32>
    %296 = arith.addf %295, %294 : vector<256x128xf32>
    %c0_460 = arith.constant 0 : index
    %c0_461 = arith.constant 0 : index
    %297 = vector.load %arg5[%c0_460, %c0_461] : memref<256x128xf32, #tpu.memory_space<vmem>>, vector<256x128xf32>
    tpu.vector_store %arg5[%c0_460, %c0_461], %296 {strides = array<i32>} : memref<256x128xf32, #tpu.memory_space<vmem>>, vector<256x128xf32>,
    %c0_462 = arith.constant 0 : index
    %c1_463 = arith.constant 1 : index
    %c0_464 = arith.constant 0 : index
    %c1_465 = arith.constant 1 : index
    %c0_466 = arith.constant 0 : index
    %c0_467 = arith.constant 0 : index
    %298 = vector.load %arg1[%c0_462, %c1_463, %c0_464, %c1_465, %c0_466, %c0_467] : memref<1x2x2x10x10x64xf32, #tpu.memory_space<vmem>>, vector<1x1x1x8x8x64xf32>
    %299 = vector.shape_cast %298 : vector<1x1x1x8x8x64xf32> to vector<8x8x64xf32>
    %300 = vector.shape_cast %299 : vector<8x8x64xf32> to vector<64x64xf32>
    %c0_468 = arith.constant 0 : index
    %c1_469 = arith.constant 1 : index
    %c1_470 = arith.constant 1 : index
    %c1_471 = arith.constant 1 : index
    %c0_472 = arith.constant 0 : index
    %c0_473 = arith.constant 0 : index
    %301 = vector.load %arg1[%c0_468, %c1_469, %c1_470, %c1_471, %c0_472, %c0_473] : memref<1x2x2x10x10x64xf32, #tpu.memory_space<vmem>>, vector<1x1x1x8x8x64xf32>
    %302 = vector.shape_cast %301 : vector<1x1x1x8x8x64xf32> to vector<8x8x64xf32>
    %303 = vector.shape_cast %302 : vector<8x8x64xf32> to vector<64x64xf32>
    %c0_474 = arith.constant 0 : index
    %c0_475 = arith.constant 0 : index
    %c0_476 = arith.constant 0 : index
    %c2_477 = arith.constant 2 : index
    %c0_478 = arith.constant 0 : index
    %c0_479 = arith.constant 0 : index
    %304 = vector.load %arg1[%c0_474, %c0_475, %c0_476, %c2_477, %c0_478, %c0_479] : memref<1x2x2x10x10x64xf32, #tpu.memory_space<vmem>>, vector<1x1x1x8x8x64xf32>
    %305 = vector.shape_cast %304 : vector<1x1x1x8x8x64xf32> to vector<8x8x64xf32>
    %306 = vector.shape_cast %305 : vector<8x8x64xf32> to vector<64x64xf32>
    %c0_480 = arith.constant 0 : index
    %c0_481 = arith.constant 0 : index
    %c1_482 = arith.constant 1 : index
    %c2_483 = arith.constant 2 : index
    %c0_484 = arith.constant 0 : index
    %c0_485 = arith.constant 0 : index
    %307 = vector.load %arg1[%c0_480, %c0_481, %c1_482, %c2_483, %c0_484, %c0_485] : memref<1x2x2x10x10x64xf32, #tpu.memory_space<vmem>>, vector<1x1x1x8x8x64xf32>
    %308 = vector.shape_cast %307 : vector<1x1x1x8x8x64xf32> to vector<8x8x64xf32>
    %309 = vector.shape_cast %308 : vector<8x8x64xf32> to vector<64x64xf32>
    %310 = tpu.concatenate %300, %303, %306, %309 in 0 : vector<64x64xf32>, vector<64x64xf32>, vector<64x64xf32>, vector<64x64xf32> -> vector<256x64xf32>
    %311 = arith.truncf %310 : vector<256x64xf32> to vector<256x64xbf16>
    %c15 = arith.constant 15 : index
    %c0_486 = arith.constant 0 : index
    %c0_487 = arith.constant 0 : index
    %312 = vector.load %arg2[%c15, %c0_486, %c0_487] : memref<25x64x128xbf16, #tpu.memory_space<vmem>>, vector<1x64x128xbf16>
    %313 = vector.shape_cast %312 : vector<1x64x128xbf16> to vector<64x128xbf16>
    %cst_488 = arith.constant dense<0.000000e+00> : vector<256x128xf32>
    %314 = tpu.matmul %311, %313, %cst_488 {dimension_numbers = #tpu.dot_dimension_numbers<[1], [0], [0], [1], [0, 0, 1, 1], [], []>} : vector<256x64xbf16>, vector<64x128xbf16>, vector<256x128xf32> -> vector<256x128xf32>
    %c0_489 = arith.constant 0 : index
    %c0_490 = arith.constant 0 : index
    %315 = vector.load %arg5[%c0_489, %c0_490] : memref<256x128xf32, #tpu.memory_space<vmem>>, vector<256x128xf32>
    %316 = arith.addf %315, %314 : vector<256x128xf32>
    %c0_491 = arith.constant 0 : index
    %c0_492 = arith.constant 0 : index
    %317 = vector.load %arg5[%c0_491, %c0_492] : memref<256x128xf32, #tpu.memory_space<vmem>>, vector<256x128xf32>
    tpu.vector_store %arg5[%c0_491, %c0_492], %316 {strides = array<i32>} : memref<256x128xf32, #tpu.memory_space<vmem>>, vector<256x128xf32>,
    %c0_493 = arith.constant 0 : index
    %c1_494 = arith.constant 1 : index
    %c1_495 = arith.constant 1 : index
    %c1_496 = arith.constant 1 : index
    %c0_497 = arith.constant 0 : index
    %c0_498 = arith.constant 0 : index
    %318 = vector.load %arg1[%c0_493, %c1_494, %c1_495, %c1_496, %c0_497, %c0_498] : memref<1x2x2x10x10x64xf32, #tpu.memory_space<vmem>>, vector<1x1x1x8x8x64xf32>
    %319 = vector.shape_cast %318 : vector<1x1x1x8x8x64xf32> to vector<8x8x64xf32>
    %320 = vector.shape_cast %319 : vector<8x8x64xf32> to vector<64x64xf32>
    %c0_499 = arith.constant 0 : index
    %c1_500 = arith.constant 1 : index
    %c0_501 = arith.constant 0 : index
    %c1_502 = arith.constant 1 : index
    %c1_503 = arith.constant 1 : index
    %c0_504 = arith.constant 0 : index
    %321 = vector.load %arg1[%c0_499, %c1_500, %c0_501, %c1_502, %c1_503, %c0_504] : memref<1x2x2x10x10x64xf32, #tpu.memory_space<vmem>>, vector<1x1x1x8x8x64xf32>
    %322 = vector.shape_cast %321 : vector<1x1x1x8x8x64xf32> to vector<8x8x64xf32>
    %323 = vector.shape_cast %322 : vector<8x8x64xf32> to vector<64x64xf32>
    %c0_505 = arith.constant 0 : index
    %c0_506 = arith.constant 0 : index
    %c1_507 = arith.constant 1 : index
    %c2_508 = arith.constant 2 : index
    %c0_509 = arith.constant 0 : index
    %c0_510 = arith.constant 0 : index
    %324 = vector.load %arg1[%c0_505, %c0_506, %c1_507, %c2_508, %c0_509, %c0_510] : memref<1x2x2x10x10x64xf32, #tpu.memory_space<vmem>>, vector<1x1x1x8x8x64xf32>
    %325 = vector.shape_cast %324 : vector<1x1x1x8x8x64xf32> to vector<8x8x64xf32>
    %326 = vector.shape_cast %325 : vector<8x8x64xf32> to vector<64x64xf32>
    %c0_511 = arith.constant 0 : index
    %c0_512 = arith.constant 0 : index
    %c0_513 = arith.constant 0 : index
    %c2_514 = arith.constant 2 : index
    %c1_515 = arith.constant 1 : index
    %c0_516 = arith.constant 0 : index
    %327 = vector.load %arg1[%c0_511, %c0_512, %c0_513, %c2_514, %c1_515, %c0_516] : memref<1x2x2x10x10x64xf32, #tpu.memory_space<vmem>>, vector<1x1x1x8x8x64xf32>
    %328 = vector.shape_cast %327 : vector<1x1x1x8x8x64xf32> to vector<8x8x64xf32>
    %329 = vector.shape_cast %328 : vector<8x8x64xf32> to vector<64x64xf32>
    %330 = tpu.concatenate %320, %323, %326, %329 in 0 : vector<64x64xf32>, vector<64x64xf32>, vector<64x64xf32>, vector<64x64xf32> -> vector<256x64xf32>
    %331 = arith.truncf %330 : vector<256x64xf32> to vector<256x64xbf16>
    %c16 = arith.constant 16 : index
    %c0_517 = arith.constant 0 : index
    %c0_518 = arith.constant 0 : index
    %332 = vector.load %arg2[%c16, %c0_517, %c0_518] : memref<25x64x128xbf16, #tpu.memory_space<vmem>>, vector<1x64x128xbf16>
    %333 = vector.shape_cast %332 : vector<1x64x128xbf16> to vector<64x128xbf16>
    %cst_519 = arith.constant dense<0.000000e+00> : vector<256x128xf32>
    %334 = tpu.matmul %331, %333, %cst_519 {dimension_numbers = #tpu.dot_dimension_numbers<[1], [0], [0], [1], [0, 0, 1, 1], [], []>} : vector<256x64xbf16>, vector<64x128xbf16>, vector<256x128xf32> -> vector<256x128xf32>
    %c0_520 = arith.constant 0 : index
    %c0_521 = arith.constant 0 : index
    %335 = vector.load %arg5[%c0_520, %c0_521] : memref<256x128xf32, #tpu.memory_space<vmem>>, vector<256x128xf32>
    %336 = arith.addf %335, %334 : vector<256x128xf32>
    %c0_522 = arith.constant 0 : index
    %c0_523 = arith.constant 0 : index
    %337 = vector.load %arg5[%c0_522, %c0_523] : memref<256x128xf32, #tpu.memory_space<vmem>>, vector<256x128xf32>
    tpu.vector_store %arg5[%c0_522, %c0_523], %336 {strides = array<i32>} : memref<256x128xf32, #tpu.memory_space<vmem>>, vector<256x128xf32>,
    %c0_524 = arith.constant 0 : index
    %c1_525 = arith.constant 1 : index
    %c0_526 = arith.constant 0 : index
    %c1_527 = arith.constant 1 : index
    %c1_528 = arith.constant 1 : index
    %c0_529 = arith.constant 0 : index
    %338 = vector.load %arg1[%c0_524, %c1_525, %c0_526, %c1_527, %c1_528, %c0_529] : memref<1x2x2x10x10x64xf32, #tpu.memory_space<vmem>>, vector<1x1x1x8x8x64xf32>
    %339 = vector.shape_cast %338 : vector<1x1x1x8x8x64xf32> to vector<8x8x64xf32>
    %340 = vector.shape_cast %339 : vector<8x8x64xf32> to vector<64x64xf32>
    %c0_530 = arith.constant 0 : index
    %c1_531 = arith.constant 1 : index
    %c1_532 = arith.constant 1 : index
    %c1_533 = arith.constant 1 : index
    %c1_534 = arith.constant 1 : index
    %c0_535 = arith.constant 0 : index
    %341 = vector.load %arg1[%c0_530, %c1_531, %c1_532, %c1_533, %c1_534, %c0_535] : memref<1x2x2x10x10x64xf32, #tpu.memory_space<vmem>>, vector<1x1x1x8x8x64xf32>
    %342 = vector.shape_cast %341 : vector<1x1x1x8x8x64xf32> to vector<8x8x64xf32>
    %343 = vector.shape_cast %342 : vector<8x8x64xf32> to vector<64x64xf32>
    %c0_536 = arith.constant 0 : index
    %c0_537 = arith.constant 0 : index
    %c0_538 = arith.constant 0 : index
    %c2_539 = arith.constant 2 : index
    %c1_540 = arith.constant 1 : index
    %c0_541 = arith.constant 0 : index
    %344 = vector.load %arg1[%c0_536, %c0_537, %c0_538, %c2_539, %c1_540, %c0_541] : memref<1x2x2x10x10x64xf32, #tpu.memory_space<vmem>>, vector<1x1x1x8x8x64xf32>
    %345 = vector.shape_cast %344 : vector<1x1x1x8x8x64xf32> to vector<8x8x64xf32>
    %346 = vector.shape_cast %345 : vector<8x8x64xf32> to vector<64x64xf32>
    %c0_542 = arith.constant 0 : index
    %c0_543 = arith.constant 0 : index
    %c1_544 = arith.constant 1 : index
    %c2_545 = arith.constant 2 : index
    %c1_546 = arith.constant 1 : index
    %c0_547 = arith.constant 0 : index
    %347 = vector.load %arg1[%c0_542, %c0_543, %c1_544, %c2_545, %c1_546, %c0_547] : memref<1x2x2x10x10x64xf32, #tpu.memory_space<vmem>>, vector<1x1x1x8x8x64xf32>
    %348 = vector.shape_cast %347 : vector<1x1x1x8x8x64xf32> to vector<8x8x64xf32>
    %349 = vector.shape_cast %348 : vector<8x8x64xf32> to vector<64x64xf32>
    %350 = tpu.concatenate %340, %343, %346, %349 in 0 : vector<64x64xf32>, vector<64x64xf32>, vector<64x64xf32>, vector<64x64xf32> -> vector<256x64xf32>
    %351 = arith.truncf %350 : vector<256x64xf32> to vector<256x64xbf16>
    %c17 = arith.constant 17 : index
    %c0_548 = arith.constant 0 : index
    %c0_549 = arith.constant 0 : index
    %352 = vector.load %arg2[%c17, %c0_548, %c0_549] : memref<25x64x128xbf16, #tpu.memory_space<vmem>>, vector<1x64x128xbf16>
    %353 = vector.shape_cast %352 : vector<1x64x128xbf16> to vector<64x128xbf16>
    %cst_550 = arith.constant dense<0.000000e+00> : vector<256x128xf32>
    %354 = tpu.matmul %351, %353, %cst_550 {dimension_numbers = #tpu.dot_dimension_numbers<[1], [0], [0], [1], [0, 0, 1, 1], [], []>} : vector<256x64xbf16>, vector<64x128xbf16>, vector<256x128xf32> -> vector<256x128xf32>
    %c0_551 = arith.constant 0 : index
    %c0_552 = arith.constant 0 : index
    %355 = vector.load %arg5[%c0_551, %c0_552] : memref<256x128xf32, #tpu.memory_space<vmem>>, vector<256x128xf32>
    %356 = arith.addf %355, %354 : vector<256x128xf32>
    %c0_553 = arith.constant 0 : index
    %c0_554 = arith.constant 0 : index
    %357 = vector.load %arg5[%c0_553, %c0_554] : memref<256x128xf32, #tpu.memory_space<vmem>>, vector<256x128xf32>
    tpu.vector_store %arg5[%c0_553, %c0_554], %356 {strides = array<i32>} : memref<256x128xf32, #tpu.memory_space<vmem>>, vector<256x128xf32>,
    %c0_555 = arith.constant 0 : index
    %c1_556 = arith.constant 1 : index
    %c1_557 = arith.constant 1 : index
    %c1_558 = arith.constant 1 : index
    %c1_559 = arith.constant 1 : index
    %c0_560 = arith.constant 0 : index
    %358 = vector.load %arg1[%c0_555, %c1_556, %c1_557, %c1_558, %c1_559, %c0_560] : memref<1x2x2x10x10x64xf32, #tpu.memory_space<vmem>>, vector<1x1x1x8x8x64xf32>
    %359 = vector.shape_cast %358 : vector<1x1x1x8x8x64xf32> to vector<8x8x64xf32>
    %360 = vector.shape_cast %359 : vector<8x8x64xf32> to vector<64x64xf32>
    %c0_561 = arith.constant 0 : index
    %c1_562 = arith.constant 1 : index
    %c0_563 = arith.constant 0 : index
    %c1_564 = arith.constant 1 : index
    %c2_565 = arith.constant 2 : index
    %c0_566 = arith.constant 0 : index
    %361 = vector.load %arg1[%c0_561, %c1_562, %c0_563, %c1_564, %c2_565, %c0_566] : memref<1x2x2x10x10x64xf32, #tpu.memory_space<vmem>>, vector<1x1x1x8x8x64xf32>
    %362 = vector.shape_cast %361 : vector<1x1x1x8x8x64xf32> to vector<8x8x64xf32>
    %363 = vector.shape_cast %362 : vector<8x8x64xf32> to vector<64x64xf32>
    %c0_567 = arith.constant 0 : index
    %c0_568 = arith.constant 0 : index
    %c1_569 = arith.constant 1 : index
    %c2_570 = arith.constant 2 : index
    %c1_571 = arith.constant 1 : index
    %c0_572 = arith.constant 0 : index
    %364 = vector.load %arg1[%c0_567, %c0_568, %c1_569, %c2_570, %c1_571, %c0_572] : memref<1x2x2x10x10x64xf32, #tpu.memory_space<vmem>>, vector<1x1x1x8x8x64xf32>
    %365 = vector.shape_cast %364 : vector<1x1x1x8x8x64xf32> to vector<8x8x64xf32>
    %366 = vector.shape_cast %365 : vector<8x8x64xf32> to vector<64x64xf32>
    %c0_573 = arith.constant 0 : index
    %c0_574 = arith.constant 0 : index
    %c0_575 = arith.constant 0 : index
    %c2_576 = arith.constant 2 : index
    %c2_577 = arith.constant 2 : index
    %c0_578 = arith.constant 0 : index
    %367 = vector.load %arg1[%c0_573, %c0_574, %c0_575, %c2_576, %c2_577, %c0_578] : memref<1x2x2x10x10x64xf32, #tpu.memory_space<vmem>>, vector<1x1x1x8x8x64xf32>
    %368 = vector.shape_cast %367 : vector<1x1x1x8x8x64xf32> to vector<8x8x64xf32>
    %369 = vector.shape_cast %368 : vector<8x8x64xf32> to vector<64x64xf32>
    %370 = tpu.concatenate %360, %363, %366, %369 in 0 : vector<64x64xf32>, vector<64x64xf32>, vector<64x64xf32>, vector<64x64xf32> -> vector<256x64xf32>
    %371 = arith.truncf %370 : vector<256x64xf32> to vector<256x64xbf16>
    %c18 = arith.constant 18 : index
    %c0_579 = arith.constant 0 : index
    %c0_580 = arith.constant 0 : index
    %372 = vector.load %arg2[%c18, %c0_579, %c0_580] : memref<25x64x128xbf16, #tpu.memory_space<vmem>>, vector<1x64x128xbf16>
    %373 = vector.shape_cast %372 : vector<1x64x128xbf16> to vector<64x128xbf16>
    %cst_581 = arith.constant dense<0.000000e+00> : vector<256x128xf32>
    %374 = tpu.matmul %371, %373, %cst_581 {dimension_numbers = #tpu.dot_dimension_numbers<[1], [0], [0], [1], [0, 0, 1, 1], [], []>} : vector<256x64xbf16>, vector<64x128xbf16>, vector<256x128xf32> -> vector<256x128xf32>
    %c0_582 = arith.constant 0 : index
    %c0_583 = arith.constant 0 : index
    %375 = vector.load %arg5[%c0_582, %c0_583] : memref<256x128xf32, #tpu.memory_space<vmem>>, vector<256x128xf32>
    %376 = arith.addf %375, %374 : vector<256x128xf32>
    %c0_584 = arith.constant 0 : index
    %c0_585 = arith.constant 0 : index
    %377 = vector.load %arg5[%c0_584, %c0_585] : memref<256x128xf32, #tpu.memory_space<vmem>>, vector<256x128xf32>
    tpu.vector_store %arg5[%c0_584, %c0_585], %376 {strides = array<i32>} : memref<256x128xf32, #tpu.memory_space<vmem>>, vector<256x128xf32>,
    %c0_586 = arith.constant 0 : index
    %c1_587 = arith.constant 1 : index
    %c0_588 = arith.constant 0 : index
    %c1_589 = arith.constant 1 : index
    %c2_590 = arith.constant 2 : index
    %c0_591 = arith.constant 0 : index
    %378 = vector.load %arg1[%c0_586, %c1_587, %c0_588, %c1_589, %c2_590, %c0_591] : memref<1x2x2x10x10x64xf32, #tpu.memory_space<vmem>>, vector<1x1x1x8x8x64xf32>
    %379 = vector.shape_cast %378 : vector<1x1x1x8x8x64xf32> to vector<8x8x64xf32>
    %380 = vector.shape_cast %379 : vector<8x8x64xf32> to vector<64x64xf32>
    %c0_592 = arith.constant 0 : index
    %c1_593 = arith.constant 1 : index
    %c1_594 = arith.constant 1 : index
    %c1_595 = arith.constant 1 : index
    %c2_596 = arith.constant 2 : index
    %c0_597 = arith.constant 0 : index
    %381 = vector.load %arg1[%c0_592, %c1_593, %c1_594, %c1_595, %c2_596, %c0_597] : memref<1x2x2x10x10x64xf32, #tpu.memory_space<vmem>>, vector<1x1x1x8x8x64xf32>
    %382 = vector.shape_cast %381 : vector<1x1x1x8x8x64xf32> to vector<8x8x64xf32>
    %383 = vector.shape_cast %382 : vector<8x8x64xf32> to vector<64x64xf32>
    %c0_598 = arith.constant 0 : index
    %c0_599 = arith.constant 0 : index
    %c0_600 = arith.constant 0 : index
    %c2_601 = arith.constant 2 : index
    %c2_602 = arith.constant 2 : index
    %c0_603 = arith.constant 0 : index
    %384 = vector.load %arg1[%c0_598, %c0_599, %c0_600, %c2_601, %c2_602, %c0_603] : memref<1x2x2x10x10x64xf32, #tpu.memory_space<vmem>>, vector<1x1x1x8x8x64xf32>
    %385 = vector.shape_cast %384 : vector<1x1x1x8x8x64xf32> to vector<8x8x64xf32>
    %386 = vector.shape_cast %385 : vector<8x8x64xf32> to vector<64x64xf32>
    %c0_604 = arith.constant 0 : index
    %c0_605 = arith.constant 0 : index
    %c1_606 = arith.constant 1 : index
    %c2_607 = arith.constant 2 : index
    %c2_608 = arith.constant 2 : index
    %c0_609 = arith.constant 0 : index
    %387 = vector.load %arg1[%c0_604, %c0_605, %c1_606, %c2_607, %c2_608, %c0_609] : memref<1x2x2x10x10x64xf32, #tpu.memory_space<vmem>>, vector<1x1x1x8x8x64xf32>
    %388 = vector.shape_cast %387 : vector<1x1x1x8x8x64xf32> to vector<8x8x64xf32>
    %389 = vector.shape_cast %388 : vector<8x8x64xf32> to vector<64x64xf32>
    %390 = tpu.concatenate %380, %383, %386, %389 in 0 : vector<64x64xf32>, vector<64x64xf32>, vector<64x64xf32>, vector<64x64xf32> -> vector<256x64xf32>
    %391 = arith.truncf %390 : vector<256x64xf32> to vector<256x64xbf16>
    %c19 = arith.constant 19 : index
    %c0_610 = arith.constant 0 : index
    %c0_611 = arith.constant 0 : index
    %392 = vector.load %arg2[%c19, %c0_610, %c0_611] : memref<25x64x128xbf16, #tpu.memory_space<vmem>>, vector<1x64x128xbf16>
    %393 = vector.shape_cast %392 : vector<1x64x128xbf16> to vector<64x128xbf16>
    %cst_612 = arith.constant dense<0.000000e+00> : vector<256x128xf32>
    %394 = tpu.matmul %391, %393, %cst_612 {dimension_numbers = #tpu.dot_dimension_numbers<[1], [0], [0], [1], [0, 0, 1, 1], [], []>} : vector<256x64xbf16>, vector<64x128xbf16>, vector<256x128xf32> -> vector<256x128xf32>
    %c0_613 = arith.constant 0 : index
    %c0_614 = arith.constant 0 : index
    %395 = vector.load %arg5[%c0_613, %c0_614] : memref<256x128xf32, #tpu.memory_space<vmem>>, vector<256x128xf32>
    %396 = arith.addf %395, %394 : vector<256x128xf32>
    %c0_615 = arith.constant 0 : index
    %c0_616 = arith.constant 0 : index
    %397 = vector.load %arg5[%c0_615, %c0_616] : memref<256x128xf32, #tpu.memory_space<vmem>>, vector<256x128xf32>
    tpu.vector_store %arg5[%c0_615, %c0_616], %396 {strides = array<i32>} : memref<256x128xf32, #tpu.memory_space<vmem>>, vector<256x128xf32>,
    %c0_617 = arith.constant 0 : index
    %c0_618 = arith.constant 0 : index
    %c0_619 = arith.constant 0 : index
    %c2_620 = arith.constant 2 : index
    %c0_621 = arith.constant 0 : index
    %c0_622 = arith.constant 0 : index
    %398 = vector.load %arg1[%c0_617, %c0_618, %c0_619, %c2_620, %c0_621, %c0_622] : memref<1x2x2x10x10x64xf32, #tpu.memory_space<vmem>>, vector<1x1x1x8x8x64xf32>
    %399 = vector.shape_cast %398 : vector<1x1x1x8x8x64xf32> to vector<8x8x64xf32>
    %400 = vector.shape_cast %399 : vector<8x8x64xf32> to vector<64x64xf32>
    %c0_623 = arith.constant 0 : index
    %c0_624 = arith.constant 0 : index
    %c1_625 = arith.constant 1 : index
    %c2_626 = arith.constant 2 : index
    %c0_627 = arith.constant 0 : index
    %c0_628 = arith.constant 0 : index
    %401 = vector.load %arg1[%c0_623, %c0_624, %c1_625, %c2_626, %c0_627, %c0_628] : memref<1x2x2x10x10x64xf32, #tpu.memory_space<vmem>>, vector<1x1x1x8x8x64xf32>
    %402 = vector.shape_cast %401 : vector<1x1x1x8x8x64xf32> to vector<8x8x64xf32>
    %403 = vector.shape_cast %402 : vector<8x8x64xf32> to vector<64x64xf32>
    %c0_629 = arith.constant 0 : index
    %c1_630 = arith.constant 1 : index
    %c0_631 = arith.constant 0 : index
    %c2_632 = arith.constant 2 : index
    %c0_633 = arith.constant 0 : index
    %c0_634 = arith.constant 0 : index
    %404 = vector.load %arg1[%c0_629, %c1_630, %c0_631, %c2_632, %c0_633, %c0_634] : memref<1x2x2x10x10x64xf32, #tpu.memory_space<vmem>>, vector<1x1x1x8x8x64xf32>
    %405 = vector.shape_cast %404 : vector<1x1x1x8x8x64xf32> to vector<8x8x64xf32>
    %406 = vector.shape_cast %405 : vector<8x8x64xf32> to vector<64x64xf32>
    %c0_635 = arith.constant 0 : index
    %c1_636 = arith.constant 1 : index
    %c1_637 = arith.constant 1 : index
    %c2_638 = arith.constant 2 : index
    %c0_639 = arith.constant 0 : index
    %c0_640 = arith.constant 0 : index
    %407 = vector.load %arg1[%c0_635, %c1_636, %c1_637, %c2_638, %c0_639, %c0_640] : memref<1x2x2x10x10x64xf32, #tpu.memory_space<vmem>>, vector<1x1x1x8x8x64xf32>
    %408 = vector.shape_cast %407 : vector<1x1x1x8x8x64xf32> to vector<8x8x64xf32>
    %409 = vector.shape_cast %408 : vector<8x8x64xf32> to vector<64x64xf32>
    %410 = tpu.concatenate %400, %403, %406, %409 in 0 : vector<64x64xf32>, vector<64x64xf32>, vector<64x64xf32>, vector<64x64xf32> -> vector<256x64xf32>
    %411 = arith.truncf %410 : vector<256x64xf32> to vector<256x64xbf16>
    %c20 = arith.constant 20 : index
    %c0_641 = arith.constant 0 : index
    %c0_642 = arith.constant 0 : index
    %412 = vector.load %arg2[%c20, %c0_641, %c0_642] : memref<25x64x128xbf16, #tpu.memory_space<vmem>>, vector<1x64x128xbf16>
    %413 = vector.shape_cast %412 : vector<1x64x128xbf16> to vector<64x128xbf16>
    %cst_643 = arith.constant dense<0.000000e+00> : vector<256x128xf32>
    %414 = tpu.matmul %411, %413, %cst_643 {dimension_numbers = #tpu.dot_dimension_numbers<[1], [0], [0], [1], [0, 0, 1, 1], [], []>} : vector<256x64xbf16>, vector<64x128xbf16>, vector<256x128xf32> -> vector<256x128xf32>
    %c0_644 = arith.constant 0 : index
    %c0_645 = arith.constant 0 : index
    %415 = vector.load %arg5[%c0_644, %c0_645] : memref<256x128xf32, #tpu.memory_space<vmem>>, vector<256x128xf32>
    %416 = arith.addf %415, %414 : vector<256x128xf32>
    %c0_646 = arith.constant 0 : index
    %c0_647 = arith.constant 0 : index
    %417 = vector.load %arg5[%c0_646, %c0_647] : memref<256x128xf32, #tpu.memory_space<vmem>>, vector<256x128xf32>
    tpu.vector_store %arg5[%c0_646, %c0_647], %416 {strides = array<i32>} : memref<256x128xf32, #tpu.memory_space<vmem>>, vector<256x128xf32>,
    %c0_648 = arith.constant 0 : index
    %c0_649 = arith.constant 0 : index
    %c1_650 = arith.constant 1 : index
    %c2_651 = arith.constant 2 : index
    %c0_652 = arith.constant 0 : index
    %c0_653 = arith.constant 0 : index
    %418 = vector.load %arg1[%c0_648, %c0_649, %c1_650, %c2_651, %c0_652, %c0_653] : memref<1x2x2x10x10x64xf32, #tpu.memory_space<vmem>>, vector<1x1x1x8x8x64xf32>
    %419 = vector.shape_cast %418 : vector<1x1x1x8x8x64xf32> to vector<8x8x64xf32>
    %420 = vector.shape_cast %419 : vector<8x8x64xf32> to vector<64x64xf32>
    %c0_654 = arith.constant 0 : index
    %c0_655 = arith.constant 0 : index
    %c0_656 = arith.constant 0 : index
    %c2_657 = arith.constant 2 : index
    %c1_658 = arith.constant 1 : index
    %c0_659 = arith.constant 0 : index
    %421 = vector.load %arg1[%c0_654, %c0_655, %c0_656, %c2_657, %c1_658, %c0_659] : memref<1x2x2x10x10x64xf32, #tpu.memory_space<vmem>>, vector<1x1x1x8x8x64xf32>
    %422 = vector.shape_cast %421 : vector<1x1x1x8x8x64xf32> to vector<8x8x64xf32>
    %423 = vector.shape_cast %422 : vector<8x8x64xf32> to vector<64x64xf32>
    %c0_660 = arith.constant 0 : index
    %c1_661 = arith.constant 1 : index
    %c1_662 = arith.constant 1 : index
    %c2_663 = arith.constant 2 : index
    %c0_664 = arith.constant 0 : index
    %c0_665 = arith.constant 0 : index
    %424 = vector.load %arg1[%c0_660, %c1_661, %c1_662, %c2_663, %c0_664, %c0_665] : memref<1x2x2x10x10x64xf32, #tpu.memory_space<vmem>>, vector<1x1x1x8x8x64xf32>
    %425 = vector.shape_cast %424 : vector<1x1x1x8x8x64xf32> to vector<8x8x64xf32>
    %426 = vector.shape_cast %425 : vector<8x8x64xf32> to vector<64x64xf32>
    %c0_666 = arith.constant 0 : index
    %c1_667 = arith.constant 1 : index
    %c0_668 = arith.constant 0 : index
    %c2_669 = arith.constant 2 : index
    %c1_670 = arith.constant 1 : index
    %c0_671 = arith.constant 0 : index
    %427 = vector.load %arg1[%c0_666, %c1_667, %c0_668, %c2_669, %c1_670, %c0_671] : memref<1x2x2x10x10x64xf32, #tpu.memory_space<vmem>>, vector<1x1x1x8x8x64xf32>
    %428 = vector.shape_cast %427 : vector<1x1x1x8x8x64xf32> to vector<8x8x64xf32>
    %429 = vector.shape_cast %428 : vector<8x8x64xf32> to vector<64x64xf32>
    %430 = tpu.concatenate %420, %423, %426, %429 in 0 : vector<64x64xf32>, vector<64x64xf32>, vector<64x64xf32>, vector<64x64xf32> -> vector<256x64xf32>
    %431 = arith.truncf %430 : vector<256x64xf32> to vector<256x64xbf16>
    %c21 = arith.constant 21 : index
    %c0_672 = arith.constant 0 : index
    %c0_673 = arith.constant 0 : index
    %432 = vector.load %arg2[%c21, %c0_672, %c0_673] : memref<25x64x128xbf16, #tpu.memory_space<vmem>>, vector<1x64x128xbf16>
    %433 = vector.shape_cast %432 : vector<1x64x128xbf16> to vector<64x128xbf16>
    %cst_674 = arith.constant dense<0.000000e+00> : vector<256x128xf32>
    %434 = tpu.matmul %431, %433, %cst_674 {dimension_numbers = #tpu.dot_dimension_numbers<[1], [0], [0], [1], [0, 0, 1, 1], [], []>} : vector<256x64xbf16>, vector<64x128xbf16>, vector<256x128xf32> -> vector<256x128xf32>
    %c0_675 = arith.constant 0 : index
    %c0_676 = arith.constant 0 : index
    %435 = vector.load %arg5[%c0_675, %c0_676] : memref<256x128xf32, #tpu.memory_space<vmem>>, vector<256x128xf32>
    %436 = arith.addf %435, %434 : vector<256x128xf32>
    %c0_677 = arith.constant 0 : index
    %c0_678 = arith.constant 0 : index
    %437 = vector.load %arg5[%c0_677, %c0_678] : memref<256x128xf32, #tpu.memory_space<vmem>>, vector<256x128xf32>
    tpu.vector_store %arg5[%c0_677, %c0_678], %436 {strides = array<i32>} : memref<256x128xf32, #tpu.memory_space<vmem>>, vector<256x128xf32>,
    %c0_679 = arith.constant 0 : index
    %c0_680 = arith.constant 0 : index
    %c0_681 = arith.constant 0 : index
    %c2_682 = arith.constant 2 : index
    %c1_683 = arith.constant 1 : index
    %c0_684 = arith.constant 0 : index
    %438 = vector.load %arg1[%c0_679, %c0_680, %c0_681, %c2_682, %c1_683, %c0_684] : memref<1x2x2x10x10x64xf32, #tpu.memory_space<vmem>>, vector<1x1x1x8x8x64xf32>
    %439 = vector.shape_cast %438 : vector<1x1x1x8x8x64xf32> to vector<8x8x64xf32>
    %440 = vector.shape_cast %439 : vector<8x8x64xf32> to vector<64x64xf32>
    %c0_685 = arith.constant 0 : index
    %c0_686 = arith.constant 0 : index
    %c1_687 = arith.constant 1 : index
    %c2_688 = arith.constant 2 : index
    %c1_689 = arith.constant 1 : index
    %c0_690 = arith.constant 0 : index
    %441 = vector.load %arg1[%c0_685, %c0_686, %c1_687, %c2_688, %c1_689, %c0_690] : memref<1x2x2x10x10x64xf32, #tpu.memory_space<vmem>>, vector<1x1x1x8x8x64xf32>
    %442 = vector.shape_cast %441 : vector<1x1x1x8x8x64xf32> to vector<8x8x64xf32>
    %443 = vector.shape_cast %442 : vector<8x8x64xf32> to vector<64x64xf32>
    %c0_691 = arith.constant 0 : index
    %c1_692 = arith.constant 1 : index
    %c0_693 = arith.constant 0 : index
    %c2_694 = arith.constant 2 : index
    %c1_695 = arith.constant 1 : index
    %c0_696 = arith.constant 0 : index
    %444 = vector.load %arg1[%c0_691, %c1_692, %c0_693, %c2_694, %c1_695, %c0_696] : memref<1x2x2x10x10x64xf32, #tpu.memory_space<vmem>>, vector<1x1x1x8x8x64xf32>
    %445 = vector.shape_cast %444 : vector<1x1x1x8x8x64xf32> to vector<8x8x64xf32>
    %446 = vector.shape_cast %445 : vector<8x8x64xf32> to vector<64x64xf32>
    %c0_697 = arith.constant 0 : index
    %c1_698 = arith.constant 1 : index
    %c1_699 = arith.constant 1 : index
    %c2_700 = arith.constant 2 : index
    %c1_701 = arith.constant 1 : index
    %c0_702 = arith.constant 0 : index
    %447 = vector.load %arg1[%c0_697, %c1_698, %c1_699, %c2_700, %c1_701, %c0_702] : memref<1x2x2x10x10x64xf32, #tpu.memory_space<vmem>>, vector<1x1x1x8x8x64xf32>
    %448 = vector.shape_cast %447 : vector<1x1x1x8x8x64xf32> to vector<8x8x64xf32>
    %449 = vector.shape_cast %448 : vector<8x8x64xf32> to vector<64x64xf32>
    %450 = tpu.concatenate %440, %443, %446, %449 in 0 : vector<64x64xf32>, vector<64x64xf32>, vector<64x64xf32>, vector<64x64xf32> -> vector<256x64xf32>
    %451 = arith.truncf %450 : vector<256x64xf32> to vector<256x64xbf16>
    %c22 = arith.constant 22 : index
    %c0_703 = arith.constant 0 : index
    %c0_704 = arith.constant 0 : index
    %452 = vector.load %arg2[%c22, %c0_703, %c0_704] : memref<25x64x128xbf16, #tpu.memory_space<vmem>>, vector<1x64x128xbf16>
    %453 = vector.shape_cast %452 : vector<1x64x128xbf16> to vector<64x128xbf16>
    %cst_705 = arith.constant dense<0.000000e+00> : vector<256x128xf32>
    %454 = tpu.matmul %451, %453, %cst_705 {dimension_numbers = #tpu.dot_dimension_numbers<[1], [0], [0], [1], [0, 0, 1, 1], [], []>} : vector<256x64xbf16>, vector<64x128xbf16>, vector<256x128xf32> -> vector<256x128xf32>
    %c0_706 = arith.constant 0 : index
    %c0_707 = arith.constant 0 : index
    %455 = vector.load %arg5[%c0_706, %c0_707] : memref<256x128xf32, #tpu.memory_space<vmem>>, vector<256x128xf32>
    %456 = arith.addf %455, %454 : vector<256x128xf32>
    %c0_708 = arith.constant 0 : index
    %c0_709 = arith.constant 0 : index
    %457 = vector.load %arg5[%c0_708, %c0_709] : memref<256x128xf32, #tpu.memory_space<vmem>>, vector<256x128xf32>
    tpu.vector_store %arg5[%c0_708, %c0_709], %456 {strides = array<i32>} : memref<256x128xf32, #tpu.memory_space<vmem>>, vector<256x128xf32>,
    %c0_710 = arith.constant 0 : index
    %c0_711 = arith.constant 0 : index
    %c1_712 = arith.constant 1 : index
    %c2_713 = arith.constant 2 : index
    %c1_714 = arith.constant 1 : index
    %c0_715 = arith.constant 0 : index
    %458 = vector.load %arg1[%c0_710, %c0_711, %c1_712, %c2_713, %c1_714, %c0_715] : memref<1x2x2x10x10x64xf32, #tpu.memory_space<vmem>>, vector<1x1x1x8x8x64xf32>
    %459 = vector.shape_cast %458 : vector<1x1x1x8x8x64xf32> to vector<8x8x64xf32>
    %460 = vector.shape_cast %459 : vector<8x8x64xf32> to vector<64x64xf32>
    %c0_716 = arith.constant 0 : index
    %c0_717 = arith.constant 0 : index
    %c0_718 = arith.constant 0 : index
    %c2_719 = arith.constant 2 : index
    %c2_720 = arith.constant 2 : index
    %c0_721 = arith.constant 0 : index
    %461 = vector.load %arg1[%c0_716, %c0_717, %c0_718, %c2_719, %c2_720, %c0_721] : memref<1x2x2x10x10x64xf32, #tpu.memory_space<vmem>>, vector<1x1x1x8x8x64xf32>
    %462 = vector.shape_cast %461 : vector<1x1x1x8x8x64xf32> to vector<8x8x64xf32>
    %463 = vector.shape_cast %462 : vector<8x8x64xf32> to vector<64x64xf32>
    %c0_722 = arith.constant 0 : index
    %c1_723 = arith.constant 1 : index
    %c1_724 = arith.constant 1 : index
    %c2_725 = arith.constant 2 : index
    %c1_726 = arith.constant 1 : index
    %c0_727 = arith.constant 0 : index
    %464 = vector.load %arg1[%c0_722, %c1_723, %c1_724, %c2_725, %c1_726, %c0_727] : memref<1x2x2x10x10x64xf32, #tpu.memory_space<vmem>>, vector<1x1x1x8x8x64xf32>
    %465 = vector.shape_cast %464 : vector<1x1x1x8x8x64xf32> to vector<8x8x64xf32>
    %466 = vector.shape_cast %465 : vector<8x8x64xf32> to vector<64x64xf32>
    %c0_728 = arith.constant 0 : index
    %c1_729 = arith.constant 1 : index
    %c0_730 = arith.constant 0 : index
    %c2_731 = arith.constant 2 : index
    %c2_732 = arith.constant 2 : index
    %c0_733 = arith.constant 0 : index
    %467 = vector.load %arg1[%c0_728, %c1_729, %c0_730, %c2_731, %c2_732, %c0_733] : memref<1x2x2x10x10x64xf32, #tpu.memory_space<vmem>>, vector<1x1x1x8x8x64xf32>
    %468 = vector.shape_cast %467 : vector<1x1x1x8x8x64xf32> to vector<8x8x64xf32>
    %469 = vector.shape_cast %468 : vector<8x8x64xf32> to vector<64x64xf32>
    %470 = tpu.concatenate %460, %463, %466, %469 in 0 : vector<64x64xf32>, vector<64x64xf32>, vector<64x64xf32>, vector<64x64xf32> -> vector<256x64xf32>
    %471 = arith.truncf %470 : vector<256x64xf32> to vector<256x64xbf16>
    %c23 = arith.constant 23 : index
    %c0_734 = arith.constant 0 : index
    %c0_735 = arith.constant 0 : index
    %472 = vector.load %arg2[%c23, %c0_734, %c0_735] : memref<25x64x128xbf16, #tpu.memory_space<vmem>>, vector<1x64x128xbf16>
    %473 = vector.shape_cast %472 : vector<1x64x128xbf16> to vector<64x128xbf16>
    %cst_736 = arith.constant dense<0.000000e+00> : vector<256x128xf32>
    %474 = tpu.matmul %471, %473, %cst_736 {dimension_numbers = #tpu.dot_dimension_numbers<[1], [0], [0], [1], [0, 0, 1, 1], [], []>} : vector<256x64xbf16>, vector<64x128xbf16>, vector<256x128xf32> -> vector<256x128xf32>
    %c0_737 = arith.constant 0 : index
    %c0_738 = arith.constant 0 : index
    %475 = vector.load %arg5[%c0_737, %c0_738] : memref<256x128xf32, #tpu.memory_space<vmem>>, vector<256x128xf32>
    %476 = arith.addf %475, %474 : vector<256x128xf32>
    %c0_739 = arith.constant 0 : index
    %c0_740 = arith.constant 0 : index
    %477 = vector.load %arg5[%c0_739, %c0_740] : memref<256x128xf32, #tpu.memory_space<vmem>>, vector<256x128xf32>
    tpu.vector_store %arg5[%c0_739, %c0_740], %476 {strides = array<i32>} : memref<256x128xf32, #tpu.memory_space<vmem>>, vector<256x128xf32>,
    %c0_741 = arith.constant 0 : index
    %c0_742 = arith.constant 0 : index
    %c0_743 = arith.constant 0 : index
    %c2_744 = arith.constant 2 : index
    %c2_745 = arith.constant 2 : index
    %c0_746 = arith.constant 0 : index
    %478 = vector.load %arg1[%c0_741, %c0_742, %c0_743, %c2_744, %c2_745, %c0_746] : memref<1x2x2x10x10x64xf32, #tpu.memory_space<vmem>>, vector<1x1x1x8x8x64xf32>
    %479 = vector.shape_cast %478 : vector<1x1x1x8x8x64xf32> to vector<8x8x64xf32>
    %480 = vector.shape_cast %479 : vector<8x8x64xf32> to vector<64x64xf32>
    %c0_747 = arith.constant 0 : index
    %c0_748 = arith.constant 0 : index
    %c1_749 = arith.constant 1 : index
    %c2_750 = arith.constant 2 : index
    %c2_751 = arith.constant 2 : index
    %c0_752 = arith.constant 0 : index
    %481 = vector.load %arg1[%c0_747, %c0_748, %c1_749, %c2_750, %c2_751, %c0_752] : memref<1x2x2x10x10x64xf32, #tpu.memory_space<vmem>>, vector<1x1x1x8x8x64xf32>
    %482 = vector.shape_cast %481 : vector<1x1x1x8x8x64xf32> to vector<8x8x64xf32>
    %483 = vector.shape_cast %482 : vector<8x8x64xf32> to vector<64x64xf32>
    %c0_753 = arith.constant 0 : index
    %c1_754 = arith.constant 1 : index
    %c0_755 = arith.constant 0 : index
    %c2_756 = arith.constant 2 : index
    %c2_757 = arith.constant 2 : index
    %c0_758 = arith.constant 0 : index
    %484 = vector.load %arg1[%c0_753, %c1_754, %c0_755, %c2_756, %c2_757, %c0_758] : memref<1x2x2x10x10x64xf32, #tpu.memory_space<vmem>>, vector<1x1x1x8x8x64xf32>
    %485 = vector.shape_cast %484 : vector<1x1x1x8x8x64xf32> to vector<8x8x64xf32>
    %486 = vector.shape_cast %485 : vector<8x8x64xf32> to vector<64x64xf32>
    %c0_759 = arith.constant 0 : index
    %c1_760 = arith.constant 1 : index
    %c1_761 = arith.constant 1 : index
    %c2_762 = arith.constant 2 : index
    %c2_763 = arith.constant 2 : index
    %c0_764 = arith.constant 0 : index
    %487 = vector.load %arg1[%c0_759, %c1_760, %c1_761, %c2_762, %c2_763, %c0_764] : memref<1x2x2x10x10x64xf32, #tpu.memory_space<vmem>>, vector<1x1x1x8x8x64xf32>
    %488 = vector.shape_cast %487 : vector<1x1x1x8x8x64xf32> to vector<8x8x64xf32>
    %489 = vector.shape_cast %488 : vector<8x8x64xf32> to vector<64x64xf32>
    %490 = tpu.concatenate %480, %483, %486, %489 in 0 : vector<64x64xf32>, vector<64x64xf32>, vector<64x64xf32>, vector<64x64xf32> -> vector<256x64xf32>
    %491 = arith.truncf %490 : vector<256x64xf32> to vector<256x64xbf16>
    %c24 = arith.constant 24 : index
    %c0_765 = arith.constant 0 : index
    %c0_766 = arith.constant 0 : index
    %492 = vector.load %arg2[%c24, %c0_765, %c0_766] : memref<25x64x128xbf16, #tpu.memory_space<vmem>>, vector<1x64x128xbf16>
    %493 = vector.shape_cast %492 : vector<1x64x128xbf16> to vector<64x128xbf16>
    %cst_767 = arith.constant dense<0.000000e+00> : vector<256x128xf32>
    %494 = tpu.matmul %491, %493, %cst_767 {dimension_numbers = #tpu.dot_dimension_numbers<[1], [0], [0], [1], [0, 0, 1, 1], [], []>} : vector<256x64xbf16>, vector<64x128xbf16>, vector<256x128xf32> -> vector<256x128xf32>
    %c0_768 = arith.constant 0 : index
    %c0_769 = arith.constant 0 : index
    %495 = vector.load %arg5[%c0_768, %c0_769] : memref<256x128xf32, #tpu.memory_space<vmem>>, vector<256x128xf32>
    %496 = arith.addf %495, %494 : vector<256x128xf32>
    %c0_770 = arith.constant 0 : index
    %c0_771 = arith.constant 0 : index
    %497 = vector.load %arg5[%c0_770, %c0_771] : memref<256x128xf32, #tpu.memory_space<vmem>>, vector<256x128xf32>
    tpu.vector_store %arg5[%c0_770, %c0_771], %496 {strides = array<i32>} : memref<256x128xf32, #tpu.memory_space<vmem>>, vector<256x128xf32>,
    %c0_772 = arith.constant 0 : index
    %c0_773 = arith.constant 0 : index
    %498 = vector.load %arg5[%c0_772, %c0_773] : memref<256x128xf32, #tpu.memory_space<vmem>>, vector<256x128xf32>
    %499 = vector.extract_strided_slice %498 {offsets = [0, 0], sizes = [64, 128], strides = [1, 1]} : vector<256x128xf32> to vector<64x128xf32>
    %500 = vector.extract_strided_slice %498 {offsets = [64, 0], sizes = [64, 128], strides = [1, 1]} : vector<256x128xf32> to vector<64x128xf32>
    %501 = arith.maximumf %499, %500 : vector<64x128xf32>
    %502 = vector.extract_strided_slice %498 {offsets = [128, 0], sizes = [64, 128], strides = [1, 1]} : vector<256x128xf32> to vector<64x128xf32>
    %503 = vector.extract_strided_slice %498 {offsets = [192, 0], sizes = [64, 128], strides = [1, 1]} : vector<256x128xf32> to vector<64x128xf32>
    %504 = arith.maximumf %502, %503 : vector<64x128xf32>
    %505 = arith.maximumf %501, %504 : vector<64x128xf32>
    %c0_774 = arith.constant 0 : index
    %c0_775 = arith.constant 0 : index
    %506 = vector.load %arg3[%c0_774, %c0_775] : memref<1x128xf32, #tpu.memory_space<vmem>>, vector<1x128xf32>
    %507 = vector.broadcast %506 : vector<1x128xf32> to vector<64x128xf32>
    %508 = arith.addf %505, %507 : vector<64x128xf32>
    %cst_776 = arith.constant 0.000000e+00 : f32
    %509 = vector.broadcast %cst_776 : f32 to vector<64x128xf32>
    %510 = arith.maximumf %508, %509 : vector<64x128xf32>
    %511 = arith.truncf %510 : vector<64x128xf32> to vector<64x128xbf16>
    %c0_777 = arith.constant 0 : index
    %c0_778 = arith.constant 0 : index
    %c0_779 = arith.constant 0 : index
    %512 = vector.load %arg4[%c0_777, %c0_778, %c0_779] : memref<1x64x128xbf16, #tpu.memory_space<vmem>>, vector<1x64x128xbf16>
    %513 = vector.shape_cast %512 : vector<1x64x128xbf16> to vector<64x128xbf16>
    %514 = vector.shape_cast %511 : vector<64x128xbf16> to vector<1x64x128xbf16>
    tpu.vector_store %arg4[%c0_777, %c0_778, %c0_779], %514 {strides = array<i32>} : memref<1x64x128xbf16, #tpu.memory_space<vmem>>, vector<1x64x128xbf16>,
    return
  }
  func.func @transform_0(%arg0: i32) -> (i32, i32, i32, i32, i32, i32) {
    %c0_i32 = arith.constant 0 : i32
    %c0_i32_0 = arith.constant 0 : i32
    %c0_i32_1 = arith.constant 0 : i32
    %c0_i32_2 = arith.constant 0 : i32
    %c0_i32_3 = arith.constant 0 : i32
    %c0_i32_4 = arith.constant 0 : i32
    return %arg0, %c0_i32, %c0_i32_0, %c0_i32_1, %c0_i32_2, %c0_i32_3 : i32, i32, i32, i32, i32, i32
  }
  func.func @transform_1(%arg0: i32) -> (i32, i32, i32) {
    %c0_i32 = arith.constant 0 : i32
    %c0_i32_0 = arith.constant 0 : i32
    %c0_i32_1 = arith.constant 0 : i32
    %c0_i32_2 = arith.constant 0 : i32
    return %c0_i32, %c0_i32_0, %c0_i32_1 : i32, i32, i32
  }
  func.func @transform_2(%arg0: i32) -> (i32, i32) {
    %c0_i32 = arith.constant 0 : i32
    %c0_i32_0 = arith.constant 0 : i32
    %c0_i32_1 = arith.constant 0 : i32
    return %c0_i32, %c0_i32_0 : i32, i32
  }
  func.func @transform_3(%arg0: i32) -> (i32, i32, i32) {
    %c0_i32 = arith.constant 0 : i32
    %c0_i32_0 = arith.constant 0 : i32
    %c0_i32_1 = arith.constant 0 : i32
    return %arg0, %c0_i32, %c0_i32_0 : i32, i32, i32
  }
}

module attributes {stable_mosaic.version = 11 : i64} {
  func.func @_mm_kernel_ksplit(%arg0: i32, %arg1: i32, %arg2: i32, %arg3: memref<2x2048xbf16, #tpu.memory_space<vmem>>, %arg4: memref<2048x512xbf16, #tpu.memory_space<vmem>>, %arg5: memref<1x512xf32, #tpu.memory_space<vmem>>, %arg6: memref<2x512xbf16, #tpu.memory_space<vmem>>, %arg7: memref<2x512xf32, #tpu.memory_space<vmem>>) attributes {dimension_semantics = [#tpu.dimension_semantics<parallel>, #tpu.dimension_semantics<parallel>, #tpu.dimension_semantics<arbitrary>], iteration_bounds = array<i64: 1, 2, 4>, scalar_prefetch = 0 : i64, scratch_operands = 1 : i64, tpu.core_type = #tpu.core_type<tc>, window_params = [{transform_indices = @transform_0, window_bounds = array<i64: 2, 2048>}, {transform_indices = @transform_1, window_bounds = array<i64: 2048, 512>}, {transform_indices = @transform_2, window_bounds = array<i64: 1, 512>}, {transform_indices = @transform_3, window_bounds = array<i64: 2, 512>}]} {
    %c0_i32 = arith.constant 0 : i32
    %0 = arith.cmpi eq, %arg2, %c0_i32 : i32
    %1 = arith.extui %0 : i1 to i32
    %c0_i32_0 = arith.constant 0 : i32
    %2 = arith.cmpi ne, %1, %c0_i32_0 : i32
    scf.if %2 {
      %cst_9 = arith.constant 0.000000e+00 : f32
      %12 = vector.broadcast %cst_9 : f32 to vector<2x512xf32>
      %c0_10 = arith.constant 0 : index
      %c0_11 = arith.constant 0 : index
      %13 = vector.load %arg7[%c0_10, %c0_11] : memref<2x512xf32, #tpu.memory_space<vmem>>, vector<2x512xf32>
      tpu.vector_store %arg7[%c0_10, %c0_11], %12 {strides = array<i32>} : memref<2x512xf32, #tpu.memory_space<vmem>>, vector<2x512xf32>,
    } else {
    }
    %c0 = arith.constant 0 : index
    %c0_1 = arith.constant 0 : index
    %3 = vector.load %arg7[%c0, %c0_1] : memref<2x512xf32, #tpu.memory_space<vmem>>, vector<2x512xf32>
    %c0_2 = arith.constant 0 : index
    %c0_3 = arith.constant 0 : index
    %4 = vector.load %arg3[%c0_2, %c0_3] : memref<2x2048xbf16, #tpu.memory_space<vmem>>, vector<2x2048xbf16>
    %c0_4 = arith.constant 0 : index
    %c0_5 = arith.constant 0 : index
    %5 = vector.load %arg4[%c0_4, %c0_5] : memref<2048x512xbf16, #tpu.memory_space<vmem>>, vector<2048x512xbf16>
    %cst = arith.constant dense<0.000000e+00> : vector<2x512xf32>
    %6 = tpu.matmul %4, %5, %cst {dimension_numbers = #tpu.dot_dimension_numbers<[1], [0], [0], [1], [0, 0, 1, 1], [], []>} : vector<2x2048xbf16>, vector<2048x512xbf16>, vector<2x512xf32> -> vector<2x512xf32>
    %7 = arith.addf %3, %6 : vector<2x512xf32>
    %c0_6 = arith.constant 0 : index
    %c0_7 = arith.constant 0 : index
    %8 = vector.load %arg7[%c0_6, %c0_7] : memref<2x512xf32, #tpu.memory_space<vmem>>, vector<2x512xf32>
    tpu.vector_store %arg7[%c0_6, %c0_7], %7 {strides = array<i32>} : memref<2x512xf32, #tpu.memory_space<vmem>>, vector<2x512xf32>,
    %c3_i32 = arith.constant 3 : i32
    %9 = arith.cmpi eq, %arg2, %c3_i32 : i32
    %10 = arith.extui %9 : i1 to i32
    %c0_i32_8 = arith.constant 0 : i32
    %11 = arith.cmpi ne, %10, %c0_i32_8 : i32
    scf.if %11 {
      %c0_9 = arith.constant 0 : index
      %c0_10 = arith.constant 0 : index
      %12 = vector.load %arg7[%c0_9, %c0_10] : memref<2x512xf32, #tpu.memory_space<vmem>>, vector<2x512xf32>
      %c0_11 = arith.constant 0 : index
      %c0_12 = arith.constant 0 : index
      %13 = vector.load %arg5[%c0_11, %c0_12] : memref<1x512xf32, #tpu.memory_space<vmem>>, vector<1x512xf32>
      %14 = vector.broadcast %13 : vector<1x512xf32> to vector<2x512xf32>
      %15 = arith.addf %12, %14 : vector<2x512xf32>
      %cst_13 = arith.constant 0.000000e+00 : f32
      %16 = vector.broadcast %cst_13 : f32 to vector<2x512xf32>
      %17 = arith.maximumf %15, %16 : vector<2x512xf32>
      %18 = arith.truncf %17 : vector<2x512xf32> to vector<2x512xbf16>
      %c0_14 = arith.constant 0 : index
      %c0_15 = arith.constant 0 : index
      %19 = vector.load %arg6[%c0_14, %c0_15] : memref<2x512xbf16, #tpu.memory_space<vmem>>, vector<2x512xbf16>
      tpu.vector_store %arg6[%c0_14, %c0_15], %18 {strides = array<i32>} : memref<2x512xbf16, #tpu.memory_space<vmem>>, vector<2x512xbf16>,
    } else {
    }
    return
  }
  func.func @transform_0(%arg0: i32, %arg1: i32, %arg2: i32) -> (i32, i32) {
    %c0_i32 = arith.constant 0 : i32
    return %arg0, %arg2 : i32, i32
  }
  func.func @transform_1(%arg0: i32, %arg1: i32, %arg2: i32) -> (i32, i32) {
    %c0_i32 = arith.constant 0 : i32
    return %arg2, %arg1 : i32, i32
  }
  func.func @transform_2(%arg0: i32, %arg1: i32, %arg2: i32) -> (i32, i32) {
    %c0_i32 = arith.constant 0 : i32
    %c0_i32_0 = arith.constant 0 : i32
    return %c0_i32, %arg1 : i32, i32
  }
  func.func @transform_3(%arg0: i32, %arg1: i32, %arg2: i32) -> (i32, i32) {
    %c0_i32 = arith.constant 0 : i32
    return %arg0, %arg1 : i32, i32
  }
}

module attributes {stable_mosaic.version = 11 : i64} {
  func.func @_fc_tail_kernel(%arg0: i32, %arg1: memref<2x1024xbf16, #tpu.memory_space<vmem>>, %arg2: memref<1024x64xbf16, #tpu.memory_space<vmem>>, %arg3: memref<1x64xf32, #tpu.memory_space<vmem>>, %arg4: memref<64x128xbf16, #tpu.memory_space<vmem>>, %arg5: memref<1x128xf32, #tpu.memory_space<vmem>>, %arg6: memref<2x64xf32, #tpu.memory_space<vmem>>, %arg7: memref<2x128xf32, #tpu.memory_space<vmem>>) attributes {dimension_semantics = [#tpu.dimension_semantics<parallel>], iteration_bounds = array<i64: 1>, scalar_prefetch = 0 : i64, scratch_operands = 0 : i64, tpu.core_type = #tpu.core_type<tc>, window_params = [{transform_indices = @transform_0, window_bounds = array<i64: 2, 1024>}, {pipeline_mode = #tpu.pipeline_mode<synchronous>, transform_indices = @transform_1, window_bounds = array<i64: 1024, 64>}, {pipeline_mode = #tpu.pipeline_mode<synchronous>, transform_indices = @transform_2, window_bounds = array<i64: 1, 64>}, {pipeline_mode = #tpu.pipeline_mode<synchronous>, transform_indices = @transform_3, window_bounds = array<i64: 64, 128>}, {pipeline_mode = #tpu.pipeline_mode<synchronous>, transform_indices = @transform_4, window_bounds = array<i64: 1, 128>}, {transform_indices = @transform_5, window_bounds = array<i64: 2, 64>}, {transform_indices = @transform_6, window_bounds = array<i64: 2, 128>}]} {
    %c0 = arith.constant 0 : index
    %c0_0 = arith.constant 0 : index
    %0 = vector.load %arg1[%c0, %c0_0] : memref<2x1024xbf16, #tpu.memory_space<vmem>>, vector<2x1024xbf16>
    %c0_1 = arith.constant 0 : index
    %c0_2 = arith.constant 0 : index
    %1 = vector.load %arg2[%c0_1, %c0_2] : memref<1024x64xbf16, #tpu.memory_space<vmem>>, vector<1024x64xbf16>
    %cst = arith.constant dense<0.000000e+00> : vector<2x64xf32>
    %2 = tpu.matmul %0, %1, %cst {dimension_numbers = #tpu.dot_dimension_numbers<[1], [0], [0], [1], [0, 0, 1, 1], [], []>} : vector<2x1024xbf16>, vector<1024x64xbf16>, vector<2x64xf32> -> vector<2x64xf32>
    %c0_3 = arith.constant 0 : index
    %c0_4 = arith.constant 0 : index
    %3 = vector.load %arg3[%c0_3, %c0_4] : memref<1x64xf32, #tpu.memory_space<vmem>>, vector<1x64xf32>
    %4 = vector.broadcast %3 : vector<1x64xf32> to vector<2x64xf32>
    %5 = arith.addf %2, %4 : vector<2x64xf32>
    %cst_5 = arith.constant 0.000000e+00 : f32
    %6 = vector.broadcast %cst_5 : f32 to vector<2x64xf32>
    %7 = arith.maximumf %5, %6 : vector<2x64xf32>
    %c0_6 = arith.constant 0 : index
    %c0_7 = arith.constant 0 : index
    %8 = vector.load %arg6[%c0_6, %c0_7] : memref<2x64xf32, #tpu.memory_space<vmem>>, vector<2x64xf32>
    tpu.vector_store %arg6[%c0_6, %c0_7], %7 {strides = array<i32>} : memref<2x64xf32, #tpu.memory_space<vmem>>, vector<2x64xf32>,
    %9 = arith.truncf %7 : vector<2x64xf32> to vector<2x64xbf16>
    %c0_8 = arith.constant 0 : index
    %c0_9 = arith.constant 0 : index
    %10 = vector.load %arg4[%c0_8, %c0_9] : memref<64x128xbf16, #tpu.memory_space<vmem>>, vector<64x128xbf16>
    %cst_10 = arith.constant dense<0.000000e+00> : vector<2x128xf32>
    %11 = tpu.matmul %9, %10, %cst_10 {dimension_numbers = #tpu.dot_dimension_numbers<[1], [0], [0], [1], [0, 0, 1, 1], [], []>} : vector<2x64xbf16>, vector<64x128xbf16>, vector<2x128xf32> -> vector<2x128xf32>
    %c0_11 = arith.constant 0 : index
    %c0_12 = arith.constant 0 : index
    %12 = vector.load %arg5[%c0_11, %c0_12] : memref<1x128xf32, #tpu.memory_space<vmem>>, vector<1x128xf32>
    %13 = vector.broadcast %12 : vector<1x128xf32> to vector<2x128xf32>
    %14 = arith.addf %11, %13 : vector<2x128xf32>
    %c0_13 = arith.constant 0 : index
    %c0_14 = arith.constant 0 : index
    %15 = vector.load %arg7[%c0_13, %c0_14] : memref<2x128xf32, #tpu.memory_space<vmem>>, vector<2x128xf32>
    tpu.vector_store %arg7[%c0_13, %c0_14], %14 {strides = array<i32>} : memref<2x128xf32, #tpu.memory_space<vmem>>, vector<2x128xf32>,
    return
  }
  func.func @transform_0(%arg0: i32) -> (i32, i32) {
    %c0_i32 = arith.constant 0 : i32
    %c0_i32_0 = arith.constant 0 : i32
    return %arg0, %c0_i32 : i32, i32
  }
  func.func @transform_1(%arg0: i32) -> (i32, i32) {
    %c0_i32 = arith.constant 0 : i32
    %c0_i32_0 = arith.constant 0 : i32
    %c0_i32_1 = arith.constant 0 : i32
    return %c0_i32, %c0_i32_0 : i32, i32
  }
  func.func @transform_2(%arg0: i32) -> (i32, i32) {
    %c0_i32 = arith.constant 0 : i32
    %c0_i32_0 = arith.constant 0 : i32
    %c0_i32_1 = arith.constant 0 : i32
    return %c0_i32, %c0_i32_0 : i32, i32
  }
  func.func @transform_3(%arg0: i32) -> (i32, i32) {
    %c0_i32 = arith.constant 0 : i32
    %c0_i32_0 = arith.constant 0 : i32
    %c0_i32_1 = arith.constant 0 : i32
    return %c0_i32, %c0_i32_0 : i32, i32
  }
  func.func @transform_4(%arg0: i32) -> (i32, i32) {
    %c0_i32 = arith.constant 0 : i32
    %c0_i32_0 = arith.constant 0 : i32
    %c0_i32_1 = arith.constant 0 : i32
    return %c0_i32, %c0_i32_0 : i32, i32
  }
  func.func @transform_5(%arg0: i32) -> (i32, i32) {
    %c0_i32 = arith.constant 0 : i32
    %c0_i32_0 = arith.constant 0 : i32
    return %arg0, %c0_i32 : i32, i32
  }
  func.func @transform_6(%arg0: i32) -> (i32, i32) {
    %c0_i32 = arith.constant 0 : i32
    %c0_i32_0 = arith.constant 0 : i32
    return %arg0, %c0_i32 : i32, i32
  }
}

</mosaic_0001>

<bundles_post_ra>
// kernel: lenet_forward.4
= control target key start
LH: loop header
LB: loop body
LE: loop exit
PB: predicated region body
PF: predicated region fallthrough
CT: control target
= control target key end

     0   :  { %s2289_s12 = smov 0   ;;  %s2837_s0 = inlined_call_operand.vmem [shape: bf16[2,4,256,32], index: 0, kind: input, shape index: {}]   ;;  %s2838_s1 = inlined_call_operand.vmem [shape: bf16[32,64], index: 1, kind: input, shape index: {}]   ;;  %s2839_s2 = inlined_call_operand.vmem [shape: f32[1,64], index: 2, kind: input, shape index: {}]   ;;  %s2840_s3 = inlined_call_operand.vmem [shape: f32[2,256,64], index: 3, kind: output, shape index: {}]  }
   0x1 LB: > { %s1731_s13 = sadd.s32 4294967295, %s2267_s12   ;;  %p1735_p0 = scmp.ge.s32.totalorder %s2267_s12, 1  ;;  %s2267_s12 = sphi %s2289_s12, %s13_s12  }
   0x2   : > { %p137_p1 = scmp.lt.s32.totalorder %s2267_s12, 3 }
   0x4   : > { %p138_p2 = pnand %p1735_p0, %p137_p1 }
   0x6   : > { %141 = sbr.rel (%p138_p2) target bundleno = 366 (0x16e), region = 32 }
   0xd   : > { %v2195_v0 = vld [vmem:[%s2838_s1] sm:$0xff]   ;;  %p161_p3 = scmp.lt.s32.totalorder %s1731_s13, 1  ;;  %v2196_v1 = vld [vmem:[%s2838_s1 + $0x8] sm:$0xff]   ;;  %vm300_vm0 = vcmask 261120   ;;  %vm1643_vm1 = vcmask 523264  }
   0xe   : > { %2043 = vmatprep.subr.bf16.mxu0 %v2195_v0  ;;  %2079 = vmatprep.subr.bf16.mxu1 %v2195_v0 }
   0xf   : > { %s2922_s13 = smov (!%p161_p3, %s1731_s13), 1  ;;  %2044 = vmatpush3.bf16.msra.mxu0 %v2195_v0  ;;  %2080 = vmatpush3.bf16.msra.mxu1 %v2195_v0 }
  0x10   : > { %2045 = vmatprep.subr.bf16.mxu0 %v2196_v1  ;;  %2081 = vmatprep.subr.bf16.mxu1 %v2196_v1  ;;  %s1969_s18 = sshll.u32 %s2922_s13, 9  ;;  %s1970_s24 = sshll.u32 %s2922_s13, 8 }
  0x11   : > { %s2309_s21 = scalar_lea.vmem %s2837_s0, %s1969_s18  ;;  %s2653_s27 = scalar_lea.vmem %s2840_s3, %s1970_s24 }
  0x12   : > { %v2197_v2 = vld [vmem:[%s2309_s21] sm:$0xff]   ;;  %v2199_v4 = vld [vmem:[%s2309_s21 + $0x8] sm:$0xff]   ;;  %v2201_v6 = vld [vmem:[%s2309_s21 + $0x10] sm:$0xff]  }
  0x13   : > { %2046 = vmatpush3.bf16.msra.mxu0 %v2196_v1  ;;  %2082 = vmatpush3.bf16.msra.mxu1 %v2196_v1  ;;  %v2198_v3 = vld [vmem:[%s2309_s21 + $0x80] sm:$0xff]   ;;  %v2200_v5 = vld [vmem:[%s2309_s21 + $0x88] sm:$0xff]   ;;  %v2202_v7 = vld [vmem:[%s2309_s21 + $0x90] sm:$0xff]  }
  0x14   : > { %2047 = vmatprep.mubr.msk.bf16.mxu0 %vm300_vm0, %v2197_v2  ;;  %2115 = vmatprep.subr.bf16.mxu0 %v2195_v0  ;;  %v2203_v8 = vld [vmem:[%s2309_s21 + $0x18] sm:$0xff]   ;;  %v2205_v10 = vld [vmem:[%s2309_s21 + $0x20] sm:$0xff]   ;;  %v2207_v12 = vld [vmem:[%s2309_s21 + $0x28] sm:$0xff]  }
  0x15   : > { %2083 = vmatprep.mubr.msk.bf16.mxu1 %vm300_vm0, %v2198_v3  ;;  %2151 = vmatprep.subr.bf16.mxu1 %v2195_v0  ;;  %v2204_v9 = vld [vmem:[%s2309_s21 + $0x98] sm:$0xff]   ;;  %v2206_v11 = vld [vmem:[%s2309_s21 + $0xa0] sm:$0xff]   ;;  %v2208_v13 = vld [vmem:[%s2309_s21 + $0xa8] sm:$0xff]  }
  0x16   : > { %2048 = vmatmul.mubr.msk.bf16.vlgmr.msra.gmra.mrb[0].mxu0 %vm300_vm0, %v2199_v4  ;;  %2084 = vmatmul.mubr.msk.bf16.vlgmr.msra.gmra.mrb[0].mxu1 %vm300_vm0, %v2200_v5  ;;  %v2209_v14 = vld [vmem:[%s2309_s21 + $0x30] sm:$0xff]   ;;  %v2211_v16 = vld [vmem:[%s2309_s21 + $0x38] sm:$0xff]   ;;  %v2213_v18 = vld [vmem:[%s2309_s21 + $0x40] sm:$0xff]  }
  0x17   : > { %2116 = vmatpush3.bf16.msra.mxu0 %v2195_v0  ;;  %2152 = vmatpush3.bf16.msra.mxu1 %v2195_v0  ;;  %v2210_v15 = vld [vmem:[%s2309_s21 + $0xb0] sm:$0xff]   ;;  %v2212_v17 = vld [vmem:[%s2309_s21 + $0xb8] sm:$0xff]   ;;  %v2214_v19 = vld [vmem:[%s2309_s21 + $0xc0] sm:$0xff]  }
  0x18   : > { %2051 = vmatprep.mubr.msk.bf16.mxu0 %vm300_vm0, %v2201_v6  ;;  %2087 = vmatprep.mubr.msk.bf16.mxu1 %vm300_vm0, %v2202_v7  ;;  %v2215_v20 = vld [vmem:[%s2309_s21 + $0x48] sm:$0xff]   ;;  %v2217_v22 = vld [vmem:[%s2309_s21 + $0x50] sm:$0xff]   ;;  %v2219_v24 = vld [vmem:[%s2309_s21 + $0x58] sm:$0xff]  }
  0x19   : > { %2117 = vmatprep.subr.bf16.mxu0 %v2196_v1  ;;  %2153 = vmatprep.subr.bf16.mxu1 %v2196_v1  ;;  %v2216_v21 = vld [vmem:[%s2309_s21 + $0xc8] sm:$0xff]   ;;  %v2218_v23 = vld [vmem:[%s2309_s21 + $0xd0] sm:$0xff]   ;;  %v2220_v25 = vld [vmem:[%s2309_s21 + $0xd8] sm:$0xff]  }
  0x1a   : > { %v2221_v26 = vld [vmem:[%s2309_s21 + $0x60] sm:$0xff]   ;;  %v2223_v28 = vld [vmem:[%s2309_s21 + $0x68] sm:$0xff]   ;;  %v2225_v30 = vld [vmem:[%s2309_s21 + $0x70] sm:$0xff]  }
  0x1b   : > { %2118 = vmatpush3.bf16.msra.mxu0 %v2196_v1  ;;  %2154 = vmatpush3.bf16.msra.mxu1 %v2196_v1  ;;  %v2222_v27 = vld [vmem:[%s2309_s21 + $0xe0] sm:$0xff]   ;;  %v2224_v29 = vld [vmem:[%s2309_s21 + $0xe8] sm:$0xff]   ;;  %v2226_v31 = vld [vmem:[%s2309_s21 + $0xf0] sm:$0xff]  }
  0x1c   : > { %v2227_v32 = vld [vmem:[%s2309_s21 + $0x78] sm:$0xff]   ;;  %v2229_v34 = vld [vmem:[%s2309_s21 + $0x100] sm:$0xff]   ;;  %v2231_v36 = vld [vmem:[%s2309_s21 + $0x108] sm:$0xff]  }
  0x1d   : > { %v2228_v33 = vld [vmem:[%s2309_s21 + $0xf8] sm:$0xff]   ;;  %v2230_v35 = vld [vmem:[%s2309_s21 + $0x180] sm:$0xff]   ;;  %v2232_v37 = vld [vmem:[%s2309_s21 + $0x188] sm:$0xff]  }
  0x1e   : > { %2052 = vmatmul.mubr.msk.bf16.gmra.mrb[4].mxu0 %vm300_vm0, %v2203_v8  ;;  %2088 = vmatmul.mubr.msk.bf16.gmra.mrb[4].mxu1 %vm300_vm0, %v2204_v9  ;;  %v2233_v38 = vld [vmem:[%s2309_s21 + $0x110] sm:$0xff]   ;;  %v2235_v40 = vld [vmem:[%s2309_s21 + $0x118] sm:$0xff]   ;;  %v2237_v42 = vld [vmem:[%s2309_s21 + $0x120] sm:$0xff]  }
  0x1f   : > { %2055 = vmatprep.mubr.msk.bf16.mxu0 %vm300_vm0, %v2205_v10  ;;  %2091 = vmatprep.mubr.msk.bf16.mxu1 %vm300_vm0, %v2206_v11  ;;  %v2234_v39 = vld [vmem:[%s2309_s21 + $0x190] sm:$0xff]   ;;  %v2236_v41 = vld [vmem:[%s2309_s21 + $0x198] sm:$0xff]   ;;  %v2238_v43 = vld [vmem:[%s2309_s21 + $0x1a0] sm:$0xff]  }
  0x20   : > { %v2239_v44 = vld [vmem:[%s2309_s21 + $0x128] sm:$0xff]   ;;  %v2241_v46 = vld [vmem:[%s2309_s21 + $0x130] sm:$0xff]   ;;  %v2243_v48 = vld [vmem:[%s2309_s21 + $0x138] sm:$0xff]  }
  0x21   : > { %v2240_v45 = vld [vmem:[%s2309_s21 + $0x1a8] sm:$0xff]   ;;  %v2242_v47 = vld [vmem:[%s2309_s21 + $0x1b0] sm:$0xff]   ;;  %v2244_v49 = vld [vmem:[%s2309_s21 + $0x1b8] sm:$0xff]  }
  0x22   : > { %v2245_v50 = vld [vmem:[%s2309_s21 + $0x140] sm:$0xff]   ;;  %v2247_v52 = vld [vmem:[%s2309_s21 + $0x148] sm:$0xff]   ;;  %v2249_v54 = vld [vmem:[%s2309_s21 + $0x150] sm:$0xff]  }
  0x23   : > { %v2246_v51 = vld [vmem:[%s2309_s21 + $0x1c0] sm:$0xff]   ;;  %v2248_v53 = vld [vmem:[%s2309_s21 + $0x1c8] sm:$0xff]   ;;  %v2250_v55 = vld [vmem:[%s2309_s21 + $0x1d0] sm:$0xff]  }
  0x24   : > { %v2251_v56 = vld [vmem:[%s2309_s21 + $0x158] sm:$0xff]   ;;  %v2253_v58 = vld [vmem:[%s2309_s21 + $0x160] sm:$0xff]   ;;  %v2255_v60 = vld [vmem:[%s2309_s21 + $0x168] sm:$0xff]  }
  0x25   : > { %v2252_v57 = vld [vmem:[%s2309_s21 + $0x1d8] sm:$0xff]   ;;  %v2254_v59 = vld [vmem:[%s2309_s21 + $0x1e0] sm:$0xff]   ;;  %v2256_v61 = vld [vmem:[%s2309_s21 + $0x1e8] sm:$0xff]  }
  0x26   : > { %2056 = vmatmul.mubr.msk.bf16.gmra.mrb[8].mxu0 %vm300_vm0, %v2207_v12  ;;  %2092 = vmatmul.mubr.msk.bf16.gmra.mrb[8].mxu1 %vm300_vm0, %v2208_v13  ;;  %v2257_v62 = vld [vmem:[%s2309_s21 + $0x170] sm:$0xff]   ;;  %v2259_v0 = vld [vmem:[%s2309_s21 + $0x178] sm:$0xff]  }
  0x27   : > { %2059 = vmatprep.mubr.msk.bf16.mxu0 %vm300_vm0, %v2209_v14  ;;  %2095 = vmatprep.mubr.msk.bf16.mxu1 %vm300_vm0, %v2210_v15  ;;  %v2258_v63 = vld [vmem:[%s2309_s21 + $0x1f0] sm:$0xff]   ;;  %v2260_v1 = vld [vmem:[%s2309_s21 + $0x1f8] sm:$0xff]  }
  0x2e   : > { %2060 = vmatmul.mubr.msk.bf16.gmra.mrb[12].mxu0 %vm300_vm0, %v2211_v16  ;;  %2096 = vmatmul.mubr.msk.bf16.gmra.mrb[12].mxu1 %vm300_vm0, %v2212_v17 }
  0x2f   : > { %2063 = vmatprep.mubr.msk.bf16.mxu0 %vm300_vm0, %v2213_v18  ;;  %2099 = vmatprep.mubr.msk.bf16.mxu1 %vm300_vm0, %v2214_v19 }
  0x36   : > { %2064 = vmatmul.mubr.msk.bf16.gmra.mrb[16].mxu0 %vm300_vm0, %v2215_v20  ;;  %2100 = vmatmul.mubr.msk.bf16.gmra.mrb[16].mxu1 %vm300_vm0, %v2216_v21 }
  0x37   : > { %2067 = vmatprep.mubr.msk.bf16.mxu0 %vm300_vm0, %v2217_v22  ;;  %2103 = vmatprep.mubr.msk.bf16.mxu1 %vm300_vm0, %v2218_v23 }
  0x3e   : > { %2068 = vmatmul.mubr.msk.bf16.gmra.mrb[20].mxu0 %vm300_vm0, %v2219_v24  ;;  %2104 = vmatmul.mubr.msk.bf16.gmra.mrb[20].mxu1 %vm300_vm0, %v2220_v25 }
  0x3f   : > { %2071 = vmatprep.mubr.msk.bf16.mxu0 %vm300_vm0, %v2221_v26  ;;  %2107 = vmatprep.mubr.msk.bf16.mxu1 %vm300_vm0, %v2222_v27 }
  0x46   : > { %2072 = vmatmul.mubr.msk.bf16.gmra.mrb[24].mxu0 %vm300_vm0, %v2223_v28  ;;  %2108 = vmatmul.mubr.msk.bf16.gmra.mrb[24].mxu1 %vm300_vm0, %v2224_v29 }
  0x47   : > { %2075 = vmatprep.mubr.msk.bf16.mxu0 %vm300_vm0, %v2225_v30  ;;  %2111 = vmatprep.mubr.msk.bf16.mxu1 %vm300_vm0, %v2226_v31 }
  0x4e   : > { %2076 = vmatmul.mubr.msk.bf16.gmra.mrb[28].mxu0 %vm300_vm0, %v2227_v32  ;;  %2112 = vmatmul.mubr.msk.bf16.gmra.mrb[28].mxu1 %vm300_vm0, %v2228_v33 }
  0x4f   : > { %2119 = vmatprep.mubr.msk.bf16.mxu0 %vm300_vm0, %v2229_v34  ;;  %2155 = vmatprep.mubr.msk.bf16.mxu1 %vm300_vm0, %v2230_v35 }
  0x56   : > { %2120 = vmatmul.mubr.msk.bf16.vlgmr.msra.gmra.mrb[32].mxu0 %vm300_vm0, %v2231_v36  ;;  %2156 = vmatmul.mubr.msk.bf16.vlgmr.msra.gmra.mrb[32].mxu1 %vm300_vm0, %v2232_v37 }
  0x57   : > { %2123 = vmatprep.mubr.msk.bf16.mxu0 %vm300_vm0, %v2233_v38  ;;  %2159 = vmatprep.mubr.msk.bf16.mxu1 %vm300_vm0, %v2234_v39 }
  0x5e   : > { %2124 = vmatmul.mubr.msk.bf16.gmra.mrb[36].mxu0 %vm300_vm0, %v2235_v40  ;;  %2160 = vmatmul.mubr.msk.bf16.gmra.mrb[36].mxu1 %vm300_vm0, %v2236_v41  ;;  %v2637_v41 = vld [vmem:[%s2839_s2] ss:$0 sm:$0xff] }
  0x5f   : > { %2127 = vmatprep.mubr.msk.bf16.mxu0 %vm300_vm0, %v2237_v42  ;;  %2163 = vmatprep.mubr.msk.bf16.mxu1 %vm300_vm0, %v2238_v43 }
  0x66   : > { %2128 = vmatmul.mubr.msk.bf16.gmra.mrb[40].mxu0 %vm300_vm0, %v2239_v44  ;;  %2164 = vmatmul.mubr.msk.bf16.gmra.mrb[40].mxu1 %vm300_vm0, %v2240_v45 }
  0x67   : > { %2131 = vmatprep.mubr.msk.bf16.mxu0 %vm300_vm0, %v2241_v46  ;;  %2167 = vmatprep.mubr.msk.bf16.mxu1 %vm300_vm0, %v2242_v47 }
  0x6e   : > { %2132 = vmatmul.mubr.msk.bf16.gmra.mrb[44].mxu0 %vm300_vm0, %v2243_v48  ;;  %2168 = vmatmul.mubr.msk.bf16.gmra.mrb[44].mxu1 %vm300_vm0, %v2244_v49 }
  0x6f   : > { %2135 = vmatprep.mubr.msk.bf16.mxu0 %vm300_vm0, %v2245_v50  ;;  %2171 = vmatprep.mubr.msk.bf16.mxu1 %vm300_vm0, %v2246_v51 }
  0x76   : > { %2136 = vmatmul.mubr.msk.bf16.gmra.mrb[48].mxu0 %vm300_vm0, %v2247_v52  ;;  %2172 = vmatmul.mubr.msk.bf16.gmra.mrb[48].mxu1 %vm300_vm0, %v2248_v53 }
  0x77   : > { %2139 = vmatprep.mubr.msk.bf16.mxu0 %vm300_vm0, %v2249_v54  ;;  %2175 = vmatprep.mubr.msk.bf16.mxu1 %vm300_vm0, %v2250_v55 }
  0x7e   : > { %2140 = vmatmul.mubr.msk.bf16.gmra.mrb[52].mxu0 %vm300_vm0, %v2251_v56  ;;  %2176 = vmatmul.mubr.msk.bf16.gmra.mrb[52].mxu1 %vm300_vm0, %v2252_v57 }
  0x7f   : > { %2143 = vmatprep.mubr.msk.bf16.mxu0 %vm300_vm0, %v2253_v58  ;;  %2179 = vmatprep.mubr.msk.bf16.mxu1 %vm300_vm0, %v2254_v59 }
  0x86   : > { %2144 = vmatmul.mubr.msk.bf16.gmra.mrb[56].mxu0 %vm300_vm0, %v2255_v60  ;;  %2180 = vmatmul.mubr.msk.bf16.gmra.mrb[56].mxu1 %vm300_vm0, %v2256_v61 }
  0x87   : > { %2147 = vmatprep.mubr.msk.bf16.mxu0 %vm300_vm0, %v2257_v62  ;;  %2183 = vmatprep.mubr.msk.bf16.mxu1 %vm300_vm0, %v2258_v63 }
  0x8e   : > { %2148 = vmatmul.mubr.msk.bf16.gmra.mrb[60].mxu0 %vm300_vm0, %v2259_v0  ;;  %2184 = vmatmul.mubr.msk.bf16.gmra.mrb[60].mxu1 %vm300_vm0, %v2260_v1 }
  0xe9   : > { %v2439_v2 = vpop.f32.mrb[0].mxu0  ;;  %v2441_v3 = vpop.f32.mrb[0].mxu1 }
  0xea   : > { %v2443_v4 = vpop.f32.mrb[1].mxu0  ;;  %v2447_v6 = vpop.f32.mrb[1].mxu1 }
  0xeb   : > { %v2449_v7 = vpop.f32.mrb[2].mxu0  ;;  %v2453_v9 = vpop.f32.mrb[2].mxu1 }
  0xec   : > { %v2455_v10 = vpop.f32.mrb[3].mxu0  ;;  %v2459_v12 = vpop.f32.mrb[3].mxu1 }
  0xf1   : > { %v2463_v14 = vpop.f32.mrb[4].mxu0  ;;  %v2465_v15 = vpop.f32.mrb[4].mxu1 }
  0xf2   : > { %v2467_v16 = vpop.f32.mrb[5].mxu0  ;;  %v2471_v18 = vpop.f32.mrb[5].mxu1 }
  0xf3   : > { %v2473_v19 = vpop.f32.mrb[6].mxu0  ;;  %v2477_v21 = vpop.f32.mrb[6].mxu1 }
  0xf4   : > { %v2479_v22 = vpop.f32.mrb[7].mxu0  ;;  %v2483_v24 = vpop.f32.mrb[7].mxu1 }
  0xf9   : > { %v2487_v26 = vpop.f32.mrb[8].mxu0  ;;  %v2489_v27 = vpop.f32.mrb[8].mxu1 }
  0xfa   : > { %v2491_v28 = vpop.f32.mrb[9].mxu0  ;;  %v2495_v30 = vpop.f32.mrb[9].mxu1 }
  0xfb   : > { %v2497_v31 = vpop.f32.mrb[10].mxu0  ;;  %v2501_v33 = vpop.f32.mrb[10].mxu1 }
  0xfc   : > { %v2503_v34 = vpop.f32.mrb[11].mxu0  ;;  %v2507_v36 = vpop.f32.mrb[11].mxu1 }
 0x101   : > { %v2511_v38 = vpop.f32.mrb[12].mxu0  ;;  %v2513_v39 = vpop.f32.mrb[12].mxu1 }
 0x102   : > { %v2515_v40 = vpop.f32.mrb[13].mxu0  ;;  %v2519_v42 = vpop.f32.mrb[13].mxu1 }
 0x103   : > { %v2521_v43 = vpop.f32.mrb[14].mxu0  ;;  %v2525_v45 = vpop.f32.mrb[14].mxu1 }
 0x104   : > { %v2527_v46 = vpop.f32.mrb[15].mxu0  ;;  %v2531_v48 = vpop.f32.mrb[15].mxu1 }
 0x109   : > { %v2535_v50 = vpop.f32.mrb[16].mxu0  ;;  %v2537_v51 = vpop.f32.mrb[16].mxu1 }
 0x10a   : > { %v2539_v52 = vpop.f32.mrb[17].mxu0  ;;  %v2543_v54 = vpop.f32.mrb[17].mxu1 }
 0x10b   : > { %v2545_v55 = vpop.f32.mrb[18].mxu0  ;;  %v2549_v57 = vpop.f32.mrb[18].mxu1 }
 0x10c   : > { %v2551_v58 = vpop.f32.mrb[19].mxu0  ;;  %v2555_v60 = vpop.f32.mrb[19].mxu1 }
 0x111   : > { %v2559_v62 = vpop.f32.mrb[20].mxu0  ;;  %v2561_v63 = vpop.f32.mrb[20].mxu1 }
 0x112   : > { %v2563_v0 = vpop.f32.mrb[21].mxu0  ;;  %v2567_v56 = vpop.f32.mrb[21].mxu1 }
 0x113   : > { %v2569_v53 = vpop.f32.mrb[22].mxu0  ;;  %v2573_v49 = vpop.f32.mrb[22].mxu1 }
 0x114   : > { %v2575_v47 = vpop.f32.mrb[23].mxu0  ;;  %v2579_v44 = vpop.f32.mrb[23].mxu1 }
 0x119   : > { %v2583_v1 = vpop.f32.mrb[24].mxu0  ;;  %v2585_v37 = vpop.f32.mrb[24].mxu1 }
 0x11a   : > { %2857 = vst [vmem:[#allocation2_spill] sm:$0xff] %v2583_v1  ;;  %2858 = vst [vmem:[#allocation3_spill] sm:$0xff] %v2585_v37  ;;  %v2587_v35 = vpop.f32.mrb[25].mxu0  ;;  %v2591_v32 = vpop.f32.mrb[25].mxu1 }
 0x11b   : > { %2859 = vst [vmem:[#allocation4_spill] sm:$0xff] %v2587_v35  ;;  %2860 = vst [vmem:[#allocation5_spill] sm:$0xff] %v2591_v32  ;;  %v2593_v29 = vpop.f32.mrb[26].mxu0  ;;  %v2597_v25 = vpop.f32.mrb[26].mxu1 }
 0x11c   : > { %2861 = vst [vmem:[#allocation6_spill] sm:$0xff] %v2593_v29  ;;  %2862 = vst [vmem:[#allocation7_spill] sm:$0xff] %v2597_v25  ;;  %v2599_v23 = vpop.f32.mrb[27].mxu0  ;;  %v2603_v20 = vpop.f32.mrb[27].mxu1 }
 0x11d   : > { %2863 = vst [vmem:[#allocation8_spill] sm:$0xff] %v2599_v23  ;;  %2864 = vst [vmem:[#allocation9_spill] sm:$0xff] %v2603_v20  ;;  %v2874_v20 = vmax.f32 %v2443_v4, %v2447_v6 }
 0x121   : > { %v2607_v59 = vpop.f32.mrb[28].mxu0  ;;  %v2609_v13 = vpop.f32.mrb[28].mxu1 }
 0x122   : > { %2865 = vst [vmem:[#allocation10_spill] sm:$0xff] %v2607_v59  ;;  %2866 = vst [vmem:[#allocation11_spill] sm:$0xff] %v2609_v13  ;;  %v2611_v11 = vpop.f32.mrb[29].mxu0  ;;  %v2615_v8 = vpop.f32.mrb[29].mxu1  ;;  %v2873_v59 = vmax.f32 %v2439_v2, %v2441_v3 }
 0x123   : > { %2867 = vst [vmem:[#allocation12_spill] sm:$0xff] %v2611_v11  ;;  %2868 = vst [vmem:[#allocation13_spill] sm:$0xff] %v2615_v8  ;;  %v2617_v5 = vpop.f32.mrb[30].mxu0  ;;  %v2621_v25 = vpop.f32.mrb[30].mxu1 }
 0x124   : > { %2869 = vst [vmem:[#allocation14_spill] sm:$0xff] %v2617_v5  ;;  %2870 = vst [vmem:[#allocation15_spill] sm:$0xff] %v2621_v25  ;;  %v2623_v17 = vpop.f32.mrb[31].mxu0  ;;  %v2627_v23 = vpop.f32.mrb[31].mxu1 }
 0x125   : > { %2871 = vst [vmem:[#allocation16_spill] sm:$0xff] %v2623_v17  ;;  %2872 = vst [vmem:[#allocation17_spill] sm:$0xff] %v2627_v23  ;;  %v2875_v23 = vmax.f32 %v2449_v7, %v2453_v9  ;;  %v2876_v17 = vmax.f32 %v2455_v10, %v2459_v12 }
 0x129   : > { %v2121_v13 = vpop.f32.mrb[32].mxu0  ;;  %v2157_v32 = vpop.f32.mrb[32].mxu1 }
 0x12a   : > { %v1188_v29 = vmax.f32 %v2873_v59, %v2121_v13  ;;  %v1059_v35 = vpop.f32.mrb[33].mxu0  ;;  %v1413_v5 = vpop.f32.mrb[33].mxu1 }
 0x12b   : > { %v1186_v25 = vmax.f32 %v2874_v20, %v1059_v35  ;;  %v2122_v8 = vpop.f32.mrb[34].mxu0  ;;  %v2158_v3 = vpop.f32.mrb[34].mxu1  ;;  %v2877_v20 = vmax.f32 %v2463_v14, %v2465_v15 }
 0x12c   : > { %v1542_v61 = vmax.f32 %v1188_v29, %v2157_v32  ;;  %v1189_v2 = vmax.f32 %v2875_v23, %v2122_v8  ;;  %v1062_v13 = vpop.f32.mrb[35].mxu0  ;;  %v1416_v37 = vpop.f32.mrb[35].mxu1  ;;  %v2878_v32 = vmax.f32 %v2467_v16, %v2471_v18 }
 0x12d   : > { %v1540_v59 = vmax.f32 %v1186_v25, %v1413_v5  ;;  %v1187_v11 = vmax.f32 %v2876_v17, %v1062_v13 }
 0x12e   : > { %v1581_v1 = vadd.f32 %v2637_v41, %v1542_v61  ;;  %v1543_v4 = vmax.f32 %v1189_v2, %v2158_v3  ;;  %v2879_v2 = vmax.f32 %v2473_v19, %v2477_v21 }
 0x12f   : > { %v1579_v6 = vadd.f32 %v2637_v41, %v1540_v59  ;;  %v1541_v7 = vmax.f32 %v1187_v11, %v1416_v37  ;;  %v2880_v59 = vmax.f32 %v2479_v22, %v2483_v24  ;;  %v2881_v24 = vmax.f32 %v2487_v26, %v2489_v27 }
 0x130   : > { %v1613_v5 = vmax.f32 %v1581_v1, 0.0  ;;  %v1582_v8 = vadd.f32 %v2637_v41, %v1543_v4 }
 0x131   : > { %v1611_v9 = vmax.f32 %v1579_v6, 0.0  ;;  %v1580_v10 = vadd.f32 %v2637_v41, %v1541_v7  ;;  %v2125_v12 = vpop.f32.mrb[36].mxu0  ;;  %v2161_v25 = vpop.f32.mrb[36].mxu1 }
 0x132   : > { %1646 = vst.msk [vmem:[%s2653_s27 + $0x10] sm:$0xff] %vm1643_vm1, %v1613_v5  ;;  %v1614_v17 = vmax.f32 %v1582_v8, 0.0  ;;  %v1192_v23 = vmax.f32 %v2877_v20, %v2125_v12  ;;  %v1075_v29 = vpop.f32.mrb[37].mxu0  ;;  %v1429_v37 = vpop.f32.mrb[37].mxu1 }
 0x133   : > { %1644 = vst.msk [vmem:[%s2653_s27] sm:$0xff] %vm1643_vm1, %v1611_v9  ;;  %v1612_v11 = vmax.f32 %v1580_v10, 0.0  ;;  %v1190_v35 = vmax.f32 %v2878_v32, %v1075_v29  ;;  %v2126_v61 = vpop.f32.mrb[38].mxu0  ;;  %v2162_v14 = vpop.f32.mrb[38].mxu1 }
 0x134   : > { %1647 = vst.msk [vmem:[%s2653_s27 + $0x18] sm:$0xff] %vm1643_vm1, %v1614_v17  ;;  %v1546_v1 = vmax.f32 %v1192_v23, %v2161_v25  ;;  %v1193_v3 = vmax.f32 %v2879_v2, %v2126_v61  ;;  %v1078_v15 = vpop.f32.mrb[39].mxu0  ;;  %v1432_v18 = vpop.f32.mrb[39].mxu1  ;;  %v2882_v25 = vmax.f32 %v2491_v28, %v2495_v30  ;;  %v2884_v2 = vmax.f32 %v2503_v34, %v2507_v36 }
 0x135   : > { %1645 = vst.msk [vmem:[%s2653_s27 + $0x8] sm:$0xff] %vm1643_vm1, %v1612_v11  ;;  %v1544_v13 = vmax.f32 %v1190_v35, %v1429_v37  ;;  %v1191_v16 = vmax.f32 %v2880_v59, %v1078_v15  ;;  %v2883_v37 = vmax.f32 %v2497_v31, %v2501_v33  ;;  %v2885_v36 = vmax.f32 %v2511_v38, %v2513_v39 }
 0x136   : > { %v1585_v4 = vadd.f32 %v2637_v41, %v1546_v1  ;;  %v1547_v6 = vmax.f32 %v1193_v3, %v2162_v14 }
 0x137   : > { %v1583_v7 = vadd.f32 %v2637_v41, %v1544_v13  ;;  %v1545_v5 = vmax.f32 %v1191_v16, %v1432_v18 }
 0x138   : > { %v1617_v19 = vmax.f32 %v1585_v4, 0.0  ;;  %v1586_v21 = vadd.f32 %v2637_v41, %v1547_v6 }
 0x139   : > { %v1615_v8 = vmax.f32 %v1583_v7, 0.0  ;;  %v1584_v9 = vadd.f32 %v2637_v41, %v1545_v5  ;;  %v2129_v10 = vpop.f32.mrb[40].mxu0  ;;  %v2165_v17 = vpop.f32.mrb[40].mxu1 }
 0x13a   : > { %1650 = vst.msk [vmem:[%s2653_s27 + $0x30] sm:$0xff] %vm1643_vm1, %v1617_v19  ;;  %v1618_v22 = vmax.f32 %v1586_v21, 0.0  ;;  %v1196_v12 = vmax.f32 %v2881_v24, %v2129_v10  ;;  %v1091_v20 = vpop.f32.mrb[41].mxu0  ;;  %v1445_v11 = vpop.f32.mrb[41].mxu1  ;;  %v2886_v19 = vmax.f32 %v2515_v40, %v2519_v42 }
 0x13b   : > { %1648 = vst.msk [vmem:[%s2653_s27 + $0x20] sm:$0xff] %vm1643_vm1, %v1615_v8  ;;  %v1616_v23 = vmax.f32 %v1584_v9, 0.0  ;;  %v1194_v29 = vmax.f32 %v2882_v25, %v1091_v20  ;;  %v2130_v32 = vpop.f32.mrb[42].mxu0  ;;  %v2166_v26 = vpop.f32.mrb[42].mxu1 }
 0x13c   : > { %1651 = vst.msk [vmem:[%s2653_s27 + $0x38] sm:$0xff] %vm1643_vm1, %v1618_v22  ;;  %v1550_v35 = vmax.f32 %v1196_v12, %v2165_v17  ;;  %v1197_v61 = vmax.f32 %v2883_v37, %v2130_v32  ;;  %v1094_v27 = vpop.f32.mrb[43].mxu0  ;;  %v1448_v30 = vpop.f32.mrb[43].mxu1  ;;  %v2887_v22 = vmax.f32 %v2521_v43, %v2525_v45  ;;  %v2888_v17 = vmax.f32 %v2527_v46, %v2531_v48 }
 0x13d   : > { %1649 = vst.msk [vmem:[%s2653_s27 + $0x28] sm:$0xff] %vm1643_vm1, %v1616_v23  ;;  %v1548_v1 = vmax.f32 %v1194_v29, %v1445_v11  ;;  %v1195_v28 = vmax.f32 %v2884_v2, %v1094_v27  ;;  %v2889_v48 = vmax.f32 %v2535_v50, %v2537_v51 }
 0x13e   : > { %v1589_v3 = vadd.f32 %v2637_v41, %v1550_v35  ;;  %v1551_v14 = vmax.f32 %v1197_v61, %v2166_v26 }
 0x13f   : > { %v1587_v15 = vadd.f32 %v2637_v41, %v1548_v1  ;;  %v1549_v13 = vmax.f32 %v1195_v28, %v1448_v30  ;;  %v2890_v1 = vmax.f32 %v2539_v52, %v2543_v54 }
 0x140   : > { %v1621_v31 = vmax.f32 %v1589_v3, 0.0  ;;  %v1590_v33 = vadd.f32 %v2637_v41, %v1551_v14  ;;  %v2891_v14 = vmax.f32 %v2545_v55, %v2549_v57 }
 0x141   : > { %v1619_v59 = vmax.f32 %v1587_v15, 0.0  ;;  %v1588_v16 = vadd.f32 %v2637_v41, %v1549_v13  ;;  %v2133_v18 = vpop.f32.mrb[44].mxu0  ;;  %v2169_v6 = vpop.f32.mrb[44].mxu1 }
 0x142   : > { %1654 = vst.msk [vmem:[%s2653_s27 + $0x50] sm:$0xff] %vm1643_vm1, %v1621_v31  ;;  %v1622_v34 = vmax.f32 %v1590_v33, 0.0  ;;  %v1200_v4 = vmax.f32 %v2885_v36, %v2133_v18  ;;  %v1107_v7 = vpop.f32.mrb[45].mxu0  ;;  %v1461_v8 = vpop.f32.mrb[45].mxu1  ;;  %v2892_v31 = vmax.f32 %v2551_v58, %v2555_v60  ;;  %v2893_v60 = vmax.f32 %v2559_v62, %v2561_v63 }
 0x143   : > { %1652 = vst.msk [vmem:[%s2653_s27 + $0x40] sm:$0xff] %vm1643_vm1, %v1619_v59  ;;  %v1620_v5 = vmax.f32 %v1588_v16, 0.0  ;;  %v1198_v21 = vmax.f32 %v2886_v19, %v1107_v7  ;;  %v2134_v9 = vpop.f32.mrb[46].mxu0  ;;  %v2170_v38 = vpop.f32.mrb[46].mxu1 }
 0x144   : > { %1655 = vst.msk [vmem:[%s2653_s27 + $0x58] sm:$0xff] %vm1643_vm1, %v1622_v34  ;;  %v1554_v10 = vmax.f32 %v1200_v4, %v2169_v6  ;;  %v1201_v24 = vmax.f32 %v2887_v22, %v2134_v9  ;;  %v1110_v39 = vpop.f32.mrb[47].mxu0  ;;  %v1464_v42 = vpop.f32.mrb[47].mxu1 }
 0x145   : > { %1653 = vst.msk [vmem:[%s2653_s27 + $0x48] sm:$0xff] %vm1643_vm1, %v1620_v5  ;;  %v1552_v12 = vmax.f32 %v1198_v21, %v1461_v8  ;;  %v1199_v40 = vmax.f32 %v2888_v17, %v1110_v39  ;;  %v2894_v21 = vmax.f32 %v2563_v0, %v2567_v56 }
 0x146   : > { %v1593_v20 = vadd.f32 %v2637_v41, %v1554_v10  ;;  %v1555_v23 = vmax.f32 %v1201_v24, %v2170_v38  ;;  %v2895_v24 = vmax.f32 %v2569_v53, %v2573_v49 }
 0x147   : > { %v1591_v25 = vadd.f32 %v2637_v41, %v1552_v12  ;;  %v1553_v29 = vmax.f32 %v1199_v40, %v1464_v42  ;;  %v2896_v12 = vmax.f32 %v2575_v47, %v2579_v44  ;;  %v2897_v47 = vld [vmem:[#allocation2_spill] sm:$0xff] }
 0x148   : > { %v1625_v43 = vmax.f32 %v1593_v20, 0.0  ;;  %v1594_v45 = vadd.f32 %v2637_v41, %v1555_v23 }
 0x149   : > { %v1623_v11 = vmax.f32 %v1591_v25, 0.0  ;;  %v1592_v32 = vadd.f32 %v2637_v41, %v1553_v29  ;;  %v2137_v35 = vpop.f32.mrb[48].mxu0  ;;  %v2173_v61 = vpop.f32.mrb[48].mxu1 }
 0x14a   : > { %1658 = vst.msk [vmem:[%s2653_s27 + $0x70] sm:$0xff] %vm1643_vm1, %v1625_v43  ;;  %v1626_v46 = vmax.f32 %v1594_v45, 0.0  ;;  %v1204_v37 = vmax.f32 %v2889_v48, %v2137_v35  ;;  %v1123_v26 = vpop.f32.mrb[49].mxu0  ;;  %v1477_v28 = vpop.f32.mrb[49].mxu1  ;;  %v2898_v43 = vld [vmem:[#allocation3_spill] sm:$0xff]  ;;  %v2900_v48 = vld [vmem:[#allocation4_spill] sm:$0xff] }
 0x14b   : > { %1656 = vst.msk [vmem:[%s2653_s27 + $0x60] sm:$0xff] %vm1643_vm1, %v1623_v11  ;;  %v1624_v27 = vmax.f32 %v1592_v32, 0.0  ;;  %v1202_v2 = vmax.f32 %v2890_v1, %v1123_v26  ;;  %v2138_v30 = vpop.f32.mrb[50].mxu0  ;;  %v2174_v50 = vpop.f32.mrb[50].mxu1  ;;  %v2899_v45 = vmax.f32 %v2897_v47, %v2898_v43 }
 0x14c   : > { %1659 = vst.msk [vmem:[%s2653_s27 + $0x78] sm:$0xff] %vm1643_vm1, %v1626_v46  ;;  %v1558_v3 = vmax.f32 %v1204_v37, %v2173_v61  ;;  %v1205_v15 = vmax.f32 %v2891_v14, %v2138_v30  ;;  %v1126_v51 = vpop.f32.mrb[51].mxu0  ;;  %v1480_v54 = vpop.f32.mrb[51].mxu1  ;;  %v2901_v37 = vld [vmem:[#allocation5_spill] sm:$0xff]  ;;  %v2904_v30 = vld [vmem:[#allocation7_spill] sm:$0xff] }
 0x14d   : > { %1657 = vst.msk [vmem:[%s2653_s27 + $0x68] sm:$0xff] %vm1643_vm1, %v1624_v27  ;;  %v1556_v13 = vmax.f32 %v1202_v2, %v1477_v28  ;;  %v1203_v52 = vmax.f32 %v2892_v31, %v1126_v51  ;;  %v2902_v61 = vmax.f32 %v2900_v48, %v2901_v37  ;;  %v2903_v28 = vld [vmem:[#allocation6_spill] sm:$0xff]  ;;  %v2907_v31 = vld [vmem:[#allocation9_spill] sm:$0xff] }
 0x14e   : > { %v1597_v33 = vadd.f32 %v2637_v41, %v1558_v3  ;;  %v1559_v59 = vmax.f32 %v1205_v15, %v2174_v50  ;;  %v2905_v3 = vmax.f32 %v2903_v28, %v2904_v30 }
 0x14f   : > { %v1595_v16 = vadd.f32 %v2637_v41, %v1556_v13  ;;  %v1557_v18 = vmax.f32 %v1203_v52, %v1480_v54  ;;  %v2906_v13 = vld [vmem:[#allocation8_spill] sm:$0xff] }
 0x150   : > { %v1629_v55 = vmax.f32 %v1597_v33, 0.0  ;;  %v1598_v57 = vadd.f32 %v2637_v41, %v1559_v59  ;;  %v2908_v52 = vmax.f32 %v2906_v13, %v2907_v31 }
 0x151   : > { %v1627_v34 = vmax.f32 %v1595_v16, 0.0  ;;  %v1596_v36 = vadd.f32 %v2637_v41, %v1557_v18  ;;  %v2141_v4 = vpop.f32.mrb[52].mxu0  ;;  %v2177_v7 = vpop.f32.mrb[52].mxu1 }
 0x152   : > { %1662 = vst.msk [vmem:[%s2653_s27 + $0x90] sm:$0xff] %vm1643_vm1, %v1629_v55  ;;  %v1630_v58 = vmax.f32 %v1598_v57, 0.0  ;;  %v1208_v6 = vmax.f32 %v2893_v60, %v2141_v4  ;;  %v1139_v5 = vpop.f32.mrb[53].mxu0  ;;  %v1493_v9 = vpop.f32.mrb[53].mxu1 }
 0x153   : > { %1660 = vst.msk [vmem:[%s2653_s27 + $0x80] sm:$0xff] %vm1643_vm1, %v1627_v34  ;;  %v1628_v19 = vmax.f32 %v1596_v36, 0.0  ;;  %v1206_v8 = vmax.f32 %v2894_v21, %v1139_v5  ;;  %v2142_v10 = vpop.f32.mrb[54].mxu0  ;;  %v2178_v62 = vpop.f32.mrb[54].mxu1 }
 0x154   : > { %1663 = vst.msk [vmem:[%s2653_s27 + $0x98] sm:$0xff] %vm1643_vm1, %v1630_v58  ;;  %v1562_v22 = vmax.f32 %v1208_v6, %v2177_v7  ;;  %v1209_v38 = vmax.f32 %v2895_v24, %v2142_v10  ;;  %v1142_v63 = vpop.f32.mrb[55].mxu0  ;;  %v1496_v0 = vpop.f32.mrb[55].mxu1  ;;  %v2909_v6 = vld [vmem:[#allocation10_spill] sm:$0xff]  ;;  %v2910_v7 = vld [vmem:[#allocation11_spill] sm:$0xff]  ;;  %v2912_v10 = vld [vmem:[#allocation12_spill] sm:$0xff] }
 0x155   : > { %1661 = vst.msk [vmem:[%s2653_s27 + $0x88] sm:$0xff] %vm1643_vm1, %v1628_v19  ;;  %v1560_v39 = vmax.f32 %v1206_v8, %v1493_v9  ;;  %v1207_v56 = vmax.f32 %v2896_v12, %v1142_v63  ;;  %v2911_v5 = vmax.f32 %v2909_v6, %v2910_v7  ;;  %v2915_v12 = vld [vmem:[#allocation14_spill] sm:$0xff] }
 0x156   : > { %v1601_v17 = vadd.f32 %v2637_v41, %v1562_v22  ;;  %v1563_v40 = vmax.f32 %v1209_v38, %v2178_v62  ;;  %v2913_v22 = vld [vmem:[#allocation13_spill] sm:$0xff] }
 0x157   : > { %v1599_v42 = vadd.f32 %v2637_v41, %v1560_v39  ;;  %v1561_v20 = vmax.f32 %v1207_v56, %v1496_v0  ;;  %v2914_v24 = vmax.f32 %v2912_v10, %v2913_v22  ;;  %v2916_v56 = vld [vmem:[#allocation15_spill] sm:$0xff] }
 0x158   : > { %v1633_v49 = vmax.f32 %v1601_v17, 0.0  ;;  %v1602_v53 = vadd.f32 %v2637_v41, %v1563_v40  ;;  %v2917_v0 = vmax.f32 %v2915_v12, %v2916_v56 }
 0x159   : > { %v1631_v23 = vmax.f32 %v1599_v42, 0.0  ;;  %v1600_v25 = vadd.f32 %v2637_v41, %v1561_v20  ;;  %v2145_v29 = vpop.f32.mrb[56].mxu0  ;;  %v2181_v32 = vpop.f32.mrb[56].mxu1 }
 0x15a   : > { %1666 = vst.msk [vmem:[%s2653_s27 + $0xb0] sm:$0xff] %vm1643_vm1, %v1633_v49  ;;  %v1634_v44 = vmax.f32 %v1602_v53, 0.0  ;;  %v1212_v11 = vmax.f32 %v2899_v45, %v2145_v29  ;;  %v1155_v35 = vpop.f32.mrb[57].mxu0  ;;  %v1509_v27 = vpop.f32.mrb[57].mxu1  ;;  %v2918_v49 = vld [vmem:[#allocation16_spill] sm:$0xff]  ;;  %v2919_v53 = vld [vmem:[#allocation17_spill] sm:$0xff] }
 0x15b   : > { %1664 = vst.msk [vmem:[%s2653_s27 + $0xa0] sm:$0xff] %vm1643_vm1, %v1631_v23  ;;  %v1632_v46 = vmax.f32 %v1600_v25, 0.0  ;;  %v1210_v26 = vmax.f32 %v2902_v61, %v1155_v35  ;;  %v2146_v1 = vpop.f32.mrb[58].mxu0  ;;  %v2182_v15 = vpop.f32.mrb[58].mxu1  ;;  %v2920_v23 = vmax.f32 %v2918_v49, %v2919_v53 }
 0x15c   : > { %1667 = vst.msk [vmem:[%s2653_s27 + $0xb8] sm:$0xff] %vm1643_vm1, %v1634_v44  ;;  %v1566_v2 = vmax.f32 %v1212_v11, %v2181_v32  ;;  %v1213_v14 = vmax.f32 %v2905_v3, %v2146_v1  ;;  %v1158_v50 = vpop.f32.mrb[59].mxu0  ;;  %v1512_v33 = vpop.f32.mrb[59].mxu1 }
 0x15d   : > { %1665 = vst.msk [vmem:[%s2653_s27 + $0xa8] sm:$0xff] %vm1643_vm1, %v1632_v46  ;;  %v1564_v51 = vmax.f32 %v1210_v26, %v1509_v27  ;;  %v1211_v54 = vmax.f32 %v2908_v52, %v1158_v50 }
 0x15e   : > { %v1605_v59 = vadd.f32 %v2637_v41, %v1566_v2  ;;  %v1567_v16 = vmax.f32 %v1213_v14, %v2182_v15 }
 0x15f   : > { %v1603_v18 = vadd.f32 %v2637_v41, %v1564_v51  ;;  %v1565_v55 = vmax.f32 %v1211_v54, %v1512_v33 }
 0x160   : > { %v1637_v57 = vmax.f32 %v1605_v59, 0.0  ;;  %v1606_v34 = vadd.f32 %v2637_v41, %v1567_v16 }
 0x161   : > { %v1635_v36 = vmax.f32 %v1603_v18, 0.0  ;;  %v1604_v4 = vadd.f32 %v2637_v41, %v1565_v55  ;;  %v2149_v58 = vpop.f32.mrb[60].mxu0  ;;  %v2185_v21 = vpop.f32.mrb[60].mxu1 }
 0x162   : > { %1670 = vst.msk [vmem:[%s2653_s27 + $0xd0] sm:$0xff] %vm1643_vm1, %v1637_v57  ;;  %v1638_v60 = vmax.f32 %v1606_v34, 0.0  ;;  %v1216_v19 = vmax.f32 %v2911_v5, %v2149_v58  ;;  %v1171_v8 = vpop.f32.mrb[61].mxu0  ;;  %v1525_v62 = vpop.f32.mrb[61].mxu1 }
 0x163   : > { %1668 = vst.msk [vmem:[%s2653_s27 + $0xc0] sm:$0xff] %vm1643_vm1, %v1635_v36  ;;  %v1636_v9 = vmax.f32 %v1604_v4, 0.0  ;;  %v1214_v38 = vmax.f32 %v2914_v24, %v1171_v8  ;;  %v2150_v63 = vpop.f32.mrb[62].mxu0  ;;  %v2186_v40 = vpop.f32.mrb[62].mxu1 }
 0x164   : > { %1671 = vst.msk [vmem:[%s2653_s27 + $0xd8] sm:$0xff] %vm1643_vm1, %v1638_v60  ;;  %v1570_v39 = vmax.f32 %v1216_v19, %v2185_v21  ;;  %v1217_v17 = vmax.f32 %v2917_v0, %v2150_v63  ;;  %v1174_v42 = vpop.f32.mrb[63].mxu0  ;;  %v1528_v29 = vpop.f32.mrb[63].mxu1 }
 0x165   : > { %1669 = vst.msk [vmem:[%s2653_s27 + $0xc8] sm:$0xff] %vm1643_vm1, %v1636_v9  ;;  %v1568_v20 = vmax.f32 %v1214_v38, %v1525_v62  ;;  %v1215_v25 = vmax.f32 %v2920_v23, %v1174_v42 }
 0x166   : > { %v1609_v44 = vadd.f32 %v2637_v41, %v1570_v39  ;;  %v1571_v47 = vmax.f32 %v1217_v17, %v2186_v40 }
 0x167   : > { %v1607_v43 = vadd.f32 %v2637_v41, %v1568_v20  ;;  %v1569_v45 = vmax.f32 %v1215_v25, %v1528_v29 }
 0x168   : > { %v1641_v11 = vmax.f32 %v1609_v44, 0.0  ;;  %v1610_v32 = vadd.f32 %v2637_v41, %v1571_v47 }
 0x169   : > { %v1639_v35 = vmax.f32 %v1607_v43, 0.0  ;;  %v1608_v46 = vadd.f32 %v2637_v41, %v1569_v45 }
 0x16a   : > { %1674 = vst.msk [vmem:[%s2653_s27 + $0xf0] sm:$0xff] %vm1643_vm1, %v1641_v11  ;;  %v1642_v48 = vmax.f32 %v1610_v32, 0.0 }
 0x16b   : > { %1672 = vst.msk [vmem:[%s2653_s27 + $0xe0] sm:$0xff] %vm1643_vm1, %v1639_v35  ;;  %v1640_v37 = vmax.f32 %v1608_v46, 0.0 }
 0x16c   : > { %1675 = vst.msk [vmem:[%s2653_s27 + $0xf8] sm:$0xff] %vm1643_vm1, %v1642_v48 }
 0x16d   : > { %1673 = vst.msk [vmem:[%s2653_s27 + $0xe8] sm:$0xff] %vm1643_vm1, %v1640_v37 }
 0x16e PF: > { %s13_s12 = sadd.s32 1, %s2267_s12  }
 0x16f   : > { %p10_p4 = scmp.ge.s32.totalorder %s13_s12, 4  }
 0x171   :  { %12 = sbr.rel (!%p10_p4) target bundleno = 1 (0x1), region = 65 }

// kernel: lenet_forward.7
= control target key start
LH: loop header
LB: loop body
LE: loop exit
PB: predicated region body
PF: predicated region fallthrough
CT: control target
= control target key end

     0   :  { %12 = vsyncpa [#allocation3], 0  ;;  %v166_v28 = vlaneseq  ;;  %v1177_v36 = vmov 1966171168   ;;  %s1467_s0 = inlined_call_operand.vmem [shape: bf16[2,1024], index: 0, kind: input, shape index: {}]   ;;  %s1468_s1 = inlined_call_operand.vmem [shape: bf16[1024,64], index: 1, kind: input, shape index: {}]   ;;  %s1469_s2 = inlined_call_operand.vmem [shape: f32[1,64], index: 2, kind: input, shape index: {}]   ;;  %s1470_s3 = inlined_call_operand.vmem [shape: bf16[64,128], index: 3, kind: input, shape index: {}]   ;;  %s1471_s4 = inlined_call_operand.vmem [shape: f32[1,128], index: 4, kind: input, shape index: {}]   ;;  %s1472_s5 = inlined_call_operand.hbm [shape: f32[2,64], index: 5, kind: output, shape index: {0}]   ;;  %s1473_s6 = inlined_call_operand.hbm [shape: f32[2,128], index: 6, kind: output, shape index: {1}]  }
   0x1   :  { %v1060_v0 = vld [vmem:[%s1468_s1 + $0x40] sm:$0xff]   ;;  %v1064_v4 = vld [vmem:[%s1468_s1 + $0x48] sm:$0xff]   ;;  %v1068_v8 = vld [vmem:[%s1468_s1 + $0x50] sm:$0xff]   ;;  %v164_v37 = vunpack.c.l.s4 %v1177_v36 }
   0x2   :  { %v1061_v1 = vld [vmem:[%s1468_s1 + $0xc0] sm:$0xff]   ;;  %950 = vmatprep.subr.bf16.mxu0 %v1060_v0  ;;  %v1065_v5 = vld [vmem:[%s1468_s1 + $0xc8] sm:$0xff]   ;;  %v1069_v9 = vld [vmem:[%s1468_s1 + $0xd0] sm:$0xff]   ;;  %v167_v33 = vshrl.u32 %v166_v28, 7 }
   0x3   :  { %v1062_v2 = vld [vmem:[%s1468_s1] sm:$0xff]   ;;  %972 = vmatprep.subr.bf16.mxu1 %v1061_v1  ;;  %v1066_v6 = vld [vmem:[%s1468_s1 + $0x8] sm:$0xff]   ;;  %v1070_v10 = vld [vmem:[%s1468_s1 + $0x10] sm:$0xff]   ;;  %v165_v40 = vunpack.c.0.s8 %v164_v37 }
   0x4   :  { %v1063_v3 = vld [vmem:[%s1468_s1 + $0x80] sm:$0xff]   ;;  %951 = vmatpush3.bf16.msra.mxu0 %v1062_v2  ;;  %v1067_v7 = vld [vmem:[%s1468_s1 + $0x88] sm:$0xff]   ;;  %v1071_v11 = vld [vmem:[%s1468_s1 + $0x90] sm:$0xff]  }
   0x5   :  { %973 = vmatpush3.bf16.msra.mxu1 %v1063_v3  ;;  %952 = vmatprep.subr.bf16.mxu0 %v1064_v4  ;;  %v1072_v12 = vld [vmem:[%s1468_s1 + $0x58] sm:$0xff]   ;;  %v1076_v16 = vld [vmem:[%s1468_s1 + $0x60] sm:$0xff]   ;;  %v1080_v20 = vld [vmem:[%s1468_s1 + $0x68] sm:$0xff]   ;;  %v1322_v41 = vsub.s32 %v165_v40, %v167_v33 }
   0x6   :  { %974 = vmatprep.subr.bf16.mxu1 %v1065_v5  ;;  %v1073_v13 = vld [vmem:[%s1468_s1 + $0xd8] sm:$0xff]   ;;  %v1077_v17 = vld [vmem:[%s1468_s1 + $0xe0] sm:$0xff]   ;;  %v1081_v21 = vld [vmem:[%s1468_s1 + $0xe8] sm:$0xff]  }
   0x7   :  { %v1074_v14 = vld [vmem:[%s1468_s1 + $0x18] sm:$0xff]   ;;  %v1078_v18 = vld [vmem:[%s1468_s1 + $0x20] sm:$0xff]   ;;  %v1082_v22 = vld [vmem:[%s1468_s1 + $0x28] sm:$0xff]  }
   0x8   :  { %953 = vmatpush3.bf16.msra.mxu0 %v1066_v6  ;;  %v1075_v15 = vld [vmem:[%s1468_s1 + $0x98] sm:$0xff]   ;;  %v1079_v19 = vld [vmem:[%s1468_s1 + $0xa0] sm:$0xff]   ;;  %v1083_v23 = vld [vmem:[%s1468_s1 + $0xa8] sm:$0xff]  }
   0x9   :  { %975 = vmatpush3.bf16.msra.mxu1 %v1067_v7  ;;  %954 = vmatprep.subr.bf16.mxu0 %v1068_v8  ;;  %v1084_v24 = vld [vmem:[%s1468_s1 + $0x70] sm:$0xff]   ;;  %v1088_v29 = vld [vmem:[%s1468_s1 + $0x78] sm:$0xff]   ;;  %v25_v34 = vld [vmem:[%s1467_s0] sm:$0xff] }
   0xa   :  { %976 = vmatprep.subr.bf16.mxu1 %v1069_v9  ;;  %v1085_v25 = vld [vmem:[%s1468_s1 + $0xf0] sm:$0xff]   ;;  %v1089_v30 = vld [vmem:[%s1468_s1 + $0xf8] sm:$0xff]   ;;  %v1093_v35 = vld [vmem:[%s1468_s1 + $0x140] sm:$0xff]   ;;  %v162_v39 = vcombine.high %v25_v34, %v25_v34  ;;  %v169_v42 = vrot.slane %v25_v34, %v1322_v41 }
   0xb   :  { %v1086_v26 = vld [vmem:[%s1468_s1 + $0x30] sm:$0xff]   ;;  %v1090_v31 = vld [vmem:[%s1468_s1 + $0x38] sm:$0xff]   ;;  %v1094_v38 = vld [vmem:[%s1468_s1 + $0x1c0] sm:$0xff]  }
   0xc   :  { %955 = vmatpush3.bf16.msra.mxu0 %v1070_v10  ;;  %v1087_v27 = vld [vmem:[%s1468_s1 + $0xb0] sm:$0xff]   ;;  %v1091_v32 = vld [vmem:[%s1468_s1 + $0xb8] sm:$0xff]   ;;  %v1326_v43 = vrot.slane %v162_v39, %v1322_v41  ;;  %v177_v44 = vcombine.high %v169_v42, %v169_v42  ;;  %v185_v45 = vrot.slane %v169_v42, %v1322_v41  ;;  %v1095_v47 = vld [vmem:[%s1468_s1 + $0x100] sm:$0xff]  }
   0xd   :  { %977 = vmatpush3.bf16.msra.mxu1 %v1071_v11  ;;  %956 = vmatprep.subr.bf16.mxu0 %v1072_v12  ;;  %v1096_v49 = vld [vmem:[%s1468_s1 + $0x180] sm:$0xff]   ;;  %v1097_v52 = vld [vmem:[%s1468_s1 + $0x148] sm:$0xff]   ;;  %v1101_v58 = vld [vmem:[%s1468_s1 + $0x150] sm:$0xff]  }
   0xe   :  { %978 = vmatprep.subr.bf16.mxu1 %v1073_v13  ;;  %v178_v46 = vcombine.high %v1326_v43, %v1326_v43  ;;  %v199_v48 = vrot.slane %v177_v44, %v1322_v41  ;;  %v207_v51 = vcombine.high %v185_v45, %v185_v45  ;;  %v1098_v54 = vld [vmem:[%s1468_s1 + $0x1c8] sm:$0xff]   ;;  %v1102_v59 = vld [vmem:[%s1468_s1 + $0x1d0] sm:$0xff]   ;;  %v1105_v62 = vld [vmem:[%s1468_s1 + $0x158] sm:$0xff]  }
   0xf   :  { %v1099_v55 = vld [vmem:[%s1468_s1 + $0x108] sm:$0xff]   ;;  %v1103_v60 = vld [vmem:[%s1468_s1 + $0x110] sm:$0xff]   ;;  %v1106_v63 = vld [vmem:[%s1468_s1 + $0x1d8] sm:$0xff]  }
  0x10   :  { %957 = vmatpush3.bf16.msra.mxu0 %v1074_v14  ;;  %v206_v50 = vrot.slane %v178_v46, %v1322_v41  ;;  %635 = vmatprep.mubr.bf16.mxu0 %v199_v48  ;;  %v209_v53 = vcombine.high %v199_v48, %v199_v48  ;;  %v1100_v57 = vld [vmem:[%s1468_s1 + $0x188] sm:$0xff]   ;;  %v1104_v61 = vld [vmem:[%s1468_s1 + $0x190] sm:$0xff]   ;;  %v1107_v0 = vld [vmem:[%s1468_s1 + $0x118] sm:$0xff]  }
  0x11   :  { %979 = vmatpush3.bf16.msra.mxu1 %v1075_v15  ;;  %958 = vmatprep.subr.bf16.mxu0 %v1076_v16  ;;  %v1108_v1 = vld [vmem:[%s1468_s1 + $0x198] sm:$0xff]   ;;  %v1109_v2 = vld [vmem:[%s1468_s1 + $0x160] sm:$0xff]   ;;  %v1113_v6 = vld [vmem:[%s1468_s1 + $0x168] sm:$0xff]  }
  0x12   :  { %980 = vmatprep.subr.bf16.mxu1 %v1077_v17  ;;  %v210_v56 = vcombine.high %v206_v50, %v206_v50  ;;  %675 = vmatprep.mubr.bf16.mxu1 %v209_v53  ;;  %v1110_v3 = vld [vmem:[%s1468_s1 + $0x1e0] sm:$0xff]   ;;  %v1114_v7 = vld [vmem:[%s1468_s1 + $0x1e8] sm:$0xff]   ;;  %v1117_v10 = vld [vmem:[%s1468_s1 + $0x170] sm:$0xff]  }
  0x13   :  { %v1111_v4 = vld [vmem:[%s1468_s1 + $0x120] sm:$0xff]   ;;  %v1115_v8 = vld [vmem:[%s1468_s1 + $0x128] sm:$0xff]   ;;  %v1118_v11 = vld [vmem:[%s1468_s1 + $0x1f0] sm:$0xff]  }
  0x14   :  { %959 = vmatpush3.bf16.msra.mxu0 %v1078_v18  ;;  %v1112_v5 = vld [vmem:[%s1468_s1 + $0x1a0] sm:$0xff]   ;;  %v1116_v9 = vld [vmem:[%s1468_s1 + $0x1a8] sm:$0xff]   ;;  %v1119_v12 = vld [vmem:[%s1468_s1 + $0x130] sm:$0xff]  }
  0x15   :  { %981 = vmatpush3.bf16.msra.mxu1 %v1079_v19  ;;  %960 = vmatprep.subr.bf16.mxu0 %v1080_v20 }
  0x16   :  { %982 = vmatprep.subr.bf16.mxu1 %v1081_v21 }
  0x18   :  { %961 = vmatpush3.bf16.msra.mxu0 %v1082_v22 }
  0x19   :  { %983 = vmatpush3.bf16.msra.mxu1 %v1083_v23  ;;  %962 = vmatprep.subr.bf16.mxu0 %v1084_v24 }
  0x1a   :  { %984 = vmatprep.subr.bf16.mxu1 %v1085_v25 }
  0x1c   :  { %963 = vmatpush3.bf16.msra.mxu0 %v1086_v26 }
  0x1d   :  { %985 = vmatpush3.bf16.msra.mxu1 %v1087_v27  ;;  %964 = vmatprep.subr.bf16.mxu0 %v1088_v29 }
  0x1e   :  { %986 = vmatprep.subr.bf16.mxu1 %v1089_v30 }
  0x20   :  { %965 = vmatpush3.bf16.msra.mxu0 %v1090_v31 }
  0x21   :  { %987 = vmatpush3.bf16.msra.mxu1 %v1091_v32  ;;  %994 = vmatprep.subr.bf16.mxu0 %v1093_v35 }
  0x22   :  { %1016 = vmatprep.subr.bf16.mxu1 %v1094_v38 }
  0x23   :  { %636 = vmatmul.mubr.bf16.vlgmr.msra.gmra.mrb[0].mxu0 %v185_v45 }
  0x24   :  { %995 = vmatpush3.bf16.msra.mxu0 %v1095_v47  ;;  %676 = vmatmul.mubr.bf16.vlgmr.msra.gmra.mrb[0].mxu1 %v207_v51 }
  0x25   :  { %996 = vmatprep.subr.bf16.mxu0 %v1097_v52  ;;  %1017 = vmatpush3.bf16.msra.mxu1 %v1096_v49 }
  0x26   :  { %715 = vmatprep.mubr.bf16.mxu0 %v206_v50  ;;  %1018 = vmatprep.subr.bf16.mxu1 %v1098_v54 }
  0x27   :  { %755 = vmatprep.mubr.bf16.mxu1 %v210_v56 }
  0x28   :  { %997 = vmatpush3.bf16.msra.mxu0 %v1099_v55 }
  0x29   :  { %998 = vmatprep.subr.bf16.mxu0 %v1101_v58  ;;  %1019 = vmatpush3.bf16.msra.mxu1 %v1100_v57 }
  0x2a   :  { %1020 = vmatprep.subr.bf16.mxu1 %v1102_v59 }
  0x2c   :  { %999 = vmatpush3.bf16.msra.mxu0 %v1103_v60 }
  0x2d   :  { %1000 = vmatprep.subr.bf16.mxu0 %v1105_v62  ;;  %1021 = vmatpush3.bf16.msra.mxu1 %v1104_v61 }
  0x2e   :  { %1022 = vmatprep.subr.bf16.mxu1 %v1106_v63 }
  0x30   :  { %1001 = vmatpush3.bf16.msra.mxu0 %v1107_v0 }
  0x31   :  { %1002 = vmatprep.subr.bf16.mxu0 %v1109_v2  ;;  %1023 = vmatpush3.bf16.msra.mxu1 %v1108_v1 }
  0x32   :  { %1024 = vmatprep.subr.bf16.mxu1 %v1110_v3 }
  0x34   :  { %1003 = vmatpush3.bf16.msra.mxu0 %v1111_v4 }
  0x35   :  { %1004 = vmatprep.subr.bf16.mxu0 %v1113_v6  ;;  %1025 = vmatpush3.bf16.msra.mxu1 %v1112_v5 }
  0x36   :  { %1026 = vmatprep.subr.bf16.mxu1 %v1114_v7 }
  0x38   :  { %1005 = vmatpush3.bf16.msra.mxu0 %v1115_v8 }
  0x39   :  { %13 = vsyncpa [#allocation5], 0  ;;  %1006 = vmatprep.subr.bf16.mxu0 %v1117_v10  ;;  %v1121_v13 = vld [vmem:[%s1468_s1 + $0x178] sm:$0xff]   ;;  %1027 = vmatpush3.bf16.msra.mxu1 %v1116_v9  ;;  %v1120_v14 = vld [vmem:[%s1468_s1 + $0x1b0] sm:$0xff]   ;;  %v192_v17 = vrot.slane %v1326_v43, %v1322_v41  ;;  %v1178_v21 = vmov 0.0   ;;  %vm1179_vm0 = vmmov 0  }
  0x3a   :  { %1028 = vmatprep.subr.bf16.mxu1 %v1118_v11  ;;  %v1122_v15 = vld [vmem:[%s1468_s1 + $0x1f8] sm:$0xff]   ;;  %v1125_v20 = vld [vmem:[%s1470_s3] sm:$0xff]   ;;  %v1126_v22 = vld [vmem:[%s1470_s3 + $0x8] sm:$0xff]   ;;  %vm764_vm1 = vcmask 517120   ;;  %vm806_vm2 = vcmask 523264  }
  0x3b   :  { %v1123_v16 = vld [vmem:[%s1468_s1 + $0x138] sm:$0xff]   ;;  %v208_v19 = vcombine.high %v192_v17, %v192_v17  ;;  %v1127_v23 = vld [vmem:[%s1470_s3 + $0x10] sm:$0xff]   ;;  %v879_v26 = vld [vmem:[%s1469_s2] ss:$0 sm:$0xff]  ;;  %s1180_s2 = smov [#allocation2]  }
  0x3c   :  { %1007 = vmatpush3.bf16.msra.mxu0 %v1119_v12  ;;  %v1124_v18 = vld [vmem:[%s1468_s1 + $0x1b8] sm:$0xff]  }
  0x3d   :  { %1008 = vmatprep.subr.bf16.mxu0 %v1121_v13  ;;  %1029 = vmatpush3.bf16.msra.mxu1 %v1120_v14  ;;  %v1128_v24 = vld [vmem:[%s1470_s3 + $0x18] sm:$0xff]   ;;  %s857_s3 = sshll.u32 %s1180_s2, 4  ;;  %s858_s3 = int_to_ptr.vmem [resolvable:$true] %s857_s3 }
  0x3e   :  { %1030 = vmatprep.subr.bf16.mxu1 %v1122_v15  ;;  %s1129_s13 = scalar_lea.vmem %s858_s3, 32  ;;  %p1134_p1 = scmp.lt.s32.totalorder %s858_s3, %s858_s3 }
  0x3f   :  { %p1130_p0 = scmp.ne.s32.totalorder %s858_s3, %s1129_s13  ;;  %p1135_p2 = scmp.lt.s32.totalorder %s1129_s13, %s1129_s13 }
  0x40   :  { %1009 = vmatpush3.bf16.msra.mxu0 %v1123_v16 }
  0x41   :  { %1031 = vmatpush3.bf16.msra.mxu1 %v1124_v18  ;;  %1043 = vmatprep.subr.bf16.mxu0 %v1178_v21  ;;  %p1136_p3 = por %p1135_p2, %p1134_p1 }
  0x43   :  { %716 = vmatmul.mubr.bf16.vlgmr.msra.gmra.mrb[4].mxu0 %v192_v17  ;;  %p1137_p4 = pnand %p1136_p3, %p1130_p0 }
  0x44   :  { %756 = vmatmul.mubr.bf16.vlgmr.msra.gmra.mrb[4].mxu1 %v208_v19  ;;  %1044 = vmatpush3.bf16.msra.mxu0 %v1125_v20 }
  0x45   :  { %1045 = vmatprep.subr.bf16.mxu0 %v1178_v21  ;;  %1051 = vmatprep.mubr.msk.bf16.mxu0 %vm1179_vm0, %v1178_v21 }
  0x48   :  { %1046 = vmatpush3.bf16.msra.mxu0 %v1126_v22 }
  0x49   :  { %1047 = vmatprep.subr.bf16.mxu0 %v1178_v21 }
  0x4c   :  { %1048 = vmatpush3.bf16.msra.mxu0 %v1127_v23 }
  0x4d   :  { %1049 = vmatprep.subr.bf16.mxu0 %v1178_v21 }
  0x50   :  { %1050 = vmatpush3.bf16.msra.mxu0 %v1128_v24 }
  0xf6   :  { %v966_v25 = vpop.f32.mrb[0].mxu0 }
  0xf7   :  { %v967_v27 = vpop.f32.mrb[1].mxu0  ;;  %v988_v28 = vpop.f32.mrb[0].mxu1 }
  0xf8   :  { %v968_v29 = vadd.f32 %v967_v27, %v966_v25  ;;  %v969_v30 = vpop.f32.mrb[2].mxu0  ;;  %v989_v31 = vpop.f32.mrb[1].mxu1 }
  0xf9   :  { %v970_v32 = vpop.f32.mrb[3].mxu0  ;;  %v990_v34 = vadd.f32 %v989_v31, %v988_v28  ;;  %v991_v35 = vpop.f32.mrb[2].mxu1 }
  0xfa   :  { %v638_v33 = vadd.f32 %v968_v29, %v879_v26  ;;  %v992_v36 = vpop.f32.mrb[3].mxu1 }
  0xfc   :  { %v678_v37 = vadd.f32 %v990_v34, %v638_v33 }
 0x116   :  { %v1010_v38 = vpop.f32.mrb[4].mxu0 }
 0x117   :  { %v1011_v39 = vpop.f32.mrb[5].mxu0  ;;  %v1032_v40 = vpop.f32.mrb[4].mxu1 }
 0x118   :  { %v1012_v41 = vadd.f32 %v1011_v39, %v1010_v38  ;;  %v1013_v42 = vpop.f32.mrb[6].mxu0  ;;  %v1033_v43 = vpop.f32.mrb[5].mxu1 }
 0x119   :  { %v1014_v44 = vpop.f32.mrb[7].mxu0  ;;  %v1034_v46 = vadd.f32 %v1033_v43, %v1032_v40  ;;  %v1035_v47 = vpop.f32.mrb[6].mxu1 }
 0x11a   :  { %v718_v45 = vadd.f32 %v1012_v41, %v678_v37  ;;  %v1036_v48 = vpop.f32.mrb[7].mxu1 }
 0x11c   :  { %v758_v49 = vadd.f32 %v1034_v46, %v718_v45 }
 0x11e   :  { %v763_v50 = vmax.f32 %v758_v49, 0.0 }
 0x120   :  { %v766_v51 = vpack.c.bf16 %v763_v50, %v763_v50  ;;  %765 = vst.msk [vmem:[#allocation2] sm:$0x3] %vm764_vm1, %v763_v50 }
 0x122   :  { %1052 = vmatmul.mubr.msk.bf16.vlgmr.msra.gmra.mrb[8].mxu0 %vm806_vm2, %v766_v51 }
 0x123   :  { %1140 = shalt.err (!%p1137_p4)
}
 0x124   :  { %s1141_s16 = scalar_lea.hbm %s1472_s5, 32 }
 0x125   :  { %p1142_p5 = scmp.ne.s32.totalorder %s1472_s5, %s1141_s16  ;;  %p1145_p6 = scmp.lt.u32.totalorder %s1141_s16, %s1472_s5 }
 0x127   :  { %p1147_p7 = pnand %p1145_p6, %p1142_p5 }
 0x129   :  { %1150 = shalt.err (!%p1147_p7)
}
 0x12a   :  { %860 = dma.vmem_to_hbm [thread:$0]  %s858_s3, 32, %s1472_s5, [#allocation3]   ;;  %v944_v52 = vld [vmem:[%s1471_s4] ss:$0 sm:$0xff] }
 0x12b   :  { %s1181_s24 = smov [#allocation4]  }
 0x12c   :  { %s867_s25 = sshll.u32 %s1181_s24, 4  ;;  %s868_s25 = int_to_ptr.vmem [resolvable:$true] %s867_s25 }
 0x12d   :  { %s1151_s26 = scalar_lea.vmem %s868_s25, 32  ;;  %p1156_p9 = scmp.lt.s32.totalorder %s868_s25, %s868_s25 }
 0x12e   :  { %p1152_p8 = scmp.ne.s32.totalorder %s868_s25, %s1151_s26  ;;  %p1157_p10 = scmp.lt.s32.totalorder %s1151_s26, %s1151_s26 }
 0x130   :  { %p1158_p11 = por %p1157_p10, %p1156_p9 }
 0x132   :  { %p1159_p12 = pnand %p1158_p11, %p1152_p8 }
 0x1f5   :  { %v844_v53 = vpop.f32.mrb[8].mxu0 }
 0x1f6   :  { %v845_v54 = vadd.f32 %v944_v52, %v844_v53  ;;  %v1053_v55 = vpop.f32.mrb[9].mxu0 }
 0x1f7   :  { %v847_v56 = vpop.f32.mrb[10].mxu0 }
 0x1f8   :  { %850 = vst [vmem:[#allocation4] sm:$0x3] %v845_v54  ;;  %v1054_v57 = vpop.f32.mrb[11].mxu0 }
 0x1f9   :  { %1162 = shalt.err (!%p1159_p12)
}
 0x1fa   :  { %s1163_s4 = scalar_lea.hbm %s1473_s6, 32 }
 0x1fb   :  { %p1164_p13 = scmp.ne.s32.totalorder %s1473_s6, %s1163_s4  ;;  %p1167_p0 = scmp.lt.u32.totalorder %s1163_s4, %s1473_s6 }
 0x1fd   :  { %p1169_p1 = pnand %p1167_p0, %p1164_p13 }
 0x1ff   :  { %1172 = shalt.err (!%p1169_p1)
}
 0x200   :  { %870 = dma.vmem_to_hbm [thread:$0]  %s868_s25, 32, %s1473_s6, [#allocation5]  }
 0x201   :  { %1173 = dma.done.wait [#allocation3], 32  }
 0x202   :  { %1174 = vsyncadd [#allocation3], 4294967264 }
 0x203   :  { %1175 = dma.done.wait [#allocation5], 32  }
 0x204   :  { %1176 = vsyncadd [#allocation5], 4294967264 }
 0x205   :  { %877 = vsyncpa [#allocation3], 1 }
 0x206   :  { %878 = vsyncpa [#allocation5], 1 }

// kernel: lenet_forward.6
= control target key start
LH: loop header
LB: loop body
LE: loop exit
PB: predicated region body
PF: predicated region fallthrough
CT: control target
= control target key end

     0   :  { %s6887_s12 = smov 0   ;;  %s6889_s13 = smov 0   ;;  %s8635_s0 = inlined_call_operand.vmem [shape: bf16[2,8192], index: 0, kind: input, shape index: {}]   ;;  %s8636_s1 = inlined_call_operand.vmem [shape: bf16[8192,1024], index: 1, kind: input, shape index: {}]   ;;  %s8637_s2 = inlined_call_operand.vmem [shape: f32[1,1024], index: 2, kind: input, shape index: {}]   ;;  %s8638_s3 = inlined_call_operand.vmem [shape: bf16[2,1024], index: 3, kind: output, shape index: {}]  }
   0x1   :  { %s6891_s14 = smov 0   ;;  %s6893_s15 = smov 0  }
   0x2   :  { %s6895_s16 = smov 0   ;;  %s6897_s17 = smov 0  }
   0x3   :  { %s6899_s18 = smov 0  }
   0x4 LB: > { %s25_s19 = sadd.s32 1, %s6854_s16  ;;  %s28_s20 = sadd.s32 1, %s6858_s17  ;;  %s6862_s18 = sphi %s6899_s18, %s13_s18   ;;  %s6858_s17 = sphi %s6897_s17, %s8644_s17   ;;  %s6854_s16 = sphi %s6895_s16, %s8643_s16   ;;  %s6850_s15 = sphi %s6893_s15, %s8642_s15   ;;  %s6846_s14 = sphi %s6891_s14, %s8641_s14   ;;  %s6842_s13 = sphi %s6889_s13, %s8640_s13   ;;  %s6838_s12 = sphi %s6887_s12, %s8639_s12  }
   0x5   : > { %p26_p0 = scmp.ge.s32.totalorder %s25_s19, 4  ;;  %p76_p1 = scmp.ne.s32.totalorder %s6842_s13, %s6838_s12 }
   0x6   : > { %p77_p2 = scmp.eq.s32.totalorder %s6862_s18, 0  ;;  %s69_s24 = sadd.s32 1, %s6842_s13 }
   0x7   : > { %s8646_s19 = smov (%p26_p0, %s25_s19), 0  ;;  %s8648_s20 = smov (!%p26_p0, %s28_s20), %s6858_s17 }
   0x8   : > { %p78_p3 = por %p77_p2, %p76_p1  ;;  %p30_p4 = scmp.ge.s32.totalorder %s8648_s20, 2 }
   0x9   : > { %s64_s21 = ssub.s32 %s6854_s16, %s8646_s19  ;;  %p5392_p6 = scmp.ge.s32.totalorder %s6862_s18, 8 }
   0xa   : > { %s8650_s20 = smov (%p30_p4, %s8648_s20), 0 }
   0xb   : > { %s65_s22 = ssub.s32 %s6858_s17, %s8650_s20  ;;  %156 = sbr.rel (%p5392_p6) target bundleno = 281 (0x119), region = 16 }
   0xc   : > { %s66_s23 = sor.u32 %s65_s22, %s64_s21 }
   0xd   : > { %p67_p5 = scmp.eq.s32.totalorder %s66_s23, 0 }
   0xf   : > { %s6938_s25 = scalar_select %p67_p5, %s6842_s13, %s69_s24  }
  0x12   : > { %171 = sbr.rel (!%p78_p3) target bundleno = 281 (0x119), region = 24  ;;  %s173_s26 = sand.u32 (%p78_p3), 1, %s6842_s13  }
  0x13   : > { %s5395_s27 = sshll.u32 (%p78_p3), %s6858_s17, 2  ;;  %s5393_s28 = sshll.u32 (%p78_p3), %s173_s26, 12 }
  0x14   : > { %s5922_s29 = sshll.u32 (%p78_p3), %s6854_s16, 11  ;;  %s6952_s8 = scalar_lea.vmem (%p78_p3), [#allocation3], %s5393_s28 }
  0x15   : > { %s179_s30 = sadd.s32 (%p78_p3), %s5922_s29, %s5395_s27 }
  0x16   : > { %s5397_s4 = sshll.u32 (%p78_p3), %s179_s30, 2 }
  0x17   : > { %s6947_s7 = scalar_lea.vmem (%p78_p3), %s8636_s1, %s5397_s4 }
  0x18   : > { %v194_v0 = vld [vmem:[%s6947_s7] sm:$0xff] (%p78_p3)  ;;  %v196_v1 = vld [vmem:[%s6947_s7 + $0x8] sm:$0xff] (%p78_p3) }
  0x19   : > { %v198_v2 = vld [vmem:[%s6947_s7 + $0x20] sm:$0xff]  ;;  %195 = vst [vmem:[%s6952_s8] sm:$0xff] %v194_v0  ;;  %197 = vst [vmem:[%s6952_s8 + $0x8] sm:$0xff] %v196_v1  ;;  %v200_v3 = vld [vmem:[%s6947_s7 + $0x28] sm:$0xff] }
  0x1a   : > { %199 = vst [vmem:[%s6952_s8 + $0x10] sm:$0xff] %v198_v2  ;;  %v202_v4 = vld [vmem:[%s6947_s7 + $0x40] sm:$0xff]  ;;  %v204_v5 = vld [vmem:[%s6947_s7 + $0x48] sm:$0xff]  ;;  %201 = vst [vmem:[%s6952_s8 + $0x18] sm:$0xff] %v200_v3 }
  0x1b   : > { %203 = vst [vmem:[%s6952_s8 + $0x20] sm:$0xff] %v202_v4  ;;  %205 = vst [vmem:[%s6952_s8 + $0x28] sm:$0xff] %v204_v5  ;;  %v206_v6 = vld [vmem:[%s6947_s7 + $0x60] sm:$0xff]  ;;  %v208_v7 = vld [vmem:[%s6947_s7 + $0x68] sm:$0xff] }
  0x1c   : > { %v210_v8 = vld [vmem:[%s6947_s7 + $0x80] sm:$0xff]  ;;  %207 = vst [vmem:[%s6952_s8 + $0x30] sm:$0xff] %v206_v6  ;;  %209 = vst [vmem:[%s6952_s8 + $0x38] sm:$0xff] %v208_v7  ;;  %v212_v9 = vld [vmem:[%s6947_s7 + $0x88] sm:$0xff] }
  0x1d   : > { %211 = vst [vmem:[%s6952_s8 + $0x40] sm:$0xff] %v210_v8  ;;  %v214_v10 = vld [vmem:[%s6947_s7 + $0xa0] sm:$0xff]  ;;  %v216_v11 = vld [vmem:[%s6947_s7 + $0xa8] sm:$0xff]  ;;  %213 = vst [vmem:[%s6952_s8 + $0x48] sm:$0xff] %v212_v9 }
  0x1e   : > { %215 = vst [vmem:[%s6952_s8 + $0x50] sm:$0xff] %v214_v10  ;;  %217 = vst [vmem:[%s6952_s8 + $0x58] sm:$0xff] %v216_v11  ;;  %v218_v12 = vld [vmem:[%s6947_s7 + $0xc0] sm:$0xff]  ;;  %v220_v13 = vld [vmem:[%s6947_s7 + $0xc8] sm:$0xff] }
  0x1f   : > { %v222_v14 = vld [vmem:[%s6947_s7 + $0xe0] sm:$0xff]  ;;  %219 = vst [vmem:[%s6952_s8 + $0x60] sm:$0xff] %v218_v12  ;;  %221 = vst [vmem:[%s6952_s8 + $0x68] sm:$0xff] %v220_v13  ;;  %v224_v15 = vld [vmem:[%s6947_s7 + $0xe8] sm:$0xff] }
  0x20   : > { %223 = vst [vmem:[%s6952_s8 + $0x70] sm:$0xff] %v222_v14  ;;  %v226_v16 = vld [vmem:[%s6947_s7 + $0x100] sm:$0xff]  ;;  %v228_v17 = vld [vmem:[%s6947_s7 + $0x108] sm:$0xff]  ;;  %225 = vst [vmem:[%s6952_s8 + $0x78] sm:$0xff] %v224_v15 }
  0x21   : > { %227 = vst [vmem:[%s6952_s8 + $0x80] sm:$0xff] %v226_v16  ;;  %229 = vst [vmem:[%s6952_s8 + $0x88] sm:$0xff] %v228_v17  ;;  %v230_v18 = vld [vmem:[%s6947_s7 + $0x120] sm:$0xff]  ;;  %v232_v19 = vld [vmem:[%s6947_s7 + $0x128] sm:$0xff] }
  0x22   : > { %v234_v20 = vld [vmem:[%s6947_s7 + $0x140] sm:$0xff]  ;;  %231 = vst [vmem:[%s6952_s8 + $0x90] sm:$0xff] %v230_v18  ;;  %233 = vst [vmem:[%s6952_s8 + $0x98] sm:$0xff] %v232_v19  ;;  %v236_v21 = vld [vmem:[%s6947_s7 + $0x148] sm:$0xff] }
  0x23   : > { %235 = vst [vmem:[%s6952_s8 + $0xa0] sm:$0xff] %v234_v20  ;;  %v238_v22 = vld [vmem:[%s6947_s7 + $0x160] sm:$0xff]  ;;  %v240_v23 = vld [vmem:[%s6947_s7 + $0x168] sm:$0xff]  ;;  %237 = vst [vmem:[%s6952_s8 + $0xa8] sm:$0xff] %v236_v21 }
  0x24   : > { %239 = vst [vmem:[%s6952_s8 + $0xb0] sm:$0xff] %v238_v22  ;;  %241 = vst [vmem:[%s6952_s8 + $0xb8] sm:$0xff] %v240_v23  ;;  %v242_v24 = vld [vmem:[%s6947_s7 + $0x180] sm:$0xff]  ;;  %v244_v25 = vld [vmem:[%s6947_s7 + $0x188] sm:$0xff] }
  0x25   : > { %v246_v26 = vld [vmem:[%s6947_s7 + $0x1a0] sm:$0xff]  ;;  %243 = vst [vmem:[%s6952_s8 + $0xc0] sm:$0xff] %v242_v24  ;;  %245 = vst [vmem:[%s6952_s8 + $0xc8] sm:$0xff] %v244_v25  ;;  %v248_v27 = vld [vmem:[%s6947_s7 + $0x1a8] sm:$0xff] }
  0x26   : > { %247 = vst [vmem:[%s6952_s8 + $0xd0] sm:$0xff] %v246_v26  ;;  %v250_v28 = vld [vmem:[%s6947_s7 + $0x1c0] sm:$0xff]  ;;  %v252_v29 = vld [vmem:[%s6947_s7 + $0x1c8] sm:$0xff]  ;;  %249 = vst [vmem:[%s6952_s8 + $0xd8] sm:$0xff] %v248_v27 }
  0x27   : > { %251 = vst [vmem:[%s6952_s8 + $0xe0] sm:$0xff] %v250_v28  ;;  %253 = vst [vmem:[%s6952_s8 + $0xe8] sm:$0xff] %v252_v29  ;;  %v254_v30 = vld [vmem:[%s6947_s7 + $0x1e0] sm:$0xff]  ;;  %v256_v31 = vld [vmem:[%s6947_s7 + $0x1e8] sm:$0xff] }
  0x28   : > { %v258_v32 = vld [vmem:[%s6947_s7 + $0x200] sm:$0xff]  ;;  %255 = vst [vmem:[%s6952_s8 + $0xf0] sm:$0xff] %v254_v30  ;;  %257 = vst [vmem:[%s6952_s8 + $0xf8] sm:$0xff] %v256_v31  ;;  %v260_v33 = vld [vmem:[%s6947_s7 + $0x208] sm:$0xff] }
  0x29   : > { %259 = vst [vmem:[%s6952_s8 + $0x100] sm:$0xff] %v258_v32  ;;  %v262_v34 = vld [vmem:[%s6947_s7 + $0x220] sm:$0xff]  ;;  %v264_v35 = vld [vmem:[%s6947_s7 + $0x228] sm:$0xff]  ;;  %261 = vst [vmem:[%s6952_s8 + $0x108] sm:$0xff] %v260_v33 }
  0x2a   : > { %263 = vst [vmem:[%s6952_s8 + $0x110] sm:$0xff] %v262_v34  ;;  %265 = vst [vmem:[%s6952_s8 + $0x118] sm:$0xff] %v264_v35  ;;  %v266_v36 = vld [vmem:[%s6947_s7 + $0x240] sm:$0xff]  ;;  %v268_v37 = vld [vmem:[%s6947_s7 + $0x248] sm:$0xff] }
  0x2b   : > { %v270_v38 = vld [vmem:[%s6947_s7 + $0x260] sm:$0xff]  ;;  %267 = vst [vmem:[%s6952_s8 + $0x120] sm:$0xff] %v266_v36  ;;  %269 = vst [vmem:[%s6952_s8 + $0x128] sm:$0xff] %v268_v37  ;;  %v272_v39 = vld [vmem:[%s6947_s7 + $0x268] sm:$0xff] }
  0x2c   : > { %271 = vst [vmem:[%s6952_s8 + $0x130] sm:$0xff] %v270_v38  ;;  %v274_v40 = vld [vmem:[%s6947_s7 + $0x280] sm:$0xff]  ;;  %v276_v41 = vld [vmem:[%s6947_s7 + $0x288] sm:$0xff]  ;;  %273 = vst [vmem:[%s6952_s8 + $0x138] sm:$0xff] %v272_v39 }
  0x2d   : > { %275 = vst [vmem:[%s6952_s8 + $0x140] sm:$0xff] %v274_v40  ;;  %277 = vst [vmem:[%s6952_s8 + $0x148] sm:$0xff] %v276_v41  ;;  %v278_v42 = vld [vmem:[%s6947_s7 + $0x2a0] sm:$0xff]  ;;  %v280_v43 = vld [vmem:[%s6947_s7 + $0x2a8] sm:$0xff] }
  0x2e   : > { %v282_v44 = vld [vmem:[%s6947_s7 + $0x2c0] sm:$0xff]  ;;  %279 = vst [vmem:[%s6952_s8 + $0x150] sm:$0xff] %v278_v42  ;;  %281 = vst [vmem:[%s6952_s8 + $0x158] sm:$0xff] %v280_v43  ;;  %v284_v45 = vld [vmem:[%s6947_s7 + $0x2c8] sm:$0xff] }
  0x2f   : > { %283 = vst [vmem:[%s6952_s8 + $0x160] sm:$0xff] %v282_v44  ;;  %v286_v46 = vld [vmem:[%s6947_s7 + $0x2e0] sm:$0xff]  ;;  %v288_v47 = vld [vmem:[%s6947_s7 + $0x2e8] sm:$0xff]  ;;  %285 = vst [vmem:[%s6952_s8 + $0x168] sm:$0xff] %v284_v45 }
  0x30   : > { %287 = vst [vmem:[%s6952_s8 + $0x170] sm:$0xff] %v286_v46  ;;  %289 = vst [vmem:[%s6952_s8 + $0x178] sm:$0xff] %v288_v47  ;;  %v290_v48 = vld [vmem:[%s6947_s7 + $0x300] sm:$0xff]  ;;  %v292_v49 = vld [vmem:[%s6947_s7 + $0x308] sm:$0xff] }
  0x31   : > { %v294_v50 = vld [vmem:[%s6947_s7 + $0x320] sm:$0xff]  ;;  %291 = vst [vmem:[%s6952_s8 + $0x180] sm:$0xff] %v290_v48  ;;  %293 = vst [vmem:[%s6952_s8 + $0x188] sm:$0xff] %v292_v49  ;;  %v296_v51 = vld [vmem:[%s6947_s7 + $0x328] sm:$0xff] }
  0x32   : > { %295 = vst [vmem:[%s6952_s8 + $0x190] sm:$0xff] %v294_v50  ;;  %v298_v52 = vld [vmem:[%s6947_s7 + $0x340] sm:$0xff]  ;;  %v300_v53 = vld [vmem:[%s6947_s7 + $0x348] sm:$0xff]  ;;  %297 = vst [vmem:[%s6952_s8 + $0x198] sm:$0xff] %v296_v51 }
  0x33   : > { %299 = vst [vmem:[%s6952_s8 + $0x1a0] sm:$0xff] %v298_v52  ;;  %301 = vst [vmem:[%s6952_s8 + $0x1a8] sm:$0xff] %v300_v53  ;;  %v302_v54 = vld [vmem:[%s6947_s7 + $0x360] sm:$0xff]  ;;  %v304_v55 = vld [vmem:[%s6947_s7 + $0x368] sm:$0xff] }
  0x34   : > { %v306_v56 = vld [vmem:[%s6947_s7 + $0x380] sm:$0xff]  ;;  %303 = vst [vmem:[%s6952_s8 + $0x1b0] sm:$0xff] %v302_v54  ;;  %305 = vst [vmem:[%s6952_s8 + $0x1b8] sm:$0xff] %v304_v55  ;;  %v308_v57 = vld [vmem:[%s6947_s7 + $0x388] sm:$0xff] }
  0x35   : > { %307 = vst [vmem:[%s6952_s8 + $0x1c0] sm:$0xff] %v306_v56  ;;  %v310_v58 = vld [vmem:[%s6947_s7 + $0x3a0] sm:$0xff]  ;;  %v312_v59 = vld [vmem:[%s6947_s7 + $0x3a8] sm:$0xff]  ;;  %309 = vst [vmem:[%s6952_s8 + $0x1c8] sm:$0xff] %v308_v57 }
  0x36   : > { %311 = vst [vmem:[%s6952_s8 + $0x1d0] sm:$0xff] %v310_v58  ;;  %313 = vst [vmem:[%s6952_s8 + $0x1d8] sm:$0xff] %v312_v59  ;;  %v314_v60 = vld [vmem:[%s6947_s7 + $0x3c0] sm:$0xff]  ;;  %v316_v61 = vld [vmem:[%s6947_s7 + $0x3c8] sm:$0xff] }
  0x37   : > { %v318_v62 = vld [vmem:[%s6947_s7 + $0x3e0] sm:$0xff]  ;;  %315 = vst [vmem:[%s6952_s8 + $0x1e0] sm:$0xff] %v314_v60  ;;  %317 = vst [vmem:[%s6952_s8 + $0x1e8] sm:$0xff] %v316_v61  ;;  %v320_v63 = vld [vmem:[%s6947_s7 + $0x3e8] sm:$0xff] }
  0x38   : > { %319 = vst [vmem:[%s6952_s8 + $0x1f0] sm:$0xff] %v318_v62  ;;  %v322_v0 = vld [vmem:[%s6947_s7 + $0x400] sm:$0xff]  ;;  %v324_v1 = vld [vmem:[%s6947_s7 + $0x408] sm:$0xff]  ;;  %321 = vst [vmem:[%s6952_s8 + $0x1f8] sm:$0xff] %v320_v63 }
  0x39   : > { %323 = vst [vmem:[%s6952_s8 + $0x200] sm:$0xff] %v322_v0  ;;  %325 = vst [vmem:[%s6952_s8 + $0x208] sm:$0xff] %v324_v1  ;;  %v326_v2 = vld [vmem:[%s6947_s7 + $0x420] sm:$0xff]  ;;  %v328_v3 = vld [vmem:[%s6947_s7 + $0x428] sm:$0xff] }
  0x3a   : > { %v330_v4 = vld [vmem:[%s6947_s7 + $0x440] sm:$0xff]  ;;  %327 = vst [vmem:[%s6952_s8 + $0x210] sm:$0xff] %v326_v2  ;;  %329 = vst [vmem:[%s6952_s8 + $0x218] sm:$0xff] %v328_v3  ;;  %v332_v5 = vld [vmem:[%s6947_s7 + $0x448] sm:$0xff] }
  0x3b   : > { %331 = vst [vmem:[%s6952_s8 + $0x220] sm:$0xff] %v330_v4  ;;  %v334_v6 = vld [vmem:[%s6947_s7 + $0x460] sm:$0xff]  ;;  %v336_v7 = vld [vmem:[%s6947_s7 + $0x468] sm:$0xff]  ;;  %333 = vst [vmem:[%s6952_s8 + $0x228] sm:$0xff] %v332_v5 }
  0x3c   : > { %335 = vst [vmem:[%s6952_s8 + $0x230] sm:$0xff] %v334_v6  ;;  %337 = vst [vmem:[%s6952_s8 + $0x238] sm:$0xff] %v336_v7  ;;  %v338_v8 = vld [vmem:[%s6947_s7 + $0x480] sm:$0xff]  ;;  %v340_v9 = vld [vmem:[%s6947_s7 + $0x488] sm:$0xff] }
  0x3d   : > { %v342_v10 = vld [vmem:[%s6947_s7 + $0x4a0] sm:$0xff]  ;;  %339 = vst [vmem:[%s6952_s8 + $0x240] sm:$0xff] %v338_v8  ;;  %341 = vst [vmem:[%s6952_s8 + $0x248] sm:$0xff] %v340_v9  ;;  %v344_v11 = vld [vmem:[%s6947_s7 + $0x4a8] sm:$0xff] }
  0x3e   : > { %343 = vst [vmem:[%s6952_s8 + $0x250] sm:$0xff] %v342_v10  ;;  %v346_v12 = vld [vmem:[%s6947_s7 + $0x4c0] sm:$0xff]  ;;  %v348_v13 = vld [vmem:[%s6947_s7 + $0x4c8] sm:$0xff]  ;;  %345 = vst [vmem:[%s6952_s8 + $0x258] sm:$0xff] %v344_v11 }
  0x3f   : > { %347 = vst [vmem:[%s6952_s8 + $0x260] sm:$0xff] %v346_v12  ;;  %349 = vst [vmem:[%s6952_s8 + $0x268] sm:$0xff] %v348_v13  ;;  %v350_v14 = vld [vmem:[%s6947_s7 + $0x4e0] sm:$0xff]  ;;  %v352_v15 = vld [vmem:[%s6947_s7 + $0x4e8] sm:$0xff] }
  0x40   : > { %v354_v16 = vld [vmem:[%s6947_s7 + $0x500] sm:$0xff]  ;;  %351 = vst [vmem:[%s6952_s8 + $0x270] sm:$0xff] %v350_v14  ;;  %353 = vst [vmem:[%s6952_s8 + $0x278] sm:$0xff] %v352_v15  ;;  %v356_v17 = vld [vmem:[%s6947_s7 + $0x508] sm:$0xff] }
  0x41   : > { %355 = vst [vmem:[%s6952_s8 + $0x280] sm:$0xff] %v354_v16  ;;  %v358_v18 = vld [vmem:[%s6947_s7 + $0x520] sm:$0xff]  ;;  %v360_v19 = vld [vmem:[%s6947_s7 + $0x528] sm:$0xff]  ;;  %357 = vst [vmem:[%s6952_s8 + $0x288] sm:$0xff] %v356_v17 }
  0x42   : > { %359 = vst [vmem:[%s6952_s8 + $0x290] sm:$0xff] %v358_v18  ;;  %361 = vst [vmem:[%s6952_s8 + $0x298] sm:$0xff] %v360_v19  ;;  %v362_v20 = vld [vmem:[%s6947_s7 + $0x540] sm:$0xff]  ;;  %v364_v21 = vld [vmem:[%s6947_s7 + $0x548] sm:$0xff] }
  0x43   : > { %v366_v22 = vld [vmem:[%s6947_s7 + $0x560] sm:$0xff]  ;;  %363 = vst [vmem:[%s6952_s8 + $0x2a0] sm:$0xff] %v362_v20  ;;  %365 = vst [vmem:[%s6952_s8 + $0x2a8] sm:$0xff] %v364_v21  ;;  %v368_v23 = vld [vmem:[%s6947_s7 + $0x568] sm:$0xff] }
  0x44   : > { %367 = vst [vmem:[%s6952_s8 + $0x2b0] sm:$0xff] %v366_v22  ;;  %v370_v24 = vld [vmem:[%s6947_s7 + $0x580] sm:$0xff]  ;;  %v372_v25 = vld [vmem:[%s6947_s7 + $0x588] sm:$0xff]  ;;  %369 = vst [vmem:[%s6952_s8 + $0x2b8] sm:$0xff] %v368_v23 }
  0x45   : > { %371 = vst [vmem:[%s6952_s8 + $0x2c0] sm:$0xff] %v370_v24  ;;  %373 = vst [vmem:[%s6952_s8 + $0x2c8] sm:$0xff] %v372_v25  ;;  %v374_v26 = vld [vmem:[%s6947_s7 + $0x5a0] sm:$0xff]  ;;  %v376_v27 = vld [vmem:[%s6947_s7 + $0x5a8] sm:$0xff] }
  0x46   : > { %v378_v28 = vld [vmem:[%s6947_s7 + $0x5c0] sm:$0xff]  ;;  %375 = vst [vmem:[%s6952_s8 + $0x2d0] sm:$0xff] %v374_v26  ;;  %377 = vst [vmem:[%s6952_s8 + $0x2d8] sm:$0xff] %v376_v27  ;;  %v380_v29 = vld [vmem:[%s6947_s7 + $0x5c8] sm:$0xff] }
  0x47   : > { %379 = vst [vmem:[%s6952_s8 + $0x2e0] sm:$0xff] %v378_v28  ;;  %v382_v30 = vld [vmem:[%s6947_s7 + $0x5e0] sm:$0xff]  ;;  %v384_v31 = vld [vmem:[%s6947_s7 + $0x5e8] sm:$0xff]  ;;  %381 = vst [vmem:[%s6952_s8 + $0x2e8] sm:$0xff] %v380_v29 }
  0x48   : > { %383 = vst [vmem:[%s6952_s8 + $0x2f0] sm:$0xff] %v382_v30  ;;  %385 = vst [vmem:[%s6952_s8 + $0x2f8] sm:$0xff] %v384_v31  ;;  %v386_v32 = vld [vmem:[%s6947_s7 + $0x600] sm:$0xff]  ;;  %v388_v33 = vld [vmem:[%s6947_s7 + $0x608] sm:$0xff] }
  0x49   : > { %v390_v34 = vld [vmem:[%s6947_s7 + $0x620] sm:$0xff]  ;;  %387 = vst [vmem:[%s6952_s8 + $0x300] sm:$0xff] %v386_v32  ;;  %389 = vst [vmem:[%s6952_s8 + $0x308] sm:$0xff] %v388_v33  ;;  %v392_v35 = vld [vmem:[%s6947_s7 + $0x628] sm:$0xff] }
  0x4a   : > { %391 = vst [vmem:[%s6952_s8 + $0x310] sm:$0xff] %v390_v34  ;;  %v394_v36 = vld [vmem:[%s6947_s7 + $0x640] sm:$0xff]  ;;  %v396_v37 = vld [vmem:[%s6947_s7 + $0x648] sm:$0xff]  ;;  %393 = vst [vmem:[%s6952_s8 + $0x318] sm:$0xff] %v392_v35 }
  0x4b   : > { %395 = vst [vmem:[%s6952_s8 + $0x320] sm:$0xff] %v394_v36  ;;  %397 = vst [vmem:[%s6952_s8 + $0x328] sm:$0xff] %v396_v37  ;;  %v398_v38 = vld [vmem:[%s6947_s7 + $0x660] sm:$0xff]  ;;  %v400_v39 = vld [vmem:[%s6947_s7 + $0x668] sm:$0xff] }
  0x4c   : > { %v402_v40 = vld [vmem:[%s6947_s7 + $0x680] sm:$0xff]  ;;  %399 = vst [vmem:[%s6952_s8 + $0x330] sm:$0xff] %v398_v38  ;;  %401 = vst [vmem:[%s6952_s8 + $0x338] sm:$0xff] %v400_v39  ;;  %v404_v41 = vld [vmem:[%s6947_s7 + $0x688] sm:$0xff] }
  0x4d   : > { %403 = vst [vmem:[%s6952_s8 + $0x340] sm:$0xff] %v402_v40  ;;  %v406_v42 = vld [vmem:[%s6947_s7 + $0x6a0] sm:$0xff]  ;;  %v408_v43 = vld [vmem:[%s6947_s7 + $0x6a8] sm:$0xff]  ;;  %405 = vst [vmem:[%s6952_s8 + $0x348] sm:$0xff] %v404_v41 }
  0x4e   : > { %407 = vst [vmem:[%s6952_s8 + $0x350] sm:$0xff] %v406_v42  ;;  %409 = vst [vmem:[%s6952_s8 + $0x358] sm:$0xff] %v408_v43  ;;  %v410_v44 = vld [vmem:[%s6947_s7 + $0x6c0] sm:$0xff]  ;;  %v412_v45 = vld [vmem:[%s6947_s7 + $0x6c8] sm:$0xff] }
  0x4f   : > { %v414_v46 = vld [vmem:[%s6947_s7 + $0x6e0] sm:$0xff]  ;;  %411 = vst [vmem:[%s6952_s8 + $0x360] sm:$0xff] %v410_v44  ;;  %413 = vst [vmem:[%s6952_s8 + $0x368] sm:$0xff] %v412_v45  ;;  %v416_v47 = vld [vmem:[%s6947_s7 + $0x6e8] sm:$0xff] }
  0x50   : > { %415 = vst [vmem:[%s6952_s8 + $0x370] sm:$0xff] %v414_v46  ;;  %v418_v48 = vld [vmem:[%s6947_s7 + $0x700] sm:$0xff]  ;;  %v420_v49 = vld [vmem:[%s6947_s7 + $0x708] sm:$0xff]  ;;  %417 = vst [vmem:[%s6952_s8 + $0x378] sm:$0xff] %v416_v47 }
  0x51   : > { %419 = vst [vmem:[%s6952_s8 + $0x380] sm:$0xff] %v418_v48  ;;  %421 = vst [vmem:[%s6952_s8 + $0x388] sm:$0xff] %v420_v49  ;;  %v422_v50 = vld [vmem:[%s6947_s7 + $0x720] sm:$0xff]  ;;  %v424_v51 = vld [vmem:[%s6947_s7 + $0x728] sm:$0xff] }
  0x52   : > { %v426_v52 = vld [vmem:[%s6947_s7 + $0x740] sm:$0xff]  ;;  %423 = vst [vmem:[%s6952_s8 + $0x390] sm:$0xff] %v422_v50  ;;  %425 = vst [vmem:[%s6952_s8 + $0x398] sm:$0xff] %v424_v51  ;;  %v428_v53 = vld [vmem:[%s6947_s7 + $0x748] sm:$0xff] }
  0x53   : > { %427 = vst [vmem:[%s6952_s8 + $0x3a0] sm:$0xff] %v426_v52  ;;  %v430_v54 = vld [vmem:[%s6947_s7 + $0x760] sm:$0xff]  ;;  %v432_v55 = vld [vmem:[%s6947_s7 + $0x768] sm:$0xff]  ;;  %429 = vst [vmem:[%s6952_s8 + $0x3a8] sm:$0xff] %v428_v53 }
  0x54   : > { %431 = vst [vmem:[%s6952_s8 + $0x3b0] sm:$0xff] %v430_v54  ;;  %433 = vst [vmem:[%s6952_s8 + $0x3b8] sm:$0xff] %v432_v55  ;;  %v434_v56 = vld [vmem:[%s6947_s7 + $0x780] sm:$0xff]  ;;  %v436_v57 = vld [vmem:[%s6947_s7 + $0x788] sm:$0xff] }
  0x55   : > { %v438_v58 = vld [vmem:[%s6947_s7 + $0x7a0] sm:$0xff]  ;;  %435 = vst [vmem:[%s6952_s8 + $0x3c0] sm:$0xff] %v434_v56  ;;  %437 = vst [vmem:[%s6952_s8 + $0x3c8] sm:$0xff] %v436_v57  ;;  %v440_v59 = vld [vmem:[%s6947_s7 + $0x7a8] sm:$0xff] }
  0x56   : > { %439 = vst [vmem:[%s6952_s8 + $0x3d0] sm:$0xff] %v438_v58  ;;  %v442_v60 = vld [vmem:[%s6947_s7 + $0x7c0] sm:$0xff]  ;;  %v444_v61 = vld [vmem:[%s6947_s7 + $0x7c8] sm:$0xff]  ;;  %441 = vst [vmem:[%s6952_s8 + $0x3d8] sm:$0xff] %v440_v59 }
  0x57   : > { %443 = vst [vmem:[%s6952_s8 + $0x3e0] sm:$0xff] %v442_v60  ;;  %445 = vst [vmem:[%s6952_s8 + $0x3e8] sm:$0xff] %v444_v61  ;;  %v446_v62 = vld [vmem:[%s6947_s7 + $0x7e0] sm:$0xff]  ;;  %v448_v63 = vld [vmem:[%s6947_s7 + $0x7e8] sm:$0xff] }
  0x58   : > { %v450_v0 = vld [vmem:[%s6947_s7 + $0x800] sm:$0xff]  ;;  %447 = vst [vmem:[%s6952_s8 + $0x3f0] sm:$0xff] %v446_v62  ;;  %449 = vst [vmem:[%s6952_s8 + $0x3f8] sm:$0xff] %v448_v63  ;;  %v452_v1 = vld [vmem:[%s6947_s7 + $0x808] sm:$0xff] }
  0x59   : > { %451 = vst [vmem:[%s6952_s8 + $0x400] sm:$0xff] %v450_v0  ;;  %v454_v2 = vld [vmem:[%s6947_s7 + $0x820] sm:$0xff]  ;;  %v456_v3 = vld [vmem:[%s6947_s7 + $0x828] sm:$0xff]  ;;  %453 = vst [vmem:[%s6952_s8 + $0x408] sm:$0xff] %v452_v1 }
  0x5a   : > { %455 = vst [vmem:[%s6952_s8 + $0x410] sm:$0xff] %v454_v2  ;;  %457 = vst [vmem:[%s6952_s8 + $0x418] sm:$0xff] %v456_v3  ;;  %v458_v4 = vld [vmem:[%s6947_s7 + $0x840] sm:$0xff]  ;;  %v460_v5 = vld [vmem:[%s6947_s7 + $0x848] sm:$0xff] }
  0x5b   : > { %v462_v6 = vld [vmem:[%s6947_s7 + $0x860] sm:$0xff]  ;;  %459 = vst [vmem:[%s6952_s8 + $0x420] sm:$0xff] %v458_v4  ;;  %461 = vst [vmem:[%s6952_s8 + $0x428] sm:$0xff] %v460_v5  ;;  %v464_v7 = vld [vmem:[%s6947_s7 + $0x868] sm:$0xff] }
  0x5c   : > { %463 = vst [vmem:[%s6952_s8 + $0x430] sm:$0xff] %v462_v6  ;;  %v466_v8 = vld [vmem:[%s6947_s7 + $0x880] sm:$0xff]  ;;  %v468_v9 = vld [vmem:[%s6947_s7 + $0x888] sm:$0xff]  ;;  %465 = vst [vmem:[%s6952_s8 + $0x438] sm:$0xff] %v464_v7 }
  0x5d   : > { %467 = vst [vmem:[%s6952_s8 + $0x440] sm:$0xff] %v466_v8  ;;  %469 = vst [vmem:[%s6952_s8 + $0x448] sm:$0xff] %v468_v9  ;;  %v470_v10 = vld [vmem:[%s6947_s7 + $0x8a0] sm:$0xff]  ;;  %v472_v11 = vld [vmem:[%s6947_s7 + $0x8a8] sm:$0xff] }
  0x5e   : > { %v474_v12 = vld [vmem:[%s6947_s7 + $0x8c0] sm:$0xff]  ;;  %471 = vst [vmem:[%s6952_s8 + $0x450] sm:$0xff] %v470_v10  ;;  %473 = vst [vmem:[%s6952_s8 + $0x458] sm:$0xff] %v472_v11  ;;  %v476_v13 = vld [vmem:[%s6947_s7 + $0x8c8] sm:$0xff] }
  0x5f   : > { %475 = vst [vmem:[%s6952_s8 + $0x460] sm:$0xff] %v474_v12  ;;  %v478_v14 = vld [vmem:[%s6947_s7 + $0x8e0] sm:$0xff]  ;;  %v480_v15 = vld [vmem:[%s6947_s7 + $0x8e8] sm:$0xff]  ;;  %477 = vst [vmem:[%s6952_s8 + $0x468] sm:$0xff] %v476_v13 }
  0x60   : > { %479 = vst [vmem:[%s6952_s8 + $0x470] sm:$0xff] %v478_v14  ;;  %481 = vst [vmem:[%s6952_s8 + $0x478] sm:$0xff] %v480_v15  ;;  %v482_v16 = vld [vmem:[%s6947_s7 + $0x900] sm:$0xff]  ;;  %v484_v17 = vld [vmem:[%s6947_s7 + $0x908] sm:$0xff] }
  0x61   : > { %v486_v18 = vld [vmem:[%s6947_s7 + $0x920] sm:$0xff]  ;;  %483 = vst [vmem:[%s6952_s8 + $0x480] sm:$0xff] %v482_v16  ;;  %485 = vst [vmem:[%s6952_s8 + $0x488] sm:$0xff] %v484_v17  ;;  %v488_v19 = vld [vmem:[%s6947_s7 + $0x928] sm:$0xff] }
  0x62   : > { %487 = vst [vmem:[%s6952_s8 + $0x490] sm:$0xff] %v486_v18  ;;  %v490_v20 = vld [vmem:[%s6947_s7 + $0x940] sm:$0xff]  ;;  %v492_v21 = vld [vmem:[%s6947_s7 + $0x948] sm:$0xff]  ;;  %489 = vst [vmem:[%s6952_s8 + $0x498] sm:$0xff] %v488_v19 }
  0x63   : > { %491 = vst [vmem:[%s6952_s8 + $0x4a0] sm:$0xff] %v490_v20  ;;  %493 = vst [vmem:[%s6952_s8 + $0x4a8] sm:$0xff] %v492_v21  ;;  %v494_v22 = vld [vmem:[%s6947_s7 + $0x960] sm:$0xff]  ;;  %v496_v23 = vld [vmem:[%s6947_s7 + $0x968] sm:$0xff] }
  0x64   : > { %v498_v24 = vld [vmem:[%s6947_s7 + $0x980] sm:$0xff]  ;;  %495 = vst [vmem:[%s6952_s8 + $0x4b0] sm:$0xff] %v494_v22  ;;  %497 = vst [vmem:[%s6952_s8 + $0x4b8] sm:$0xff] %v496_v23  ;;  %v500_v25 = vld [vmem:[%s6947_s7 + $0x988] sm:$0xff] }
  0x65   : > { %499 = vst [vmem:[%s6952_s8 + $0x4c0] sm:$0xff] %v498_v24  ;;  %v502_v26 = vld [vmem:[%s6947_s7 + $0x9a0] sm:$0xff]  ;;  %v504_v27 = vld [vmem:[%s6947_s7 + $0x9a8] sm:$0xff]  ;;  %501 = vst [vmem:[%s6952_s8 + $0x4c8] sm:$0xff] %v500_v25 }
  0x66   : > { %503 = vst [vmem:[%s6952_s8 + $0x4d0] sm:$0xff] %v502_v26  ;;  %505 = vst [vmem:[%s6952_s8 + $0x4d8] sm:$0xff] %v504_v27  ;;  %v506_v28 = vld [vmem:[%s6947_s7 + $0x9c0] sm:$0xff]  ;;  %v508_v29 = vld [vmem:[%s6947_s7 + $0x9c8] sm:$0xff] }
  0x67   : > { %v510_v30 = vld [vmem:[%s6947_s7 + $0x9e0] sm:$0xff]  ;;  %507 = vst [vmem:[%s6952_s8 + $0x4e0] sm:$0xff] %v506_v28  ;;  %509 = vst [vmem:[%s6952_s8 + $0x4e8] sm:$0xff] %v508_v29  ;;  %v512_v31 = vld [vmem:[%s6947_s7 + $0x9e8] sm:$0xff] }
  0x68   : > { %511 = vst [vmem:[%s6952_s8 + $0x4f0] sm:$0xff] %v510_v30  ;;  %v514_v32 = vld [vmem:[%s6947_s7 + $0xa00] sm:$0xff]  ;;  %v516_v33 = vld [vmem:[%s6947_s7 + $0xa08] sm:$0xff]  ;;  %513 = vst [vmem:[%s6952_s8 + $0x4f8] sm:$0xff] %v512_v31 }
  0x69   : > { %515 = vst [vmem:[%s6952_s8 + $0x500] sm:$0xff] %v514_v32  ;;  %517 = vst [vmem:[%s6952_s8 + $0x508] sm:$0xff] %v516_v33  ;;  %v518_v34 = vld [vmem:[%s6947_s7 + $0xa20] sm:$0xff]  ;;  %v520_v35 = vld [vmem:[%s6947_s7 + $0xa28] sm:$0xff] }
  0x6a   : > { %v522_v36 = vld [vmem:[%s6947_s7 + $0xa40] sm:$0xff]  ;;  %519 = vst [vmem:[%s6952_s8 + $0x510] sm:$0xff] %v518_v34  ;;  %521 = vst [vmem:[%s6952_s8 + $0x518] sm:$0xff] %v520_v35  ;;  %v524_v37 = vld [vmem:[%s6947_s7 + $0xa48] sm:$0xff] }
  0x6b   : > { %523 = vst [vmem:[%s6952_s8 + $0x520] sm:$0xff] %v522_v36  ;;  %v526_v38 = vld [vmem:[%s6947_s7 + $0xa60] sm:$0xff]  ;;  %v528_v39 = vld [vmem:[%s6947_s7 + $0xa68] sm:$0xff]  ;;  %525 = vst [vmem:[%s6952_s8 + $0x528] sm:$0xff] %v524_v37 }
  0x6c   : > { %527 = vst [vmem:[%s6952_s8 + $0x530] sm:$0xff] %v526_v38  ;;  %529 = vst [vmem:[%s6952_s8 + $0x538] sm:$0xff] %v528_v39  ;;  %v530_v40 = vld [vmem:[%s6947_s7 + $0xa80] sm:$0xff]  ;;  %v532_v41 = vld [vmem:[%s6947_s7 + $0xa88] sm:$0xff] }
  0x6d   : > { %v534_v42 = vld [vmem:[%s6947_s7 + $0xaa0] sm:$0xff]  ;;  %531 = vst [vmem:[%s6952_s8 + $0x540] sm:$0xff] %v530_v40  ;;  %533 = vst [vmem:[%s6952_s8 + $0x548] sm:$0xff] %v532_v41  ;;  %v536_v43 = vld [vmem:[%s6947_s7 + $0xaa8] sm:$0xff] }
  0x6e   : > { %535 = vst [vmem:[%s6952_s8 + $0x550] sm:$0xff] %v534_v42  ;;  %v538_v44 = vld [vmem:[%s6947_s7 + $0xac0] sm:$0xff]  ;;  %v540_v45 = vld [vmem:[%s6947_s7 + $0xac8] sm:$0xff]  ;;  %537 = vst [vmem:[%s6952_s8 + $0x558] sm:$0xff] %v536_v43 }
  0x6f   : > { %539 = vst [vmem:[%s6952_s8 + $0x560] sm:$0xff] %v538_v44  ;;  %541 = vst [vmem:[%s6952_s8 + $0x568] sm:$0xff] %v540_v45  ;;  %v542_v46 = vld [vmem:[%s6947_s7 + $0xae0] sm:$0xff]  ;;  %v544_v47 = vld [vmem:[%s6947_s7 + $0xae8] sm:$0xff] }
  0x70   : > { %v546_v48 = vld [vmem:[%s6947_s7 + $0xb00] sm:$0xff]  ;;  %543 = vst [vmem:[%s6952_s8 + $0x570] sm:$0xff] %v542_v46  ;;  %545 = vst [vmem:[%s6952_s8 + $0x578] sm:$0xff] %v544_v47  ;;  %v548_v49 = vld [vmem:[%s6947_s7 + $0xb08] sm:$0xff] }
  0x71   : > { %547 = vst [vmem:[%s6952_s8 + $0x580] sm:$0xff] %v546_v48  ;;  %v550_v50 = vld [vmem:[%s6947_s7 + $0xb20] sm:$0xff]  ;;  %v552_v51 = vld [vmem:[%s6947_s7 + $0xb28] sm:$0xff]  ;;  %549 = vst [vmem:[%s6952_s8 + $0x588] sm:$0xff] %v548_v49 }
  0x72   : > { %551 = vst [vmem:[%s6952_s8 + $0x590] sm:$0xff] %v550_v50  ;;  %553 = vst [vmem:[%s6952_s8 + $0x598] sm:$0xff] %v552_v51  ;;  %v554_v52 = vld [vmem:[%s6947_s7 + $0xb40] sm:$0xff]  ;;  %v556_v53 = vld [vmem:[%s6947_s7 + $0xb48] sm:$0xff] }
  0x73   : > { %v558_v54 = vld [vmem:[%s6947_s7 + $0xb60] sm:$0xff]  ;;  %555 = vst [vmem:[%s6952_s8 + $0x5a0] sm:$0xff] %v554_v52  ;;  %557 = vst [vmem:[%s6952_s8 + $0x5a8] sm:$0xff] %v556_v53  ;;  %v560_v55 = vld [vmem:[%s6947_s7 + $0xb68] sm:$0xff] }
  0x74   : > { %559 = vst [vmem:[%s6952_s8 + $0x5b0] sm:$0xff] %v558_v54  ;;  %v562_v56 = vld [vmem:[%s6947_s7 + $0xb80] sm:$0xff]  ;;  %v564_v57 = vld [vmem:[%s6947_s7 + $0xb88] sm:$0xff]  ;;  %561 = vst [vmem:[%s6952_s8 + $0x5b8] sm:$0xff] %v560_v55 }
  0x75   : > { %563 = vst [vmem:[%s6952_s8 + $0x5c0] sm:$0xff] %v562_v56  ;;  %565 = vst [vmem:[%s6952_s8 + $0x5c8] sm:$0xff] %v564_v57  ;;  %v566_v58 = vld [vmem:[%s6947_s7 + $0xba0] sm:$0xff]  ;;  %v568_v59 = vld [vmem:[%s6947_s7 + $0xba8] sm:$0xff] }
  0x76   : > { %v570_v60 = vld [vmem:[%s6947_s7 + $0xbc0] sm:$0xff]  ;;  %567 = vst [vmem:[%s6952_s8 + $0x5d0] sm:$0xff] %v566_v58  ;;  %569 = vst [vmem:[%s6952_s8 + $0x5d8] sm:$0xff] %v568_v59  ;;  %v572_v61 = vld [vmem:[%s6947_s7 + $0xbc8] sm:$0xff] }
  0x77   : > { %571 = vst [vmem:[%s6952_s8 + $0x5e0] sm:$0xff] %v570_v60  ;;  %v574_v62 = vld [vmem:[%s6947_s7 + $0xbe0] sm:$0xff]  ;;  %v576_v63 = vld [vmem:[%s6947_s7 + $0xbe8] sm:$0xff]  ;;  %573 = vst [vmem:[%s6952_s8 + $0x5e8] sm:$0xff] %v572_v61 }
  0x78   : > { %575 = vst [vmem:[%s6952_s8 + $0x5f0] sm:$0xff] %v574_v62  ;;  %577 = vst [vmem:[%s6952_s8 + $0x5f8] sm:$0xff] %v576_v63  ;;  %v578_v0 = vld [vmem:[%s6947_s7 + $0xc00] sm:$0xff]  ;;  %v580_v1 = vld [vmem:[%s6947_s7 + $0xc08] sm:$0xff] }
  0x79   : > { %v582_v2 = vld [vmem:[%s6947_s7 + $0xc20] sm:$0xff]  ;;  %579 = vst [vmem:[%s6952_s8 + $0x600] sm:$0xff] %v578_v0  ;;  %581 = vst [vmem:[%s6952_s8 + $0x608] sm:$0xff] %v580_v1  ;;  %v584_v3 = vld [vmem:[%s6947_s7 + $0xc28] sm:$0xff] }
  0x7a   : > { %583 = vst [vmem:[%s6952_s8 + $0x610] sm:$0xff] %v582_v2  ;;  %v586_v4 = vld [vmem:[%s6947_s7 + $0xc40] sm:$0xff]  ;;  %v588_v5 = vld [vmem:[%s6947_s7 + $0xc48] sm:$0xff]  ;;  %585 = vst [vmem:[%s6952_s8 + $0x618] sm:$0xff] %v584_v3 }
  0x7b   : > { %587 = vst [vmem:[%s6952_s8 + $0x620] sm:$0xff] %v586_v4  ;;  %589 = vst [vmem:[%s6952_s8 + $0x628] sm:$0xff] %v588_v5  ;;  %v590_v6 = vld [vmem:[%s6947_s7 + $0xc60] sm:$0xff]  ;;  %v592_v7 = vld [vmem:[%s6947_s7 + $0xc68] sm:$0xff] }
  0x7c   : > { %v594_v8 = vld [vmem:[%s6947_s7 + $0xc80] sm:$0xff]  ;;  %591 = vst [vmem:[%s6952_s8 + $0x630] sm:$0xff] %v590_v6  ;;  %593 = vst [vmem:[%s6952_s8 + $0x638] sm:$0xff] %v592_v7  ;;  %v596_v9 = vld [vmem:[%s6947_s7 + $0xc88] sm:$0xff] }
  0x7d   : > { %595 = vst [vmem:[%s6952_s8 + $0x640] sm:$0xff] %v594_v8  ;;  %v598_v10 = vld [vmem:[%s6947_s7 + $0xca0] sm:$0xff]  ;;  %v600_v11 = vld [vmem:[%s6947_s7 + $0xca8] sm:$0xff]  ;;  %597 = vst [vmem:[%s6952_s8 + $0x648] sm:$0xff] %v596_v9 }
  0x7e   : > { %599 = vst [vmem:[%s6952_s8 + $0x650] sm:$0xff] %v598_v10  ;;  %601 = vst [vmem:[%s6952_s8 + $0x658] sm:$0xff] %v600_v11  ;;  %v602_v12 = vld [vmem:[%s6947_s7 + $0xcc0] sm:$0xff]  ;;  %v604_v13 = vld [vmem:[%s6947_s7 + $0xcc8] sm:$0xff] }
  0x7f   : > { %v606_v14 = vld [vmem:[%s6947_s7 + $0xce0] sm:$0xff]  ;;  %603 = vst [vmem:[%s6952_s8 + $0x660] sm:$0xff] %v602_v12  ;;  %605 = vst [vmem:[%s6952_s8 + $0x668] sm:$0xff] %v604_v13  ;;  %v608_v15 = vld [vmem:[%s6947_s7 + $0xce8] sm:$0xff] }
  0x80   : > { %607 = vst [vmem:[%s6952_s8 + $0x670] sm:$0xff] %v606_v14  ;;  %v610_v16 = vld [vmem:[%s6947_s7 + $0xd00] sm:$0xff]  ;;  %v612_v17 = vld [vmem:[%s6947_s7 + $0xd08] sm:$0xff]  ;;  %609 = vst [vmem:[%s6952_s8 + $0x678] sm:$0xff] %v608_v15 }
  0x81   : > { %611 = vst [vmem:[%s6952_s8 + $0x680] sm:$0xff] %v610_v16  ;;  %613 = vst [vmem:[%s6952_s8 + $0x688] sm:$0xff] %v612_v17  ;;  %v614_v18 = vld [vmem:[%s6947_s7 + $0xd20] sm:$0xff]  ;;  %v616_v19 = vld [vmem:[%s6947_s7 + $0xd28] sm:$0xff] }
  0x82   : > { %v618_v20 = vld [vmem:[%s6947_s7 + $0xd40] sm:$0xff]  ;;  %615 = vst [vmem:[%s6952_s8 + $0x690] sm:$0xff] %v614_v18  ;;  %617 = vst [vmem:[%s6952_s8 + $0x698] sm:$0xff] %v616_v19  ;;  %v620_v21 = vld [vmem:[%s6947_s7 + $0xd48] sm:$0xff] }
  0x83   : > { %619 = vst [vmem:[%s6952_s8 + $0x6a0] sm:$0xff] %v618_v20  ;;  %v622_v22 = vld [vmem:[%s6947_s7 + $0xd60] sm:$0xff]  ;;  %v624_v23 = vld [vmem:[%s6947_s7 + $0xd68] sm:$0xff]  ;;  %621 = vst [vmem:[%s6952_s8 + $0x6a8] sm:$0xff] %v620_v21 }
  0x84   : > { %623 = vst [vmem:[%s6952_s8 + $0x6b0] sm:$0xff] %v622_v22  ;;  %625 = vst [vmem:[%s6952_s8 + $0x6b8] sm:$0xff] %v624_v23  ;;  %v626_v24 = vld [vmem:[%s6947_s7 + $0xd80] sm:$0xff]  ;;  %v628_v25 = vld [vmem:[%s6947_s7 + $0xd88] sm:$0xff] }
  0x85   : > { %v630_v26 = vld [vmem:[%s6947_s7 + $0xda0] sm:$0xff]  ;;  %627 = vst [vmem:[%s6952_s8 + $0x6c0] sm:$0xff] %v626_v24  ;;  %629 = vst [vmem:[%s6952_s8 + $0x6c8] sm:$0xff] %v628_v25  ;;  %v632_v27 = vld [vmem:[%s6947_s7 + $0xda8] sm:$0xff] }
  0x86   : > { %631 = vst [vmem:[%s6952_s8 + $0x6d0] sm:$0xff] %v630_v26  ;;  %v634_v28 = vld [vmem:[%s6947_s7 + $0xdc0] sm:$0xff]  ;;  %v636_v29 = vld [vmem:[%s6947_s7 + $0xdc8] sm:$0xff]  ;;  %633 = vst [vmem:[%s6952_s8 + $0x6d8] sm:$0xff] %v632_v27 }
  0x87   : > { %635 = vst [vmem:[%s6952_s8 + $0x6e0] sm:$0xff] %v634_v28  ;;  %637 = vst [vmem:[%s6952_s8 + $0x6e8] sm:$0xff] %v636_v29  ;;  %v638_v30 = vld [vmem:[%s6947_s7 + $0xde0] sm:$0xff]  ;;  %v640_v31 = vld [vmem:[%s6947_s7 + $0xde8] sm:$0xff] }
  0x88   : > { %v642_v32 = vld [vmem:[%s6947_s7 + $0xe00] sm:$0xff]  ;;  %639 = vst [vmem:[%s6952_s8 + $0x6f0] sm:$0xff] %v638_v30  ;;  %641 = vst [vmem:[%s6952_s8 + $0x6f8] sm:$0xff] %v640_v31  ;;  %v644_v33 = vld [vmem:[%s6947_s7 + $0xe08] sm:$0xff] }
  0x89   : > { %643 = vst [vmem:[%s6952_s8 + $0x700] sm:$0xff] %v642_v32  ;;  %v646_v34 = vld [vmem:[%s6947_s7 + $0xe20] sm:$0xff]  ;;  %v648_v35 = vld [vmem:[%s6947_s7 + $0xe28] sm:$0xff]  ;;  %645 = vst [vmem:[%s6952_s8 + $0x708] sm:$0xff] %v644_v33 }
  0x8a   : > { %647 = vst [vmem:[%s6952_s8 + $0x710] sm:$0xff] %v646_v34  ;;  %649 = vst [vmem:[%s6952_s8 + $0x718] sm:$0xff] %v648_v35  ;;  %v650_v36 = vld [vmem:[%s6947_s7 + $0xe40] sm:$0xff]  ;;  %v652_v37 = vld [vmem:[%s6947_s7 + $0xe48] sm:$0xff] }
  0x8b   : > { %v654_v38 = vld [vmem:[%s6947_s7 + $0xe60] sm:$0xff]  ;;  %651 = vst [vmem:[%s6952_s8 + $0x720] sm:$0xff] %v650_v36  ;;  %653 = vst [vmem:[%s6952_s8 + $0x728] sm:$0xff] %v652_v37  ;;  %v656_v39 = vld [vmem:[%s6947_s7 + $0xe68] sm:$0xff] }
  0x8c   : > { %655 = vst [vmem:[%s6952_s8 + $0x730] sm:$0xff] %v654_v38  ;;  %v658_v40 = vld [vmem:[%s6947_s7 + $0xe80] sm:$0xff]  ;;  %v660_v41 = vld [vmem:[%s6947_s7 + $0xe88] sm:$0xff]  ;;  %657 = vst [vmem:[%s6952_s8 + $0x738] sm:$0xff] %v656_v39 }
  0x8d   : > { %659 = vst [vmem:[%s6952_s8 + $0x740] sm:$0xff] %v658_v40  ;;  %661 = vst [vmem:[%s6952_s8 + $0x748] sm:$0xff] %v660_v41  ;;  %v662_v42 = vld [vmem:[%s6947_s7 + $0xea0] sm:$0xff]  ;;  %v664_v43 = vld [vmem:[%s6947_s7 + $0xea8] sm:$0xff] }
  0x8e   : > { %v666_v44 = vld [vmem:[%s6947_s7 + $0xec0] sm:$0xff]  ;;  %663 = vst [vmem:[%s6952_s8 + $0x750] sm:$0xff] %v662_v42  ;;  %665 = vst [vmem:[%s6952_s8 + $0x758] sm:$0xff] %v664_v43  ;;  %v668_v45 = vld [vmem:[%s6947_s7 + $0xec8] sm:$0xff] }
  0x8f   : > { %667 = vst [vmem:[%s6952_s8 + $0x760] sm:$0xff] %v666_v44  ;;  %v670_v46 = vld [vmem:[%s6947_s7 + $0xee0] sm:$0xff]  ;;  %v672_v47 = vld [vmem:[%s6947_s7 + $0xee8] sm:$0xff]  ;;  %669 = vst [vmem:[%s6952_s8 + $0x768] sm:$0xff] %v668_v45 }
  0x90   : > { %671 = vst [vmem:[%s6952_s8 + $0x770] sm:$0xff] %v670_v46  ;;  %673 = vst [vmem:[%s6952_s8 + $0x778] sm:$0xff] %v672_v47  ;;  %v674_v48 = vld [vmem:[%s6947_s7 + $0xf00] sm:$0xff]  ;;  %v676_v49 = vld [vmem:[%s6947_s7 + $0xf08] sm:$0xff] }
  0x91   : > { %v678_v50 = vld [vmem:[%s6947_s7 + $0xf20] sm:$0xff]  ;;  %675 = vst [vmem:[%s6952_s8 + $0x780] sm:$0xff] %v674_v48  ;;  %677 = vst [vmem:[%s6952_s8 + $0x788] sm:$0xff] %v676_v49  ;;  %v680_v51 = vld [vmem:[%s6947_s7 + $0xf28] sm:$0xff] }
  0x92   : > { %679 = vst [vmem:[%s6952_s8 + $0x790] sm:$0xff] %v678_v50  ;;  %v682_v52 = vld [vmem:[%s6947_s7 + $0xf40] sm:$0xff]  ;;  %v684_v53 = vld [vmem:[%s6947_s7 + $0xf48] sm:$0xff]  ;;  %681 = vst [vmem:[%s6952_s8 + $0x798] sm:$0xff] %v680_v51 }
  0x93   : > { %683 = vst [vmem:[%s6952_s8 + $0x7a0] sm:$0xff] %v682_v52  ;;  %685 = vst [vmem:[%s6952_s8 + $0x7a8] sm:$0xff] %v684_v53  ;;  %v686_v54 = vld [vmem:[%s6947_s7 + $0xf60] sm:$0xff]  ;;  %v688_v55 = vld [vmem:[%s6947_s7 + $0xf68] sm:$0xff] }
  0x94   : > { %v690_v56 = vld [vmem:[%s6947_s7 + $0xf80] sm:$0xff]  ;;  %687 = vst [vmem:[%s6952_s8 + $0x7b0] sm:$0xff] %v686_v54  ;;  %689 = vst [vmem:[%s6952_s8 + $0x7b8] sm:$0xff] %v688_v55  ;;  %v692_v57 = vld [vmem:[%s6947_s7 + $0xf88] sm:$0xff] }
  0x95   : > { %691 = vst [vmem:[%s6952_s8 + $0x7c0] sm:$0xff] %v690_v56  ;;  %v694_v58 = vld [vmem:[%s6947_s7 + $0xfa0] sm:$0xff]  ;;  %v696_v59 = vld [vmem:[%s6947_s7 + $0xfa8] sm:$0xff]  ;;  %693 = vst [vmem:[%s6952_s8 + $0x7c8] sm:$0xff] %v692_v57 }
  0x96   : > { %695 = vst [vmem:[%s6952_s8 + $0x7d0] sm:$0xff] %v694_v58  ;;  %697 = vst [vmem:[%s6952_s8 + $0x7d8] sm:$0xff] %v696_v59  ;;  %v698_v60 = vld [vmem:[%s6947_s7 + $0xfc0] sm:$0xff]  ;;  %v700_v61 = vld [vmem:[%s6947_s7 + $0xfc8] sm:$0xff] }
  0x97   : > { %v702_v62 = vld [vmem:[%s6947_s7 + $0xfe0] sm:$0xff]  ;;  %699 = vst [vmem:[%s6952_s8 + $0x7e0] sm:$0xff] %v698_v60  ;;  %701 = vst [vmem:[%s6952_s8 + $0x7e8] sm:$0xff] %v700_v61  ;;  %v704_v63 = vld [vmem:[%s6947_s7 + $0xfe8] sm:$0xff] }
  0x98   : > { %703 = vst [vmem:[%s6952_s8 + $0x7f0] sm:$0xff] %v702_v62  ;;  %v706_v0 = vld [vmem:[%s6947_s7 + $0x1000] sm:$0xff]  ;;  %v708_v1 = vld [vmem:[%s6947_s7 + $0x1008] sm:$0xff]  ;;  %705 = vst [vmem:[%s6952_s8 + $0x7f8] sm:$0xff] %v704_v63 }
  0x99   : > { %707 = vst [vmem:[%s6952_s8 + $0x800] sm:$0xff] %v706_v0  ;;  %709 = vst [vmem:[%s6952_s8 + $0x808] sm:$0xff] %v708_v1  ;;  %v710_v2 = vld [vmem:[%s6947_s7 + $0x1020] sm:$0xff]  ;;  %v712_v3 = vld [vmem:[%s6947_s7 + $0x1028] sm:$0xff] }
  0x9a   : > { %v714_v4 = vld [vmem:[%s6947_s7 + $0x1040] sm:$0xff]  ;;  %711 = vst [vmem:[%s6952_s8 + $0x810] sm:$0xff] %v710_v2  ;;  %713 = vst [vmem:[%s6952_s8 + $0x818] sm:$0xff] %v712_v3  ;;  %v716_v5 = vld [vmem:[%s6947_s7 + $0x1048] sm:$0xff] }
  0x9b   : > { %715 = vst [vmem:[%s6952_s8 + $0x820] sm:$0xff] %v714_v4  ;;  %v718_v6 = vld [vmem:[%s6947_s7 + $0x1060] sm:$0xff]  ;;  %v720_v7 = vld [vmem:[%s6947_s7 + $0x1068] sm:$0xff]  ;;  %717 = vst [vmem:[%s6952_s8 + $0x828] sm:$0xff] %v716_v5 }
  0x9c   : > { %719 = vst [vmem:[%s6952_s8 + $0x830] sm:$0xff] %v718_v6  ;;  %721 = vst [vmem:[%s6952_s8 + $0x838] sm:$0xff] %v720_v7  ;;  %v722_v8 = vld [vmem:[%s6947_s7 + $0x1080] sm:$0xff]  ;;  %v724_v9 = vld [vmem:[%s6947_s7 + $0x1088] sm:$0xff] }
  0x9d   : > { %v726_v10 = vld [vmem:[%s6947_s7 + $0x10a0] sm:$0xff]  ;;  %723 = vst [vmem:[%s6952_s8 + $0x840] sm:$0xff] %v722_v8  ;;  %725 = vst [vmem:[%s6952_s8 + $0x848] sm:$0xff] %v724_v9  ;;  %v728_v11 = vld [vmem:[%s6947_s7 + $0x10a8] sm:$0xff] }
  0x9e   : > { %727 = vst [vmem:[%s6952_s8 + $0x850] sm:$0xff] %v726_v10  ;;  %v730_v12 = vld [vmem:[%s6947_s7 + $0x10c0] sm:$0xff]  ;;  %v732_v13 = vld [vmem:[%s6947_s7 + $0x10c8] sm:$0xff]  ;;  %729 = vst [vmem:[%s6952_s8 + $0x858] sm:$0xff] %v728_v11 }
  0x9f   : > { %731 = vst [vmem:[%s6952_s8 + $0x860] sm:$0xff] %v730_v12  ;;  %733 = vst [vmem:[%s6952_s8 + $0x868] sm:$0xff] %v732_v13  ;;  %v734_v14 = vld [vmem:[%s6947_s7 + $0x10e0] sm:$0xff]  ;;  %v736_v15 = vld [vmem:[%s6947_s7 + $0x10e8] sm:$0xff] }
  0xa0   : > { %v738_v16 = vld [vmem:[%s6947_s7 + $0x1100] sm:$0xff]  ;;  %735 = vst [vmem:[%s6952_s8 + $0x870] sm:$0xff] %v734_v14  ;;  %737 = vst [vmem:[%s6952_s8 + $0x878] sm:$0xff] %v736_v15  ;;  %v740_v17 = vld [vmem:[%s6947_s7 + $0x1108] sm:$0xff] }
  0xa1   : > { %739 = vst [vmem:[%s6952_s8 + $0x880] sm:$0xff] %v738_v16  ;;  %v742_v18 = vld [vmem:[%s6947_s7 + $0x1120] sm:$0xff]  ;;  %v744_v19 = vld [vmem:[%s6947_s7 + $0x1128] sm:$0xff]  ;;  %741 = vst [vmem:[%s6952_s8 + $0x888] sm:$0xff] %v740_v17 }
  0xa2   : > { %743 = vst [vmem:[%s6952_s8 + $0x890] sm:$0xff] %v742_v18  ;;  %745 = vst [vmem:[%s6952_s8 + $0x898] sm:$0xff] %v744_v19  ;;  %v746_v20 = vld [vmem:[%s6947_s7 + $0x1140] sm:$0xff]  ;;  %v748_v21 = vld [vmem:[%s6947_s7 + $0x1148] sm:$0xff] }
  0xa3   : > { %v750_v22 = vld [vmem:[%s6947_s7 + $0x1160] sm:$0xff]  ;;  %747 = vst [vmem:[%s6952_s8 + $0x8a0] sm:$0xff] %v746_v20  ;;  %749 = vst [vmem:[%s6952_s8 + $0x8a8] sm:$0xff] %v748_v21  ;;  %v752_v23 = vld [vmem:[%s6947_s7 + $0x1168] sm:$0xff] }
  0xa4   : > { %751 = vst [vmem:[%s6952_s8 + $0x8b0] sm:$0xff] %v750_v22  ;;  %v754_v24 = vld [vmem:[%s6947_s7 + $0x1180] sm:$0xff]  ;;  %v756_v25 = vld [vmem:[%s6947_s7 + $0x1188] sm:$0xff]  ;;  %753 = vst [vmem:[%s6952_s8 + $0x8b8] sm:$0xff] %v752_v23 }
  0xa5   : > { %755 = vst [vmem:[%s6952_s8 + $0x8c0] sm:$0xff] %v754_v24  ;;  %757 = vst [vmem:[%s6952_s8 + $0x8c8] sm:$0xff] %v756_v25  ;;  %v758_v26 = vld [vmem:[%s6947_s7 + $0x11a0] sm:$0xff]  ;;  %v760_v27 = vld [vmem:[%s6947_s7 + $0x11a8] sm:$0xff] }
  0xa6   : > { %v762_v28 = vld [vmem:[%s6947_s7 + $0x11c0] sm:$0xff]  ;;  %759 = vst [vmem:[%s6952_s8 + $0x8d0] sm:$0xff] %v758_v26  ;;  %761 = vst [vmem:[%s6952_s8 + $0x8d8] sm:$0xff] %v760_v27  ;;  %v764_v29 = vld [vmem:[%s6947_s7 + $0x11c8] sm:$0xff] }
  0xa7   : > { %763 = vst [vmem:[%s6952_s8 + $0x8e0] sm:$0xff] %v762_v28  ;;  %v766_v30 = vld [vmem:[%s6947_s7 + $0x11e0] sm:$0xff]  ;;  %v768_v31 = vld [vmem:[%s6947_s7 + $0x11e8] sm:$0xff]  ;;  %765 = vst [vmem:[%s6952_s8 + $0x8e8] sm:$0xff] %v764_v29 }
  0xa8   : > { %767 = vst [vmem:[%s6952_s8 + $0x8f0] sm:$0xff] %v766_v30  ;;  %769 = vst [vmem:[%s6952_s8 + $0x8f8] sm:$0xff] %v768_v31  ;;  %v770_v32 = vld [vmem:[%s6947_s7 + $0x1200] sm:$0xff]  ;;  %v772_v33 = vld [vmem:[%s6947_s7 + $0x1208] sm:$0xff] }
  0xa9   : > { %v774_v34 = vld [vmem:[%s6947_s7 + $0x1220] sm:$0xff]  ;;  %771 = vst [vmem:[%s6952_s8 + $0x900] sm:$0xff] %v770_v32  ;;  %773 = vst [vmem:[%s6952_s8 + $0x908] sm:$0xff] %v772_v33  ;;  %v776_v35 = vld [vmem:[%s6947_s7 + $0x1228] sm:$0xff] }
  0xaa   : > { %775 = vst [vmem:[%s6952_s8 + $0x910] sm:$0xff] %v774_v34  ;;  %v778_v36 = vld [vmem:[%s6947_s7 + $0x1240] sm:$0xff]  ;;  %v780_v37 = vld [vmem:[%s6947_s7 + $0x1248] sm:$0xff]  ;;  %777 = vst [vmem:[%s6952_s8 + $0x918] sm:$0xff] %v776_v35 }
  0xab   : > { %779 = vst [vmem:[%s6952_s8 + $0x920] sm:$0xff] %v778_v36  ;;  %781 = vst [vmem:[%s6952_s8 + $0x928] sm:$0xff] %v780_v37  ;;  %v782_v38 = vld [vmem:[%s6947_s7 + $0x1260] sm:$0xff]  ;;  %v784_v39 = vld [vmem:[%s6947_s7 + $0x1268] sm:$0xff] }
  0xac   : > { %v786_v40 = vld [vmem:[%s6947_s7 + $0x1280] sm:$0xff]  ;;  %783 = vst [vmem:[%s6952_s8 + $0x930] sm:$0xff] %v782_v38  ;;  %785 = vst [vmem:[%s6952_s8 + $0x938] sm:$0xff] %v784_v39  ;;  %v788_v41 = vld [vmem:[%s6947_s7 + $0x1288] sm:$0xff] }
  0xad   : > { %787 = vst [vmem:[%s6952_s8 + $0x940] sm:$0xff] %v786_v40  ;;  %v790_v42 = vld [vmem:[%s6947_s7 + $0x12a0] sm:$0xff]  ;;  %v792_v43 = vld [vmem:[%s6947_s7 + $0x12a8] sm:$0xff]  ;;  %789 = vst [vmem:[%s6952_s8 + $0x948] sm:$0xff] %v788_v41 }
  0xae   : > { %791 = vst [vmem:[%s6952_s8 + $0x950] sm:$0xff] %v790_v42  ;;  %793 = vst [vmem:[%s6952_s8 + $0x958] sm:$0xff] %v792_v43  ;;  %v794_v44 = vld [vmem:[%s6947_s7 + $0x12c0] sm:$0xff]  ;;  %v796_v45 = vld [vmem:[%s6947_s7 + $0x12c8] sm:$0xff] }
  0xaf   : > { %v798_v46 = vld [vmem:[%s6947_s7 + $0x12e0] sm:$0xff]  ;;  %795 = vst [vmem:[%s6952_s8 + $0x960] sm:$0xff] %v794_v44  ;;  %797 = vst [vmem:[%s6952_s8 + $0x968] sm:$0xff] %v796_v45  ;;  %v800_v47 = vld [vmem:[%s6947_s7 + $0x12e8] sm:$0xff] }
  0xb0   : > { %799 = vst [vmem:[%s6952_s8 + $0x970] sm:$0xff] %v798_v46  ;;  %v802_v48 = vld [vmem:[%s6947_s7 + $0x1300] sm:$0xff]  ;;  %v804_v49 = vld [vmem:[%s6947_s7 + $0x1308] sm:$0xff]  ;;  %801 = vst [vmem:[%s6952_s8 + $0x978] sm:$0xff] %v800_v47 }
  0xb1   : > { %803 = vst [vmem:[%s6952_s8 + $0x980] sm:$0xff] %v802_v48  ;;  %805 = vst [vmem:[%s6952_s8 + $0x988] sm:$0xff] %v804_v49  ;;  %v806_v50 = vld [vmem:[%s6947_s7 + $0x1320] sm:$0xff]  ;;  %v808_v51 = vld [vmem:[%s6947_s7 + $0x1328] sm:$0xff] }
  0xb2   : > { %v810_v52 = vld [vmem:[%s6947_s7 + $0x1340] sm:$0xff]  ;;  %807 = vst [vmem:[%s6952_s8 + $0x990] sm:$0xff] %v806_v50  ;;  %809 = vst [vmem:[%s6952_s8 + $0x998] sm:$0xff] %v808_v51  ;;  %v812_v53 = vld [vmem:[%s6947_s7 + $0x1348] sm:$0xff] }
  0xb3   : > { %811 = vst [vmem:[%s6952_s8 + $0x9a0] sm:$0xff] %v810_v52  ;;  %v814_v54 = vld [vmem:[%s6947_s7 + $0x1360] sm:$0xff]  ;;  %v816_v55 = vld [vmem:[%s6947_s7 + $0x1368] sm:$0xff]  ;;  %813 = vst [vmem:[%s6952_s8 + $0x9a8] sm:$0xff] %v812_v53 }
  0xb4   : > { %815 = vst [vmem:[%s6952_s8 + $0x9b0] sm:$0xff] %v814_v54  ;;  %817 = vst [vmem:[%s6952_s8 + $0x9b8] sm:$0xff] %v816_v55  ;;  %v818_v56 = vld [vmem:[%s6947_s7 + $0x1380] sm:$0xff]  ;;  %v820_v57 = vld [vmem:[%s6947_s7 + $0x1388] sm:$0xff] }
  0xb5   : > { %v822_v58 = vld [vmem:[%s6947_s7 + $0x13a0] sm:$0xff]  ;;  %819 = vst [vmem:[%s6952_s8 + $0x9c0] sm:$0xff] %v818_v56  ;;  %821 = vst [vmem:[%s6952_s8 + $0x9c8] sm:$0xff] %v820_v57  ;;  %v824_v59 = vld [vmem:[%s6947_s7 + $0x13a8] sm:$0xff] }
  0xb6   : > { %823 = vst [vmem:[%s6952_s8 + $0x9d0] sm:$0xff] %v822_v58  ;;  %v826_v60 = vld [vmem:[%s6947_s7 + $0x13c0] sm:$0xff]  ;;  %v828_v61 = vld [vmem:[%s6947_s7 + $0x13c8] sm:$0xff]  ;;  %825 = vst [vmem:[%s6952_s8 + $0x9d8] sm:$0xff] %v824_v59 }
  0xb7   : > { %827 = vst [vmem:[%s6952_s8 + $0x9e0] sm:$0xff] %v826_v60  ;;  %829 = vst [vmem:[%s6952_s8 + $0x9e8] sm:$0xff] %v828_v61  ;;  %v830_v62 = vld [vmem:[%s6947_s7 + $0x13e0] sm:$0xff]  ;;  %v832_v63 = vld [vmem:[%s6947_s7 + $0x13e8] sm:$0xff] }
  0xb8   : > { %v834_v0 = vld [vmem:[%s6947_s7 + $0x1400] sm:$0xff]  ;;  %831 = vst [vmem:[%s6952_s8 + $0x9f0] sm:$0xff] %v830_v62  ;;  %833 = vst [vmem:[%s6952_s8 + $0x9f8] sm:$0xff] %v832_v63  ;;  %v836_v1 = vld [vmem:[%s6947_s7 + $0x1408] sm:$0xff] }
  0xb9   : > { %835 = vst [vmem:[%s6952_s8 + $0xa00] sm:$0xff] %v834_v0  ;;  %v838_v2 = vld [vmem:[%s6947_s7 + $0x1420] sm:$0xff]  ;;  %v840_v3 = vld [vmem:[%s6947_s7 + $0x1428] sm:$0xff]  ;;  %837 = vst [vmem:[%s6952_s8 + $0xa08] sm:$0xff] %v836_v1 }
  0xba   : > { %839 = vst [vmem:[%s6952_s8 + $0xa10] sm:$0xff] %v838_v2  ;;  %841 = vst [vmem:[%s6952_s8 + $0xa18] sm:$0xff] %v840_v3  ;;  %v842_v4 = vld [vmem:[%s6947_s7 + $0x1440] sm:$0xff]  ;;  %v844_v5 = vld [vmem:[%s6947_s7 + $0x1448] sm:$0xff] }
  0xbb   : > { %v846_v6 = vld [vmem:[%s6947_s7 + $0x1460] sm:$0xff]  ;;  %843 = vst [vmem:[%s6952_s8 + $0xa20] sm:$0xff] %v842_v4  ;;  %845 = vst [vmem:[%s6952_s8 + $0xa28] sm:$0xff] %v844_v5  ;;  %v848_v7 = vld [vmem:[%s6947_s7 + $0x1468] sm:$0xff] }
  0xbc   : > { %847 = vst [vmem:[%s6952_s8 + $0xa30] sm:$0xff] %v846_v6  ;;  %v850_v8 = vld [vmem:[%s6947_s7 + $0x1480] sm:$0xff]  ;;  %v852_v9 = vld [vmem:[%s6947_s7 + $0x1488] sm:$0xff]  ;;  %849 = vst [vmem:[%s6952_s8 + $0xa38] sm:$0xff] %v848_v7 }
  0xbd   : > { %851 = vst [vmem:[%s6952_s8 + $0xa40] sm:$0xff] %v850_v8  ;;  %853 = vst [vmem:[%s6952_s8 + $0xa48] sm:$0xff] %v852_v9  ;;  %v854_v10 = vld [vmem:[%s6947_s7 + $0x14a0] sm:$0xff]  ;;  %v856_v11 = vld [vmem:[%s6947_s7 + $0x14a8] sm:$0xff] }
  0xbe   : > { %v858_v12 = vld [vmem:[%s6947_s7 + $0x14c0] sm:$0xff]  ;;  %855 = vst [vmem:[%s6952_s8 + $0xa50] sm:$0xff] %v854_v10  ;;  %857 = vst [vmem:[%s6952_s8 + $0xa58] sm:$0xff] %v856_v11  ;;  %v860_v13 = vld [vmem:[%s6947_s7 + $0x14c8] sm:$0xff] }
  0xbf   : > { %859 = vst [vmem:[%s6952_s8 + $0xa60] sm:$0xff] %v858_v12  ;;  %v862_v14 = vld [vmem:[%s6947_s7 + $0x14e0] sm:$0xff]  ;;  %v864_v15 = vld [vmem:[%s6947_s7 + $0x14e8] sm:$0xff]  ;;  %861 = vst [vmem:[%s6952_s8 + $0xa68] sm:$0xff] %v860_v13 }
  0xc0   : > { %863 = vst [vmem:[%s6952_s8 + $0xa70] sm:$0xff] %v862_v14  ;;  %865 = vst [vmem:[%s6952_s8 + $0xa78] sm:$0xff] %v864_v15  ;;  %v866_v16 = vld [vmem:[%s6947_s7 + $0x1500] sm:$0xff]  ;;  %v868_v17 = vld [vmem:[%s6947_s7 + $0x1508] sm:$0xff] }
  0xc1   : > { %v870_v18 = vld [vmem:[%s6947_s7 + $0x1520] sm:$0xff]  ;;  %867 = vst [vmem:[%s6952_s8 + $0xa80] sm:$0xff] %v866_v16  ;;  %869 = vst [vmem:[%s6952_s8 + $0xa88] sm:$0xff] %v868_v17  ;;  %v872_v19 = vld [vmem:[%s6947_s7 + $0x1528] sm:$0xff] }
  0xc2   : > { %871 = vst [vmem:[%s6952_s8 + $0xa90] sm:$0xff] %v870_v18  ;;  %v874_v20 = vld [vmem:[%s6947_s7 + $0x1540] sm:$0xff]  ;;  %v876_v21 = vld [vmem:[%s6947_s7 + $0x1548] sm:$0xff]  ;;  %873 = vst [vmem:[%s6952_s8 + $0xa98] sm:$0xff] %v872_v19 }
  0xc3   : > { %875 = vst [vmem:[%s6952_s8 + $0xaa0] sm:$0xff] %v874_v20  ;;  %877 = vst [vmem:[%s6952_s8 + $0xaa8] sm:$0xff] %v876_v21  ;;  %v878_v22 = vld [vmem:[%s6947_s7 + $0x1560] sm:$0xff]  ;;  %v880_v23 = vld [vmem:[%s6947_s7 + $0x1568] sm:$0xff] }
  0xc4   : > { %v882_v24 = vld [vmem:[%s6947_s7 + $0x1580] sm:$0xff]  ;;  %879 = vst [vmem:[%s6952_s8 + $0xab0] sm:$0xff] %v878_v22  ;;  %881 = vst [vmem:[%s6952_s8 + $0xab8] sm:$0xff] %v880_v23  ;;  %v884_v25 = vld [vmem:[%s6947_s7 + $0x1588] sm:$0xff] }
  0xc5   : > { %883 = vst [vmem:[%s6952_s8 + $0xac0] sm:$0xff] %v882_v24  ;;  %v886_v26 = vld [vmem:[%s6947_s7 + $0x15a0] sm:$0xff]  ;;  %v888_v27 = vld [vmem:[%s6947_s7 + $0x15a8] sm:$0xff]  ;;  %885 = vst [vmem:[%s6952_s8 + $0xac8] sm:$0xff] %v884_v25 }
  0xc6   : > { %887 = vst [vmem:[%s6952_s8 + $0xad0] sm:$0xff] %v886_v26  ;;  %889 = vst [vmem:[%s6952_s8 + $0xad8] sm:$0xff] %v888_v27  ;;  %v890_v28 = vld [vmem:[%s6947_s7 + $0x15c0] sm:$0xff]  ;;  %v892_v29 = vld [vmem:[%s6947_s7 + $0x15c8] sm:$0xff] }
  0xc7   : > { %v894_v30 = vld [vmem:[%s6947_s7 + $0x15e0] sm:$0xff]  ;;  %891 = vst [vmem:[%s6952_s8 + $0xae0] sm:$0xff] %v890_v28  ;;  %893 = vst [vmem:[%s6952_s8 + $0xae8] sm:$0xff] %v892_v29  ;;  %v896_v31 = vld [vmem:[%s6947_s7 + $0x15e8] sm:$0xff] }
  0xc8   : > { %895 = vst [vmem:[%s6952_s8 + $0xaf0] sm:$0xff] %v894_v30  ;;  %v898_v32 = vld [vmem:[%s6947_s7 + $0x1600] sm:$0xff]  ;;  %v900_v33 = vld [vmem:[%s6947_s7 + $0x1608] sm:$0xff]  ;;  %897 = vst [vmem:[%s6952_s8 + $0xaf8] sm:$0xff] %v896_v31 }
  0xc9   : > { %899 = vst [vmem:[%s6952_s8 + $0xb00] sm:$0xff] %v898_v32  ;;  %901 = vst [vmem:[%s6952_s8 + $0xb08] sm:$0xff] %v900_v33  ;;  %v902_v34 = vld [vmem:[%s6947_s7 + $0x1620] sm:$0xff]  ;;  %v904_v35 = vld [vmem:[%s6947_s7 + $0x1628] sm:$0xff] }
  0xca   : > { %v906_v36 = vld [vmem:[%s6947_s7 + $0x1640] sm:$0xff]  ;;  %903 = vst [vmem:[%s6952_s8 + $0xb10] sm:$0xff] %v902_v34  ;;  %905 = vst [vmem:[%s6952_s8 + $0xb18] sm:$0xff] %v904_v35  ;;  %v908_v37 = vld [vmem:[%s6947_s7 + $0x1648] sm:$0xff] }
  0xcb   : > { %907 = vst [vmem:[%s6952_s8 + $0xb20] sm:$0xff] %v906_v36  ;;  %v910_v38 = vld [vmem:[%s6947_s7 + $0x1660] sm:$0xff]  ;;  %v912_v39 = vld [vmem:[%s6947_s7 + $0x1668] sm:$0xff]  ;;  %909 = vst [vmem:[%s6952_s8 + $0xb28] sm:$0xff] %v908_v37 }
  0xcc   : > { %911 = vst [vmem:[%s6952_s8 + $0xb30] sm:$0xff] %v910_v38  ;;  %913 = vst [vmem:[%s6952_s8 + $0xb38] sm:$0xff] %v912_v39  ;;  %v914_v40 = vld [vmem:[%s6947_s7 + $0x1680] sm:$0xff]  ;;  %v916_v41 = vld [vmem:[%s6947_s7 + $0x1688] sm:$0xff] }
  0xcd   : > { %v918_v42 = vld [vmem:[%s6947_s7 + $0x16a0] sm:$0xff]  ;;  %915 = vst [vmem:[%s6952_s8 + $0xb40] sm:$0xff] %v914_v40  ;;  %917 = vst [vmem:[%s6952_s8 + $0xb48] sm:$0xff] %v916_v41  ;;  %v920_v43 = vld [vmem:[%s6947_s7 + $0x16a8] sm:$0xff] }
  0xce   : > { %919 = vst [vmem:[%s6952_s8 + $0xb50] sm:$0xff] %v918_v42  ;;  %v922_v44 = vld [vmem:[%s6947_s7 + $0x16c0] sm:$0xff]  ;;  %v924_v45 = vld [vmem:[%s6947_s7 + $0x16c8] sm:$0xff]  ;;  %921 = vst [vmem:[%s6952_s8 + $0xb58] sm:$0xff] %v920_v43 }
  0xcf   : > { %923 = vst [vmem:[%s6952_s8 + $0xb60] sm:$0xff] %v922_v44  ;;  %925 = vst [vmem:[%s6952_s8 + $0xb68] sm:$0xff] %v924_v45  ;;  %v926_v46 = vld [vmem:[%s6947_s7 + $0x16e0] sm:$0xff]  ;;  %v928_v47 = vld [vmem:[%s6947_s7 + $0x16e8] sm:$0xff] }
  0xd0   : > { %v930_v48 = vld [vmem:[%s6947_s7 + $0x1700] sm:$0xff]  ;;  %927 = vst [vmem:[%s6952_s8 + $0xb70] sm:$0xff] %v926_v46  ;;  %929 = vst [vmem:[%s6952_s8 + $0xb78] sm:$0xff] %v928_v47  ;;  %v932_v49 = vld [vmem:[%s6947_s7 + $0x1708] sm:$0xff] }
  0xd1   : > { %931 = vst [vmem:[%s6952_s8 + $0xb80] sm:$0xff] %v930_v48  ;;  %v934_v50 = vld [vmem:[%s6947_s7 + $0x1720] sm:$0xff]  ;;  %v936_v51 = vld [vmem:[%s6947_s7 + $0x1728] sm:$0xff]  ;;  %933 = vst [vmem:[%s6952_s8 + $0xb88] sm:$0xff] %v932_v49 }
  0xd2   : > { %935 = vst [vmem:[%s6952_s8 + $0xb90] sm:$0xff] %v934_v50  ;;  %937 = vst [vmem:[%s6952_s8 + $0xb98] sm:$0xff] %v936_v51  ;;  %v938_v52 = vld [vmem:[%s6947_s7 + $0x1740] sm:$0xff]  ;;  %v940_v53 = vld [vmem:[%s6947_s7 + $0x1748] sm:$0xff] }
  0xd3   : > { %v942_v54 = vld [vmem:[%s6947_s7 + $0x1760] sm:$0xff]  ;;  %939 = vst [vmem:[%s6952_s8 + $0xba0] sm:$0xff] %v938_v52  ;;  %941 = vst [vmem:[%s6952_s8 + $0xba8] sm:$0xff] %v940_v53  ;;  %v944_v55 = vld [vmem:[%s6947_s7 + $0x1768] sm:$0xff] }
  0xd4   : > { %943 = vst [vmem:[%s6952_s8 + $0xbb0] sm:$0xff] %v942_v54  ;;  %v946_v56 = vld [vmem:[%s6947_s7 + $0x1780] sm:$0xff]  ;;  %v948_v57 = vld [vmem:[%s6947_s7 + $0x1788] sm:$0xff]  ;;  %945 = vst [vmem:[%s6952_s8 + $0xbb8] sm:$0xff] %v944_v55 }
  0xd5   : > { %947 = vst [vmem:[%s6952_s8 + $0xbc0] sm:$0xff] %v946_v56  ;;  %949 = vst [vmem:[%s6952_s8 + $0xbc8] sm:$0xff] %v948_v57  ;;  %v950_v58 = vld [vmem:[%s6947_s7 + $0x17a0] sm:$0xff]  ;;  %v952_v59 = vld [vmem:[%s6947_s7 + $0x17a8] sm:$0xff] }
  0xd6   : > { %v954_v60 = vld [vmem:[%s6947_s7 + $0x17c0] sm:$0xff]  ;;  %951 = vst [vmem:[%s6952_s8 + $0xbd0] sm:$0xff] %v950_v58  ;;  %953 = vst [vmem:[%s6952_s8 + $0xbd8] sm:$0xff] %v952_v59  ;;  %v956_v61 = vld [vmem:[%s6947_s7 + $0x17c8] sm:$0xff] }
  0xd7   : > { %955 = vst [vmem:[%s6952_s8 + $0xbe0] sm:$0xff] %v954_v60  ;;  %v958_v62 = vld [vmem:[%s6947_s7 + $0x17e0] sm:$0xff]  ;;  %v960_v63 = vld [vmem:[%s6947_s7 + $0x17e8] sm:$0xff]  ;;  %957 = vst [vmem:[%s6952_s8 + $0xbe8] sm:$0xff] %v956_v61 }
  0xd8   : > { %959 = vst [vmem:[%s6952_s8 + $0xbf0] sm:$0xff] %v958_v62  ;;  %961 = vst [vmem:[%s6952_s8 + $0xbf8] sm:$0xff] %v960_v63  ;;  %v962_v0 = vld [vmem:[%s6947_s7 + $0x1800] sm:$0xff]  ;;  %v964_v1 = vld [vmem:[%s6947_s7 + $0x1808] sm:$0xff] }
  0xd9   : > { %v966_v2 = vld [vmem:[%s6947_s7 + $0x1820] sm:$0xff]  ;;  %963 = vst [vmem:[%s6952_s8 + $0xc00] sm:$0xff] %v962_v0  ;;  %965 = vst [vmem:[%s6952_s8 + $0xc08] sm:$0xff] %v964_v1  ;;  %v968_v3 = vld [vmem:[%s6947_s7 + $0x1828] sm:$0xff] }
  0xda   : > { %967 = vst [vmem:[%s6952_s8 + $0xc10] sm:$0xff] %v966_v2  ;;  %v970_v4 = vld [vmem:[%s6947_s7 + $0x1840] sm:$0xff]  ;;  %v972_v5 = vld [vmem:[%s6947_s7 + $0x1848] sm:$0xff]  ;;  %969 = vst [vmem:[%s6952_s8 + $0xc18] sm:$0xff] %v968_v3 }
  0xdb   : > { %971 = vst [vmem:[%s6952_s8 + $0xc20] sm:$0xff] %v970_v4  ;;  %973 = vst [vmem:[%s6952_s8 + $0xc28] sm:$0xff] %v972_v5  ;;  %v974_v6 = vld [vmem:[%s6947_s7 + $0x1860] sm:$0xff]  ;;  %v976_v7 = vld [vmem:[%s6947_s7 + $0x1868] sm:$0xff] }
  0xdc   : > { %v978_v8 = vld [vmem:[%s6947_s7 + $0x1880] sm:$0xff]  ;;  %975 = vst [vmem:[%s6952_s8 + $0xc30] sm:$0xff] %v974_v6  ;;  %977 = vst [vmem:[%s6952_s8 + $0xc38] sm:$0xff] %v976_v7  ;;  %v980_v9 = vld [vmem:[%s6947_s7 + $0x1888] sm:$0xff] }
  0xdd   : > { %979 = vst [vmem:[%s6952_s8 + $0xc40] sm:$0xff] %v978_v8  ;;  %v982_v10 = vld [vmem:[%s6947_s7 + $0x18a0] sm:$0xff]  ;;  %v984_v11 = vld [vmem:[%s6947_s7 + $0x18a8] sm:$0xff]  ;;  %981 = vst [vmem:[%s6952_s8 + $0xc48] sm:$0xff] %v980_v9 }
  0xde   : > { %983 = vst [vmem:[%s6952_s8 + $0xc50] sm:$0xff] %v982_v10  ;;  %985 = vst [vmem:[%s6952_s8 + $0xc58] sm:$0xff] %v984_v11  ;;  %v986_v12 = vld [vmem:[%s6947_s7 + $0x18c0] sm:$0xff]  ;;  %v988_v13 = vld [vmem:[%s6947_s7 + $0x18c8] sm:$0xff] }
  0xdf   : > { %v990_v14 = vld [vmem:[%s6947_s7 + $0x18e0] sm:$0xff]  ;;  %987 = vst [vmem:[%s6952_s8 + $0xc60] sm:$0xff] %v986_v12  ;;  %989 = vst [vmem:[%s6952_s8 + $0xc68] sm:$0xff] %v988_v13  ;;  %v992_v15 = vld [vmem:[%s6947_s7 + $0x18e8] sm:$0xff] }
  0xe0   : > { %991 = vst [vmem:[%s6952_s8 + $0xc70] sm:$0xff] %v990_v14  ;;  %v994_v16 = vld [vmem:[%s6947_s7 + $0x1900] sm:$0xff]  ;;  %v996_v17 = vld [vmem:[%s6947_s7 + $0x1908] sm:$0xff]  ;;  %993 = vst [vmem:[%s6952_s8 + $0xc78] sm:$0xff] %v992_v15 }
  0xe1   : > { %995 = vst [vmem:[%s6952_s8 + $0xc80] sm:$0xff] %v994_v16  ;;  %997 = vst [vmem:[%s6952_s8 + $0xc88] sm:$0xff] %v996_v17  ;;  %v998_v18 = vld [vmem:[%s6947_s7 + $0x1920] sm:$0xff]  ;;  %v1000_v19 = vld [vmem:[%s6947_s7 + $0x1928] sm:$0xff] }
  0xe2   : > { %v1002_v20 = vld [vmem:[%s6947_s7 + $0x1940] sm:$0xff]  ;;  %999 = vst [vmem:[%s6952_s8 + $0xc90] sm:$0xff] %v998_v18  ;;  %1001 = vst [vmem:[%s6952_s8 + $0xc98] sm:$0xff] %v1000_v19  ;;  %v1004_v21 = vld [vmem:[%s6947_s7 + $0x1948] sm:$0xff] }
  0xe3   : > { %1003 = vst [vmem:[%s6952_s8 + $0xca0] sm:$0xff] %v1002_v20  ;;  %v1006_v22 = vld [vmem:[%s6947_s7 + $0x1960] sm:$0xff]  ;;  %v1008_v23 = vld [vmem:[%s6947_s7 + $0x1968] sm:$0xff]  ;;  %1005 = vst [vmem:[%s6952_s8 + $0xca8] sm:$0xff] %v1004_v21 }
  0xe4   : > { %1007 = vst [vmem:[%s6952_s8 + $0xcb0] sm:$0xff] %v1006_v22  ;;  %1009 = vst [vmem:[%s6952_s8 + $0xcb8] sm:$0xff] %v1008_v23  ;;  %v1010_v24 = vld [vmem:[%s6947_s7 + $0x1980] sm:$0xff]  ;;  %v1012_v25 = vld [vmem:[%s6947_s7 + $0x1988] sm:$0xff] }
  0xe5   : > { %v1014_v26 = vld [vmem:[%s6947_s7 + $0x19a0] sm:$0xff]  ;;  %1011 = vst [vmem:[%s6952_s8 + $0xcc0] sm:$0xff] %v1010_v24  ;;  %1013 = vst [vmem:[%s6952_s8 + $0xcc8] sm:$0xff] %v1012_v25  ;;  %v1016_v27 = vld [vmem:[%s6947_s7 + $0x19a8] sm:$0xff] }
  0xe6   : > { %1015 = vst [vmem:[%s6952_s8 + $0xcd0] sm:$0xff] %v1014_v26  ;;  %v1018_v28 = vld [vmem:[%s6947_s7 + $0x19c0] sm:$0xff]  ;;  %v1020_v29 = vld [vmem:[%s6947_s7 + $0x19c8] sm:$0xff]  ;;  %1017 = vst [vmem:[%s6952_s8 + $0xcd8] sm:$0xff] %v1016_v27 }
  0xe7   : > { %1019 = vst [vmem:[%s6952_s8 + $0xce0] sm:$0xff] %v1018_v28  ;;  %1021 = vst [vmem:[%s6952_s8 + $0xce8] sm:$0xff] %v1020_v29  ;;  %v1022_v30 = vld [vmem:[%s6947_s7 + $0x19e0] sm:$0xff]  ;;  %v1024_v31 = vld [vmem:[%s6947_s7 + $0x19e8] sm:$0xff] }
  0xe8   : > { %v1026_v32 = vld [vmem:[%s6947_s7 + $0x1a00] sm:$0xff]  ;;  %1023 = vst [vmem:[%s6952_s8 + $0xcf0] sm:$0xff] %v1022_v30  ;;  %1025 = vst [vmem:[%s6952_s8 + $0xcf8] sm:$0xff] %v1024_v31  ;;  %v1028_v33 = vld [vmem:[%s6947_s7 + $0x1a08] sm:$0xff] }
  0xe9   : > { %1027 = vst [vmem:[%s6952_s8 + $0xd00] sm:$0xff] %v1026_v32  ;;  %v1030_v34 = vld [vmem:[%s6947_s7 + $0x1a20] sm:$0xff]  ;;  %v1032_v35 = vld [vmem:[%s6947_s7 + $0x1a28] sm:$0xff]  ;;  %1029 = vst [vmem:[%s6952_s8 + $0xd08] sm:$0xff] %v1028_v33 }
  0xea   : > { %1031 = vst [vmem:[%s6952_s8 + $0xd10] sm:$0xff] %v1030_v34  ;;  %1033 = vst [vmem:[%s6952_s8 + $0xd18] sm:$0xff] %v1032_v35  ;;  %v1034_v36 = vld [vmem:[%s6947_s7 + $0x1a40] sm:$0xff]  ;;  %v1036_v37 = vld [vmem:[%s6947_s7 + $0x1a48] sm:$0xff] }
  0xeb   : > { %v1038_v38 = vld [vmem:[%s6947_s7 + $0x1a60] sm:$0xff]  ;;  %1035 = vst [vmem:[%s6952_s8 + $0xd20] sm:$0xff] %v1034_v36  ;;  %1037 = vst [vmem:[%s6952_s8 + $0xd28] sm:$0xff] %v1036_v37  ;;  %v1040_v39 = vld [vmem:[%s6947_s7 + $0x1a68] sm:$0xff] }
  0xec   : > { %1039 = vst [vmem:[%s6952_s8 + $0xd30] sm:$0xff] %v1038_v38  ;;  %v1042_v40 = vld [vmem:[%s6947_s7 + $0x1a80] sm:$0xff]  ;;  %v1044_v41 = vld [vmem:[%s6947_s7 + $0x1a88] sm:$0xff]  ;;  %1041 = vst [vmem:[%s6952_s8 + $0xd38] sm:$0xff] %v1040_v39 }
  0xed   : > { %1043 = vst [vmem:[%s6952_s8 + $0xd40] sm:$0xff] %v1042_v40  ;;  %1045 = vst [vmem:[%s6952_s8 + $0xd48] sm:$0xff] %v1044_v41  ;;  %v1046_v42 = vld [vmem:[%s6947_s7 + $0x1aa0] sm:$0xff]  ;;  %v1048_v43 = vld [vmem:[%s6947_s7 + $0x1aa8] sm:$0xff] }
  0xee   : > { %v1050_v44 = vld [vmem:[%s6947_s7 + $0x1ac0] sm:$0xff]  ;;  %1047 = vst [vmem:[%s6952_s8 + $0xd50] sm:$0xff] %v1046_v42  ;;  %1049 = vst [vmem:[%s6952_s8 + $0xd58] sm:$0xff] %v1048_v43  ;;  %v1052_v45 = vld [vmem:[%s6947_s7 + $0x1ac8] sm:$0xff] }
  0xef   : > { %1051 = vst [vmem:[%s6952_s8 + $0xd60] sm:$0xff] %v1050_v44  ;;  %v1054_v46 = vld [vmem:[%s6947_s7 + $0x1ae0] sm:$0xff]  ;;  %v1056_v47 = vld [vmem:[%s6947_s7 + $0x1ae8] sm:$0xff]  ;;  %1053 = vst [vmem:[%s6952_s8 + $0xd68] sm:$0xff] %v1052_v45 }
  0xf0   : > { %1055 = vst [vmem:[%s6952_s8 + $0xd70] sm:$0xff] %v1054_v46  ;;  %1057 = vst [vmem:[%s6952_s8 + $0xd78] sm:$0xff] %v1056_v47  ;;  %v1058_v48 = vld [vmem:[%s6947_s7 + $0x1b00] sm:$0xff]  ;;  %v1060_v49 = vld [vmem:[%s6947_s7 + $0x1b08] sm:$0xff] }
  0xf1   : > { %v1062_v50 = vld [vmem:[%s6947_s7 + $0x1b20] sm:$0xff]  ;;  %1059 = vst [vmem:[%s6952_s8 + $0xd80] sm:$0xff] %v1058_v48  ;;  %1061 = vst [vmem:[%s6952_s8 + $0xd88] sm:$0xff] %v1060_v49  ;;  %v1064_v51 = vld [vmem:[%s6947_s7 + $0x1b28] sm:$0xff] }
  0xf2   : > { %1063 = vst [vmem:[%s6952_s8 + $0xd90] sm:$0xff] %v1062_v50  ;;  %v1066_v52 = vld [vmem:[%s6947_s7 + $0x1b40] sm:$0xff]  ;;  %v1068_v53 = vld [vmem:[%s6947_s7 + $0x1b48] sm:$0xff]  ;;  %1065 = vst [vmem:[%s6952_s8 + $0xd98] sm:$0xff] %v1064_v51 }
  0xf3   : > { %1067 = vst [vmem:[%s6952_s8 + $0xda0] sm:$0xff] %v1066_v52  ;;  %1069 = vst [vmem:[%s6952_s8 + $0xda8] sm:$0xff] %v1068_v53  ;;  %v1070_v54 = vld [vmem:[%s6947_s7 + $0x1b60] sm:$0xff]  ;;  %v1072_v55 = vld [vmem:[%s6947_s7 + $0x1b68] sm:$0xff] }
  0xf4   : > { %v1074_v56 = vld [vmem:[%s6947_s7 + $0x1b80] sm:$0xff]  ;;  %1071 = vst [vmem:[%s6952_s8 + $0xdb0] sm:$0xff] %v1070_v54  ;;  %1073 = vst [vmem:[%s6952_s8 + $0xdb8] sm:$0xff] %v1072_v55  ;;  %v1076_v57 = vld [vmem:[%s6947_s7 + $0x1b88] sm:$0xff] }
  0xf5   : > { %1075 = vst [vmem:[%s6952_s8 + $0xdc0] sm:$0xff] %v1074_v56  ;;  %v1078_v58 = vld [vmem:[%s6947_s7 + $0x1ba0] sm:$0xff]  ;;  %v1080_v59 = vld [vmem:[%s6947_s7 + $0x1ba8] sm:$0xff]  ;;  %1077 = vst [vmem:[%s6952_s8 + $0xdc8] sm:$0xff] %v1076_v57 }
  0xf6   : > { %1079 = vst [vmem:[%s6952_s8 + $0xdd0] sm:$0xff] %v1078_v58  ;;  %1081 = vst [vmem:[%s6952_s8 + $0xdd8] sm:$0xff] %v1080_v59  ;;  %v1082_v60 = vld [vmem:[%s6947_s7 + $0x1bc0] sm:$0xff]  ;;  %v1084_v61 = vld [vmem:[%s6947_s7 + $0x1bc8] sm:$0xff] }
  0xf7   : > { %v1086_v62 = vld [vmem:[%s6947_s7 + $0x1be0] sm:$0xff]  ;;  %1083 = vst [vmem:[%s6952_s8 + $0xde0] sm:$0xff] %v1082_v60  ;;  %1085 = vst [vmem:[%s6952_s8 + $0xde8] sm:$0xff] %v1084_v61  ;;  %v1088_v63 = vld [vmem:[%s6947_s7 + $0x1be8] sm:$0xff] }
  0xf8   : > { %1087 = vst [vmem:[%s6952_s8 + $0xdf0] sm:$0xff] %v1086_v62  ;;  %v1090_v0 = vld [vmem:[%s6947_s7 + $0x1c00] sm:$0xff]  ;;  %v1092_v1 = vld [vmem:[%s6947_s7 + $0x1c08] sm:$0xff]  ;;  %1089 = vst [vmem:[%s6952_s8 + $0xdf8] sm:$0xff] %v1088_v63 }
  0xf9   : > { %1091 = vst [vmem:[%s6952_s8 + $0xe00] sm:$0xff] %v1090_v0  ;;  %1093 = vst [vmem:[%s6952_s8 + $0xe08] sm:$0xff] %v1092_v1  ;;  %v1094_v2 = vld [vmem:[%s6947_s7 + $0x1c20] sm:$0xff]  ;;  %v1096_v3 = vld [vmem:[%s6947_s7 + $0x1c28] sm:$0xff] }
  0xfa   : > { %v1098_v4 = vld [vmem:[%s6947_s7 + $0x1c40] sm:$0xff]  ;;  %1095 = vst [vmem:[%s6952_s8 + $0xe10] sm:$0xff] %v1094_v2  ;;  %1097 = vst [vmem:[%s6952_s8 + $0xe18] sm:$0xff] %v1096_v3  ;;  %v1100_v5 = vld [vmem:[%s6947_s7 + $0x1c48] sm:$0xff] }
  0xfb   : > { %1099 = vst [vmem:[%s6952_s8 + $0xe20] sm:$0xff] %v1098_v4  ;;  %v1102_v6 = vld [vmem:[%s6947_s7 + $0x1c60] sm:$0xff]  ;;  %v1104_v7 = vld [vmem:[%s6947_s7 + $0x1c68] sm:$0xff]  ;;  %1101 = vst [vmem:[%s6952_s8 + $0xe28] sm:$0xff] %v1100_v5 }
  0xfc   : > { %1103 = vst [vmem:[%s6952_s8 + $0xe30] sm:$0xff] %v1102_v6  ;;  %1105 = vst [vmem:[%s6952_s8 + $0xe38] sm:$0xff] %v1104_v7  ;;  %v1106_v8 = vld [vmem:[%s6947_s7 + $0x1c80] sm:$0xff]  ;;  %v1108_v9 = vld [vmem:[%s6947_s7 + $0x1c88] sm:$0xff] }
  0xfd   : > { %v1110_v10 = vld [vmem:[%s6947_s7 + $0x1ca0] sm:$0xff]  ;;  %1107 = vst [vmem:[%s6952_s8 + $0xe40] sm:$0xff] %v1106_v8  ;;  %1109 = vst [vmem:[%s6952_s8 + $0xe48] sm:$0xff] %v1108_v9  ;;  %v1112_v11 = vld [vmem:[%s6947_s7 + $0x1ca8] sm:$0xff] }
  0xfe   : > { %1111 = vst [vmem:[%s6952_s8 + $0xe50] sm:$0xff] %v1110_v10  ;;  %v1114_v12 = vld [vmem:[%s6947_s7 + $0x1cc0] sm:$0xff]  ;;  %v1116_v13 = vld [vmem:[%s6947_s7 + $0x1cc8] sm:$0xff]  ;;  %1113 = vst [vmem:[%s6952_s8 + $0xe58] sm:$0xff] %v1112_v11 }
  0xff   : > { %1115 = vst [vmem:[%s6952_s8 + $0xe60] sm:$0xff] %v1114_v12  ;;  %1117 = vst [vmem:[%s6952_s8 + $0xe68] sm:$0xff] %v1116_v13  ;;  %v1118_v14 = vld [vmem:[%s6947_s7 + $0x1ce0] sm:$0xff]  ;;  %v1120_v15 = vld [vmem:[%s6947_s7 + $0x1ce8] sm:$0xff] }
 0x100   : > { %v1122_v16 = vld [vmem:[%s6947_s7 + $0x1d00] sm:$0xff]  ;;  %1119 = vst [vmem:[%s6952_s8 + $0xe70] sm:$0xff] %v1118_v14  ;;  %1121 = vst [vmem:[%s6952_s8 + $0xe78] sm:$0xff] %v1120_v15  ;;  %v1124_v17 = vld [vmem:[%s6947_s7 + $0x1d08] sm:$0xff] }
 0x101   : > { %1123 = vst [vmem:[%s6952_s8 + $0xe80] sm:$0xff] %v1122_v16  ;;  %v1126_v18 = vld [vmem:[%s6947_s7 + $0x1d20] sm:$0xff]  ;;  %v1128_v19 = vld [vmem:[%s6947_s7 + $0x1d28] sm:$0xff]  ;;  %1125 = vst [vmem:[%s6952_s8 + $0xe88] sm:$0xff] %v1124_v17 }
 0x102   : > { %1127 = vst [vmem:[%s6952_s8 + $0xe90] sm:$0xff] %v1126_v18  ;;  %1129 = vst [vmem:[%s6952_s8 + $0xe98] sm:$0xff] %v1128_v19  ;;  %v1130_v20 = vld [vmem:[%s6947_s7 + $0x1d40] sm:$0xff]  ;;  %v1132_v21 = vld [vmem:[%s6947_s7 + $0x1d48] sm:$0xff] }
 0x103   : > { %v1134_v22 = vld [vmem:[%s6947_s7 + $0x1d60] sm:$0xff]  ;;  %1131 = vst [vmem:[%s6952_s8 + $0xea0] sm:$0xff] %v1130_v20  ;;  %1133 = vst [vmem:[%s6952_s8 + $0xea8] sm:$0xff] %v1132_v21  ;;  %v1136_v23 = vld [vmem:[%s6947_s7 + $0x1d68] sm:$0xff] }
 0x104   : > { %1135 = vst [vmem:[%s6952_s8 + $0xeb0] sm:$0xff] %v1134_v22  ;;  %v1138_v24 = vld [vmem:[%s6947_s7 + $0x1d80] sm:$0xff]  ;;  %v1140_v25 = vld [vmem:[%s6947_s7 + $0x1d88] sm:$0xff]  ;;  %1137 = vst [vmem:[%s6952_s8 + $0xeb8] sm:$0xff] %v1136_v23 }
 0x105   : > { %1139 = vst [vmem:[%s6952_s8 + $0xec0] sm:$0xff] %v1138_v24  ;;  %1141 = vst [vmem:[%s6952_s8 + $0xec8] sm:$0xff] %v1140_v25  ;;  %v1142_v26 = vld [vmem:[%s6947_s7 + $0x1da0] sm:$0xff]  ;;  %v1144_v27 = vld [vmem:[%s6947_s7 + $0x1da8] sm:$0xff] }
 0x106   : > { %v1146_v28 = vld [vmem:[%s6947_s7 + $0x1dc0] sm:$0xff]  ;;  %1143 = vst [vmem:[%s6952_s8 + $0xed0] sm:$0xff] %v1142_v26  ;;  %1145 = vst [vmem:[%s6952_s8 + $0xed8] sm:$0xff] %v1144_v27  ;;  %v1148_v29 = vld [vmem:[%s6947_s7 + $0x1dc8] sm:$0xff] }
 0x107   : > { %1147 = vst [vmem:[%s6952_s8 + $0xee0] sm:$0xff] %v1146_v28  ;;  %v1150_v30 = vld [vmem:[%s6947_s7 + $0x1de0] sm:$0xff]  ;;  %v1152_v31 = vld [vmem:[%s6947_s7 + $0x1de8] sm:$0xff]  ;;  %1149 = vst [vmem:[%s6952_s8 + $0xee8] sm:$0xff] %v1148_v29 }
 0x108   : > { %1151 = vst [vmem:[%s6952_s8 + $0xef0] sm:$0xff] %v1150_v30  ;;  %1153 = vst [vmem:[%s6952_s8 + $0xef8] sm:$0xff] %v1152_v31  ;;  %v1154_v32 = vld [vmem:[%s6947_s7 + $0x1e00] sm:$0xff]  ;;  %v1156_v33 = vld [vmem:[%s6947_s7 + $0x1e08] sm:$0xff] }
 0x109   : > { %v1158_v34 = vld [vmem:[%s6947_s7 + $0x1e20] sm:$0xff]  ;;  %1155 = vst [vmem:[%s6952_s8 + $0xf00] sm:$0xff] %v1154_v32  ;;  %1157 = vst [vmem:[%s6952_s8 + $0xf08] sm:$0xff] %v1156_v33  ;;  %v1160_v35 = vld [vmem:[%s6947_s7 + $0x1e28] sm:$0xff] }
 0x10a   : > { %1159 = vst [vmem:[%s6952_s8 + $0xf10] sm:$0xff] %v1158_v34  ;;  %v1162_v36 = vld [vmem:[%s6947_s7 + $0x1e40] sm:$0xff]  ;;  %v1164_v37 = vld [vmem:[%s6947_s7 + $0x1e48] sm:$0xff]  ;;  %1161 = vst [vmem:[%s6952_s8 + $0xf18] sm:$0xff] %v1160_v35 }
 0x10b   : > { %1163 = vst [vmem:[%s6952_s8 + $0xf20] sm:$0xff] %v1162_v36  ;;  %1165 = vst [vmem:[%s6952_s8 + $0xf28] sm:$0xff] %v1164_v37  ;;  %v1166_v38 = vld [vmem:[%s6947_s7 + $0x1e60] sm:$0xff]  ;;  %v1168_v39 = vld [vmem:[%s6947_s7 + $0x1e68] sm:$0xff] }
 0x10c   : > { %v1170_v40 = vld [vmem:[%s6947_s7 + $0x1e80] sm:$0xff]  ;;  %1167 = vst [vmem:[%s6952_s8 + $0xf30] sm:$0xff] %v1166_v38  ;;  %1169 = vst [vmem:[%s6952_s8 + $0xf38] sm:$0xff] %v1168_v39  ;;  %v1172_v41 = vld [vmem:[%s6947_s7 + $0x1e88] sm:$0xff] }
 0x10d   : > { %1171 = vst [vmem:[%s6952_s8 + $0xf40] sm:$0xff] %v1170_v40  ;;  %v1174_v42 = vld [vmem:[%s6947_s7 + $0x1ea0] sm:$0xff]  ;;  %v1176_v43 = vld [vmem:[%s6947_s7 + $0x1ea8] sm:$0xff]  ;;  %1173 = vst [vmem:[%s6952_s8 + $0xf48] sm:$0xff] %v1172_v41 }
 0x10e   : > { %1175 = vst [vmem:[%s6952_s8 + $0xf50] sm:$0xff] %v1174_v42  ;;  %1177 = vst [vmem:[%s6952_s8 + $0xf58] sm:$0xff] %v1176_v43  ;;  %v1178_v44 = vld [vmem:[%s6947_s7 + $0x1ec0] sm:$0xff]  ;;  %v1180_v45 = vld [vmem:[%s6947_s7 + $0x1ec8] sm:$0xff] }
 0x10f   : > { %v1182_v46 = vld [vmem:[%s6947_s7 + $0x1ee0] sm:$0xff]  ;;  %1179 = vst [vmem:[%s6952_s8 + $0xf60] sm:$0xff] %v1178_v44  ;;  %1181 = vst [vmem:[%s6952_s8 + $0xf68] sm:$0xff] %v1180_v45  ;;  %v1184_v47 = vld [vmem:[%s6947_s7 + $0x1ee8] sm:$0xff] }
 0x110   : > { %1183 = vst [vmem:[%s6952_s8 + $0xf70] sm:$0xff] %v1182_v46  ;;  %v1186_v48 = vld [vmem:[%s6947_s7 + $0x1f00] sm:$0xff]  ;;  %v1188_v49 = vld [vmem:[%s6947_s7 + $0x1f08] sm:$0xff]  ;;  %1185 = vst [vmem:[%s6952_s8 + $0xf78] sm:$0xff] %v1184_v47 }
 0x111   : > { %1187 = vst [vmem:[%s6952_s8 + $0xf80] sm:$0xff] %v1186_v48  ;;  %1189 = vst [vmem:[%s6952_s8 + $0xf88] sm:$0xff] %v1188_v49  ;;  %v1190_v50 = vld [vmem:[%s6947_s7 + $0x1f20] sm:$0xff]  ;;  %v1192_v51 = vld [vmem:[%s6947_s7 + $0x1f28] sm:$0xff] }
 0x112   : > { %v1194_v52 = vld [vmem:[%s6947_s7 + $0x1f40] sm:$0xff]  ;;  %1191 = vst [vmem:[%s6952_s8 + $0xf90] sm:$0xff] %v1190_v50  ;;  %1193 = vst [vmem:[%s6952_s8 + $0xf98] sm:$0xff] %v1192_v51  ;;  %v1196_v53 = vld [vmem:[%s6947_s7 + $0x1f48] sm:$0xff] }
 0x113   : > { %1195 = vst [vmem:[%s6952_s8 + $0xfa0] sm:$0xff] %v1194_v52  ;;  %v1198_v54 = vld [vmem:[%s6947_s7 + $0x1f60] sm:$0xff]  ;;  %v1200_v55 = vld [vmem:[%s6947_s7 + $0x1f68] sm:$0xff]  ;;  %1197 = vst [vmem:[%s6952_s8 + $0xfa8] sm:$0xff] %v1196_v53 }
 0x114   : > { %1199 = vst [vmem:[%s6952_s8 + $0xfb0] sm:$0xff] %v1198_v54  ;;  %1201 = vst [vmem:[%s6952_s8 + $0xfb8] sm:$0xff] %v1200_v55  ;;  %v1202_v56 = vld [vmem:[%s6947_s7 + $0x1f80] sm:$0xff]  ;;  %v1204_v57 = vld [vmem:[%s6947_s7 + $0x1f88] sm:$0xff] }
 0x115   : > { %v1206_v58 = vld [vmem:[%s6947_s7 + $0x1fa0] sm:$0xff]  ;;  %1203 = vst [vmem:[%s6952_s8 + $0xfc0] sm:$0xff] %v1202_v56  ;;  %1205 = vst [vmem:[%s6952_s8 + $0xfc8] sm:$0xff] %v1204_v57  ;;  %v1208_v59 = vld [vmem:[%s6947_s7 + $0x1fa8] sm:$0xff] }
 0x116   : > { %1207 = vst [vmem:[%s6952_s8 + $0xfd0] sm:$0xff] %v1206_v58  ;;  %v1210_v60 = vld [vmem:[%s6947_s7 + $0x1fc0] sm:$0xff]  ;;  %v1212_v61 = vld [vmem:[%s6947_s7 + $0x1fc8] sm:$0xff]  ;;  %1209 = vst [vmem:[%s6952_s8 + $0xfd8] sm:$0xff] %v1208_v59 }
 0x117   : > { %1211 = vst [vmem:[%s6952_s8 + $0xfe0] sm:$0xff] %v1210_v60  ;;  %1213 = vst [vmem:[%s6952_s8 + $0xfe8] sm:$0xff] %v1212_v61  ;;  %v1214_v62 = vld [vmem:[%s6947_s7 + $0x1fe0] sm:$0xff]  ;;  %v1216_v63 = vld [vmem:[%s6947_s7 + $0x1fe8] sm:$0xff] }
 0x118   : > { %1215 = vst [vmem:[%s6952_s8 + $0xff0] sm:$0xff] %v1214_v62  ;;  %1217 = vst [vmem:[%s6952_s8 + $0xff8] sm:$0xff] %v1216_v63 }
 0x119 PF: > { %p5398_p7 = scmp.ge.s32.totalorder %s6862_s18, 1  ;;  %p1230_p8 = scmp.lt.s32.totalorder %s6862_s18, 9 }
 0x11b   : > { %p1231_p9 = pnand %p5398_p7, %p1230_p8 }
 0x11c   : > { %s1237_s9 = sand.u32 (!%p1231_p9), 1, %s6838_s12   ;;  %s5400_s10 = sshll.u32 (!%p1231_p9), %s6846_s14, 4 }
 0x11d   : > { %1234 = sbr.rel (%p1231_p9) target bundleno = 1060 (0x424), region = 51  ;;  %s5399_s11 = sshll.u32 (!%p1231_p9), %s1237_s9, 12 }
 0x11e   : > { %p1278_p10 = scmp.lt.s32.totalorder (!%p1231_p9), %s5400_s10, 63  ;;  %s5401_s21 = sshll.u32 (!%p1231_p9), %s6850_s15, 2 }
 0x11f   : > { %p1287_p11 = scmp.lt.s32.totalorder (!%p1231_p9), %s5401_s21, 7  ;;  %s7995_s15 = scalar_lea.vmem (!%p1231_p9), [#allocation3], %s5399_s11 }
 0x120   : > { %p5403_p12 = scmp.ne.s32.totalorder (!%p1231_p9), %s6846_s14, 0 }
 0x124   : > { %s8652_s10 = smov (!%p1278_p10, %s5400_s10), 63  ;;  %s8654_s21 = smov (!%p1287_p11, %s5401_s21), 7 }
 0x125   : > { %s7983_s24 = scalar_lea.vmem %s8635_s0, %s8652_s10  ;;  %s1289_s28 = scalar_lea.vmem %s8637_s2, %s8654_s21  ;;  %v6864_v0 = vmov (!%p5403_p12), 0.0  }
 0x126   : > { %s1298_s30 = scalar_lea.vmem %s8638_s3, %s8654_s21  ;;  %1303 = sbr.rel (%p5403_p12) target bundleno = 301 (0x12d), region = 59  ;;  %1304 = vst [vmem:[#allocation2] sm:$0xff] (!%p5403_p12), %v6864_v0 }
 0x12d PF: > { %v6038_v1 = vld [vmem:[%s7995_s15 + $0x4] ss:$16 sps:$4 sm:$0xff]   ;;  %v6040_v2 = vld [vmem:[%s7995_s15 + $0xc] ss:$16 sps:$4 sm:$0xff]   ;;  %v6042_v3 = vld [vmem:[%s7995_s15] ss:$16 sps:$4 sm:$0xff]   ;;  %v1826_v39 = vlaneseq }
 0x12e   : > { %4496 = vmatprep.subr.bf16.mxu0 %v6038_v1  ;;  %v6043_v4 = vld [vmem:[%s7995_s15 + $0x8] ss:$16 sps:$4 sm:$0xff]   ;;  %4824 = vmatprep.subr.bf16.mxu1 %v6040_v2  ;;  %v6044_v5 = vld [vmem:[%s7995_s15 + $0x24] ss:$16 sps:$4 sm:$0xff]   ;;  %v6046_v6 = vld [vmem:[%s7995_s15 + $0x2c] ss:$16 sps:$4 sm:$0xff]  }
 0x12f   : > { %4497 = vmatpush1.bf16.msra.mxu0 %v6042_v3  ;;  %4825 = vmatpush1.bf16.msra.mxu1 %v6043_v4  ;;  %v6048_v7 = vld [vmem:[%s7995_s15 + $0x20] ss:$16 sps:$4 sm:$0xff]   ;;  %v6049_v8 = vld [vmem:[%s7995_s15 + $0x28] ss:$16 sps:$4 sm:$0xff]   ;;  %v6050_v9 = vld [vmem:[%s7995_s15 + $0x44] ss:$16 sps:$4 sm:$0xff]  }
 0x130   : > { %4498 = vmatprep.subr.bf16.mxu0 %v6044_v5  ;;  %4826 = vmatprep.subr.bf16.mxu1 %v6046_v6  ;;  %v6052_v10 = vld [vmem:[%s7995_s15 + $0x4c] ss:$16 sps:$4 sm:$0xff]   ;;  %v6054_v11 = vld [vmem:[%s7995_s15 + $0x40] ss:$16 sps:$4 sm:$0xff]   ;;  %v6055_v12 = vld [vmem:[%s7995_s15 + $0x48] ss:$16 sps:$4 sm:$0xff]  }
 0x131   : > { %v6056_v13 = vld [vmem:[%s7995_s15 + $0x64] ss:$16 sps:$4 sm:$0xff]   ;;  %v6058_v14 = vld [vmem:[%s7995_s15 + $0x6c] ss:$16 sps:$4 sm:$0xff]   ;;  %v6060_v15 = vld [vmem:[%s7995_s15 + $0x60] ss:$16 sps:$4 sm:$0xff]  }
 0x132   : > { %v6061_v16 = vld [vmem:[%s7995_s15 + $0x68] ss:$16 sps:$4 sm:$0xff]   ;;  %v6062_v17 = vld [vmem:[%s7995_s15 + $0x84] ss:$16 sps:$4 sm:$0xff]   ;;  %v6064_v18 = vld [vmem:[%s7995_s15 + $0x8c] ss:$16 sps:$4 sm:$0xff]  }
 0x133   : > { %4499 = vmatpush1.bf16.msra.mxu0 %v6048_v7  ;;  %4827 = vmatpush1.bf16.msra.mxu1 %v6049_v8  ;;  %v6066_v19 = vld [vmem:[%s7995_s15 + $0x80] ss:$16 sps:$4 sm:$0xff]   ;;  %v6067_v20 = vld [vmem:[%s7995_s15 + $0x88] ss:$16 sps:$4 sm:$0xff]   ;;  %v6068_v21 = vld [vmem:[%s7995_s15 + $0xa4] ss:$16 sps:$4 sm:$0xff]  }
 0x134   : > { %4500 = vmatprep.subr.bf16.mxu0 %v6050_v9  ;;  %4828 = vmatprep.subr.bf16.mxu1 %v6052_v10  ;;  %v6070_v22 = vld [vmem:[%s7995_s15 + $0xac] ss:$16 sps:$4 sm:$0xff]   ;;  %v6072_v23 = vld [vmem:[%s7995_s15 + $0xa0] ss:$16 sps:$4 sm:$0xff]   ;;  %v6073_v24 = vld [vmem:[%s7995_s15 + $0xa8] ss:$16 sps:$4 sm:$0xff]  }
 0x135   : > { %v6074_v25 = vld [vmem:[%s7995_s15 + $0xc4] ss:$16 sps:$4 sm:$0xff]   ;;  %v6076_v26 = vld [vmem:[%s7995_s15 + $0xcc] ss:$16 sps:$4 sm:$0xff]   ;;  %v6078_v27 = vld [vmem:[%s7995_s15 + $0xc0] ss:$16 sps:$4 sm:$0xff]  }
 0x136   : > { %v6079_v28 = vld [vmem:[%s7995_s15 + $0xc8] ss:$16 sps:$4 sm:$0xff]   ;;  %v6080_v29 = vld [vmem:[%s7995_s15 + $0xe4] ss:$16 sps:$4 sm:$0xff]   ;;  %v6082_v30 = vld [vmem:[%s7995_s15 + $0xec] ss:$16 sps:$4 sm:$0xff]  }
 0x137   : > { %4501 = vmatpush1.bf16.msra.mxu0 %v6054_v11  ;;  %4829 = vmatpush1.bf16.msra.mxu1 %v6055_v12  ;;  %v6084_v31 = vld [vmem:[%s7995_s15 + $0xe0] ss:$16 sps:$4 sm:$0xff]   ;;  %v6085_v32 = vld [vmem:[%s7995_s15 + $0xe8] ss:$16 sps:$4 sm:$0xff]   ;;  %v6086_v33 = vld [vmem:[%s7995_s15 + $0x104] ss:$16 sps:$4 sm:$0xff]  }
 0x138   : > { %4502 = vmatprep.subr.bf16.mxu0 %v6056_v13  ;;  %4830 = vmatprep.subr.bf16.mxu1 %v6058_v14  ;;  %v6088_v34 = vld [vmem:[%s7995_s15 + $0x10c] ss:$16 sps:$4 sm:$0xff]   ;;  %v6090_v35 = vld [vmem:[%s7995_s15 + $0x100] ss:$16 sps:$4 sm:$0xff]   ;;  %v6091_v36 = vld [vmem:[%s7995_s15 + $0x108] ss:$16 sps:$4 sm:$0xff]  }
 0x139   : > { %v6865_v37 = vmov 1966171168   ;;  %v6092_v40 = vld [vmem:[%s7995_s15 + $0x124] ss:$16 sps:$4 sm:$0xff]   ;;  %v6094_v41 = vld [vmem:[%s7995_s15 + $0x12c] ss:$16 sps:$4 sm:$0xff]  }
 0x13a   : > { %v1824_v38 = vunpack.c.l.s4 %v6865_v37  ;;  %v6096_v42 = vld [vmem:[%s7995_s15 + $0x120] ss:$16 sps:$4 sm:$0xff]   ;;  %v8037_v44 = vshrl.u32 %v1826_v39, 7  ;;  %v6097_v45 = vld [vmem:[%s7995_s15 + $0x128] ss:$16 sps:$4 sm:$0xff]   ;;  %p5916_p13 = scmp.ne.s32.totalorder %s6846_s14, 3 }
 0x13b   : > { %4503 = vmatpush1.bf16.msra.mxu0 %v6060_v15  ;;  %4831 = vmatpush1.bf16.msra.mxu1 %v6061_v16  ;;  %v6098_v46 = vld [vmem:[%s7995_s15 + $0x144] ss:$16 sps:$4 sm:$0xff]   ;;  %v6100_v47 = vld [vmem:[%s7995_s15 + $0x14c] ss:$16 sps:$4 sm:$0xff]   ;;  %v6102_v48 = vld [vmem:[%s7995_s15 + $0x140] ss:$16 sps:$4 sm:$0xff]  }
 0x13c   : > { %4504 = vmatprep.subr.bf16.mxu0 %v6062_v17  ;;  %4832 = vmatprep.subr.bf16.mxu1 %v6064_v18  ;;  %v1825_v43 = vunpack.c.0.s8 %v1824_v38  ;;  %v6103_v49 = vld [vmem:[%s7995_s15 + $0x148] ss:$16 sps:$4 sm:$0xff]   ;;  %v6104_v51 = vld [vmem:[%s7995_s15 + $0x164] ss:$16 sps:$4 sm:$0xff]   ;;  %v6106_v52 = vld [vmem:[%s7995_s15 + $0x16c] ss:$16 sps:$4 sm:$0xff]  }
 0x13d   : > { %v8050_v53 = vld [vmem:[%s7983_s24] sm:$0xff]  ;;  %v6108_v54 = vld [vmem:[%s7995_s15 + $0x160] ss:$16 sps:$4 sm:$0xff]   ;;  %v6110_v57 = vld [vmem:[%s7995_s15 + $0x184] ss:$16 sps:$4 sm:$0xff]  }
 0x13e   : > { %v8045_v50 = vsub.s32 %v1825_v43, %v8037_v44  ;;  %v6109_v56 = vld [vmem:[%s7995_s15 + $0x168] ss:$16 sps:$4 sm:$0xff]   ;;  %v6112_v58 = vld [vmem:[%s7995_s15 + $0x18c] ss:$16 sps:$4 sm:$0xff]   ;;  %v6114_v60 = vld [vmem:[%s7995_s15 + $0x180] ss:$16 sps:$4 sm:$0xff]  }
 0x13f   : > { %4505 = vmatpush1.bf16.msra.mxu0 %v6066_v19  ;;  %4833 = vmatpush1.bf16.msra.mxu1 %v6067_v20  ;;  %v6115_v62 = vld [vmem:[%s7995_s15 + $0x188] ss:$16 sps:$4 sm:$0xff]   ;;  %v6116_v63 = vld [vmem:[%s7995_s15 + $0x1a4] ss:$16 sps:$4 sm:$0xff]   ;;  %v6118_v0 = vld [vmem:[%s7995_s15 + $0x1ac] ss:$16 sps:$4 sm:$0xff]  }
 0x140   : > { %4506 = vmatprep.subr.bf16.mxu0 %v6068_v21  ;;  %4834 = vmatprep.subr.bf16.mxu1 %v6070_v22  ;;  %v1829_v55 = vrot.slane %v8050_v53, %v8045_v50  ;;  %v6120_v1 = vld [vmem:[%s7995_s15 + $0x1a0] ss:$16 sps:$4 sm:$0xff]   ;;  %v6121_v2 = vld [vmem:[%s7995_s15 + $0x1a8] ss:$16 sps:$4 sm:$0xff]   ;;  %v6122_v3 = vld [vmem:[%s7995_s15 + $0x1c4] ss:$16 sps:$4 sm:$0xff]  }
 0x141   : > { %v6124_v4 = vld [vmem:[%s7995_s15 + $0x1cc] ss:$16 sps:$4 sm:$0xff]   ;;  %v6126_v5 = vld [vmem:[%s7995_s15 + $0x1c0] ss:$16 sps:$4 sm:$0xff]   ;;  %v6127_v6 = vld [vmem:[%s7995_s15 + $0x1c8] ss:$16 sps:$4 sm:$0xff]  }
 0x142   : > { %v1837_v59 = vcombine.high %v1829_v55, %v1829_v55  ;;  %v6128_v7 = vld [vmem:[%s7995_s15 + $0x1e4] ss:$16 sps:$4 sm:$0xff]   ;;  %v6130_v8 = vld [vmem:[%s7995_s15 + $0x1ec] ss:$16 sps:$4 sm:$0xff]   ;;  %v6132_v9 = vld [vmem:[%s7995_s15 + $0x1e0] ss:$16 sps:$4 sm:$0xff]   ;;  %v8077_v14 = vrot.slane %v1829_v55, %v8045_v50 }
 0x143   : > { %4507 = vmatpush1.bf16.msra.mxu0 %v6072_v23  ;;  %4835 = vmatpush1.bf16.msra.mxu1 %v6073_v24  ;;  %v6133_v10 = vld [vmem:[%s7995_s15 + $0x1e8] ss:$16 sps:$4 sm:$0xff]   ;;  %v6136_v11 = vld [vmem:[%s7995_s15 + $0x204] ss:$16 sps:$4 sm:$0xff]   ;;  %v6139_v12 = vld [vmem:[%s7995_s15 + $0x20c] ss:$16 sps:$4 sm:$0xff]  }
 0x144   : > { %4508 = vmatprep.subr.bf16.mxu0 %v6074_v25  ;;  %4836 = vmatprep.subr.bf16.mxu1 %v6076_v26  ;;  %v1859_v61 = vrot.slane %v1837_v59, %v8045_v50  ;;  %v6134_v13 = vld [vmem:[%s7995_s15 + $0x200] ss:$16 sps:$4 sm:$0xff]   ;;  %v6137_v15 = vld [vmem:[%s7995_s15 + $0x208] ss:$16 sps:$4 sm:$0xff]   ;;  %v6142_v16 = vld [vmem:[%s7995_s15 + $0x224] ss:$16 sps:$4 sm:$0xff]  }
 0x145   : > { %v6145_v17 = vld [vmem:[%s7995_s15 + $0x22c] ss:$16 sps:$4 sm:$0xff]   ;;  %v6140_v19 = vld [vmem:[%s7995_s15 + $0x220] ss:$16 sps:$4 sm:$0xff]   ;;  %v6143_v20 = vld [vmem:[%s7995_s15 + $0x228] ss:$16 sps:$4 sm:$0xff]  }
 0x146   : > { %4528 = vmatprep.mubr.bf16.mxu0 %v1859_v61  ;;  %4856 = vmatprep.mubr.bf16.mxu1 %v1859_v61  ;;  %v1869_v18 = vcombine.high %v1859_v61, %v1859_v61  ;;  %v6148_v21 = vld [vmem:[%s7995_s15 + $0x244] ss:$16 sps:$4 sm:$0xff]   ;;  %v6151_v22 = vld [vmem:[%s7995_s15 + $0x24c] ss:$16 sps:$4 sm:$0xff]   ;;  %v6146_v23 = vld [vmem:[%s7995_s15 + $0x240] ss:$16 sps:$4 sm:$0xff]  }
 0x147   : > { %4509 = vmatpush1.bf16.msra.mxu0 %v6078_v27  ;;  %4837 = vmatpush1.bf16.msra.mxu1 %v6079_v28  ;;  %v6149_v24 = vld [vmem:[%s7995_s15 + $0x248] ss:$16 sps:$4 sm:$0xff]   ;;  %v6154_v25 = vld [vmem:[%s7995_s15 + $0x264] ss:$16 sps:$4 sm:$0xff]   ;;  %v6157_v26 = vld [vmem:[%s7995_s15 + $0x26c] ss:$16 sps:$4 sm:$0xff]  }
 0x148   : > { %4510 = vmatprep.subr.bf16.mxu0 %v6080_v29  ;;  %4838 = vmatprep.subr.bf16.mxu1 %v6082_v30  ;;  %v6152_v27 = vld [vmem:[%s7995_s15 + $0x260] ss:$16 sps:$4 sm:$0xff]   ;;  %v6155_v28 = vld [vmem:[%s7995_s15 + $0x268] ss:$16 sps:$4 sm:$0xff]   ;;  %v6160_v29 = vld [vmem:[%s7995_s15 + $0x284] ss:$16 sps:$4 sm:$0xff]  }
 0x149   : > { %v6163_v30 = vld [vmem:[%s7995_s15 + $0x28c] ss:$16 sps:$4 sm:$0xff]   ;;  %v6172_v37 = vld [vmem:[%s7995_s15 + $0x2c4] ss:$16 sps:$4 sm:$0xff]   ;;  %v6170_v39 = vld [vmem:[%s7995_s15 + $0x2c0] ss:$16 sps:$4 sm:$0xff]  }
 0x14a   : > { %v6175_v38 = vld [vmem:[%s7995_s15 + $0x2cc] ss:$16 sps:$4 sm:$0xff]   ;;  %v6176_v43 = vld [vmem:[%s7995_s15 + $0x2e0] ss:$16 sps:$4 sm:$0xff]   ;;  %v6191_v55 = vld [vmem:[%s7995_s15 + $0x328] ss:$16 sps:$4 sm:$0xff]  }
 0x14b   : > { %4511 = vmatpush1.bf16.msra.mxu0 %v6084_v31  ;;  %4839 = vmatpush1.bf16.msra.mxu1 %v6085_v32  ;;  %v6158_v31 = vld [vmem:[%s7995_s15 + $0x280] ss:$16 sps:$4 sm:$0xff]   ;;  %v6161_v32 = vld [vmem:[%s7995_s15 + $0x288] ss:$16 sps:$4 sm:$0xff]   ;;  %v6205_v61 = vld [vmem:[%s7995_s15 + $0x36c] ss:$16 sps:$4 sm:$0xff]  }
 0x14c   : > { %4512 = vmatprep.subr.bf16.mxu0 %v6086_v33  ;;  %4840 = vmatprep.subr.bf16.mxu1 %v6088_v34  ;;  %v6166_v33 = vld [vmem:[%s7995_s15 + $0x2a4] ss:$16 sps:$4 sm:$0xff]   ;;  %v6169_v34 = vld [vmem:[%s7995_s15 + $0x2ac] ss:$16 sps:$4 sm:$0xff]   ;;  %v6197_v59 = vld [vmem:[%s7995_s15 + $0x348] ss:$16 sps:$4 sm:$0xff]  }
 0x14f   : > { %4513 = vmatpush1.bf16.msra.mxu0 %v6090_v35  ;;  %4841 = vmatpush1.bf16.msra.mxu1 %v6091_v36  ;;  %v6164_v35 = vld [vmem:[%s7995_s15 + $0x2a0] ss:$16 sps:$4 sm:$0xff]   ;;  %v6167_v36 = vld [vmem:[%s7995_s15 + $0x2a8] ss:$16 sps:$4 sm:$0xff]  }
 0x150   : > { %4514 = vmatprep.subr.bf16.mxu0 %v6092_v40  ;;  %4842 = vmatprep.subr.bf16.mxu1 %v6094_v41  ;;  %v6173_v40 = vld [vmem:[%s7995_s15 + $0x2c8] ss:$16 sps:$4 sm:$0xff]   ;;  %v6178_v41 = vld [vmem:[%s7995_s15 + $0x2e4] ss:$16 sps:$4 sm:$0xff]  }
 0x153   : > { %4515 = vmatpush1.bf16.msra.mxu0 %v6096_v42  ;;  %4843 = vmatpush1.bf16.msra.mxu1 %v6097_v45  ;;  %v6181_v42 = vld [vmem:[%s7995_s15 + $0x2ec] ss:$16 sps:$4 sm:$0xff]   ;;  %v6179_v45 = vld [vmem:[%s7995_s15 + $0x2e8] ss:$16 sps:$4 sm:$0xff]  }
 0x154   : > { %4516 = vmatprep.subr.bf16.mxu0 %v6098_v46  ;;  %4844 = vmatprep.subr.bf16.mxu1 %v6100_v47  ;;  %v6184_v46 = vld [vmem:[%s7995_s15 + $0x304] ss:$16 sps:$4 sm:$0xff]   ;;  %v6187_v47 = vld [vmem:[%s7995_s15 + $0x30c] ss:$16 sps:$4 sm:$0xff]  }
 0x157   : > { %4517 = vmatpush1.bf16.msra.mxu0 %v6102_v48  ;;  %4845 = vmatpush1.bf16.msra.mxu1 %v6103_v49  ;;  %v6182_v48 = vld [vmem:[%s7995_s15 + $0x300] ss:$16 sps:$4 sm:$0xff]   ;;  %v6185_v49 = vld [vmem:[%s7995_s15 + $0x308] ss:$16 sps:$4 sm:$0xff]  }
 0x158   : > { %4518 = vmatprep.subr.bf16.mxu0 %v6104_v51  ;;  %4846 = vmatprep.subr.bf16.mxu1 %v6106_v52  ;;  %v6190_v51 = vld [vmem:[%s7995_s15 + $0x324] ss:$16 sps:$4 sm:$0xff]   ;;  %v6193_v52 = vld [vmem:[%s7995_s15 + $0x32c] ss:$16 sps:$4 sm:$0xff]  }
 0x15b   : > { %4519 = vmatpush1.bf16.msra.mxu0 %v6108_v54  ;;  %4847 = vmatpush1.bf16.msra.mxu1 %v6109_v56  ;;  %v6188_v54 = vld [vmem:[%s7995_s15 + $0x320] ss:$16 sps:$4 sm:$0xff]   ;;  %v6196_v56 = vld [vmem:[%s7995_s15 + $0x344] ss:$16 sps:$4 sm:$0xff]  }
 0x15c   : > { %4520 = vmatprep.subr.bf16.mxu0 %v6110_v57  ;;  %4848 = vmatprep.subr.bf16.mxu1 %v6112_v58  ;;  %v6199_v57 = vld [vmem:[%s7995_s15 + $0x34c] ss:$16 sps:$4 sm:$0xff]   ;;  %v6194_v58 = vld [vmem:[%s7995_s15 + $0x340] ss:$16 sps:$4 sm:$0xff]  }
 0x15f   : > { %4521 = vmatpush1.bf16.msra.mxu0 %v6114_v60  ;;  %4849 = vmatpush1.bf16.msra.mxu1 %v6115_v62  ;;  %v6202_v60 = vld [vmem:[%s7995_s15 + $0x364] ss:$16 sps:$4 sm:$0xff]   ;;  %v6200_v62 = vld [vmem:[%s7995_s15 + $0x360] ss:$16 sps:$4 sm:$0xff]  }
 0x160   : > { %4522 = vmatprep.subr.bf16.mxu0 %v6116_v63  ;;  %4850 = vmatprep.subr.bf16.mxu1 %v6118_v0  ;;  %v6203_v63 = vld [vmem:[%s7995_s15 + $0x368] ss:$16 sps:$4 sm:$0xff]   ;;  %v6208_v0 = vld [vmem:[%s7995_s15 + $0x384] ss:$16 sps:$4 sm:$0xff]  }
 0x163   : > { %4523 = vmatpush1.bf16.msra.mxu0 %v6120_v1  ;;  %4851 = vmatpush1.bf16.msra.mxu1 %v6121_v2  ;;  %v6211_v1 = vld [vmem:[%s7995_s15 + $0x38c] ss:$16 sps:$4 sm:$0xff]   ;;  %v6206_v2 = vld [vmem:[%s7995_s15 + $0x380] ss:$16 sps:$4 sm:$0xff]  }
 0x164   : > { %4524 = vmatprep.subr.bf16.mxu0 %v6122_v3  ;;  %4852 = vmatprep.subr.bf16.mxu1 %v6124_v4  ;;  %v6209_v3 = vld [vmem:[%s7995_s15 + $0x388] ss:$16 sps:$4 sm:$0xff]   ;;  %v6214_v4 = vld [vmem:[%s7995_s15 + $0x3a4] ss:$16 sps:$4 sm:$0xff]  }
 0x167   : > { %4525 = vmatpush1.bf16.msra.mxu0 %v6126_v5  ;;  %4853 = vmatpush1.bf16.msra.mxu1 %v6127_v6  ;;  %v6217_v5 = vld [vmem:[%s7995_s15 + $0x3ac] ss:$16 sps:$4 sm:$0xff]   ;;  %v6212_v6 = vld [vmem:[%s7995_s15 + $0x3a0] ss:$16 sps:$4 sm:$0xff]  }
 0x168   : > { %4526 = vmatprep.subr.bf16.mxu0 %v6128_v7  ;;  %4854 = vmatprep.subr.bf16.mxu1 %v6130_v8  ;;  %v6215_v7 = vld [vmem:[%s7995_s15 + $0x3a8] ss:$16 sps:$4 sm:$0xff]   ;;  %v6220_v8 = vld [vmem:[%s7995_s15 + $0x3c4] ss:$16 sps:$4 sm:$0xff]  }
 0x16b   : > { %4527 = vmatpush1.bf16.msra.mxu0 %v6132_v9  ;;  %4855 = vmatpush1.bf16.msra.mxu1 %v6133_v10  ;;  %v6223_v9 = vld [vmem:[%s7995_s15 + $0x3cc] ss:$16 sps:$4 sm:$0xff]   ;;  %v1822_v10 = vcombine.high %v8050_v53, %v8050_v53  ;;  %v6227_v53 = vld [vmem:[%s7995_s15 + $0x3e8] ss:$16 sps:$4 sm:$0xff]  }
 0x16c   : > { %4537 = vmatprep.subr.bf16.mxu0 %v6136_v11  ;;  %4865 = vmatprep.subr.bf16.mxu1 %v6139_v12  ;;  %v6218_v11 = vld [vmem:[%s7995_s15 + $0x3c0] ss:$16 sps:$4 sm:$0xff]   ;;  %v6221_v12 = vld [vmem:[%s7995_s15 + $0x3c8] ss:$16 sps:$4 sm:$0xff]  }
 0x16e   : > { %4529 = vmatmul.mubr.bf16.vlgmr.msra.gmra.mrb[0].mxu0 %v8077_v14  ;;  %4857 = vmatmul.mubr.bf16.vlgmr.msra.gmra.mrb[0].mxu1 %v8077_v14 }
 0x16f   : > { %4538 = vmatpush1.bf16.msra.mxu0 %v6134_v13  ;;  %4866 = vmatpush1.bf16.msra.mxu1 %v6137_v15  ;;  %v6226_v13 = vld [vmem:[%s7995_s15 + $0x3e4] ss:$16 sps:$4 sm:$0xff]   ;;  %v6229_v15 = vld [vmem:[%s7995_s15 + $0x3ec] ss:$16 sps:$4 sm:$0xff]  }
 0x170   : > { %4539 = vmatprep.subr.bf16.mxu0 %v6142_v16  ;;  %4867 = vmatprep.subr.bf16.mxu1 %v6145_v17  ;;  %v8143_v16 = vrot.slane %v1822_v10, %v8045_v50  ;;  %v6224_v17 = vld [vmem:[%s7995_s15 + $0x3e0] ss:$16 sps:$4 sm:$0xff]   ;;  %v6305_v10 = vld [vmem:[%s7995_s15 + $0x588] ss:$16 sps:$4 sm:$0xff]  }
 0x171   : > { %4569 = vmatprep.mubr.bf16.mxu0 %v1869_v18  ;;  %4897 = vmatprep.mubr.bf16.mxu1 %v1869_v18  ;;  %v6232_v18 = vld [vmem:[%s7995_s15 + $0x404] ss:$16 sps:$4 sm:$0xff]  }
 0x173   : > { %4540 = vmatpush1.bf16.msra.mxu0 %v6140_v19  ;;  %4868 = vmatpush1.bf16.msra.mxu1 %v6143_v20  ;;  %v6235_v19 = vld [vmem:[%s7995_s15 + $0x40c] ss:$16 sps:$4 sm:$0xff]   ;;  %v1838_v20 = vcombine.high %v8143_v16, %v8143_v16 }
 0x174   : > { %4541 = vmatprep.subr.bf16.mxu0 %v6148_v21  ;;  %4869 = vmatprep.subr.bf16.mxu1 %v6151_v22  ;;  %v6230_v21 = vld [vmem:[%s7995_s15 + $0x400] ss:$16 sps:$4 sm:$0xff]   ;;  %v1867_v22 = vcombine.high %v8077_v14, %v8077_v14  ;;  %v6239_v14 = vld [vmem:[%s7995_s15 + $0x428] ss:$16 sps:$4 sm:$0xff]  }
 0x177   : > { %4542 = vmatpush1.bf16.msra.mxu0 %v6146_v23  ;;  %4870 = vmatpush1.bf16.msra.mxu1 %v6149_v24  ;;  %v6233_v23 = vld [vmem:[%s7995_s15 + $0x408] ss:$16 sps:$4 sm:$0xff]   ;;  %v6238_v24 = vld [vmem:[%s7995_s15 + $0x424] ss:$16 sps:$4 sm:$0xff]  }
 0x178   : > { %4543 = vmatprep.subr.bf16.mxu0 %v6154_v25  ;;  %4871 = vmatprep.subr.bf16.mxu1 %v6157_v26  ;;  %v6241_v25 = vld [vmem:[%s7995_s15 + $0x42c] ss:$16 sps:$4 sm:$0xff]   ;;  %v8158_v26 = vrot.slane %v1838_v20, %v8045_v50  ;;  %v6322_v20 = vld [vmem:[%s7995_s15 + $0x5e4] ss:$16 sps:$4 sm:$0xff]  }
 0x17b   : > { %4544 = vmatpush1.bf16.msra.mxu0 %v6152_v27  ;;  %4872 = vmatpush1.bf16.msra.mxu1 %v6155_v28  ;;  %v6236_v27 = vld [vmem:[%s7995_s15 + $0x420] ss:$16 sps:$4 sm:$0xff]   ;;  %v6244_v28 = vld [vmem:[%s7995_s15 + $0x444] ss:$16 sps:$4 sm:$0xff]  }
 0x17c   : > { %4545 = vmatprep.subr.bf16.mxu0 %v6160_v29  ;;  %4873 = vmatprep.subr.bf16.mxu1 %v6163_v30  ;;  %v6247_v29 = vld [vmem:[%s7995_s15 + $0x44c] ss:$16 sps:$4 sm:$0xff]   ;;  %v6242_v30 = vld [vmem:[%s7995_s15 + $0x440] ss:$16 sps:$4 sm:$0xff]  }
 0x17f   : > { %4546 = vmatpush1.bf16.msra.mxu0 %v6158_v31  ;;  %4874 = vmatpush1.bf16.msra.mxu1 %v6161_v32  ;;  %v6245_v31 = vld [vmem:[%s7995_s15 + $0x448] ss:$16 sps:$4 sm:$0xff]   ;;  %v6250_v32 = vld [vmem:[%s7995_s15 + $0x464] ss:$16 sps:$4 sm:$0xff]  }
 0x180   : > { %4547 = vmatprep.subr.bf16.mxu0 %v6166_v33  ;;  %4875 = vmatprep.subr.bf16.mxu1 %v6169_v34  ;;  %v6253_v33 = vld [vmem:[%s7995_s15 + $0x46c] ss:$16 sps:$4 sm:$0xff]   ;;  %v6248_v34 = vld [vmem:[%s7995_s15 + $0x460] ss:$16 sps:$4 sm:$0xff]  }
 0x183   : > { %4548 = vmatpush1.bf16.msra.mxu0 %v6164_v35  ;;  %4876 = vmatpush1.bf16.msra.mxu1 %v6167_v36  ;;  %v6251_v35 = vld [vmem:[%s7995_s15 + $0x468] ss:$16 sps:$4 sm:$0xff]   ;;  %v6256_v36 = vld [vmem:[%s7995_s15 + $0x484] ss:$16 sps:$4 sm:$0xff]  }
 0x184   : > { %4549 = vmatprep.subr.bf16.mxu0 %v6172_v37  ;;  %4877 = vmatprep.subr.bf16.mxu1 %v6175_v38  ;;  %v6259_v37 = vld [vmem:[%s7995_s15 + $0x48c] ss:$16 sps:$4 sm:$0xff]   ;;  %v6254_v38 = vld [vmem:[%s7995_s15 + $0x480] ss:$16 sps:$4 sm:$0xff]  }
 0x187   : > { %4550 = vmatpush1.bf16.msra.mxu0 %v6170_v39  ;;  %4878 = vmatpush1.bf16.msra.mxu1 %v6173_v40  ;;  %v6257_v39 = vld [vmem:[%s7995_s15 + $0x488] ss:$16 sps:$4 sm:$0xff]   ;;  %v6262_v40 = vld [vmem:[%s7995_s15 + $0x4a4] ss:$16 sps:$4 sm:$0xff]  }
 0x188   : > { %4551 = vmatprep.subr.bf16.mxu0 %v6178_v41  ;;  %4879 = vmatprep.subr.bf16.mxu1 %v6181_v42  ;;  %v6265_v41 = vld [vmem:[%s7995_s15 + $0x4ac] ss:$16 sps:$4 sm:$0xff]   ;;  %v6260_v42 = vld [vmem:[%s7995_s15 + $0x4a0] ss:$16 sps:$4 sm:$0xff]  }
 0x18b   : > { %4552 = vmatpush1.bf16.msra.mxu0 %v6176_v43  ;;  %4880 = vmatpush1.bf16.msra.mxu1 %v6179_v45  ;;  %v6263_v43 = vld [vmem:[%s7995_s15 + $0x4a8] ss:$16 sps:$4 sm:$0xff]   ;;  %v6268_v45 = vld [vmem:[%s7995_s15 + $0x4c4] ss:$16 sps:$4 sm:$0xff]  }
 0x18c   : > { %4553 = vmatprep.subr.bf16.mxu0 %v6184_v46  ;;  %4881 = vmatprep.subr.bf16.mxu1 %v6187_v47  ;;  %v6271_v46 = vld [vmem:[%s7995_s15 + $0x4cc] ss:$16 sps:$4 sm:$0xff]   ;;  %v6266_v47 = vld [vmem:[%s7995_s15 + $0x4c0] ss:$16 sps:$4 sm:$0xff]  }
 0x18f   : > { %4554 = vmatpush1.bf16.msra.mxu0 %v6182_v48  ;;  %4882 = vmatpush1.bf16.msra.mxu1 %v6185_v49  ;;  %v6269_v48 = vld [vmem:[%s7995_s15 + $0x4c8] ss:$16 sps:$4 sm:$0xff]   ;;  %v6274_v49 = vld [vmem:[%s7995_s15 + $0x4e4] ss:$16 sps:$4 sm:$0xff]  }
 0x190   : > { %4555 = vmatprep.subr.bf16.mxu0 %v6190_v51  ;;  %4883 = vmatprep.subr.bf16.mxu1 %v6193_v52  ;;  %v6277_v51 = vld [vmem:[%s7995_s15 + $0x4ec] ss:$16 sps:$4 sm:$0xff]   ;;  %v6272_v52 = vld [vmem:[%s7995_s15 + $0x4e0] ss:$16 sps:$4 sm:$0xff]  }
 0x193   : > { %4556 = vmatpush1.bf16.msra.mxu0 %v6188_v54  ;;  %4884 = vmatpush1.bf16.msra.mxu1 %v6191_v55  ;;  %v6275_v54 = vld [vmem:[%s7995_s15 + $0x4e8] ss:$16 sps:$4 sm:$0xff]   ;;  %v6280_v55 = vld [vmem:[%s7995_s15 + $0x504] ss:$16 sps:$4 sm:$0xff]  }
 0x194   : > { %4557 = vmatprep.subr.bf16.mxu0 %v6196_v56  ;;  %4885 = vmatprep.subr.bf16.mxu1 %v6199_v57  ;;  %v6283_v56 = vld [vmem:[%s7995_s15 + $0x50c] ss:$16 sps:$4 sm:$0xff]   ;;  %v6278_v57 = vld [vmem:[%s7995_s15 + $0x500] ss:$16 sps:$4 sm:$0xff]  }
 0x197   : > { %4558 = vmatpush1.bf16.msra.mxu0 %v6194_v58  ;;  %4886 = vmatpush1.bf16.msra.mxu1 %v6197_v59  ;;  %v6281_v58 = vld [vmem:[%s7995_s15 + $0x508] ss:$16 sps:$4 sm:$0xff]   ;;  %v6286_v59 = vld [vmem:[%s7995_s15 + $0x524] ss:$16 sps:$4 sm:$0xff]  }
 0x198   : > { %4559 = vmatprep.subr.bf16.mxu0 %v6202_v60  ;;  %4887 = vmatprep.subr.bf16.mxu1 %v6205_v61  ;;  %v6289_v60 = vld [vmem:[%s7995_s15 + $0x52c] ss:$16 sps:$4 sm:$0xff]   ;;  %v6284_v61 = vld [vmem:[%s7995_s15 + $0x520] ss:$16 sps:$4 sm:$0xff]  }
 0x19b   : > { %4560 = vmatpush1.bf16.msra.mxu0 %v6200_v62  ;;  %4888 = vmatpush1.bf16.msra.mxu1 %v6203_v63  ;;  %v6287_v62 = vld [vmem:[%s7995_s15 + $0x528] ss:$16 sps:$4 sm:$0xff]   ;;  %v6292_v63 = vld [vmem:[%s7995_s15 + $0x544] ss:$16 sps:$4 sm:$0xff]  }
 0x19c   : > { %4561 = vmatprep.subr.bf16.mxu0 %v6208_v0  ;;  %4889 = vmatprep.subr.bf16.mxu1 %v6211_v1  ;;  %v6295_v0 = vld [vmem:[%s7995_s15 + $0x54c] ss:$16 sps:$4 sm:$0xff]   ;;  %v6290_v1 = vld [vmem:[%s7995_s15 + $0x540] ss:$16 sps:$4 sm:$0xff]  }
 0x19f   : > { %4562 = vmatpush1.bf16.msra.mxu0 %v6206_v2  ;;  %4890 = vmatpush1.bf16.msra.mxu1 %v6209_v3  ;;  %v6293_v2 = vld [vmem:[%s7995_s15 + $0x548] ss:$16 sps:$4 sm:$0xff]   ;;  %v6298_v3 = vld [vmem:[%s7995_s15 + $0x564] ss:$16 sps:$4 sm:$0xff]  }
 0x1a0   : > { %4563 = vmatprep.subr.bf16.mxu0 %v6214_v4  ;;  %4891 = vmatprep.subr.bf16.mxu1 %v6217_v5  ;;  %v6301_v4 = vld [vmem:[%s7995_s15 + $0x56c] ss:$16 sps:$4 sm:$0xff]   ;;  %v6296_v5 = vld [vmem:[%s7995_s15 + $0x560] ss:$16 sps:$4 sm:$0xff]  }
 0x1a3   : > { %4564 = vmatpush1.bf16.msra.mxu0 %v6212_v6  ;;  %4892 = vmatpush1.bf16.msra.mxu1 %v6215_v7  ;;  %v6299_v6 = vld [vmem:[%s7995_s15 + $0x568] ss:$16 sps:$4 sm:$0xff]   ;;  %v6304_v7 = vld [vmem:[%s7995_s15 + $0x584] ss:$16 sps:$4 sm:$0xff]  }
 0x1a4   : > { %4565 = vmatprep.subr.bf16.mxu0 %v6220_v8  ;;  %4893 = vmatprep.subr.bf16.mxu1 %v6223_v9  ;;  %v6307_v8 = vld [vmem:[%s7995_s15 + $0x58c] ss:$16 sps:$4 sm:$0xff]   ;;  %v6302_v9 = vld [vmem:[%s7995_s15 + $0x580] ss:$16 sps:$4 sm:$0xff]  }
 0x1a7   : > { %4566 = vmatpush1.bf16.msra.mxu0 %v6218_v11  ;;  %4894 = vmatpush1.bf16.msra.mxu1 %v6221_v12  ;;  %v6310_v11 = vld [vmem:[%s7995_s15 + $0x5a4] ss:$16 sps:$4 sm:$0xff]   ;;  %v6313_v12 = vld [vmem:[%s7995_s15 + $0x5ac] ss:$16 sps:$4 sm:$0xff]  }
 0x1a8   : > { %4567 = vmatprep.subr.bf16.mxu0 %v6226_v13  ;;  %4895 = vmatprep.subr.bf16.mxu1 %v6229_v15  ;;  %v6308_v13 = vld [vmem:[%s7995_s15 + $0x5a0] ss:$16 sps:$4 sm:$0xff]   ;;  %v6311_v15 = vld [vmem:[%s7995_s15 + $0x5a8] ss:$16 sps:$4 sm:$0xff]  }
 0x1ab   : > { %4568 = vmatpush1.bf16.msra.mxu0 %v6224_v17  ;;  %4896 = vmatpush1.bf16.msra.mxu1 %v6227_v53  ;;  %v6316_v17 = vld [vmem:[%s7995_s15 + $0x5c4] ss:$16 sps:$4 sm:$0xff]   ;;  %v6319_v53 = vld [vmem:[%s7995_s15 + $0x5cc] ss:$16 sps:$4 sm:$0xff]  }
 0x1ac   : > { %4578 = vmatprep.subr.bf16.mxu0 %v6232_v18  ;;  %4906 = vmatprep.subr.bf16.mxu1 %v6235_v19  ;;  %v6314_v18 = vld [vmem:[%s7995_s15 + $0x5c0] ss:$16 sps:$4 sm:$0xff]   ;;  %v6317_v19 = vld [vmem:[%s7995_s15 + $0x5c8] ss:$16 sps:$4 sm:$0xff]  }
 0x1ae   : > { %4570 = vmatmul.mubr.bf16.vlgmr.msra.gmra.mrb[0].mxu0 %v1867_v22  ;;  %4898 = vmatmul.mubr.bf16.vlgmr.msra.gmra.mrb[0].mxu1 %v1867_v22  ;;  %v6320_v22 = vld [vmem:[%s7995_s15 + $0x5e0] ss:$16 sps:$4 sm:$0xff]  }
 0x1af   : > { %4579 = vmatpush1.bf16.msra.mxu0 %v6230_v21  ;;  %4907 = vmatpush1.bf16.msra.mxu1 %v6233_v23  ;;  %v6325_v21 = vld [vmem:[%s7995_s15 + $0x5ec] ss:$16 sps:$4 sm:$0xff]   ;;  %v6323_v23 = vld [vmem:[%s7995_s15 + $0x5e8] ss:$16 sps:$4 sm:$0xff]  }
 0x1b0   : > { %4580 = vmatprep.subr.bf16.mxu0 %v6238_v24  ;;  %4908 = vmatprep.subr.bf16.mxu1 %v6241_v25  ;;  %v6329_v24 = vld [vmem:[%s7995_s15 + $0x604] ss:$16 sps:$4 sm:$0xff]   ;;  %v6332_v25 = vld [vmem:[%s7995_s15 + $0x60c] ss:$16 sps:$4 sm:$0xff]  }
 0x1b1   : > { %4610 = vmatprep.mubr.bf16.mxu0 %v8158_v26  ;;  %4938 = vmatprep.mubr.bf16.mxu1 %v8158_v26 }
 0x1b3   : > { %4581 = vmatpush1.bf16.msra.mxu0 %v6236_v27  ;;  %4909 = vmatpush1.bf16.msra.mxu1 %v6239_v14  ;;  %v6327_v27 = vld [vmem:[%s7995_s15 + $0x600] ss:$16 sps:$4 sm:$0xff]   ;;  %v8225_v14 = vrot.slane %v8143_v16, %v8045_v50 }
 0x1b4   : > { %4582 = vmatprep.subr.bf16.mxu0 %v6244_v28  ;;  %4910 = vmatprep.subr.bf16.mxu1 %v6247_v29  ;;  %v6330_v28 = vld [vmem:[%s7995_s15 + $0x608] ss:$16 sps:$4 sm:$0xff]   ;;  %v6335_v29 = vld [vmem:[%s7995_s15 + $0x624] ss:$16 sps:$4 sm:$0xff]   ;;  %v6333_v16 = vld [vmem:[%s7995_s15 + $0x620] ss:$16 sps:$4 sm:$0xff]  }
 0x1b7   : > { %4583 = vmatpush1.bf16.msra.mxu0 %v6242_v30  ;;  %4911 = vmatpush1.bf16.msra.mxu1 %v6245_v31  ;;  %v6338_v30 = vld [vmem:[%s7995_s15 + $0x62c] ss:$16 sps:$4 sm:$0xff]   ;;  %v1870_v31 = vcombine.high %v8158_v26, %v8158_v26  ;;  %v6339_v26 = vld [vmem:[%s7995_s15 + $0x640] ss:$16 sps:$4 sm:$0xff]  }
 0x1b8   : > { %4584 = vmatprep.subr.bf16.mxu0 %v6250_v32  ;;  %4912 = vmatprep.subr.bf16.mxu1 %v6253_v33  ;;  %v6336_v32 = vld [vmem:[%s7995_s15 + $0x628] ss:$16 sps:$4 sm:$0xff]   ;;  %v6341_v33 = vld [vmem:[%s7995_s15 + $0x644] ss:$16 sps:$4 sm:$0xff]  }
 0x1bb   : > { %4585 = vmatpush1.bf16.msra.mxu0 %v6248_v34  ;;  %4913 = vmatpush1.bf16.msra.mxu1 %v6251_v35  ;;  %v6344_v34 = vld [vmem:[%s7995_s15 + $0x64c] ss:$16 sps:$4 sm:$0xff]   ;;  %v6342_v35 = vld [vmem:[%s7995_s15 + $0x648] ss:$16 sps:$4 sm:$0xff]  }
 0x1bc   : > { %4586 = vmatprep.subr.bf16.mxu0 %v6256_v36  ;;  %4914 = vmatprep.subr.bf16.mxu1 %v6259_v37  ;;  %v6347_v36 = vld [vmem:[%s7995_s15 + $0x664] ss:$16 sps:$4 sm:$0xff]   ;;  %v6350_v37 = vld [vmem:[%s7995_s15 + $0x66c] ss:$16 sps:$4 sm:$0xff]  }
 0x1bf   : > { %4587 = vmatpush1.bf16.msra.mxu0 %v6254_v38  ;;  %4915 = vmatpush1.bf16.msra.mxu1 %v6257_v39  ;;  %v6345_v38 = vld [vmem:[%s7995_s15 + $0x660] ss:$16 sps:$4 sm:$0xff]   ;;  %v6348_v39 = vld [vmem:[%s7995_s15 + $0x668] ss:$16 sps:$4 sm:$0xff]  }
 0x1c0   : > { %4588 = vmatprep.subr.bf16.mxu0 %v6262_v40  ;;  %4916 = vmatprep.subr.bf16.mxu1 %v6265_v41  ;;  %v6353_v40 = vld [vmem:[%s7995_s15 + $0x684] ss:$16 sps:$4 sm:$0xff]   ;;  %v6356_v41 = vld [vmem:[%s7995_s15 + $0x68c] ss:$16 sps:$4 sm:$0xff]  }
 0x1c3   : > { %4589 = vmatpush1.bf16.msra.mxu0 %v6260_v42  ;;  %4917 = vmatpush1.bf16.msra.mxu1 %v6263_v43  ;;  %v6351_v42 = vld [vmem:[%s7995_s15 + $0x680] ss:$16 sps:$4 sm:$0xff]   ;;  %v6354_v43 = vld [vmem:[%s7995_s15 + $0x688] ss:$16 sps:$4 sm:$0xff]  }
 0x1c4   : > { %4590 = vmatprep.subr.bf16.mxu0 %v6268_v45  ;;  %4918 = vmatprep.subr.bf16.mxu1 %v6271_v46  ;;  %v6359_v45 = vld [vmem:[%s7995_s15 + $0x6a4] ss:$16 sps:$4 sm:$0xff]   ;;  %v6362_v46 = vld [vmem:[%s7995_s15 + $0x6ac] ss:$16 sps:$4 sm:$0xff]  }
 0x1c7   : > { %4591 = vmatpush1.bf16.msra.mxu0 %v6266_v47  ;;  %4919 = vmatpush1.bf16.msra.mxu1 %v6269_v48  ;;  %v6357_v47 = vld [vmem:[%s7995_s15 + $0x6a0] ss:$16 sps:$4 sm:$0xff]   ;;  %v6360_v48 = vld [vmem:[%s7995_s15 + $0x6a8] ss:$16 sps:$4 sm:$0xff]  }
 0x1c8   : > { %4592 = vmatprep.subr.bf16.mxu0 %v6274_v49  ;;  %4920 = vmatprep.subr.bf16.mxu1 %v6277_v51  ;;  %v6365_v49 = vld [vmem:[%s7995_s15 + $0x6c4] ss:$16 sps:$4 sm:$0xff]   ;;  %v6368_v51 = vld [vmem:[%s7995_s15 + $0x6cc] ss:$16 sps:$4 sm:$0xff]  }
 0x1cb   : > { %4593 = vmatpush1.bf16.msra.mxu0 %v6272_v52  ;;  %4921 = vmatpush1.bf16.msra.mxu1 %v6275_v54  ;;  %v6363_v52 = vld [vmem:[%s7995_s15 + $0x6c0] ss:$16 sps:$4 sm:$0xff]   ;;  %v6366_v54 = vld [vmem:[%s7995_s15 + $0x6c8] ss:$16 sps:$4 sm:$0xff]  }
 0x1cc   : > { %4594 = vmatprep.subr.bf16.mxu0 %v6280_v55  ;;  %4922 = vmatprep.subr.bf16.mxu1 %v6283_v56  ;;  %v6371_v55 = vld [vmem:[%s7995_s15 + $0x6e4] ss:$16 sps:$4 sm:$0xff]   ;;  %v6374_v56 = vld [vmem:[%s7995_s15 + $0x6ec] ss:$16 sps:$4 sm:$0xff]  }
 0x1cf   : > { %4595 = vmatpush1.bf16.msra.mxu0 %v6278_v57  ;;  %4923 = vmatpush1.bf16.msra.mxu1 %v6281_v58  ;;  %v6369_v57 = vld [vmem:[%s7995_s15 + $0x6e0] ss:$16 sps:$4 sm:$0xff]   ;;  %v6372_v58 = vld [vmem:[%s7995_s15 + $0x6e8] ss:$16 sps:$4 sm:$0xff]  }
 0x1d0   : > { %4596 = vmatprep.subr.bf16.mxu0 %v6286_v59  ;;  %4924 = vmatprep.subr.bf16.mxu1 %v6289_v60  ;;  %v6377_v59 = vld [vmem:[%s7995_s15 + $0x704] ss:$16 sps:$4 sm:$0xff]   ;;  %v6380_v60 = vld [vmem:[%s7995_s15 + $0x70c] ss:$16 sps:$4 sm:$0xff]  }
 0x1d3   : > { %4597 = vmatpush1.bf16.msra.mxu0 %v6284_v61  ;;  %4925 = vmatpush1.bf16.msra.mxu1 %v6287_v62  ;;  %v6375_v61 = vld [vmem:[%s7995_s15 + $0x700] ss:$16 sps:$4 sm:$0xff]   ;;  %v6378_v62 = vld [vmem:[%s7995_s15 + $0x708] ss:$16 sps:$4 sm:$0xff]  }
 0x1d4   : > { %4598 = vmatprep.subr.bf16.mxu0 %v6292_v63  ;;  %4926 = vmatprep.subr.bf16.mxu1 %v6295_v0  ;;  %v6383_v63 = vld [vmem:[%s7995_s15 + $0x724] ss:$16 sps:$4 sm:$0xff]   ;;  %v6386_v0 = vld [vmem:[%s7995_s15 + $0x72c] ss:$16 sps:$4 sm:$0xff]  }
 0x1d7   : > { %4599 = vmatpush1.bf16.msra.mxu0 %v6290_v1  ;;  %4927 = vmatpush1.bf16.msra.mxu1 %v6293_v2  ;;  %v6381_v1 = vld [vmem:[%s7995_s15 + $0x720] ss:$16 sps:$4 sm:$0xff]   ;;  %v6384_v2 = vld [vmem:[%s7995_s15 + $0x728] ss:$16 sps:$4 sm:$0xff]  }
 0x1d8   : > { %4600 = vmatprep.subr.bf16.mxu0 %v6298_v3  ;;  %4928 = vmatprep.subr.bf16.mxu1 %v6301_v4  ;;  %v6389_v3 = vld [vmem:[%s7995_s15 + $0x744] ss:$16 sps:$4 sm:$0xff]   ;;  %v6392_v4 = vld [vmem:[%s7995_s15 + $0x74c] ss:$16 sps:$4 sm:$0xff]  }
 0x1db   : > { %4601 = vmatpush1.bf16.msra.mxu0 %v6296_v5  ;;  %4929 = vmatpush1.bf16.msra.mxu1 %v6299_v6  ;;  %v6387_v5 = vld [vmem:[%s7995_s15 + $0x740] ss:$16 sps:$4 sm:$0xff]   ;;  %v6390_v6 = vld [vmem:[%s7995_s15 + $0x748] ss:$16 sps:$4 sm:$0xff]  }
 0x1dc   : > { %4602 = vmatprep.subr.bf16.mxu0 %v6304_v7  ;;  %4930 = vmatprep.subr.bf16.mxu1 %v6307_v8  ;;  %v6395_v7 = vld [vmem:[%s7995_s15 + $0x764] ss:$16 sps:$4 sm:$0xff]   ;;  %v6398_v8 = vld [vmem:[%s7995_s15 + $0x76c] ss:$16 sps:$4 sm:$0xff]  }
 0x1df   : > { %4603 = vmatpush1.bf16.msra.mxu0 %v6302_v9  ;;  %4931 = vmatpush1.bf16.msra.mxu1 %v6305_v10  ;;  %v6393_v9 = vld [vmem:[%s7995_s15 + $0x760] ss:$16 sps:$4 sm:$0xff]   ;;  %v6396_v10 = vld [vmem:[%s7995_s15 + $0x768] ss:$16 sps:$4 sm:$0xff]  }
 0x1e0   : > { %4604 = vmatprep.subr.bf16.mxu0 %v6310_v11  ;;  %4932 = vmatprep.subr.bf16.mxu1 %v6313_v12  ;;  %v6401_v11 = vld [vmem:[%s7995_s15 + $0x784] ss:$16 sps:$4 sm:$0xff]   ;;  %v6404_v12 = vld [vmem:[%s7995_s15 + $0x78c] ss:$16 sps:$4 sm:$0xff]  }
 0x1e3   : > { %4605 = vmatpush1.bf16.msra.mxu0 %v6308_v13  ;;  %4933 = vmatpush1.bf16.msra.mxu1 %v6311_v15  ;;  %v6399_v13 = vld [vmem:[%s7995_s15 + $0x780] ss:$16 sps:$4 sm:$0xff]   ;;  %v6402_v15 = vld [vmem:[%s7995_s15 + $0x788] ss:$16 sps:$4 sm:$0xff]  }
 0x1e4   : > { %4606 = vmatprep.subr.bf16.mxu0 %v6316_v17  ;;  %4934 = vmatprep.subr.bf16.mxu1 %v6319_v53  ;;  %v6407_v17 = vld [vmem:[%s7995_s15 + $0x7a4] ss:$16 sps:$4 sm:$0xff]   ;;  %v6410_v53 = vld [vmem:[%s7995_s15 + $0x7ac] ss:$16 sps:$4 sm:$0xff]  }
 0x1e7   : > { %4607 = vmatpush1.bf16.msra.mxu0 %v6314_v18  ;;  %4935 = vmatpush1.bf16.msra.mxu1 %v6317_v19  ;;  %v6405_v18 = vld [vmem:[%s7995_s15 + $0x7a0] ss:$16 sps:$4 sm:$0xff]   ;;  %v6408_v19 = vld [vmem:[%s7995_s15 + $0x7a8] ss:$16 sps:$4 sm:$0xff]  }
 0x1e8   : > { %4608 = vmatprep.subr.bf16.mxu0 %v6322_v20  ;;  %4936 = vmatprep.subr.bf16.mxu1 %v6325_v21  ;;  %v6413_v20 = vld [vmem:[%s7995_s15 + $0x7c4] ss:$16 sps:$4 sm:$0xff]   ;;  %v6416_v21 = vld [vmem:[%s7995_s15 + $0x7cc] ss:$16 sps:$4 sm:$0xff]  }
 0x1eb   : > { %4609 = vmatpush1.bf16.msra.mxu0 %v6320_v22  ;;  %4937 = vmatpush1.bf16.msra.mxu1 %v6323_v23  ;;  %v8287_v22 = vld [vmem:[%s7983_s24 + $0x8] sm:$0xff] }
 0x1ec   : > { %4619 = vmatprep.subr.bf16.mxu0 %v6329_v24  ;;  %4947 = vmatprep.subr.bf16.mxu1 %v6332_v25  ;;  %v6411_v23 = vld [vmem:[%s7995_s15 + $0x7c0] ss:$16 sps:$4 sm:$0xff]   ;;  %v6414_v24 = vld [vmem:[%s7995_s15 + $0x7c8] ss:$16 sps:$4 sm:$0xff]   ;;  %v6419_v25 = vld [vmem:[%s7995_s15 + $0x7e4] ss:$16 sps:$4 sm:$0xff]  }
 0x1ee   : > { %4611 = vmatmul.mubr.bf16.vlgmr.msra.gmra.mrb[0].mxu0 %v8225_v14  ;;  %4939 = vmatmul.mubr.bf16.vlgmr.msra.gmra.mrb[0].mxu1 %v8225_v14 }
 0x1ef   : > { %4620 = vmatpush1.bf16.msra.mxu0 %v6327_v27  ;;  %4948 = vmatpush1.bf16.msra.mxu1 %v6330_v28  ;;  %v6422_v27 = vld [vmem:[%s7995_s15 + $0x7ec] ss:$16 sps:$4 sm:$0xff]   ;;  %v8295_v28 = vrot.slane %v8287_v22, %v8045_v50 }
 0x1f0   : > { %4621 = vmatprep.subr.bf16.mxu0 %v6335_v29  ;;  %4949 = vmatprep.subr.bf16.mxu1 %v6338_v30  ;;  %v6417_v29 = vld [vmem:[%s7995_s15 + $0x7e0] ss:$16 sps:$4 sm:$0xff]   ;;  %v6420_v30 = vld [vmem:[%s7995_s15 + $0x7e8] ss:$16 sps:$4 sm:$0xff]  }
 0x1f1   : > { %4651 = vmatprep.mubr.bf16.mxu0 %v1870_v31  ;;  %4979 = vmatprep.mubr.bf16.mxu1 %v1870_v31  ;;  %v6425_v31 = vld [vmem:[%s7995_s15 + $0x804] ss:$16 sps:$4 sm:$0xff]  }
 0x1f3   : > { %4622 = vmatpush1.bf16.msra.mxu0 %v6333_v16  ;;  %4950 = vmatpush1.bf16.msra.mxu1 %v6336_v32  ;;  %v6428_v16 = vld [vmem:[%s7995_s15 + $0x80c] ss:$16 sps:$4 sm:$0xff]   ;;  %v1886_v32 = vcombine.high %v8295_v28, %v8295_v28 }
 0x1f4   : > { %4623 = vmatprep.subr.bf16.mxu0 %v6341_v33  ;;  %4951 = vmatprep.subr.bf16.mxu1 %v6344_v34  ;;  %v1868_v33 = vcombine.high %v8225_v14, %v8225_v14  ;;  %v6423_v34 = vld [vmem:[%s7995_s15 + $0x800] ss:$16 sps:$4 sm:$0xff]  }
 0x1f5   : > { %v6429_v14 = vld [vmem:[%s7995_s15 + $0x820] ss:$16 sps:$4 sm:$0xff]  }
 0x1f7   : > { %4624 = vmatpush1.bf16.msra.mxu0 %v6339_v26  ;;  %4952 = vmatpush1.bf16.msra.mxu1 %v6342_v35  ;;  %v6426_v26 = vld [vmem:[%s7995_s15 + $0x808] ss:$16 sps:$4 sm:$0xff]   ;;  %v6431_v35 = vld [vmem:[%s7995_s15 + $0x824] ss:$16 sps:$4 sm:$0xff]  }
 0x1f8   : > { %4625 = vmatprep.subr.bf16.mxu0 %v6347_v36  ;;  %4953 = vmatprep.subr.bf16.mxu1 %v6350_v37  ;;  %v6434_v36 = vld [vmem:[%s7995_s15 + $0x82c] ss:$16 sps:$4 sm:$0xff]   ;;  %v8310_v37 = vrot.slane %v1886_v32, %v8045_v50  ;;  %v6510_v32 = vld [vmem:[%s7995_s15 + $0x9c8] ss:$16 sps:$4 sm:$0xff]  }
 0x1fb   : > { %4626 = vmatpush1.bf16.msra.mxu0 %v6345_v38  ;;  %4954 = vmatpush1.bf16.msra.mxu1 %v6348_v39  ;;  %v6432_v38 = vld [vmem:[%s7995_s15 + $0x828] ss:$16 sps:$4 sm:$0xff]   ;;  %v6437_v39 = vld [vmem:[%s7995_s15 + $0x844] ss:$16 sps:$4 sm:$0xff]  }
 0x1fc   : > { %4627 = vmatprep.subr.bf16.mxu0 %v6353_v40  ;;  %4955 = vmatprep.subr.bf16.mxu1 %v6356_v41  ;;  %v6440_v40 = vld [vmem:[%s7995_s15 + $0x84c] ss:$16 sps:$4 sm:$0xff]   ;;  %v6435_v41 = vld [vmem:[%s7995_s15 + $0x840] ss:$16 sps:$4 sm:$0xff]  }
 0x1ff   : > { %4628 = vmatpush1.bf16.msra.mxu0 %v6351_v42  ;;  %4956 = vmatpush1.bf16.msra.mxu1 %v6354_v43  ;;  %v6438_v42 = vld [vmem:[%s7995_s15 + $0x848] ss:$16 sps:$4 sm:$0xff]   ;;  %v6443_v43 = vld [vmem:[%s7995_s15 + $0x864] ss:$16 sps:$4 sm:$0xff]  }
 0x200   : > { %4629 = vmatprep.subr.bf16.mxu0 %v6359_v45  ;;  %4957 = vmatprep.subr.bf16.mxu1 %v6362_v46  ;;  %v6446_v45 = vld [vmem:[%s7995_s15 + $0x86c] ss:$16 sps:$4 sm:$0xff]   ;;  %v6441_v46 = vld [vmem:[%s7995_s15 + $0x860] ss:$16 sps:$4 sm:$0xff]  }
 0x203   : > { %4630 = vmatpush1.bf16.msra.mxu0 %v6357_v47  ;;  %4958 = vmatpush1.bf16.msra.mxu1 %v6360_v48  ;;  %v6444_v47 = vld [vmem:[%s7995_s15 + $0x868] ss:$16 sps:$4 sm:$0xff]   ;;  %v6449_v48 = vld [vmem:[%s7995_s15 + $0x884] ss:$16 sps:$4 sm:$0xff]  }
 0x204   : > { %4631 = vmatprep.subr.bf16.mxu0 %v6365_v49  ;;  %4959 = vmatprep.subr.bf16.mxu1 %v6368_v51  ;;  %v6452_v49 = vld [vmem:[%s7995_s15 + $0x88c] ss:$16 sps:$4 sm:$0xff]   ;;  %v6447_v51 = vld [vmem:[%s7995_s15 + $0x880] ss:$16 sps:$4 sm:$0xff]  }
 0x207   : > { %4632 = vmatpush1.bf16.msra.mxu0 %v6363_v52  ;;  %4960 = vmatpush1.bf16.msra.mxu1 %v6366_v54  ;;  %v6450_v52 = vld [vmem:[%s7995_s15 + $0x888] ss:$16 sps:$4 sm:$0xff]   ;;  %v6455_v54 = vld [vmem:[%s7995_s15 + $0x8a4] ss:$16 sps:$4 sm:$0xff]  }
 0x208   : > { %4633 = vmatprep.subr.bf16.mxu0 %v6371_v55  ;;  %4961 = vmatprep.subr.bf16.mxu1 %v6374_v56  ;;  %v6458_v55 = vld [vmem:[%s7995_s15 + $0x8ac] ss:$16 sps:$4 sm:$0xff]   ;;  %v6453_v56 = vld [vmem:[%s7995_s15 + $0x8a0] ss:$16 sps:$4 sm:$0xff]  }
 0x20b   : > { %4634 = vmatpush1.bf16.msra.mxu0 %v6369_v57  ;;  %4962 = vmatpush1.bf16.msra.mxu1 %v6372_v58  ;;  %v6456_v57 = vld [vmem:[%s7995_s15 + $0x8a8] ss:$16 sps:$4 sm:$0xff]   ;;  %v6461_v58 = vld [vmem:[%s7995_s15 + $0x8c4] ss:$16 sps:$4 sm:$0xff]  }
 0x20c   : > { %4635 = vmatprep.subr.bf16.mxu0 %v6377_v59  ;;  %4963 = vmatprep.subr.bf16.mxu1 %v6380_v60  ;;  %v6464_v59 = vld [vmem:[%s7995_s15 + $0x8cc] ss:$16 sps:$4 sm:$0xff]   ;;  %v6459_v60 = vld [vmem:[%s7995_s15 + $0x8c0] ss:$16 sps:$4 sm:$0xff]  }
 0x20f   : > { %4636 = vmatpush1.bf16.msra.mxu0 %v6375_v61  ;;  %4964 = vmatpush1.bf16.msra.mxu1 %v6378_v62  ;;  %v6462_v61 = vld [vmem:[%s7995_s15 + $0x8c8] ss:$16 sps:$4 sm:$0xff]   ;;  %v6467_v62 = vld [vmem:[%s7995_s15 + $0x8e4] ss:$16 sps:$4 sm:$0xff]  }
 0x210   : > { %4637 = vmatprep.subr.bf16.mxu0 %v6383_v63  ;;  %4965 = vmatprep.subr.bf16.mxu1 %v6386_v0  ;;  %v6470_v63 = vld [vmem:[%s7995_s15 + $0x8ec] ss:$16 sps:$4 sm:$0xff]   ;;  %v6465_v0 = vld [vmem:[%s7995_s15 + $0x8e0] ss:$16 sps:$4 sm:$0xff]  }
 0x213   : > { %4638 = vmatpush1.bf16.msra.mxu0 %v6381_v1  ;;  %4966 = vmatpush1.bf16.msra.mxu1 %v6384_v2  ;;  %v6468_v1 = vld [vmem:[%s7995_s15 + $0x8e8] ss:$16 sps:$4 sm:$0xff]   ;;  %v6473_v2 = vld [vmem:[%s7995_s15 + $0x904] ss:$16 sps:$4 sm:$0xff]  }
 0x214   : > { %4639 = vmatprep.subr.bf16.mxu0 %v6389_v3  ;;  %4967 = vmatprep.subr.bf16.mxu1 %v6392_v4  ;;  %v6476_v3 = vld [vmem:[%s7995_s15 + $0x90c] ss:$16 sps:$4 sm:$0xff]   ;;  %v6471_v4 = vld [vmem:[%s7995_s15 + $0x900] ss:$16 sps:$4 sm:$0xff]  }
 0x217   : > { %4640 = vmatpush1.bf16.msra.mxu0 %v6387_v5  ;;  %4968 = vmatpush1.bf16.msra.mxu1 %v6390_v6  ;;  %v6474_v5 = vld [vmem:[%s7995_s15 + $0x908] ss:$16 sps:$4 sm:$0xff]   ;;  %v6479_v6 = vld [vmem:[%s7995_s15 + $0x924] ss:$16 sps:$4 sm:$0xff]  }
 0x218   : > { %4641 = vmatprep.subr.bf16.mxu0 %v6395_v7  ;;  %4969 = vmatprep.subr.bf16.mxu1 %v6398_v8  ;;  %v6482_v7 = vld [vmem:[%s7995_s15 + $0x92c] ss:$16 sps:$4 sm:$0xff]   ;;  %v6477_v8 = vld [vmem:[%s7995_s15 + $0x920] ss:$16 sps:$4 sm:$0xff]  }
 0x21b   : > { %4642 = vmatpush1.bf16.msra.mxu0 %v6393_v9  ;;  %4970 = vmatpush1.bf16.msra.mxu1 %v6396_v10  ;;  %v6480_v9 = vld [vmem:[%s7995_s15 + $0x928] ss:$16 sps:$4 sm:$0xff]   ;;  %v6485_v10 = vld [vmem:[%s7995_s15 + $0x944] ss:$16 sps:$4 sm:$0xff]  }
 0x21c   : > { %4643 = vmatprep.subr.bf16.mxu0 %v6401_v11  ;;  %4971 = vmatprep.subr.bf16.mxu1 %v6404_v12  ;;  %v6488_v11 = vld [vmem:[%s7995_s15 + $0x94c] ss:$16 sps:$4 sm:$0xff]   ;;  %v6483_v12 = vld [vmem:[%s7995_s15 + $0x940] ss:$16 sps:$4 sm:$0xff]  }
 0x21f   : > { %4644 = vmatpush1.bf16.msra.mxu0 %v6399_v13  ;;  %4972 = vmatpush1.bf16.msra.mxu1 %v6402_v15  ;;  %v6486_v13 = vld [vmem:[%s7995_s15 + $0x948] ss:$16 sps:$4 sm:$0xff]   ;;  %v6491_v15 = vld [vmem:[%s7995_s15 + $0x964] ss:$16 sps:$4 sm:$0xff]  }
 0x220   : > { %4645 = vmatprep.subr.bf16.mxu0 %v6407_v17  ;;  %4973 = vmatprep.subr.bf16.mxu1 %v6410_v53  ;;  %v6494_v17 = vld [vmem:[%s7995_s15 + $0x96c] ss:$16 sps:$4 sm:$0xff]   ;;  %v6489_v53 = vld [vmem:[%s7995_s15 + $0x960] ss:$16 sps:$4 sm:$0xff]  }
 0x223   : > { %4646 = vmatpush1.bf16.msra.mxu0 %v6405_v18  ;;  %4974 = vmatpush1.bf16.msra.mxu1 %v6408_v19  ;;  %v6492_v18 = vld [vmem:[%s7995_s15 + $0x968] ss:$16 sps:$4 sm:$0xff]   ;;  %v6497_v19 = vld [vmem:[%s7995_s15 + $0x984] ss:$16 sps:$4 sm:$0xff]  }
 0x224   : > { %4647 = vmatprep.subr.bf16.mxu0 %v6413_v20  ;;  %4975 = vmatprep.subr.bf16.mxu1 %v6416_v21  ;;  %v6500_v20 = vld [vmem:[%s7995_s15 + $0x98c] ss:$16 sps:$4 sm:$0xff]   ;;  %v6495_v21 = vld [vmem:[%s7995_s15 + $0x980] ss:$16 sps:$4 sm:$0xff]  }
 0x227   : > { %4648 = vmatpush1.bf16.msra.mxu0 %v6411_v23  ;;  %4976 = vmatpush1.bf16.msra.mxu1 %v6414_v24  ;;  %v6498_v23 = vld [vmem:[%s7995_s15 + $0x988] ss:$16 sps:$4 sm:$0xff]   ;;  %v6503_v24 = vld [vmem:[%s7995_s15 + $0x9a4] ss:$16 sps:$4 sm:$0xff]  }
 0x228   : > { %4649 = vmatprep.subr.bf16.mxu0 %v6419_v25  ;;  %4977 = vmatprep.subr.bf16.mxu1 %v6422_v27  ;;  %v6506_v25 = vld [vmem:[%s7995_s15 + $0x9ac] ss:$16 sps:$4 sm:$0xff]   ;;  %v6501_v27 = vld [vmem:[%s7995_s15 + $0x9a0] ss:$16 sps:$4 sm:$0xff]  }
 0x22b   : > { %4650 = vmatpush1.bf16.msra.mxu0 %v6417_v29  ;;  %4978 = vmatpush1.bf16.msra.mxu1 %v6420_v30  ;;  %v6504_v29 = vld [vmem:[%s7995_s15 + $0x9a8] ss:$16 sps:$4 sm:$0xff]   ;;  %v6509_v30 = vld [vmem:[%s7995_s15 + $0x9c4] ss:$16 sps:$4 sm:$0xff]  }
 0x22c   : > { %4660 = vmatprep.subr.bf16.mxu0 %v6425_v31  ;;  %4988 = vmatprep.subr.bf16.mxu1 %v6428_v16  ;;  %v6512_v31 = vld [vmem:[%s7995_s15 + $0x9cc] ss:$16 sps:$4 sm:$0xff]   ;;  %v6507_v16 = vld [vmem:[%s7995_s15 + $0x9c0] ss:$16 sps:$4 sm:$0xff]  }
 0x22e   : > { %4652 = vmatmul.mubr.bf16.vlgmr.msra.gmra.mrb[0].mxu0 %v1868_v33  ;;  %4980 = vmatmul.mubr.bf16.vlgmr.msra.gmra.mrb[0].mxu1 %v1868_v33  ;;  %v6515_v33 = vld [vmem:[%s7995_s15 + $0x9e4] ss:$16 sps:$4 sm:$0xff]  }
 0x22f   : > { %4661 = vmatpush1.bf16.msra.mxu0 %v6423_v34  ;;  %4989 = vmatpush1.bf16.msra.mxu1 %v6426_v26  ;;  %v6518_v34 = vld [vmem:[%s7995_s15 + $0x9ec] ss:$16 sps:$4 sm:$0xff]   ;;  %v6513_v26 = vld [vmem:[%s7995_s15 + $0x9e0] ss:$16 sps:$4 sm:$0xff]  }
 0x230   : > { %4662 = vmatprep.subr.bf16.mxu0 %v6431_v35  ;;  %4990 = vmatprep.subr.bf16.mxu1 %v6434_v36  ;;  %v6516_v35 = vld [vmem:[%s7995_s15 + $0x9e8] ss:$16 sps:$4 sm:$0xff]   ;;  %v6521_v36 = vld [vmem:[%s7995_s15 + $0xa04] ss:$16 sps:$4 sm:$0xff]  }
 0x231   : > { %4692 = vmatprep.mubr.bf16.mxu0 %v8310_v37  ;;  %5020 = vmatprep.mubr.bf16.mxu1 %v8310_v37 }
 0x233   : > { %4663 = vmatpush1.bf16.msra.mxu0 %v6429_v14  ;;  %4991 = vmatpush1.bf16.msra.mxu1 %v6432_v38  ;;  %v6524_v14 = vld [vmem:[%s7995_s15 + $0xa0c] ss:$16 sps:$4 sm:$0xff]   ;;  %v8376_v38 = vrot.slane %v8295_v28, %v8045_v50  ;;  %v6525_v28 = vld [vmem:[%s7995_s15 + $0xa20] ss:$16 sps:$4 sm:$0xff]  }
 0x234   : > { %4664 = vmatprep.subr.bf16.mxu0 %v6437_v39  ;;  %4992 = vmatprep.subr.bf16.mxu1 %v6440_v40  ;;  %v6519_v39 = vld [vmem:[%s7995_s15 + $0xa00] ss:$16 sps:$4 sm:$0xff]   ;;  %v6522_v40 = vld [vmem:[%s7995_s15 + $0xa08] ss:$16 sps:$4 sm:$0xff]  }
 0x237   : > { %4665 = vmatpush1.bf16.msra.mxu0 %v6435_v41  ;;  %4993 = vmatpush1.bf16.msra.mxu1 %v6438_v42  ;;  %v6527_v41 = vld [vmem:[%s7995_s15 + $0xa24] ss:$16 sps:$4 sm:$0xff]   ;;  %v6530_v42 = vld [vmem:[%s7995_s15 + $0xa2c] ss:$16 sps:$4 sm:$0xff]  }
 0x238   : > { %4666 = vmatprep.subr.bf16.mxu0 %v6443_v43  ;;  %4994 = vmatprep.subr.bf16.mxu1 %v6446_v45  ;;  %v1918_v43 = vcombine.high %v8310_v37, %v8310_v37  ;;  %v6528_v45 = vld [vmem:[%s7995_s15 + $0xa28] ss:$16 sps:$4 sm:$0xff]   ;;  %v6531_v37 = vld [vmem:[%s7995_s15 + $0xa40] ss:$16 sps:$4 sm:$0xff]  }
 0x23b   : > { %4667 = vmatpush1.bf16.msra.mxu0 %v6441_v46  ;;  %4995 = vmatpush1.bf16.msra.mxu1 %v6444_v47  ;;  %v6533_v46 = vld [vmem:[%s7995_s15 + $0xa44] ss:$16 sps:$4 sm:$0xff]   ;;  %v6536_v47 = vld [vmem:[%s7995_s15 + $0xa4c] ss:$16 sps:$4 sm:$0xff]  }
 0x23c   : > { %4668 = vmatprep.subr.bf16.mxu0 %v6449_v48  ;;  %4996 = vmatprep.subr.bf16.mxu1 %v6452_v49  ;;  %v6534_v48 = vld [vmem:[%s7995_s15 + $0xa48] ss:$16 sps:$4 sm:$0xff]   ;;  %v6539_v49 = vld [vmem:[%s7995_s15 + $0xa64] ss:$16 sps:$4 sm:$0xff]  }
 0x23f   : > { %4669 = vmatpush1.bf16.msra.mxu0 %v6447_v51  ;;  %4997 = vmatpush1.bf16.msra.mxu1 %v6450_v52  ;;  %v6542_v51 = vld [vmem:[%s7995_s15 + $0xa6c] ss:$16 sps:$4 sm:$0xff]   ;;  %v6537_v52 = vld [vmem:[%s7995_s15 + $0xa60] ss:$16 sps:$4 sm:$0xff]  }
 0x240   : > { %4670 = vmatprep.subr.bf16.mxu0 %v6455_v54  ;;  %4998 = vmatprep.subr.bf16.mxu1 %v6458_v55  ;;  %v6540_v54 = vld [vmem:[%s7995_s15 + $0xa68] ss:$16 sps:$4 sm:$0xff]   ;;  %v6545_v55 = vld [vmem:[%s7995_s15 + $0xa84] ss:$16 sps:$4 sm:$0xff]  }
 0x243   : > { %4671 = vmatpush1.bf16.msra.mxu0 %v6453_v56  ;;  %4999 = vmatpush1.bf16.msra.mxu1 %v6456_v57  ;;  %v6548_v56 = vld [vmem:[%s7995_s15 + $0xa8c] ss:$16 sps:$4 sm:$0xff]   ;;  %v6543_v57 = vld [vmem:[%s7995_s15 + $0xa80] ss:$16 sps:$4 sm:$0xff]  }
 0x244   : > { %4672 = vmatprep.subr.bf16.mxu0 %v6461_v58  ;;  %5000 = vmatprep.subr.bf16.mxu1 %v6464_v59  ;;  %v6546_v58 = vld [vmem:[%s7995_s15 + $0xa88] ss:$16 sps:$4 sm:$0xff]   ;;  %v6551_v59 = vld [vmem:[%s7995_s15 + $0xaa4] ss:$16 sps:$4 sm:$0xff]  }
 0x247   : > { %4673 = vmatpush1.bf16.msra.mxu0 %v6459_v60  ;;  %5001 = vmatpush1.bf16.msra.mxu1 %v6462_v61  ;;  %v6554_v60 = vld [vmem:[%s7995_s15 + $0xaac] ss:$16 sps:$4 sm:$0xff]   ;;  %v6549_v61 = vld [vmem:[%s7995_s15 + $0xaa0] ss:$16 sps:$4 sm:$0xff]  }
 0x248   : > { %4674 = vmatprep.subr.bf16.mxu0 %v6467_v62  ;;  %5002 = vmatprep.subr.bf16.mxu1 %v6470_v63  ;;  %v6552_v62 = vld [vmem:[%s7995_s15 + $0xaa8] ss:$16 sps:$4 sm:$0xff]   ;;  %v6557_v63 = vld [vmem:[%s7995_s15 + $0xac4] ss:$16 sps:$4 sm:$0xff]  }
 0x24b   : > { %4675 = vmatpush1.bf16.msra.mxu0 %v6465_v0  ;;  %5003 = vmatpush1.bf16.msra.mxu1 %v6468_v1  ;;  %v6560_v0 = vld [vmem:[%s7995_s15 + $0xacc] ss:$16 sps:$4 sm:$0xff]   ;;  %v6555_v1 = vld [vmem:[%s7995_s15 + $0xac0] ss:$16 sps:$4 sm:$0xff]  }
 0x24c   : > { %4676 = vmatprep.subr.bf16.mxu0 %v6473_v2  ;;  %5004 = vmatprep.subr.bf16.mxu1 %v6476_v3  ;;  %v6558_v2 = vld [vmem:[%s7995_s15 + $0xac8] ss:$16 sps:$4 sm:$0xff]   ;;  %v6563_v3 = vld [vmem:[%s7995_s15 + $0xae4] ss:$16 sps:$4 sm:$0xff]  }
 0x24f   : > { %4677 = vmatpush1.bf16.msra.mxu0 %v6471_v4  ;;  %5005 = vmatpush1.bf16.msra.mxu1 %v6474_v5  ;;  %v6566_v4 = vld [vmem:[%s7995_s15 + $0xaec] ss:$16 sps:$4 sm:$0xff]   ;;  %v6561_v5 = vld [vmem:[%s7995_s15 + $0xae0] ss:$16 sps:$4 sm:$0xff]  }
 0x250   : > { %4678 = vmatprep.subr.bf16.mxu0 %v6479_v6  ;;  %5006 = vmatprep.subr.bf16.mxu1 %v6482_v7  ;;  %v6564_v6 = vld [vmem:[%s7995_s15 + $0xae8] ss:$16 sps:$4 sm:$0xff]   ;;  %v6569_v7 = vld [vmem:[%s7995_s15 + $0xb04] ss:$16 sps:$4 sm:$0xff]  }
 0x253   : > { %4679 = vmatpush1.bf16.msra.mxu0 %v6477_v8  ;;  %5007 = vmatpush1.bf16.msra.mxu1 %v6480_v9  ;;  %v6572_v8 = vld [vmem:[%s7995_s15 + $0xb0c] ss:$16 sps:$4 sm:$0xff]   ;;  %v6567_v9 = vld [vmem:[%s7995_s15 + $0xb00] ss:$16 sps:$4 sm:$0xff]  }
 0x254   : > { %4680 = vmatprep.subr.bf16.mxu0 %v6485_v10  ;;  %5008 = vmatprep.subr.bf16.mxu1 %v6488_v11  ;;  %v6570_v10 = vld [vmem:[%s7995_s15 + $0xb08] ss:$16 sps:$4 sm:$0xff]   ;;  %v6575_v11 = vld [vmem:[%s7995_s15 + $0xb24] ss:$16 sps:$4 sm:$0xff]  }
 0x257   : > { %4681 = vmatpush1.bf16.msra.mxu0 %v6483_v12  ;;  %5009 = vmatpush1.bf16.msra.mxu1 %v6486_v13  ;;  %v6578_v12 = vld [vmem:[%s7995_s15 + $0xb2c] ss:$16 sps:$4 sm:$0xff]   ;;  %v6573_v13 = vld [vmem:[%s7995_s15 + $0xb20] ss:$16 sps:$4 sm:$0xff]  }
 0x258   : > { %4682 = vmatprep.subr.bf16.mxu0 %v6491_v15  ;;  %5010 = vmatprep.subr.bf16.mxu1 %v6494_v17  ;;  %v6576_v15 = vld [vmem:[%s7995_s15 + $0xb28] ss:$16 sps:$4 sm:$0xff]   ;;  %v6581_v17 = vld [vmem:[%s7995_s15 + $0xb44] ss:$16 sps:$4 sm:$0xff]  }
 0x25b   : > { %4683 = vmatpush1.bf16.msra.mxu0 %v6489_v53  ;;  %5011 = vmatpush1.bf16.msra.mxu1 %v6492_v18  ;;  %v6584_v53 = vld [vmem:[%s7995_s15 + $0xb4c] ss:$16 sps:$4 sm:$0xff]   ;;  %v6579_v18 = vld [vmem:[%s7995_s15 + $0xb40] ss:$16 sps:$4 sm:$0xff]  }
 0x25c   : > { %4684 = vmatprep.subr.bf16.mxu0 %v6497_v19  ;;  %5012 = vmatprep.subr.bf16.mxu1 %v6500_v20  ;;  %v6582_v19 = vld [vmem:[%s7995_s15 + $0xb48] ss:$16 sps:$4 sm:$0xff]   ;;  %v6587_v20 = vld [vmem:[%s7995_s15 + $0xb64] ss:$16 sps:$4 sm:$0xff]  }
 0x25f   : > { %4685 = vmatpush1.bf16.msra.mxu0 %v6495_v21  ;;  %5013 = vmatpush1.bf16.msra.mxu1 %v6498_v23  ;;  %v6590_v21 = vld [vmem:[%s7995_s15 + $0xb6c] ss:$16 sps:$4 sm:$0xff]   ;;  %v6585_v23 = vld [vmem:[%s7995_s15 + $0xb60] ss:$16 sps:$4 sm:$0xff]  }
 0x260   : > { %4686 = vmatprep.subr.bf16.mxu0 %v6503_v24  ;;  %5014 = vmatprep.subr.bf16.mxu1 %v6506_v25  ;;  %v6588_v24 = vld [vmem:[%s7995_s15 + $0xb68] ss:$16 sps:$4 sm:$0xff]   ;;  %v6593_v25 = vld [vmem:[%s7995_s15 + $0xb84] ss:$16 sps:$4 sm:$0xff]  }
 0x263   : > { %4687 = vmatpush1.bf16.msra.mxu0 %v6501_v27  ;;  %5015 = vmatpush1.bf16.msra.mxu1 %v6504_v29  ;;  %v6596_v27 = vld [vmem:[%s7995_s15 + $0xb8c] ss:$16 sps:$4 sm:$0xff]   ;;  %v6591_v29 = vld [vmem:[%s7995_s15 + $0xb80] ss:$16 sps:$4 sm:$0xff]  }
 0x264   : > { %4688 = vmatprep.subr.bf16.mxu0 %v6509_v30  ;;  %5016 = vmatprep.subr.bf16.mxu1 %v6512_v31  ;;  %v6594_v30 = vld [vmem:[%s7995_s15 + $0xb88] ss:$16 sps:$4 sm:$0xff]   ;;  %v6599_v31 = vld [vmem:[%s7995_s15 + $0xba4] ss:$16 sps:$4 sm:$0xff]  }
 0x267   : > { %4689 = vmatpush1.bf16.msra.mxu0 %v6507_v16  ;;  %5017 = vmatpush1.bf16.msra.mxu1 %v6510_v32  ;;  %v6602_v16 = vld [vmem:[%s7995_s15 + $0xbac] ss:$16 sps:$4 sm:$0xff]   ;;  %v6597_v32 = vld [vmem:[%s7995_s15 + $0xba0] ss:$16 sps:$4 sm:$0xff]  }
 0x268   : > { %4690 = vmatprep.subr.bf16.mxu0 %v6515_v33  ;;  %5018 = vmatprep.subr.bf16.mxu1 %v6518_v34  ;;  %v6600_v33 = vld [vmem:[%s7995_s15 + $0xba8] ss:$16 sps:$4 sm:$0xff]   ;;  %v6605_v34 = vld [vmem:[%s7995_s15 + $0xbc4] ss:$16 sps:$4 sm:$0xff]  }
 0x26b   : > { %4691 = vmatpush1.bf16.msra.mxu0 %v6513_v26  ;;  %5019 = vmatpush1.bf16.msra.mxu1 %v6516_v35  ;;  %v6608_v26 = vld [vmem:[%s7995_s15 + $0xbcc] ss:$16 sps:$4 sm:$0xff]   ;;  %v1871_v35 = vcombine.high %v8287_v22, %v8287_v22  ;;  %v6609_v22 = vld [vmem:[%s7995_s15 + $0xbe0] ss:$16 sps:$4 sm:$0xff]  }
 0x26c   : > { %4701 = vmatprep.subr.bf16.mxu0 %v6521_v36  ;;  %5029 = vmatprep.subr.bf16.mxu1 %v6524_v14  ;;  %v6603_v36 = vld [vmem:[%s7995_s15 + $0xbc0] ss:$16 sps:$4 sm:$0xff]   ;;  %v6606_v14 = vld [vmem:[%s7995_s15 + $0xbc8] ss:$16 sps:$4 sm:$0xff]  }
 0x26e   : > { %4693 = vmatmul.mubr.bf16.vlgmr.msra.gmra.mrb[0].mxu0 %v8376_v38  ;;  %5021 = vmatmul.mubr.bf16.vlgmr.msra.gmra.mrb[0].mxu1 %v8376_v38 }
 0x26f   : > { %4702 = vmatpush1.bf16.msra.mxu0 %v6519_v39  ;;  %5030 = vmatpush1.bf16.msra.mxu1 %v6522_v40  ;;  %v6611_v39 = vld [vmem:[%s7995_s15 + $0xbe4] ss:$16 sps:$4 sm:$0xff]   ;;  %v6614_v40 = vld [vmem:[%s7995_s15 + $0xbec] ss:$16 sps:$4 sm:$0xff]  }
 0x270   : > { %4703 = vmatprep.subr.bf16.mxu0 %v6527_v41  ;;  %5031 = vmatprep.subr.bf16.mxu1 %v6530_v42  ;;  %v8445_v41 = vrot.slane %v1871_v35, %v8045_v50  ;;  %v6612_v42 = vld [vmem:[%s7995_s15 + $0xbe8] ss:$16 sps:$4 sm:$0xff]  }
 0x271   : > { %4733 = vmatprep.mubr.bf16.mxu0 %v1918_v43  ;;  %5061 = vmatprep.mubr.bf16.mxu1 %v1918_v43  ;;  %v6617_v43 = vld [vmem:[%s7995_s15 + $0xc04] ss:$16 sps:$4 sm:$0xff]   ;;  %v6690_v35 = vld [vmem:[%s7995_s15 + $0xd88] ss:$16 sps:$4 sm:$0xff]  }
 0x273   : > { %4704 = vmatpush1.bf16.msra.mxu0 %v6525_v28  ;;  %5032 = vmatpush1.bf16.msra.mxu1 %v6528_v45  ;;  %v6620_v28 = vld [vmem:[%s7995_s15 + $0xc0c] ss:$16 sps:$4 sm:$0xff]   ;;  %v1887_v45 = vcombine.high %v8445_v41, %v8445_v41 }
 0x274   : > { %4705 = vmatprep.subr.bf16.mxu0 %v6533_v46  ;;  %5033 = vmatprep.subr.bf16.mxu1 %v6536_v47  ;;  %v1916_v46 = vcombine.high %v8376_v38, %v8376_v38  ;;  %v6615_v47 = vld [vmem:[%s7995_s15 + $0xc00] ss:$16 sps:$4 sm:$0xff]  }
 0x275   : > { %v6621_v38 = vld [vmem:[%s7995_s15 + $0xc20] ss:$16 sps:$4 sm:$0xff]  }
 0x277   : > { %4706 = vmatpush1.bf16.msra.mxu0 %v6531_v37  ;;  %5034 = vmatpush1.bf16.msra.mxu1 %v6534_v48  ;;  %v6618_v37 = vld [vmem:[%s7995_s15 + $0xc08] ss:$16 sps:$4 sm:$0xff]   ;;  %v6623_v48 = vld [vmem:[%s7995_s15 + $0xc24] ss:$16 sps:$4 sm:$0xff]  }
 0x278   : > { %4707 = vmatprep.subr.bf16.mxu0 %v6539_v49  ;;  %5035 = vmatprep.subr.bf16.mxu1 %v6542_v51  ;;  %v6626_v49 = vld [vmem:[%s7995_s15 + $0xc2c] ss:$16 sps:$4 sm:$0xff]   ;;  %v8460_v51 = vrot.slane %v1887_v45, %v8045_v50  ;;  %v6707_v45 = vld [vmem:[%s7995_s15 + $0xde4] ss:$16 sps:$4 sm:$0xff]  }
 0x27b   : > { %4708 = vmatpush1.bf16.msra.mxu0 %v6537_v52  ;;  %5036 = vmatpush1.bf16.msra.mxu1 %v6540_v54  ;;  %v6624_v52 = vld [vmem:[%s7995_s15 + $0xc28] ss:$16 sps:$4 sm:$0xff]   ;;  %v6629_v54 = vld [vmem:[%s7995_s15 + $0xc44] ss:$16 sps:$4 sm:$0xff]  }
 0x27c   : > { %4709 = vmatprep.subr.bf16.mxu0 %v6545_v55  ;;  %5037 = vmatprep.subr.bf16.mxu1 %v6548_v56  ;;  %v6632_v55 = vld [vmem:[%s7995_s15 + $0xc4c] ss:$16 sps:$4 sm:$0xff]   ;;  %v6627_v56 = vld [vmem:[%s7995_s15 + $0xc40] ss:$16 sps:$4 sm:$0xff]  }
 0x27f   : > { %4710 = vmatpush1.bf16.msra.mxu0 %v6543_v57  ;;  %5038 = vmatpush1.bf16.msra.mxu1 %v6546_v58  ;;  %v6630_v57 = vld [vmem:[%s7995_s15 + $0xc48] ss:$16 sps:$4 sm:$0xff]   ;;  %v6635_v58 = vld [vmem:[%s7995_s15 + $0xc64] ss:$16 sps:$4 sm:$0xff]  }
 0x280   : > { %4711 = vmatprep.subr.bf16.mxu0 %v6551_v59  ;;  %5039 = vmatprep.subr.bf16.mxu1 %v6554_v60  ;;  %v6638_v59 = vld [vmem:[%s7995_s15 + $0xc6c] ss:$16 sps:$4 sm:$0xff]   ;;  %v6633_v60 = vld [vmem:[%s7995_s15 + $0xc60] ss:$16 sps:$4 sm:$0xff]  }
 0x283   : > { %4712 = vmatpush1.bf16.msra.mxu0 %v6549_v61  ;;  %5040 = vmatpush1.bf16.msra.mxu1 %v6552_v62  ;;  %v6636_v61 = vld [vmem:[%s7995_s15 + $0xc68] ss:$16 sps:$4 sm:$0xff]   ;;  %v6641_v62 = vld [vmem:[%s7995_s15 + $0xc84] ss:$16 sps:$4 sm:$0xff]  }
 0x284   : > { %4713 = vmatprep.subr.bf16.mxu0 %v6557_v63  ;;  %5041 = vmatprep.subr.bf16.mxu1 %v6560_v0  ;;  %v6644_v63 = vld [vmem:[%s7995_s15 + $0xc8c] ss:$16 sps:$4 sm:$0xff]   ;;  %v6639_v0 = vld [vmem:[%s7995_s15 + $0xc80] ss:$16 sps:$4 sm:$0xff]  }
 0x287   : > { %4714 = vmatpush1.bf16.msra.mxu0 %v6555_v1  ;;  %5042 = vmatpush1.bf16.msra.mxu1 %v6558_v2  ;;  %v6642_v1 = vld [vmem:[%s7995_s15 + $0xc88] ss:$16 sps:$4 sm:$0xff]   ;;  %v6647_v2 = vld [vmem:[%s7995_s15 + $0xca4] ss:$16 sps:$4 sm:$0xff]  }
 0x288   : > { %4715 = vmatprep.subr.bf16.mxu0 %v6563_v3  ;;  %5043 = vmatprep.subr.bf16.mxu1 %v6566_v4  ;;  %v6650_v3 = vld [vmem:[%s7995_s15 + $0xcac] ss:$16 sps:$4 sm:$0xff]   ;;  %v6645_v4 = vld [vmem:[%s7995_s15 + $0xca0] ss:$16 sps:$4 sm:$0xff]  }
 0x28b   : > { %4716 = vmatpush1.bf16.msra.mxu0 %v6561_v5  ;;  %5044 = vmatpush1.bf16.msra.mxu1 %v6564_v6  ;;  %v6648_v5 = vld [vmem:[%s7995_s15 + $0xca8] ss:$16 sps:$4 sm:$0xff]   ;;  %v6653_v6 = vld [vmem:[%s7995_s15 + $0xcc4] ss:$16 sps:$4 sm:$0xff]  }
 0x28c   : > { %4717 = vmatprep.subr.bf16.mxu0 %v6569_v7  ;;  %5045 = vmatprep.subr.bf16.mxu1 %v6572_v8  ;;  %v6656_v7 = vld [vmem:[%s7995_s15 + $0xccc] ss:$16 sps:$4 sm:$0xff]   ;;  %v6651_v8 = vld [vmem:[%s7995_s15 + $0xcc0] ss:$16 sps:$4 sm:$0xff]  }
 0x28f   : > { %4718 = vmatpush1.bf16.msra.mxu0 %v6567_v9  ;;  %5046 = vmatpush1.bf16.msra.mxu1 %v6570_v10  ;;  %v6654_v9 = vld [vmem:[%s7995_s15 + $0xcc8] ss:$16 sps:$4 sm:$0xff]   ;;  %v6659_v10 = vld [vmem:[%s7995_s15 + $0xce4] ss:$16 sps:$4 sm:$0xff]  }
 0x290   : > { %4719 = vmatprep.subr.bf16.mxu0 %v6575_v11  ;;  %5047 = vmatprep.subr.bf16.mxu1 %v6578_v12  ;;  %v6662_v11 = vld [vmem:[%s7995_s15 + $0xcec] ss:$16 sps:$4 sm:$0xff]   ;;  %v6657_v12 = vld [vmem:[%s7995_s15 + $0xce0] ss:$16 sps:$4 sm:$0xff]  }
 0x293   : > { %4720 = vmatpush1.bf16.msra.mxu0 %v6573_v13  ;;  %5048 = vmatpush1.bf16.msra.mxu1 %v6576_v15  ;;  %v6660_v13 = vld [vmem:[%s7995_s15 + $0xce8] ss:$16 sps:$4 sm:$0xff]   ;;  %v6665_v15 = vld [vmem:[%s7995_s15 + $0xd04] ss:$16 sps:$4 sm:$0xff]  }
 0x294   : > { %4721 = vmatprep.subr.bf16.mxu0 %v6581_v17  ;;  %5049 = vmatprep.subr.bf16.mxu1 %v6584_v53  ;;  %v6668_v17 = vld [vmem:[%s7995_s15 + $0xd0c] ss:$16 sps:$4 sm:$0xff]   ;;  %v6663_v53 = vld [vmem:[%s7995_s15 + $0xd00] ss:$16 sps:$4 sm:$0xff]  }
 0x297   : > { %4722 = vmatpush1.bf16.msra.mxu0 %v6579_v18  ;;  %5050 = vmatpush1.bf16.msra.mxu1 %v6582_v19  ;;  %v6666_v18 = vld [vmem:[%s7995_s15 + $0xd08] ss:$16 sps:$4 sm:$0xff]   ;;  %v6671_v19 = vld [vmem:[%s7995_s15 + $0xd24] ss:$16 sps:$4 sm:$0xff]  }
 0x298   : > { %4723 = vmatprep.subr.bf16.mxu0 %v6587_v20  ;;  %5051 = vmatprep.subr.bf16.mxu1 %v6590_v21  ;;  %v6674_v20 = vld [vmem:[%s7995_s15 + $0xd2c] ss:$16 sps:$4 sm:$0xff]   ;;  %v6669_v21 = vld [vmem:[%s7995_s15 + $0xd20] ss:$16 sps:$4 sm:$0xff]  }
 0x29b   : > { %4724 = vmatpush1.bf16.msra.mxu0 %v6585_v23  ;;  %5052 = vmatpush1.bf16.msra.mxu1 %v6588_v24  ;;  %v6672_v23 = vld [vmem:[%s7995_s15 + $0xd28] ss:$16 sps:$4 sm:$0xff]   ;;  %v6677_v24 = vld [vmem:[%s7995_s15 + $0xd44] ss:$16 sps:$4 sm:$0xff]  }
 0x29c   : > { %4725 = vmatprep.subr.bf16.mxu0 %v6593_v25  ;;  %5053 = vmatprep.subr.bf16.mxu1 %v6596_v27  ;;  %v6680_v25 = vld [vmem:[%s7995_s15 + $0xd4c] ss:$16 sps:$4 sm:$0xff]   ;;  %v6675_v27 = vld [vmem:[%s7995_s15 + $0xd40] ss:$16 sps:$4 sm:$0xff]  }
 0x29f   : > { %4726 = vmatpush1.bf16.msra.mxu0 %v6591_v29  ;;  %5054 = vmatpush1.bf16.msra.mxu1 %v6594_v30  ;;  %v6678_v29 = vld [vmem:[%s7995_s15 + $0xd48] ss:$16 sps:$4 sm:$0xff]   ;;  %v6683_v30 = vld [vmem:[%s7995_s15 + $0xd64] ss:$16 sps:$4 sm:$0xff]  }
 0x2a0   : > { %4727 = vmatprep.subr.bf16.mxu0 %v6599_v31  ;;  %5055 = vmatprep.subr.bf16.mxu1 %v6602_v16  ;;  %v6686_v31 = vld [vmem:[%s7995_s15 + $0xd6c] ss:$16 sps:$4 sm:$0xff]   ;;  %v6681_v16 = vld [vmem:[%s7995_s15 + $0xd60] ss:$16 sps:$4 sm:$0xff]  }
 0x2a3   : > { %4728 = vmatpush1.bf16.msra.mxu0 %v6597_v32  ;;  %5056 = vmatpush1.bf16.msra.mxu1 %v6600_v33  ;;  %v6684_v32 = vld [vmem:[%s7995_s15 + $0xd68] ss:$16 sps:$4 sm:$0xff]   ;;  %v6689_v33 = vld [vmem:[%s7995_s15 + $0xd84] ss:$16 sps:$4 sm:$0xff]  }
 0x2a4   : > { %4729 = vmatprep.subr.bf16.mxu0 %v6605_v34  ;;  %5057 = vmatprep.subr.bf16.mxu1 %v6608_v26  ;;  %v6692_v34 = vld [vmem:[%s7995_s15 + $0xd8c] ss:$16 sps:$4 sm:$0xff]   ;;  %v6687_v26 = vld [vmem:[%s7995_s15 + $0xd80] ss:$16 sps:$4 sm:$0xff]  }
 0x2a7   : > { %4730 = vmatpush1.bf16.msra.mxu0 %v6603_v36  ;;  %5058 = vmatpush1.bf16.msra.mxu1 %v6606_v14  ;;  %v6695_v36 = vld [vmem:[%s7995_s15 + $0xda4] ss:$16 sps:$4 sm:$0xff]   ;;  %v6698_v14 = vld [vmem:[%s7995_s15 + $0xdac] ss:$16 sps:$4 sm:$0xff]  }
 0x2a8   : > { %4731 = vmatprep.subr.bf16.mxu0 %v6611_v39  ;;  %5059 = vmatprep.subr.bf16.mxu1 %v6614_v40  ;;  %v6693_v39 = vld [vmem:[%s7995_s15 + $0xda0] ss:$16 sps:$4 sm:$0xff]   ;;  %v6696_v40 = vld [vmem:[%s7995_s15 + $0xda8] ss:$16 sps:$4 sm:$0xff]  }
 0x2ab   : > { %4732 = vmatpush1.bf16.msra.mxu0 %v6609_v22  ;;  %5060 = vmatpush1.bf16.msra.mxu1 %v6612_v42  ;;  %v6701_v22 = vld [vmem:[%s7995_s15 + $0xdc4] ss:$16 sps:$4 sm:$0xff]   ;;  %v6704_v42 = vld [vmem:[%s7995_s15 + $0xdcc] ss:$16 sps:$4 sm:$0xff]  }
 0x2ac   : > { %4742 = vmatprep.subr.bf16.mxu0 %v6617_v43  ;;  %5070 = vmatprep.subr.bf16.mxu1 %v6620_v28  ;;  %v6699_v43 = vld [vmem:[%s7995_s15 + $0xdc0] ss:$16 sps:$4 sm:$0xff]   ;;  %v6702_v28 = vld [vmem:[%s7995_s15 + $0xdc8] ss:$16 sps:$4 sm:$0xff]  }
 0x2ae   : > { %4734 = vmatmul.mubr.bf16.vlgmr.msra.gmra.mrb[0].mxu0 %v1916_v46  ;;  %5062 = vmatmul.mubr.bf16.vlgmr.msra.gmra.mrb[0].mxu1 %v1916_v46  ;;  %v6710_v46 = vld [vmem:[%s7995_s15 + $0xdec] ss:$16 sps:$4 sm:$0xff]  }
 0x2af   : > { %4743 = vmatpush1.bf16.msra.mxu0 %v6615_v47  ;;  %5071 = vmatpush1.bf16.msra.mxu1 %v6618_v37  ;;  %v6705_v47 = vld [vmem:[%s7995_s15 + $0xde0] ss:$16 sps:$4 sm:$0xff]   ;;  %v6708_v37 = vld [vmem:[%s7995_s15 + $0xde8] ss:$16 sps:$4 sm:$0xff]  }
 0x2b0   : > { %4744 = vmatprep.subr.bf16.mxu0 %v6623_v48  ;;  %5072 = vmatprep.subr.bf16.mxu1 %v6626_v49  ;;  %v6714_v48 = vld [vmem:[%s7995_s15 + $0xe04] ss:$16 sps:$4 sm:$0xff]   ;;  %v6717_v49 = vld [vmem:[%s7995_s15 + $0xe0c] ss:$16 sps:$4 sm:$0xff]  }
 0x2b1   : > { %4774 = vmatprep.mubr.bf16.mxu0 %v8460_v51  ;;  %5102 = vmatprep.mubr.bf16.mxu1 %v8460_v51 }
 0x2b3   : > { %4745 = vmatpush1.bf16.msra.mxu0 %v6621_v38  ;;  %5073 = vmatpush1.bf16.msra.mxu1 %v6624_v52  ;;  %v8526_v38 = vrot.slane %v8445_v41, %v8045_v50  ;;  %v6712_v52 = vld [vmem:[%s7995_s15 + $0xe00] ss:$16 sps:$4 sm:$0xff]  }
 0x2b4   : > { %4746 = vmatprep.subr.bf16.mxu0 %v6629_v54  ;;  %5074 = vmatprep.subr.bf16.mxu1 %v6632_v55  ;;  %v6715_v54 = vld [vmem:[%s7995_s15 + $0xe08] ss:$16 sps:$4 sm:$0xff]   ;;  %v6720_v55 = vld [vmem:[%s7995_s15 + $0xe24] ss:$16 sps:$4 sm:$0xff]   ;;  %v6718_v41 = vld [vmem:[%s7995_s15 + $0xe20] ss:$16 sps:$4 sm:$0xff]  }
 0x2b7   : > { %4747 = vmatpush1.bf16.msra.mxu0 %v6627_v56  ;;  %5075 = vmatpush1.bf16.msra.mxu1 %v6630_v57  ;;  %v6723_v56 = vld [vmem:[%s7995_s15 + $0xe2c] ss:$16 sps:$4 sm:$0xff]   ;;  %v1919_v57 = vcombine.high %v8460_v51, %v8460_v51  ;;  %v6724_v51 = vld [vmem:[%s7995_s15 + $0xe40] ss:$16 sps:$4 sm:$0xff]  }
 0x2b8   : > { %4748 = vmatprep.subr.bf16.mxu0 %v6635_v58  ;;  %5076 = vmatprep.subr.bf16.mxu1 %v6638_v59  ;;  %v6721_v58 = vld [vmem:[%s7995_s15 + $0xe28] ss:$16 sps:$4 sm:$0xff]   ;;  %v6726_v59 = vld [vmem:[%s7995_s15 + $0xe44] ss:$16 sps:$4 sm:$0xff]  }
 0x2bb   : > { %4749 = vmatpush1.bf16.msra.mxu0 %v6633_v60  ;;  %5077 = vmatpush1.bf16.msra.mxu1 %v6636_v61  ;;  %v6729_v60 = vld [vmem:[%s7995_s15 + $0xe4c] ss:$16 sps:$4 sm:$0xff]   ;;  %v6727_v61 = vld [vmem:[%s7995_s15 + $0xe48] ss:$16 sps:$4 sm:$0xff]  }
 0x2bc   : > { %4750 = vmatprep.subr.bf16.mxu0 %v6641_v62  ;;  %5078 = vmatprep.subr.bf16.mxu1 %v6644_v63  ;;  %v6732_v62 = vld [vmem:[%s7995_s15 + $0xe64] ss:$16 sps:$4 sm:$0xff]   ;;  %v6735_v63 = vld [vmem:[%s7995_s15 + $0xe6c] ss:$16 sps:$4 sm:$0xff]  }
 0x2bf   : > { %4751 = vmatpush1.bf16.msra.mxu0 %v6639_v0  ;;  %5079 = vmatpush1.bf16.msra.mxu1 %v6642_v1  ;;  %v6730_v0 = vld [vmem:[%s7995_s15 + $0xe60] ss:$16 sps:$4 sm:$0xff]   ;;  %v6733_v1 = vld [vmem:[%s7995_s15 + $0xe68] ss:$16 sps:$4 sm:$0xff]  }
 0x2c0   : > { %4752 = vmatprep.subr.bf16.mxu0 %v6647_v2  ;;  %5080 = vmatprep.subr.bf16.mxu1 %v6650_v3  ;;  %v6738_v2 = vld [vmem:[%s7995_s15 + $0xe84] ss:$16 sps:$4 sm:$0xff]   ;;  %v6741_v3 = vld [vmem:[%s7995_s15 + $0xe8c] ss:$16 sps:$4 sm:$0xff]  }
 0x2c3   : > { %4753 = vmatpush1.bf16.msra.mxu0 %v6645_v4  ;;  %5081 = vmatpush1.bf16.msra.mxu1 %v6648_v5  ;;  %v6736_v4 = vld [vmem:[%s7995_s15 + $0xe80] ss:$16 sps:$4 sm:$0xff]   ;;  %v6739_v5 = vld [vmem:[%s7995_s15 + $0xe88] ss:$16 sps:$4 sm:$0xff]  }
 0x2c4   : > { %4754 = vmatprep.subr.bf16.mxu0 %v6653_v6  ;;  %5082 = vmatprep.subr.bf16.mxu1 %v6656_v7  ;;  %v6744_v6 = vld [vmem:[%s7995_s15 + $0xea4] ss:$16 sps:$4 sm:$0xff]   ;;  %v6747_v7 = vld [vmem:[%s7995_s15 + $0xeac] ss:$16 sps:$4 sm:$0xff]  }
 0x2c7   : > { %4755 = vmatpush1.bf16.msra.mxu0 %v6651_v8  ;;  %5083 = vmatpush1.bf16.msra.mxu1 %v6654_v9  ;;  %v6742_v8 = vld [vmem:[%s7995_s15 + $0xea0] ss:$16 sps:$4 sm:$0xff]   ;;  %v6745_v9 = vld [vmem:[%s7995_s15 + $0xea8] ss:$16 sps:$4 sm:$0xff]  }
 0x2c8   : > { %4756 = vmatprep.subr.bf16.mxu0 %v6659_v10  ;;  %5084 = vmatprep.subr.bf16.mxu1 %v6662_v11  ;;  %v6750_v10 = vld [vmem:[%s7995_s15 + $0xec4] ss:$16 sps:$4 sm:$0xff]   ;;  %v6753_v11 = vld [vmem:[%s7995_s15 + $0xecc] ss:$16 sps:$4 sm:$0xff]  }
 0x2cb   : > { %4757 = vmatpush1.bf16.msra.mxu0 %v6657_v12  ;;  %5085 = vmatpush1.bf16.msra.mxu1 %v6660_v13  ;;  %v6748_v12 = vld [vmem:[%s7995_s15 + $0xec0] ss:$16 sps:$4 sm:$0xff]   ;;  %v6751_v13 = vld [vmem:[%s7995_s15 + $0xec8] ss:$16 sps:$4 sm:$0xff]  }
 0x2cc   : > { %4758 = vmatprep.subr.bf16.mxu0 %v6665_v15  ;;  %5086 = vmatprep.subr.bf16.mxu1 %v6668_v17  ;;  %v6756_v15 = vld [vmem:[%s7995_s15 + $0xee4] ss:$16 sps:$4 sm:$0xff]   ;;  %v6759_v17 = vld [vmem:[%s7995_s15 + $0xeec] ss:$16 sps:$4 sm:$0xff]  }
 0x2cf   : > { %4759 = vmatpush1.bf16.msra.mxu0 %v6663_v53  ;;  %5087 = vmatpush1.bf16.msra.mxu1 %v6666_v18  ;;  %v6754_v53 = vld [vmem:[%s7995_s15 + $0xee0] ss:$16 sps:$4 sm:$0xff]   ;;  %v6757_v18 = vld [vmem:[%s7995_s15 + $0xee8] ss:$16 sps:$4 sm:$0xff]  }
 0x2d0   : > { %4760 = vmatprep.subr.bf16.mxu0 %v6671_v19  ;;  %5088 = vmatprep.subr.bf16.mxu1 %v6674_v20  ;;  %v6762_v19 = vld [vmem:[%s7995_s15 + $0xf04] ss:$16 sps:$4 sm:$0xff]   ;;  %v6765_v20 = vld [vmem:[%s7995_s15 + $0xf0c] ss:$16 sps:$4 sm:$0xff]  }
 0x2d3   : > { %4761 = vmatpush1.bf16.msra.mxu0 %v6669_v21  ;;  %5089 = vmatpush1.bf16.msra.mxu1 %v6672_v23  ;;  %v6760_v21 = vld [vmem:[%s7995_s15 + $0xf00] ss:$16 sps:$4 sm:$0xff]   ;;  %v6763_v23 = vld [vmem:[%s7995_s15 + $0xf08] ss:$16 sps:$4 sm:$0xff]  }
 0x2d4   : > { %4762 = vmatprep.subr.bf16.mxu0 %v6677_v24  ;;  %5090 = vmatprep.subr.bf16.mxu1 %v6680_v25  ;;  %v6768_v24 = vld [vmem:[%s7995_s15 + $0xf24] ss:$16 sps:$4 sm:$0xff]   ;;  %v6771_v25 = vld [vmem:[%s7995_s15 + $0xf2c] ss:$16 sps:$4 sm:$0xff]  }
 0x2d7   : > { %4763 = vmatpush1.bf16.msra.mxu0 %v6675_v27  ;;  %5091 = vmatpush1.bf16.msra.mxu1 %v6678_v29  ;;  %v6766_v27 = vld [vmem:[%s7995_s15 + $0xf20] ss:$16 sps:$4 sm:$0xff]   ;;  %v6769_v29 = vld [vmem:[%s7995_s15 + $0xf28] ss:$16 sps:$4 sm:$0xff]  }
 0x2d8   : > { %4764 = vmatprep.subr.bf16.mxu0 %v6683_v30  ;;  %5092 = vmatprep.subr.bf16.mxu1 %v6686_v31  ;;  %v6774_v30 = vld [vmem:[%s7995_s15 + $0xf44] ss:$16 sps:$4 sm:$0xff]   ;;  %v6777_v31 = vld [vmem:[%s7995_s15 + $0xf4c] ss:$16 sps:$4 sm:$0xff]  }
 0x2db   : > { %4765 = vmatpush1.bf16.msra.mxu0 %v6681_v16  ;;  %5093 = vmatpush1.bf16.msra.mxu1 %v6684_v32  ;;  %v6772_v16 = vld [vmem:[%s7995_s15 + $0xf40] ss:$16 sps:$4 sm:$0xff]   ;;  %v6775_v32 = vld [vmem:[%s7995_s15 + $0xf48] ss:$16 sps:$4 sm:$0xff]  }
 0x2dc   : > { %4766 = vmatprep.subr.bf16.mxu0 %v6689_v33  ;;  %5094 = vmatprep.subr.bf16.mxu1 %v6692_v34  ;;  %v6780_v33 = vld [vmem:[%s7995_s15 + $0xf64] ss:$16 sps:$4 sm:$0xff]   ;;  %v6783_v34 = vld [vmem:[%s7995_s15 + $0xf6c] ss:$16 sps:$4 sm:$0xff]  }
 0x2df   : > { %4767 = vmatpush1.bf16.msra.mxu0 %v6687_v26  ;;  %5095 = vmatpush1.bf16.msra.mxu1 %v6690_v35  ;;  %v6778_v26 = vld [vmem:[%s7995_s15 + $0xf60] ss:$16 sps:$4 sm:$0xff]   ;;  %v6781_v35 = vld [vmem:[%s7995_s15 + $0xf68] ss:$16 sps:$4 sm:$0xff]  }
 0x2e0   : > { %4768 = vmatprep.subr.bf16.mxu0 %v6695_v36  ;;  %5096 = vmatprep.subr.bf16.mxu1 %v6698_v14  ;;  %v6786_v36 = vld [vmem:[%s7995_s15 + $0xf84] ss:$16 sps:$4 sm:$0xff]   ;;  %v6789_v14 = vld [vmem:[%s7995_s15 + $0xf8c] ss:$16 sps:$4 sm:$0xff]  }
 0x2e3   : > { %4769 = vmatpush1.bf16.msra.mxu0 %v6693_v39  ;;  %5097 = vmatpush1.bf16.msra.mxu1 %v6696_v40  ;;  %v6784_v39 = vld [vmem:[%s7995_s15 + $0xf80] ss:$16 sps:$4 sm:$0xff]   ;;  %v6787_v40 = vld [vmem:[%s7995_s15 + $0xf88] ss:$16 sps:$4 sm:$0xff]  }
 0x2e4   : > { %4770 = vmatprep.subr.bf16.mxu0 %v6701_v22  ;;  %5098 = vmatprep.subr.bf16.mxu1 %v6704_v42  ;;  %v6792_v22 = vld [vmem:[%s7995_s15 + $0xfa4] ss:$16 sps:$4 sm:$0xff]   ;;  %v6795_v42 = vld [vmem:[%s7995_s15 + $0xfac] ss:$16 sps:$4 sm:$0xff]  }
 0x2e7   : > { %4771 = vmatpush1.bf16.msra.mxu0 %v6699_v43  ;;  %5099 = vmatpush1.bf16.msra.mxu1 %v6702_v28  ;;  %v6790_v43 = vld [vmem:[%s7995_s15 + $0xfa0] ss:$16 sps:$4 sm:$0xff]   ;;  %v6793_v28 = vld [vmem:[%s7995_s15 + $0xfa8] ss:$16 sps:$4 sm:$0xff]  }
 0x2e8   : > { %4772 = vmatprep.subr.bf16.mxu0 %v6707_v45  ;;  %5100 = vmatprep.subr.bf16.mxu1 %v6710_v46  ;;  %v6798_v45 = vld [vmem:[%s7995_s15 + $0xfc4] ss:$16 sps:$4 sm:$0xff]   ;;  %v6801_v46 = vld [vmem:[%s7995_s15 + $0xfcc] ss:$16 sps:$4 sm:$0xff]  }
 0x2eb   : > { %4773 = vmatpush1.bf16.msra.mxu0 %v6705_v47  ;;  %5101 = vmatpush1.bf16.msra.mxu1 %v6708_v37  ;;  %v6796_v47 = vld [vmem:[%s7995_s15 + $0xfc0] ss:$16 sps:$4 sm:$0xff]   ;;  %v6799_v37 = vld [vmem:[%s7995_s15 + $0xfc8] ss:$16 sps:$4 sm:$0xff]  }
 0x2ec   : > { %4783 = vmatprep.subr.bf16.mxu0 %v6714_v48  ;;  %5111 = vmatprep.subr.bf16.mxu1 %v6717_v49  ;;  %v6804_v48 = vld [vmem:[%s7995_s15 + $0xfe4] ss:$16 sps:$4 sm:$0xff]   ;;  %v6807_v49 = vld [vmem:[%s7995_s15 + $0xfec] ss:$16 sps:$4 sm:$0xff]  }
 0x2ee   : > { %4775 = vmatmul.mubr.bf16.vlgmr.msra.gmra.mrb[0].mxu0 %v8526_v38  ;;  %5103 = vmatmul.mubr.bf16.vlgmr.msra.gmra.mrb[0].mxu1 %v8526_v38 }
 0x2ef   : > { %4784 = vmatpush1.bf16.msra.mxu0 %v6712_v52  ;;  %5112 = vmatpush1.bf16.msra.mxu1 %v6715_v54  ;;  %v6802_v52 = vld [vmem:[%s7995_s15 + $0xfe0] ss:$16 sps:$4 sm:$0xff]   ;;  %v6805_v54 = vld [vmem:[%s7995_s15 + $0xfe8] ss:$16 sps:$4 sm:$0xff]  }
 0x2f0   : > { %4785 = vmatprep.subr.bf16.mxu0 %v6720_v55  ;;  %5113 = vmatprep.subr.bf16.mxu1 %v6723_v56  ;;  %v1917_v55 = vcombine.high %v8526_v38, %v8526_v38  ;;  %v6866_v56 = vmov 1983009808  }
 0x2f1   : > { %4815 = vmatprep.mubr.bf16.mxu0 %v1919_v57  ;;  %5143 = vmatprep.mubr.bf16.mxu1 %v1919_v57  ;;  %v5159_v57 = vunpack.c.l.s4 %v6866_v56 }
 0x2f3   : > { %4786 = vmatpush1.bf16.msra.mxu0 %v6718_v41  ;;  %5114 = vmatpush1.bf16.msra.mxu1 %v6721_v58  ;;  %v5160_v41 = vunpack.c.0.s8 %v5159_v57 }
 0x2f4   : > { %4787 = vmatprep.subr.bf16.mxu0 %v6726_v59  ;;  %5115 = vmatprep.subr.bf16.mxu1 %v6729_v60 }
 0x2f5   : > { %v5163_v60 = vsub.s32 %v5160_v41, %v8037_v44 }
 0x2f7   : > { %4788 = vmatpush1.bf16.msra.mxu0 %v6724_v51  ;;  %5116 = vmatpush1.bf16.msra.mxu1 %v6727_v61 }
 0x2f8   : > { %4789 = vmatprep.subr.bf16.mxu0 %v6732_v62  ;;  %5117 = vmatprep.subr.bf16.mxu1 %v6735_v63 }
 0x2fb   : > { %4790 = vmatpush1.bf16.msra.mxu0 %v6730_v0  ;;  %5118 = vmatpush1.bf16.msra.mxu1 %v6733_v1 }
 0x2fc   : > { %4791 = vmatprep.subr.bf16.mxu0 %v6738_v2  ;;  %5119 = vmatprep.subr.bf16.mxu1 %v6741_v3 }
 0x2ff   : > { %4792 = vmatpush1.bf16.msra.mxu0 %v6736_v4  ;;  %5120 = vmatpush1.bf16.msra.mxu1 %v6739_v5  ;;  %v1305_v5 = vld [vmem:[#allocation2] sm:$0xff] }
 0x300   : > { %4793 = vmatprep.subr.bf16.mxu0 %v6744_v6  ;;  %5121 = vmatprep.subr.bf16.mxu1 %v6747_v7 }
 0x303   : > { %4794 = vmatpush1.bf16.msra.mxu0 %v6742_v8  ;;  %5122 = vmatpush1.bf16.msra.mxu1 %v6745_v9  ;;  %v5181_v8 = vld [vmem:[%s1289_s28] sm:$0xf] (!%p5916_p13)  ;;  %v5185_v9 = vsub.s32 (!%p5916_p13), 0, %v8037_v44 }
 0x304   : > { %4795 = vmatprep.subr.bf16.mxu0 %v6750_v10  ;;  %5123 = vmatprep.subr.bf16.mxu1 %v6753_v11  ;;  %v5189_v10 = vsub.s32 (!%p5916_p13), 1, %v8037_v44  ;;  %v5193_v11 = vsub.s32 (!%p5916_p13), 2, %v8037_v44 }
 0x307   : > { %4796 = vmatpush1.bf16.msra.mxu0 %v6748_v12  ;;  %5124 = vmatpush1.bf16.msra.mxu1 %v6751_v13  ;;  %v5197_v12 = vsub.s32 (!%p5916_p13), 3, %v8037_v44  ;;  %v5186_v13 = vrot.slane (!%p5916_p13), %v5181_v8, %v5185_v9 }
 0x308   : > { %4797 = vmatprep.subr.bf16.mxu0 %v6756_v15  ;;  %5125 = vmatprep.subr.bf16.mxu1 %v6759_v17  ;;  %v5190_v15 = vrot.slane (!%p5916_p13), %v5181_v8, %v5189_v10  ;;  %v5194_v17 = vrot.slane (!%p5916_p13), %v5181_v8, %v5193_v11 }
 0x30b   : > { %4798 = vmatpush1.bf16.msra.mxu0 %v6754_v53  ;;  %5126 = vmatpush1.bf16.msra.mxu1 %v6757_v18  ;;  %v5198_v53 = vrot.slane (!%p5916_p13), %v5181_v8, %v5197_v12  ;;  %v5199_v18 = vcombine.low (!%p5916_p13), %v5186_v13, %v5190_v15 }
 0x30c   : > { %4799 = vmatprep.subr.bf16.mxu0 %v6762_v19  ;;  %5127 = vmatprep.subr.bf16.mxu1 %v6765_v20 }
 0x30d   : > { %v5200_v19 = vcombine.low (!%p5916_p13), %v5194_v17, %v5198_v53  ;;  %v5207_v20 = vrot.slane (!%p5916_p13), %v5199_v18, %v5163_v60 }
 0x30f   : > { %4800 = vmatpush1.bf16.msra.mxu0 %v6760_v21  ;;  %5128 = vmatpush1.bf16.msra.mxu1 %v6763_v23  ;;  %v5214_v21 = vrot.slane (!%p5916_p13), %v5200_v19, %v5163_v60 }
 0x310   : > { %4801 = vmatprep.subr.bf16.mxu0 %v6768_v24  ;;  %5129 = vmatprep.subr.bf16.mxu1 %v6771_v25 }
 0x311   : > { %v5215_v24 = vcombine.low (!%p5916_p13), %v5207_v20, %v5214_v21 }
 0x313   : > { %4802 = vmatpush1.bf16.msra.mxu0 %v6766_v27  ;;  %5130 = vmatpush1.bf16.msra.mxu1 %v6769_v29 }
 0x314   : > { %4803 = vmatprep.subr.bf16.mxu0 %v6774_v30  ;;  %5131 = vmatprep.subr.bf16.mxu1 %v6777_v31 }
 0x317   : > { %4804 = vmatpush1.bf16.msra.mxu0 %v6772_v16  ;;  %5132 = vmatpush1.bf16.msra.mxu1 %v6775_v32 }
 0x318   : > { %4805 = vmatprep.subr.bf16.mxu0 %v6780_v33  ;;  %5133 = vmatprep.subr.bf16.mxu1 %v6783_v34 }
 0x31b   : > { %4806 = vmatpush1.bf16.msra.mxu0 %v6778_v26  ;;  %5134 = vmatpush1.bf16.msra.mxu1 %v6781_v35 }
 0x31c   : > { %4807 = vmatprep.subr.bf16.mxu0 %v6786_v36  ;;  %5135 = vmatprep.subr.bf16.mxu1 %v6789_v14 }
 0x31f   : > { %4808 = vmatpush1.bf16.msra.mxu0 %v6784_v39  ;;  %5136 = vmatpush1.bf16.msra.mxu1 %v6787_v40 }
 0x320   : > { %4809 = vmatprep.subr.bf16.mxu0 %v6792_v22  ;;  %5137 = vmatprep.subr.bf16.mxu1 %v6795_v42 }
 0x323   : > { %4810 = vmatpush1.bf16.msra.mxu0 %v6790_v43  ;;  %5138 = vmatpush1.bf16.msra.mxu1 %v6793_v28 }
 0x324   : > { %4811 = vmatprep.subr.bf16.mxu0 %v6798_v45  ;;  %5139 = vmatprep.subr.bf16.mxu1 %v6801_v46 }
 0x327   : > { %4812 = vmatpush1.bf16.msra.mxu0 %v6796_v47  ;;  %5140 = vmatpush1.bf16.msra.mxu1 %v6799_v37 }
 0x328   : > { %4813 = vmatprep.subr.bf16.mxu0 %v6804_v48  ;;  %5141 = vmatprep.subr.bf16.mxu1 %v6807_v49 }
 0x32b   : > { %4814 = vmatpush1.bf16.msra.mxu0 %v6802_v52  ;;  %5142 = vmatpush1.bf16.msra.mxu1 %v6805_v54 }
 0x32e   : > { %4816 = vmatmul.mubr.bf16.vlgmr.msra.gmra.mrb[0].mxu0 %v1917_v55  ;;  %5144 = vmatmul.mubr.bf16.vlgmr.msra.gmra.mrb[0].mxu1 %v1917_v55 }
 0x401   : > { %v4817_v58 = vpop.f32.mrb[0].mxu0  ;;  %v5145_v59 = vpop.f32.mrb[0].mxu1 }
 0x402   : > { %v4819_v51 = vpop.f32.mrb[1].mxu0  ;;  %v5147_v61 = vpop.f32.mrb[1].mxu1 }
 0x403   : > { %v5156_v62 = vcombine.low %v4817_v58, %v4819_v51  ;;  %v5157_v63 = vcombine.low %v5145_v59, %v5147_v61  ;;  %v4821_v0 = vpop.f32.mrb[2].mxu0  ;;  %v5149_v1 = vpop.f32.mrb[2].mxu1 }
 0x404   : > { %v4822_v2 = vpop.f32.mrb[3].mxu0  ;;  %v5150_v3 = vpop.f32.mrb[3].mxu1 }
 0x405   : > { %v5164_v38 = vrot.slane %v5156_v62, %v5163_v60  ;;  %v5171_v4 = vrot.slane %v5157_v63, %v5163_v60  ;;  %5179 = sbr.rel (%p5916_p13) target bundleno = 1060 (0x424), region = 63 }
 0x407   : > { %v5172_v6 = vcombine.low %v5164_v38, %v5171_v4 }
 0x409   : > { %v5174_v7 = vadd.f32 %v5172_v6, %v1305_v5 }
 0x40b   : > { %5175 = vst [vmem:[#allocation2] sm:$0xff] %v5174_v7 }
 0x412   : > { %v5180_v23 = vld [vmem:[#allocation2] sm:$0xff] }
 0x413   : > { %v5217_v25 = vadd.f32 %v5215_v24, %v5180_v23 }
 0x415   : > { %v5218_v27 = vmax.f32 %v5217_v25, 0.0 }
 0x417   : > { %v5220_v29 = vcombine.high %v5218_v27, %v5218_v27  ;;  %v5227_v30 = vrot.slane %v5218_v27, %v5163_v60 }
 0x419   : > { %v5234_v31 = vrot.slane %v5220_v29, %v5163_v60  ;;  %v5235_v16 = vcombine.high %v5227_v30, %v5227_v30 }
 0x41b   : > { %v5236_v32 = vcombine.high %v5234_v31, %v5234_v31  ;;  %v5917_v33 = vpack.c.bf16 %v5235_v16, %v5227_v30 }
 0x41d   : > { %v5918_v44 = vpack.c.bf16 %v5236_v32, %v5234_v31  ;;  %v5257_v34 = vrot.slane %v5917_v33, %v8045_v50 }
 0x41f   : > { %v5264_v26 = vrot.slane %v5918_v44, %v8045_v50 }
 0x421   : > { %v5265_v35 = vcombine.low %v5257_v34, %v5264_v26 }
 0x423   : > { %5919 = vst.sshfl [vmem:[%s1298_s30] sm:$0x55 pattern:$0x73625140] %v5265_v35 }
 0x424 PF: > { %s13_s18 = sadd.s32 1, %s6862_s18   ;;  %s8639_s12 = smov %s6842_s13 }
 0x425   : > { %p10_p0 = scmp.ge.s32.totalorder %s13_s18, 10   ;;  %s8640_s13 = smov %s6938_s25 }
 0x426   : > { %s8641_s14 = smov %s6854_s16  ;;  %s8642_s15 = smov %s6858_s17 }
 0x427   : > { %s8643_s16 = smov %s8646_s19  ;;  %s8644_s17 = smov %s8650_s20 }
 0x428   :  { %12 = sbr.rel (!%p10_p0) target bundleno = 4 (0x4), region = 104 }

// kernel: lenet_forward.5
= control target key start
LH: loop header
LB: loop body
LE: loop exit
PB: predicated region body
PF: predicated region fallthrough
CT: control target
= control target key end

     0   :  { %s13863_s12 = smov 0   ;;  %s16157_s0 = inlined_call_operand.vmem [shape: f32[2,2,2,10,10,64], index: 0, kind: input, shape index: {}]   ;;  %s16158_s1 = inlined_call_operand.vmem [shape: bf16[25,64,128], index: 1, kind: input, shape index: {}]   ;;  %s16159_s2 = inlined_call_operand.vmem [shape: f32[1,128], index: 2, kind: input, shape index: {}]   ;;  %s16160_s3 = inlined_call_operand.vmem [shape: bf16[2,64,128], index: 3, kind: output, shape index: {}]  }
   0x1 LB: > { %s9943_s13 = sadd.s32 4294967295, %s13841_s12   ;;  %p9947_p0 = scmp.ge.s32.totalorder %s13841_s12, 1  ;;  %s13841_s12 = sphi %s13863_s12, %s13_s12  }
   0x2   : > { %p137_p1 = scmp.lt.s32.totalorder %s13841_s12, 3 }
   0x4   : > { %p138_p2 = pnand %p9947_p0, %p137_p1 }
   0x6   : > { %141 = sbr.rel (%p138_p2) target bundleno = 1051 (0x41b), region = 32 }
   0xd   : > { %v13731_v0 = vld [vmem:[%s16158_s1] sm:$0xff]   ;;  %p161_p3 = scmp.lt.s32.totalorder %s9943_s13, 1  ;;  %v13733_v2 = vld [vmem:[%s16158_s1 + $0x8] sm:$0xff]   ;;  %v13735_v4 = vld [vmem:[%s16158_s1 + $0x10] sm:$0xff]   ;;  %vm255_vm0 = vcmask 523264  }
   0xe   : > { %v13732_v1 = vld [vmem:[%s16158_s1 + $0x180] sm:$0xff]   ;;  %11946 = vmatprep.subr.bf16.mxu1 %v13731_v0  ;;  %v13734_v3 = vld [vmem:[%s16158_s1 + $0x188] sm:$0xff]   ;;  %v13736_v5 = vld [vmem:[%s16158_s1 + $0x190] sm:$0xff]  }
   0xf   : > { %s16204_s13 = smov (!%p161_p3, %s9943_s13), 1  ;;  %12426 = vmatprep.subr.bf16.mxu0 %v13732_v1  ;;  %11947 = vmatpush3.bf16.msra.mxu1 %v13731_v0  ;;  %v13737_v6 = vld [vmem:[%s16158_s1 + $0x18] sm:$0xff]   ;;  %v13739_v16 = vld [vmem:[%s16158_s1 + $0x20] sm:$0xff]   ;;  %v13741_v33 = vld [vmem:[%s16158_s1 + $0x1a8] sm:$0xff]  }
  0x10   : > { %12427 = vmatpush3.bf16.msra.mxu0 %v13732_v1  ;;  %11948 = vmatprep.subr.bf16.mxu1 %v13733_v2  ;;  %s13722_s24 = smul.u32 640, %s16204_s13  ;;  %v13738_v10 = vld [vmem:[%s16158_s1 + $0x198] sm:$0xff]   ;;  %v13740_v19 = vld [vmem:[%s16158_s1 + $0x1a0] sm:$0xff]   ;;  %v13742_v37 = vld [vmem:[%s16158_s1 + $0x28] sm:$0xff]   ;;  %s11414_s8 = sshll.u32 %s16204_s13, 5 }
  0x11   : > { %12428 = vmatprep.subr.bf16.mxu0 %v13734_v3  ;;  %v13743_v41 = vld [vmem:[%s16158_s1 + $0x1b0] sm:$0xff]   ;;  %v13744_v48 = vld [vmem:[%s16158_s1 + $0x1b8] sm:$0xff]   ;;  %v13746_v57 = vld [vmem:[%s16158_s1 + $0x1c0] sm:$0xff]   ;;  %s170_s11 = scalar_lea.vmem %s16160_s3, %s11414_s8 }
  0x12   : > { %s13895_s29 = scalar_lea.vmem %s16157_s0, %s13722_s24  ;;  %v13745_v49 = vld [vmem:[%s16158_s1 + $0x30] sm:$0xff]   ;;  %v13747_v62 = vld [vmem:[%s16158_s1 + $0x38] sm:$0xff]  }
  0x13   : > { %11949 = vmatpush3.bf16.msra.mxu1 %v13733_v2  ;;  %v172_v7 = vld [vmem:[%s13895_s29] sm:$0xff]  ;;  %v173_v8 = vld [vmem:[%s13895_s29 + $0x10] sm:$0xff] }
  0x14   : > { %12429 = vmatpush3.bf16.msra.mxu0 %v13734_v3  ;;  %11950 = vmatprep.subr.bf16.mxu1 %v13735_v4  ;;  %v13903_v9 = vld [vmem:[%s13895_s29 + $0x11] sm:$0xff]  ;;  %v207_v11 = vpack.c.bf16 %v173_v8, %v172_v7  ;;  %v10624_v12 = vld [vmem:[%s13895_s29 + $0x21] sm:$0xff] }
  0x15   : > { %12430 = vmatprep.subr.bf16.mxu0 %v13736_v5  ;;  %v174_v13 = vld [vmem:[%s13895_s29 + $0x20] sm:$0xff]  ;;  %v4779_v14 = vpack.c.bf16 %v10624_v12, %v13903_v9  ;;  %v175_v15 = vld [vmem:[%s13895_s29 + $0x30] sm:$0xff] }
  0x16   : > { %11954 = vmatprep.mubr.msk.bf16.mxu1 %vm255_vm0, %v207_v11  ;;  %v10625_v17 = vld [vmem:[%s13895_s29 + $0x31] sm:$0xff]  ;;  %v10626_v18 = vld [vmem:[%s13895_s29 + $0x41] sm:$0xff]  ;;  %v13927_v24 = vpack.c.bf16 %v175_v15, %v174_v13 }
  0x17   : > { %11951 = vmatpush3.bf16.msra.mxu1 %v13735_v4  ;;  %v13921_v20 = vpack.c.bf16 %v10625_v17, %v10624_v12  ;;  %12434 = vmatprep.mubr.msk.bf16.mxu0 %vm255_vm0, %v4779_v14  ;;  %v176_v21 = vld [vmem:[%s13895_s29 + $0x40] sm:$0xff]  ;;  %v177_v22 = vld [vmem:[%s13895_s29 + $0x50] sm:$0xff]  ;;  %v4780_v28 = vpack.c.bf16 %v10626_v18, %v10625_v17 }
  0x18   : > { %12431 = vmatpush3.bf16.msra.mxu0 %v13736_v5  ;;  %11952 = vmatprep.subr.bf16.mxu1 %v13737_v6  ;;  %v10627_v23 = vld [vmem:[%s13895_s29 + $0x51] sm:$0xff]  ;;  %v10628_v25 = vld [vmem:[%s13895_s29 + $0x61] sm:$0xff]  ;;  %v13935_v30 = vpack.c.bf16 %v177_v22, %v176_v21 }
  0x19   : > { %12432 = vmatprep.subr.bf16.mxu0 %v13738_v10  ;;  %v10629_v26 = vld [vmem:[%s13895_s29 + $0x71] sm:$0xff]  ;;  %v13931_v27 = vpack.c.bf16 %v10627_v23, %v10626_v18  ;;  %v4781_v31 = vpack.c.bf16 %v10628_v25, %v10627_v23  ;;  %v178_v32 = vld [vmem:[%s13895_s29 + $0x60] sm:$0xff] }
  0x1a   : > { %v13933_v29 = vpack.c.bf16 %v10629_v26, %v10628_v25  ;;  %v179_v34 = vld [vmem:[%s13895_s29 + $0x70] sm:$0xff]  ;;  %v10630_v35 = vld [vmem:[%s13895_s29 + $0x81] sm:$0xff] }
  0x1b   : > { %11953 = vmatpush3.bf16.msra.mxu1 %v13737_v6  ;;  %v9951_v36 = vld [vmem:[%s13895_s29 + $0xa0] sm:$0xff]  ;;  %v9952_v38 = vld [vmem:[%s13895_s29 + $0xb0] sm:$0xff]  ;;  %v13961_v42 = vpack.c.bf16 %v179_v34, %v178_v32  ;;  %v4782_v43 = vpack.c.bf16 %v10630_v35, %v10629_v26 }
  0x1c   : > { %12433 = vmatpush3.bf16.msra.mxu0 %v13738_v10  ;;  %11986 = vmatprep.subr.bf16.mxu1 %v13739_v16  ;;  %v13955_v39 = vld [vmem:[%s13895_s29 + $0xb1] sm:$0xff]  ;;  %v10632_v40 = vld [vmem:[%s13895_s29 + $0xc1] sm:$0xff]  ;;  %v13963_v44 = vpack.c.bf16 %v9952_v38, %v9951_v36 }
  0x1d   : > { %12466 = vmatprep.subr.bf16.mxu0 %v13740_v19  ;;  %v4783_v45 = vpack.c.bf16 %v10632_v40, %v13955_v39  ;;  %v9953_v46 = vld [vmem:[%s13895_s29 + $0xc0] sm:$0xff]  ;;  %v9954_v47 = vld [vmem:[%s13895_s29 + $0xd0] sm:$0xff] }
  0x1e   : > { %11955 = vmatmul.mubr.msk.bf16.vlgmr.msra.gmra.mrb[0].mxu1 %vm255_vm0, %v13927_v24  ;;  %v10633_v50 = vld [vmem:[%s13895_s29 + $0xd1] sm:$0xff]  ;;  %v10634_v51 = vld [vmem:[%s13895_s29 + $0xe1] sm:$0xff]  ;;  %v13991_v58 = vpack.c.bf16 %v9954_v47, %v9953_v46 }
  0x1f   : > { %12435 = vmatmul.mubr.msk.bf16.vlgmr.msra.gmra.mrb[0].mxu0 %vm255_vm0, %v4780_v28  ;;  %11987 = vmatpush3.bf16.msra.mxu1 %v13739_v16  ;;  %v9955_v52 = vld [vmem:[%s13895_s29 + $0xe0] sm:$0xff]  ;;  %v9956_v53 = vld [vmem:[%s13895_s29 + $0xf0] sm:$0xff]  ;;  %v13984_v54 = vpack.c.bf16 %v10633_v50, %v10632_v40  ;;  %v4784_v59 = vpack.c.bf16 %v10634_v51, %v10633_v50  ;;  %v13752_v40 = vld [vmem:[%s16158_s1 + $0x1d8] sm:$0xff]  }
  0x20   : > { %12467 = vmatpush3.bf16.msra.mxu0 %v13740_v19  ;;  %11958 = vmatprep.mubr.msk.bf16.mxu1 %vm255_vm0, %v13935_v30  ;;  %v10635_v55 = vld [vmem:[%s13895_s29 + $0xf1] sm:$0xff]  ;;  %v10636_v56 = vld [vmem:[%s13895_s29 + $0x101] sm:$0xff]  ;;  %v13993_v60 = vpack.c.bf16 %v9956_v53, %v9955_v52 }
  0x21   : > { %12438 = vmatprep.mubr.msk.bf16.mxu0 %vm255_vm0, %v4781_v31  ;;  %12468 = vmatprep.subr.bf16.mxu0 %v13741_v33  ;;  %v4785_v61 = vpack.c.bf16 %v10636_v56, %v10635_v55  ;;  %v9957_v63 = vld [vmem:[%s13895_s29 + $0x100] sm:$0xff]  ;;  %v9958_v0 = vld [vmem:[%s13895_s29 + $0x110] sm:$0xff]  ;;  %v14006_v2 = vpack.c.bf16 %v10635_v55, %v10634_v51  ;;  %v13748_v19 = vld [vmem:[%s16158_s1 + $0x1c8] sm:$0xff]  }
  0x22   : > { %11988 = vmatprep.subr.bf16.mxu1 %v13742_v37  ;;  %v10637_v1 = vld [vmem:[%s13895_s29 + $0x111] sm:$0xff]  ;;  %v10638_v3 = vld [vmem:[%s13895_s29 + $0x121] sm:$0xff]  ;;  %v14016_v7 = vpack.c.bf16 %v9958_v0, %v9957_v63 }
  0x23   : > { %11989 = vmatpush3.bf16.msra.mxu1 %v13742_v37  ;;  %v9959_v4 = vld [vmem:[%s13895_s29 + $0x140] sm:$0xff]  ;;  %v14012_v5 = vld [vmem:[%s13895_s29 + $0x150] sm:$0xff]  ;;  %v14014_v6 = vpack.c.bf16 %v10637_v1, %v10636_v56  ;;  %v4786_v10 = vpack.c.bf16 %v10638_v3, %v10637_v1 }
  0x24   : > { %12469 = vmatpush3.bf16.msra.mxu0 %v13741_v33  ;;  %11990 = vmatprep.subr.bf16.mxu1 %v13745_v49  ;;  %v14021_v8 = vld [vmem:[%s16158_s1 + $0x40] sm:$0xff]   ;;  %v215_v11 = vpack.c.bf16 %v14012_v5, %v9959_v4  ;;  %v14033_v13 = vld [vmem:[%s13895_s29 + $0x170] sm:$0xff] }
  0x25   : > { %12470 = vmatprep.subr.bf16.mxu0 %v13743_v41  ;;  %v14028_v12 = vld [vmem:[%s13895_s29 + $0x160] sm:$0xff]  ;;  %v14042_v16 = vld [vmem:[%s13895_s29 + $0x190] sm:$0xff] }
  0x26   : > { %11959 = vmatmul.mubr.msk.bf16.gmra.mrb[4].mxu1 %vm255_vm0, %v13961_v42  ;;  %v14036_v14 = vld [vmem:[%s13895_s29 + $0x180] sm:$0xff]  ;;  %v216_v17 = vpack.c.bf16 %v14033_v13, %v14028_v12  ;;  %v14060_v23 = vld [vmem:[%s13895_s29 + $0x1b0] sm:$0xff] }
  0x27   : > { %12439 = vmatmul.mubr.msk.bf16.gmra.mrb[4].mxu0 %vm255_vm0, %v4782_v43  ;;  %11962 = vmatprep.mubr.msk.bf16.mxu1 %vm255_vm0, %v13963_v44  ;;  %v217_v18 = vpack.c.bf16 %v14042_v16, %v14036_v14  ;;  %v14057_v22 = vld [vmem:[%s13895_s29 + $0x1a0] sm:$0xff]  ;;  %v9968_v26 = vld [vmem:[%s13895_s29 + $0x1f0] sm:$0xff] }
  0x28   : > { %12442 = vmatprep.mubr.msk.bf16.mxu0 %vm255_vm0, %v4783_v45  ;;  %12471 = vmatpush3.bf16.msra.mxu0 %v13743_v41  ;;  %v9967_v25 = vld [vmem:[%s13895_s29 + $0x1e0] sm:$0xff]  ;;  %v14068_v31 = vld [vmem:[%s13895_s29 + $0x12] sm:$0xff]  ;;  %v218_v34 = vpack.c.bf16 %v14060_v23, %v14057_v22 }
  0x29   : > { %12472 = vmatprep.subr.bf16.mxu0 %v13744_v48  ;;  %11991 = vmatpush3.bf16.msra.mxu1 %v13745_v49  ;;  %v14071_v32 = vld [vmem:[%s13895_s29 + $0x22] sm:$0xff]  ;;  %v13750_v33 = vld [vmem:[%s16158_s1 + $0x1d0] sm:$0xff]   ;;  %v14078_v35 = vpack.c.bf16 %v9968_v26, %v9967_v25 }
  0x2a   : > { %11992 = vmatprep.subr.bf16.mxu1 %v13747_v62  ;;  %v14082_v36 = vpack.c.bf16 %v14071_v32, %v14068_v31  ;;  %v9969_v37 = vld [vmem:[%s13895_s29 + $0x200] sm:$0xff]  ;;  %v9970_v38 = vld [vmem:[%s13895_s29 + $0x210] sm:$0xff] }
  0x2b   : > { %v14091_v41 = vld [vmem:[%s13895_s29 + $0x32] sm:$0xff]  ;;  %v14094_v43 = vld [vmem:[%s13895_s29 + $0x42] sm:$0xff]  ;;  %v14120_v55 = vpack.c.bf16 %v9970_v38, %v9969_v37 }
  0x2c   : > { %12473 = vmatpush3.bf16.msra.mxu0 %v13744_v48  ;;  %v10700_v46 = vld [vmem:[%s13895_s29 + $0x201] sm:$0xff]  ;;  %v10701_v47 = vld [vmem:[%s13895_s29 + $0x211] sm:$0xff]  ;;  %v14102_v48 = vpack.c.bf16 %v9969_v37, %v9968_v26  ;;  %v14124_v56 = vpack.c.bf16 %v14094_v43, %v14091_v41 }
  0x2d   : > { %12506 = vmatprep.subr.bf16.mxu0 %v13746_v57  ;;  %11993 = vmatpush3.bf16.msra.mxu1 %v13747_v62  ;;  %v9972_v49 = vld [vmem:[%s13895_s29 + $0x230] sm:$0xff]  ;;  %v14107_v50 = vpack.c.bf16 %v10701_v47, %v10700_v46  ;;  %v14113_v52 = vld [vmem:[%s13895_s29 + $0x62] sm:$0xff] }
  0x2e   : > { %11963 = vmatmul.mubr.msk.bf16.gmra.mrb[8].mxu1 %vm255_vm0, %v13991_v58  ;;  %12026 = vmatprep.subr.bf16.mxu1 %v14021_v8  ;;  %v14110_v51 = vld [vmem:[%s13895_s29 + $0x52] sm:$0xff]  ;;  %v14118_v53 = vld [vmem:[%s16158_s1 + $0x1e0] sm:$0xff]  }
  0x2f   : > { %12443 = vmatmul.mubr.msk.bf16.gmra.mrb[8].mxu0 %vm255_vm0, %v4784_v59  ;;  %11966 = vmatprep.mubr.msk.bf16.mxu1 %vm255_vm0, %v13993_v60  ;;  %v10702_v62 = vld [vmem:[%s13895_s29 + $0x221] sm:$0xff]  ;;  %v14135_v63 = vld [vmem:[%s13895_s29 + $0x250] sm:$0xff] }
  0x30   : > { %12446 = vmatprep.mubr.msk.bf16.mxu0 %vm255_vm0, %v4785_v61  ;;  %v10703_v0 = vld [vmem:[%s13895_s29 + $0x231] sm:$0xff]  ;;  %v10698_v4 = vld [vmem:[%s13895_s29 + $0x82] sm:$0xff]  ;;  %v5174_v37 = vpack.c.bf16 %v10702_v62, %v10701_v47 }
  0x31   : > { %v14144_v3 = vld [vmem:[%s13895_s29 + $0x72] sm:$0xff]  ;;  %v14322_v28 = vld [vmem:[%s13895_s29 + $0x181] sm:$0xff] }
  0x32   : > { %v13753_v47 = vld [vmem:[%s16158_s1 + $0x50] sm:$0xff]   ;;  %v14331_v21 = vld [vmem:[%s13895_s29 + $0x102] sm:$0xff] }
  0x33   : > { %16179 = vst [vmem:[#allocation8_spill] sm:$0xff] %v14331_v21 }
  0x36   : > { %11967 = vmatmul.mubr.msk.bf16.gmra.mrb[12].mxu1 %vm255_vm0, %v14016_v7 }
  0x37   : > { %12447 = vmatmul.mubr.msk.bf16.gmra.mrb[12].mxu0 %vm255_vm0, %v4786_v10  ;;  %11970 = vmatprep.mubr.msk.bf16.mxu1 %vm255_vm0, %v215_v11  ;;  %v14153_v11 = vld [vmem:[%s13895_s29 + $0x1f1] sm:$0xff] }
  0x38   : > { %12474 = vmatprep.mubr.msk.bf16.mxu0 %vm255_vm0, %v4783_v45  ;;  %v9971_v45 = vld [vmem:[%s13895_s29 + $0x220] sm:$0xff] }
  0x39   : > { %v14139_v1 = vpack.c.bf16 %v9971_v45, %v9970_v38  ;;  %v13751_v38 = vld [vmem:[%s16158_s1 + $0x48] sm:$0xff]  }
  0x3e   : > { %11971 = vmatmul.mubr.msk.bf16.gmra.mrb[16].mxu1 %vm255_vm0, %v216_v17  ;;  %v10705_v17 = vld [vmem:[%s13895_s29 + $0x251] sm:$0xff] }
  0x3f   : > { %12475 = vmatmul.mubr.msk.bf16.vlgmr.msra.gmra.mrb[0].mxu0 %vm255_vm0, %v4784_v59  ;;  %11974 = vmatprep.mubr.msk.bf16.mxu1 %vm255_vm0, %v217_v18  ;;  %v14130_v59 = vpack.c.bf16 %v14113_v52, %v14110_v51  ;;  %v14156_v18 = vpack.c.bf16 %v10703_v0, %v10702_v62 }
  0x40   : > { %12507 = vmatpush3.bf16.msra.mxu0 %v13746_v57  ;;  %12478 = vmatprep.mubr.msk.bf16.mxu0 %vm255_vm0, %v4785_v61  ;;  %v14126_v57 = vpack.c.bf16 %v9972_v49, %v9971_v45  ;;  %v9973_v61 = vld [vmem:[%s13895_s29 + $0x240] sm:$0xff] }
  0x41   : > { %12508 = vmatprep.subr.bf16.mxu0 %v13748_v19  ;;  %v14165_v26 = vpack.c.bf16 %v14135_v63, %v9973_v61  ;;  %v10706_v45 = vld [vmem:[%s13895_s29 + $0x261] sm:$0xff] }
  0x44   : > { %12509 = vmatpush3.bf16.msra.mxu0 %v13748_v19  ;;  %v14158_v19 = vpack.c.bf16 %v9973_v61, %v9972_v49  ;;  %v14191_v49 = vld [vmem:[%s13895_s29 + $0x162] sm:$0xff]  ;;  %v5176_v61 = vpack.c.bf16 %v10706_v45, %v10705_v17  ;;  %v14247_v45 = vld [vmem:[%s13895_s29 + $0x1b2] sm:$0xff] }
  0x45   : > { %12510 = vmatprep.subr.bf16.mxu0 %v13750_v33  ;;  %16174 = vst [vmem:[#allocation3_spill] sm:$0xff] %v14247_v45 }
  0x46   : > { %11975 = vmatmul.mubr.msk.bf16.gmra.mrb[20].mxu1 %vm255_vm0, %v218_v34  ;;  %v5173_v34 = vpack.c.bf16 %v10700_v46, %v14153_v11  ;;  %v505_v46 = vld [vmem:[%s13895_s29 + $0x1] sm:$0xff] }
  0x47   : > { %12479 = vmatmul.mubr.msk.bf16.gmra.mrb[4].mxu0 %vm255_vm0, %v4786_v10  ;;  %11978 = vmatprep.mubr.msk.bf16.mxu1 %vm255_vm0, %v14078_v35  ;;  %v10704_v10 = vld [vmem:[%s13895_s29 + $0x241] sm:$0xff]  ;;  %v14200_v62 = vpack.c.bf16 %v13903_v9, %v505_v46  ;;  %v14221_v9 = vld [vmem:[%s13895_s29 + $0x192] sm:$0xff] }
  0x48   : > { %12482 = vmatprep.mubr.msk.bf16.mxu0 %vm255_vm0, %v14082_v36  ;;  %12511 = vmatpush3.bf16.msra.mxu0 %v13750_v33  ;;  %v14162_v25 = vpack.c.bf16 %v10705_v17, %v10704_v10  ;;  %v14168_v33 = vpack.c.bf16 %v10698_v4, %v14144_v3  ;;  %v14212_v4 = vld [vmem:[%s13895_s29 + $0x172] sm:$0xff]  ;;  %v14224_v17 = vld [vmem:[%s13895_s29 + $0x1a2] sm:$0xff] }
  0x49   : > { %12512 = vmatprep.subr.bf16.mxu0 %v13752_v40  ;;  %v10714_v46 = vld [vmem:[%s13895_s29 + $0x1c2] sm:$0xff] }
  0x4c   : > { %12513 = vmatpush3.bf16.msra.mxu0 %v13752_v40  ;;  %v5175_v40 = vpack.c.bf16 %v10704_v10, %v10703_v0  ;;  %v13755_v0 = vld [vmem:[%s16158_s1 + $0x58] sm:$0xff]   ;;  %v14215_v10 = vld [vmem:[%s13895_s29 + $0x182] sm:$0xff] }
  0x4d   : > { %12546 = vmatprep.subr.bf16.mxu0 %v14118_v53 }
  0x4e   : > { %11979 = vmatmul.mubr.msk.bf16.gmra.mrb[24].mxu1 %vm255_vm0, %v14120_v55 }
  0x4f   : > { %12483 = vmatmul.mubr.msk.bf16.gmra.mrb[8].mxu0 %vm255_vm0, %v14124_v56  ;;  %11982 = vmatprep.mubr.msk.bf16.mxu1 %vm255_vm0, %v14126_v57 }
  0x50   : > { %12486 = vmatprep.mubr.msk.bf16.mxu0 %vm255_vm0, %v14130_v59 }
  0x56   : > { %11983 = vmatmul.mubr.msk.bf16.gmra.mrb[28].mxu1 %vm255_vm0, %v14165_v26 }
  0x57   : > { %12487 = vmatmul.mubr.msk.bf16.gmra.mrb[12].mxu0 %vm255_vm0, %v14168_v33  ;;  %11994 = vmatprep.mubr.msk.bf16.mxu1 %vm255_vm0, %v13963_v44  ;;  %v14188_v44 = vld [vmem:[%s13895_s29 + $0x152] sm:$0xff] }
  0x58   : > { %12490 = vmatprep.mubr.msk.bf16.mxu0 %vm255_vm0, %v5173_v34  ;;  %v14229_v34 = vld [vmem:[%s16158_s1 + $0x60] sm:$0xff]  }
  0x5e   : > { %11995 = vmatmul.mubr.msk.bf16.vlgmr.msra.gmra.mrb[0].mxu1 %vm255_vm0, %v13991_v58 }
  0x5f   : > { %12491 = vmatmul.mubr.msk.bf16.gmra.mrb[16].mxu0 %vm255_vm0, %v5174_v37  ;;  %12027 = vmatpush3.bf16.msra.mxu1 %v14021_v8  ;;  %v14204_v8 = vpack.c.bf16 %v14191_v49, %v14188_v44  ;;  %v14315_v37 = vld [vmem:[%s13895_s29 + $0xd2] sm:$0xff] }
  0x60   : > { %11998 = vmatprep.mubr.msk.bf16.mxu1 %vm255_vm0, %v13993_v60  ;;  %12494 = vmatprep.mubr.msk.bf16.mxu0 %vm255_vm0, %v5175_v40  ;;  %v14241_v40 = vpack.c.bf16 %v14224_v17, %v14221_v9  ;;  %16177 = vst [vmem:[#allocation6_spill] sm:$0xff] %v14315_v37 }
  0x61   : > { %12028 = vmatprep.subr.bf16.mxu1 %v13751_v38 }
  0x63   : > { %12029 = vmatpush3.bf16.msra.mxu1 %v13751_v38  ;;  %v14237_v38 = vpack.c.bf16 %v14215_v10, %v14212_v4 }
  0x64   : > { %12030 = vmatprep.subr.bf16.mxu1 %v13753_v47 }
  0x66   : > { %11999 = vmatmul.mubr.msk.bf16.gmra.mrb[4].mxu1 %vm255_vm0, %v14016_v7 }
  0x67   : > { %12495 = vmatmul.mubr.msk.bf16.gmra.mrb[20].mxu0 %vm255_vm0, %v5176_v61  ;;  %12002 = vmatprep.mubr.msk.bf16.mxu1 %vm255_vm0, %v14200_v62  ;;  %v14259_v61 = vpack.c.bf16 %v10714_v46, %v14247_v45  ;;  %v14286_v46 = vld [vmem:[%s13895_s29 + $0xb2] sm:$0xff]  ;;  %v14357_v45 = vld [vmem:[%s13895_s29 + $0x1a1] sm:$0xff] }
  0x68   : > { %12498 = vmatprep.mubr.msk.bf16.mxu0 %vm255_vm0, %v14204_v8  ;;  %12031 = vmatpush3.bf16.msra.mxu1 %v13753_v47  ;;  %16175 = vst [vmem:[#allocation4_spill] sm:$0xff] %v14286_v46  ;;  %v14312_v47 = vld [vmem:[%s13895_s29 + $0x171] sm:$0xff] }
  0x69   : > { %12032 = vmatprep.subr.bf16.mxu1 %v13755_v0 }
  0x6c   : > { %12033 = vmatpush3.bf16.msra.mxu1 %v13755_v0  ;;  %v13756_v0 = vld [vmem:[%s16158_s1 + $0x1e8] sm:$0xff]  }
  0x6d   : > { %12066 = vmatprep.subr.bf16.mxu1 %v14229_v34 }
  0x6e   : > { %12003 = vmatmul.mubr.msk.bf16.gmra.mrb[8].mxu1 %vm255_vm0, %v13921_v20 }
  0x6f   : > { %12499 = vmatmul.mubr.msk.bf16.gmra.mrb[24].mxu0 %vm255_vm0, %v14237_v38  ;;  %12006 = vmatprep.mubr.msk.bf16.mxu1 %vm255_vm0, %v13931_v27 }
  0x70   : > { %12502 = vmatprep.mubr.msk.bf16.mxu0 %vm255_vm0, %v14241_v40 }
  0x76   : > { %12007 = vmatmul.mubr.msk.bf16.gmra.mrb[12].mxu1 %vm255_vm0, %v13933_v29 }
  0x77   : > { %12503 = vmatmul.mubr.msk.bf16.gmra.mrb[28].mxu0 %vm255_vm0, %v14259_v61  ;;  %12010 = vmatprep.mubr.msk.bf16.mxu1 %vm255_vm0, %v14078_v35  ;;  %v10011_v35 = vld [vmem:[%s13895_s29 + $0x141] sm:$0xff] }
  0x78   : > { %12514 = vmatprep.mubr.msk.bf16.mxu0 %vm255_vm0, %v14082_v36  ;;  %v14283_v36 = vld [vmem:[%s13895_s29 + $0x151] sm:$0xff] }
  0x7e   : > { %12011 = vmatmul.mubr.msk.bf16.gmra.mrb[16].mxu1 %vm255_vm0, %v14120_v55  ;;  %v14289_v55 = vld [vmem:[%s13895_s29 + $0xc2] sm:$0xff] }
  0x7f   : > { %12515 = vmatmul.mubr.msk.bf16.vlgmr.msra.gmra.mrb[0].mxu0 %vm255_vm0, %v14124_v56  ;;  %12014 = vmatprep.mubr.msk.bf16.mxu1 %vm255_vm0, %v14126_v57  ;;  %16176 = vst [vmem:[#allocation5_spill] sm:$0xff] %v14289_v55  ;;  %v14295_v56 = vpack.c.bf16 %v14283_v36, %v10011_v35  ;;  %v5555_v57 = vpack.c.bf16 %v14289_v55, %v14286_v46  ;;  %v14309_v35 = vld [vmem:[%s13895_s29 + $0x161] sm:$0xff] }
  0x80   : > { %12547 = vmatpush3.bf16.msra.mxu0 %v14118_v53  ;;  %12518 = vmatprep.mubr.msk.bf16.mxu0 %vm255_vm0, %v14130_v59  ;;  %v13758_v53 = vld [vmem:[%s16158_s1 + $0x1f0] sm:$0xff]   ;;  %v13760_v59 = vld [vmem:[%s16158_s1 + $0x1f8] sm:$0xff]   ;;  %v14340_v15 = vpack.c.bf16 %v14312_v47, %v14309_v35 }
  0x81   : > { %12548 = vmatprep.subr.bf16.mxu0 %v13756_v0 }
  0x84   : > { %12549 = vmatpush3.bf16.msra.mxu0 %v13756_v0  ;;  %v14319_v0 = vld [vmem:[%s13895_s29 + $0xe2] sm:$0xff] }
  0x85   : > { %12550 = vmatprep.subr.bf16.mxu0 %v13758_v53  ;;  %16178 = vst [vmem:[#allocation7_spill] sm:$0xff] %v14319_v0  ;;  %v5556_v55 = vpack.c.bf16 %v14319_v0, %v14315_v37  ;;  %v14360_v0 = vld [vmem:[%s13895_s29 + $0x1b1] sm:$0xff] }
  0x86   : > { %12015 = vmatmul.mubr.msk.bf16.gmra.mrb[20].mxu1 %vm255_vm0, %v14165_v26  ;;  %v14325_v26 = vld [vmem:[%s13895_s29 + $0x191] sm:$0xff] }
  0x87   : > { %12519 = vmatmul.mubr.msk.bf16.gmra.mrb[4].mxu0 %vm255_vm0, %v14168_v33  ;;  %12018 = vmatprep.mubr.msk.bf16.mxu1 %vm255_vm0, %v14295_v56  ;;  %v14328_v33 = vld [vmem:[%s13895_s29 + $0xf2] sm:$0xff] }
  0x88   : > { %12522 = vmatprep.mubr.msk.bf16.mxu0 %vm255_vm0, %v5555_v57  ;;  %12551 = vmatpush3.bf16.msra.mxu0 %v13758_v53  ;;  %v14336_v57 = vld [vmem:[%s16158_s1 + $0x200] sm:$0xff]   ;;  %v14346_v53 = vpack.c.bf16 %v14325_v26, %v14322_v28  ;;  %v5557_v46 = vpack.c.bf16 %v14331_v21, %v14328_v33  ;;  %v14364_v37 = vld [vmem:[%s13895_s29 + $0x112] sm:$0xff]  ;;  %v14369_v21 = vpack.c.bf16 %v14360_v0, %v14357_v45 }
  0x89   : > { %12552 = vmatprep.subr.bf16.mxu0 %v13760_v59 }
  0x8c   : > { %12553 = vmatpush3.bf16.msra.mxu0 %v13760_v59  ;;  %v10758_v59 = vld [vmem:[%s13895_s29 + $0x122] sm:$0xff] }
  0x8d   : > { %12586 = vmatprep.subr.bf16.mxu0 %v14336_v57 }
  0x8e   : > { %12019 = vmatmul.mubr.msk.bf16.gmra.mrb[24].mxu1 %vm255_vm0, %v14340_v15 }
  0x8f   : > { %12523 = vmatmul.mubr.msk.bf16.gmra.mrb[8].mxu0 %vm255_vm0, %v5556_v55  ;;  %12022 = vmatprep.mubr.msk.bf16.mxu1 %vm255_vm0, %v14346_v53  ;;  %v5558_v55 = vpack.c.bf16 %v10758_v59, %v14364_v37  ;;  %v14420_v59 = vld [vmem:[%s13895_s29 + $0x222] sm:$0xff] }
  0x90   : > { %12526 = vmatprep.mubr.msk.bf16.mxu0 %vm255_vm0, %v5557_v46  ;;  %v13759_v46 = vld [vmem:[%s16158_s1 + $0x68] sm:$0xff]   ;;  %16180 = vst [vmem:[#allocation9_spill] sm:$0xff] %v14420_v59 }
  0x96   : > { %12023 = vmatmul.mubr.msk.bf16.gmra.mrb[28].mxu1 %vm255_vm0, %v14369_v21 }
  0x97   : > { %12527 = vmatmul.mubr.msk.bf16.gmra.mrb[12].mxu0 %vm255_vm0, %v5558_v55  ;;  %12034 = vmatprep.mubr.msk.bf16.mxu1 %vm255_vm0, %v14200_v62  ;;  %v10047_v62 = vld [vmem:[%s13895_s29 + $0xa1] sm:$0xff]  ;;  %v14423_v55 = vld [vmem:[%s13895_s29 + $0x232] sm:$0xff] }
  0x98   : > { %12530 = vmatprep.mubr.msk.bf16.mxu0 %vm255_vm0, %v14204_v8  ;;  %v13761_v8 = vld [vmem:[%s16158_s1 + $0x70] sm:$0xff]  }
  0x9e   : > { %12035 = vmatmul.mubr.msk.bf16.vlgmr.msra.gmra.mrb[0].mxu1 %vm255_vm0, %v13921_v20  ;;  %v14396_v20 = vld [vmem:[%s13895_s29 + $0x1f2] sm:$0xff] }
  0x9f   : > { %12531 = vmatmul.mubr.msk.bf16.gmra.mrb[16].mxu0 %vm255_vm0, %v14237_v38  ;;  %12067 = vmatpush3.bf16.msra.mxu1 %v14229_v34  ;;  %v14399_v38 = vld [vmem:[%s13895_s29 + $0x202] sm:$0xff]  ;;  %v14402_v34 = vpack.c.bf16 %v13955_v39, %v10047_v62  ;;  %v14417_v39 = vld [vmem:[%s13895_s29 + $0x212] sm:$0xff] }
  0xa0   : > { %12038 = vmatprep.mubr.msk.bf16.mxu1 %vm255_vm0, %v13931_v27  ;;  %12534 = vmatprep.mubr.msk.bf16.mxu0 %vm255_vm0, %v14241_v40  ;;  %v5563_v27 = vpack.c.bf16 %v14399_v38, %v14396_v20  ;;  %v13763_v40 = vld [vmem:[%s16158_s1 + $0x78] sm:$0xff]  }
  0xa1   : > { %12068 = vmatprep.subr.bf16.mxu1 %v13759_v46 }
  0xa3   : > { %12069 = vmatpush3.bf16.msra.mxu1 %v13759_v46  ;;  %v14426_v46 = vld [vmem:[%s13895_s29 + $0x242] sm:$0xff] }
  0xa4   : > { %12070 = vmatprep.subr.bf16.mxu1 %v13761_v8  ;;  %v5565_v62 = vpack.c.bf16 %v14426_v46, %v14423_v55 }
  0xa6   : > { %12039 = vmatmul.mubr.msk.bf16.gmra.mrb[4].mxu1 %vm255_vm0, %v13933_v29  ;;  %v13765_v29 = vld [vmem:[%s16158_s1 + $0x80] sm:$0xff]  }
  0xa7   : > { %12535 = vmatmul.mubr.msk.bf16.gmra.mrb[20].mxu0 %vm255_vm0, %v14259_v61  ;;  %12042 = vmatprep.mubr.msk.bf16.mxu1 %vm255_vm0, %v14402_v34  ;;  %v5564_v61 = vpack.c.bf16 %v14420_v59, %v14417_v39 }
  0xa8   : > { %12538 = vmatprep.mubr.msk.bf16.mxu0 %vm255_vm0, %v5563_v27  ;;  %12071 = vmatpush3.bf16.msra.mxu1 %v13761_v8  ;;  %v14442_v8 = vld [vmem:[%s13895_s29 + $0x252] sm:$0xff]  ;;  %v10774_v27 = vld [vmem:[%s13895_s29 + $0x262] sm:$0xff] }
  0xa9   : > { %12072 = vmatprep.subr.bf16.mxu1 %v13763_v40  ;;  %v5566_v59 = vpack.c.bf16 %v10774_v27, %v14442_v8  ;;  %v14664_v27 = vld [vmem:[%s13895_s29 + $0x110] sm:$0xff] }
  0xac   : > { %12073 = vmatpush3.bf16.msra.mxu1 %v13763_v40  ;;  %v16181_v40 = vpack.c.bf16 %v14028_v12, %v14012_v5  ;;  %v16183_v5 = vpack.c.bf16 %v14057_v22, %v14042_v16  ;;  %v10810_v12 = vld [vmem:[%s13895_s29 + $0x1c0] sm:$0xff]  ;;  %v13768_v16 = vld [vmem:[%s16158_s1 + $0x218] sm:$0xff]  }
  0xad   : > { %12106 = vmatprep.subr.bf16.mxu1 %v13765_v29  ;;  %v13770_v22 = vld [vmem:[%s16158_s1 + $0x220] sm:$0xff]  }
  0xae   : > { %12043 = vmatmul.mubr.msk.bf16.gmra.mrb[8].mxu1 %vm255_vm0, %v13984_v54 }
  0xaf   : > { %12539 = vmatmul.mubr.msk.bf16.gmra.mrb[24].mxu0 %vm255_vm0, %v5564_v61  ;;  %12046 = vmatprep.mubr.msk.bf16.mxu1 %vm255_vm0, %v14006_v2  ;;  %v13764_v61 = vld [vmem:[%s16158_s1 + $0x208] sm:$0xff]  }
  0xb0   : > { %12542 = vmatprep.mubr.msk.bf16.mxu0 %vm255_vm0, %v5565_v62  ;;  %v16182_v62 = vpack.c.bf16 %v14036_v14, %v14033_v13  ;;  %v5942_v13 = vpack.c.bf16 %v10810_v12, %v14060_v23  ;;  %v13775_v12 = vld [vmem:[%s16158_s1 + $0xa8] sm:$0xff]  }
  0xb6   : > { %12047 = vmatmul.mubr.msk.bf16.gmra.mrb[12].mxu1 %vm255_vm0, %v14014_v6 }
  0xb7   : > { %12543 = vmatmul.mubr.msk.bf16.gmra.mrb[28].mxu0 %vm255_vm0, %v5566_v59  ;;  %12050 = vmatprep.mubr.msk.bf16.mxu1 %vm255_vm0, %v14295_v56  ;;  %v10063_v56 = vld [vmem:[%s13895_s29 + $0x1e1] sm:$0xff]  ;;  %v1660_v59 = vld [vmem:[%s13895_s29 + $0x52] sm:$0xff] }
  0xb8   : > { %12554 = vmatprep.mubr.msk.bf16.mxu0 %vm255_vm0, %v16181_v40  ;;  %v927_v14 = vpack.c.bf16 %v14153_v11, %v10063_v56  ;;  %v13767_v11 = vld [vmem:[%s16158_s1 + $0x88] sm:$0xff]  }
  0xb9   : > { %v1661_v56 = vld [vmem:[%s13895_s29 + $0x62] sm:$0xff] }
  0xbe   : > { %12051 = vmatmul.mubr.msk.bf16.gmra.mrb[16].mxu1 %vm255_vm0, %v14340_v15  ;;  %v13766_v15 = vld [vmem:[%s16158_s1 + $0x210] sm:$0xff]  }
  0xbf   : > { %12555 = vmatmul.mubr.msk.bf16.vlgmr.msra.gmra.mrb[0].mxu0 %vm255_vm0, %v16182_v62  ;;  %12054 = vmatprep.mubr.msk.bf16.mxu1 %vm255_vm0, %v14346_v53  ;;  %v13769_v53 = vld [vmem:[%s16158_s1 + $0x90] sm:$0xff]  }
  0xc0   : > { %12587 = vmatpush3.bf16.msra.mxu0 %v14336_v57  ;;  %12558 = vmatprep.mubr.msk.bf16.mxu0 %vm255_vm0, %v16183_v5  ;;  %v14523_v57 = vld [vmem:[%s13895_s29 + $0x2] sm:$0xff] }
  0xc1   : > { %12588 = vmatprep.subr.bf16.mxu0 %v13764_v61 }
  0xc4   : > { %12589 = vmatpush3.bf16.msra.mxu0 %v13764_v61 }
  0xc5   : > { %12590 = vmatprep.subr.bf16.mxu0 %v13766_v15 }
  0xc6   : > { %12055 = vmatmul.mubr.msk.bf16.gmra.mrb[20].mxu1 %vm255_vm0, %v14369_v21  ;;  %v10818_v21 = vld [vmem:[%s13895_s29 + $0x260] sm:$0xff] }
  0xc7   : > { %12559 = vmatmul.mubr.msk.bf16.gmra.mrb[4].mxu0 %vm255_vm0, %v5942_v13  ;;  %12058 = vmatprep.mubr.msk.bf16.mxu1 %vm255_vm0, %v927_v14  ;;  %v5946_v23 = vpack.c.bf16 %v10818_v21, %v14135_v63  ;;  %v14515_v63 = vld [vmem:[%s13895_s29 + $0x80] sm:$0xff] }
  0xc8   : > { %12562 = vmatprep.mubr.msk.bf16.mxu0 %vm255_vm0, %v14102_v48  ;;  %12591 = vmatpush3.bf16.msra.mxu0 %v13766_v15  ;;  %v1662_v15 = vld [vmem:[%s13895_s29 + $0x72] sm:$0xff]  ;;  %v10151_v13 = vld [vmem:[%s13895_s29 + $0xa2] sm:$0xff] }
  0xc9   : > { %12592 = vmatprep.subr.bf16.mxu0 %v13768_v16  ;;  %v14696_v21 = vpack.c.bf16 %v1662_v15, %v1661_v56  ;;  %v14831_v56 = vld [vmem:[%s13895_s29 + $0x221] sm:$0xff]  ;;  %v14834_v15 = vld [vmem:[%s13895_s29 + $0x231] sm:$0xff] }
  0xcc   : > { %12593 = vmatpush3.bf16.msra.mxu0 %v13768_v16  ;;  %v14691_v16 = vld [vmem:[%s13895_s29 + $0x21] sm:$0xff] }
  0xcd   : > { %12626 = vmatprep.subr.bf16.mxu0 %v13770_v22 }
  0xce   : > { %12059 = vmatmul.mubr.msk.bf16.gmra.mrb[24].mxu1 %vm255_vm0, %v14107_v50 }
  0xcf   : > { %12563 = vmatmul.mubr.msk.bf16.gmra.mrb[8].mxu0 %vm255_vm0, %v14139_v1  ;;  %12062 = vmatprep.mubr.msk.bf16.mxu1 %vm255_vm0, %v14156_v18 }
  0xd0   : > { %12566 = vmatprep.mubr.msk.bf16.mxu0 %vm255_vm0, %v14158_v19 }
  0xd6   : > { %12063 = vmatmul.mubr.msk.bf16.gmra.mrb[28].mxu1 %vm255_vm0, %v14162_v25 }
  0xd7   : > { %12567 = vmatmul.mubr.msk.bf16.gmra.mrb[12].mxu0 %vm255_vm0, %v5946_v23  ;;  %12074 = vmatprep.mubr.msk.bf16.mxu1 %vm255_vm0, %v14402_v34  ;;  %v1659_v34 = vld [vmem:[%s13895_s29 + $0x42] sm:$0xff] }
  0xd8   : > { %12570 = vmatprep.mubr.msk.bf16.mxu0 %vm255_vm0, %v13927_v24  ;;  %v10826_v24 = vld [vmem:[%s13895_s29 + $0x90] sm:$0xff]  ;;  %v14670_v62 = vpack.c.bf16 %v1660_v59, %v1659_v34  ;;  %v10167_v34 = vld [vmem:[%s13895_s29 + $0x1e2] sm:$0xff] }
  0xd9   : > { %v14803_v59 = vld [vmem:[%s13895_s29 + $0x1f1] sm:$0xff] }
  0xde   : > { %12075 = vmatmul.mubr.msk.bf16.vlgmr.msra.gmra.mrb[0].mxu1 %vm255_vm0, %v13984_v54  ;;  %v5950_v54 = vpack.c.bf16 %v10826_v24, %v14515_v63 }
  0xdf   : > { %12571 = vmatmul.mubr.msk.bf16.gmra.mrb[16].mxu0 %vm255_vm0, %v13935_v30  ;;  %12107 = vmatpush3.bf16.msra.mxu1 %v13765_v29  ;;  %v1305_v30 = vpack.c.bf16 %v14068_v31, %v14523_v57  ;;  %v1307_v31 = vpack.c.bf16 %v14110_v51, %v14094_v43  ;;  %v10834_v43 = vld [vmem:[%s13895_s29 + $0x130] sm:$0xff]  ;;  %v14661_v29 = vld [vmem:[%s13895_s29 + $0x100] sm:$0xff] }
  0xe0   : > { %12078 = vmatprep.mubr.msk.bf16.mxu1 %vm255_vm0, %v14006_v2  ;;  %12574 = vmatprep.mubr.msk.bf16.mxu0 %vm255_vm0, %v13961_v42  ;;  %v13771_v42 = vld [vmem:[%s16158_s1 + $0x98] sm:$0xff]   ;;  %v14543_v2 = vld [vmem:[%s16158_s1 + $0xa0] sm:$0xff]   ;;  %v6335_v5 = vpack.c.bf16 %v14664_v27, %v14661_v29 }
  0xe1   : > { %12108 = vmatprep.subr.bf16.mxu1 %v13767_v11 }
  0xe3   : > { %12109 = vmatpush3.bf16.msra.mxu1 %v13767_v11 }
  0xe4   : > { %12110 = vmatprep.subr.bf16.mxu1 %v13769_v53 }
  0xe6   : > { %12079 = vmatmul.mubr.msk.bf16.gmra.mrb[4].mxu1 %vm255_vm0, %v14014_v6  ;;  %v16184_v6 = vpack.c.bf16 %v14091_v41, %v14071_v32  ;;  %v16185_v32 = vpack.c.bf16 %v14144_v3, %v14113_v52  ;;  %v13774_v41 = vld [vmem:[%s16158_s1 + $0x230] sm:$0xff]   ;;  %v13776_v52 = vld [vmem:[%s16158_s1 + $0x238] sm:$0xff]   ;;  %v1314_v3 = vpack.c.bf16 %v14212_v4, %v14191_v49  ;;  %v14632_v49 = vld [vmem:[%s13895_s29 + $0xc0] sm:$0xff] }
  0xe7   : > { %12575 = vmatmul.mubr.msk.bf16.gmra.mrb[20].mxu0 %vm255_vm0, %v5950_v54  ;;  %12082 = vmatprep.mubr.msk.bf16.mxu1 %vm255_vm0, %v1305_v30  ;;  %v14635_v4 = vld [vmem:[%s13895_s29 + $0xd0] sm:$0xff]  ;;  %v14720_v30 = vld [vmem:[%s13895_s29 + $0x61] sm:$0xff] }
  0xe8   : > { %12578 = vmatprep.mubr.msk.bf16.mxu0 %vm255_vm0, %v13991_v58  ;;  %12111 = vmatpush3.bf16.msra.mxu1 %v13769_v53  ;;  %v14558_v58 = vld [vmem:[%s13895_s29 + $0x120] sm:$0xff]  ;;  %v14717_v54 = vld [vmem:[%s13895_s29 + $0x51] sm:$0xff] }
  0xe9   : > { %12112 = vmatprep.subr.bf16.mxu1 %v13771_v42  ;;  %v14562_v51 = vpack.c.bf16 %v10834_v43, %v14558_v58  ;;  %v14714_v53 = vld [vmem:[%s13895_s29 + $0x41] sm:$0xff] }
  0xec   : > { %12113 = vmatpush3.bf16.msra.mxu1 %v13771_v42  ;;  %v14723_v42 = vld [vmem:[%s13895_s29 + $0x71] sm:$0xff] }
  0xed   : > { %12146 = vmatprep.subr.bf16.mxu1 %v14543_v2 }
  0xee   : > { %12083 = vmatmul.mubr.msk.bf16.gmra.mrb[8].mxu1 %vm255_vm0, %v16184_v6  ;;  %v16189_v6 = vld [vmem:[#allocation6_spill] sm:$0xff] }
  0xef   : > { %12579 = vmatmul.mubr.msk.bf16.gmra.mrb[24].mxu0 %vm255_vm0, %v13993_v60  ;;  %12086 = vmatprep.mubr.msk.bf16.mxu1 %vm255_vm0, %v1307_v31  ;;  %v13772_v60 = vld [vmem:[%s16158_s1 + $0x228] sm:$0xff]   ;;  %v16188_v31 = vld [vmem:[#allocation5_spill] sm:$0xff] }
  0xf0   : > { %12582 = vmatprep.mubr.msk.bf16.mxu0 %vm255_vm0, %v14016_v7  ;;  %v14585_v7 = vld [vmem:[%s13895_s29 + $0x142] sm:$0xff]  ;;  %v1692_v43 = vpack.c.bf16 %v16189_v6, %v16188_v31  ;;  %v10204_v6 = vld [vmem:[%s13895_s29 + $0x150] sm:$0xff] }
  0xf6   : > { %12087 = vmatmul.mubr.msk.bf16.gmra.mrb[12].mxu1 %vm255_vm0, %v16185_v32  ;;  %v16190_v32 = vld [vmem:[#allocation7_spill] sm:$0xff] }
  0xf7   : > { %12583 = vmatmul.mubr.msk.bf16.gmra.mrb[28].mxu0 %vm255_vm0, %v14562_v51  ;;  %12090 = vmatprep.mubr.msk.bf16.mxu1 %vm255_vm0, %v927_v14  ;;  %v13777_v14 = vld [vmem:[%s16158_s1 + $0xb0] sm:$0xff]  }
  0xf8   : > { %12594 = vmatprep.mubr.msk.bf16.mxu0 %vm255_vm0, %v14102_v48  ;;  %v1313_v48 = vpack.c.bf16 %v14188_v44, %v14585_v7  ;;  %v1656_v44 = vld [vmem:[%s13895_s29 + $0x12] sm:$0xff] }
  0xfe   : > { %12091 = vmatmul.mubr.msk.bf16.gmra.mrb[16].mxu1 %vm255_vm0, %v14107_v50  ;;  %v14594_v50 = vpack.c.bf16 %v14309_v35, %v14283_v36  ;;  %v6333_v36 = vpack.c.bf16 %v14635_v4, %v14632_v49  ;;  %v1657_v35 = vld [vmem:[%s13895_s29 + $0x22] sm:$0xff] }
  0xff   : > { %12595 = vmatmul.mubr.msk.bf16.vlgmr.msra.gmra.mrb[0].mxu0 %vm255_vm0, %v14139_v1  ;;  %12094 = vmatprep.mubr.msk.bf16.mxu1 %vm255_vm0, %v14156_v18  ;;  %v14608_v1 = vld [vmem:[%s16158_s1 + $0x240] sm:$0xff]   ;;  %v14614_v18 = vpack.c.bf16 %v14322_v28, %v14312_v47  ;;  %v1687_v47 = vpack.c.bf16 %v1656_v44, %v14523_v57  ;;  %v13779_v57 = vld [vmem:[%s16158_s1 + $0xb8] sm:$0xff]  }
 0x100   : > { %12627 = vmatpush3.bf16.msra.mxu0 %v13770_v22  ;;  %12598 = vmatprep.mubr.msk.bf16.mxu0 %vm255_vm0, %v14158_v19  ;;  %v1315_v19 = vpack.c.bf16 %v14221_v9, %v14215_v10  ;;  %v10878_v28 = vld [vmem:[%s13895_s29 + $0x1c1] sm:$0xff]  ;;  %v14694_v22 = vld [vmem:[%s13895_s29 + $0x31] sm:$0xff] }
 0x101   : > { %12628 = vmatprep.subr.bf16.mxu0 %v13772_v60  ;;  %v16186_v10 = vld [vmem:[#allocation3_spill] sm:$0xff]  ;;  %v14701_v24 = vpack.c.bf16 %v14694_v22, %v14691_v16 }
 0x102   : > { %v1316_v9 = vpack.c.bf16 %v16186_v10, %v14224_v17  ;;  %v14653_v17 = vld [vmem:[%s13895_s29 + $0xe0] sm:$0xff] }
 0x103   : > { %v14768_v10 = vld [vmem:[%s13895_s29 + $0x162] sm:$0xff] }
 0x104   : > { %12629 = vmatpush3.bf16.msra.mxu0 %v13772_v60  ;;  %v1693_v60 = vpack.c.bf16 %v14328_v33, %v16190_v32  ;;  %v14750_v33 = vld [vmem:[%s13895_s29 + $0x81] sm:$0xff] }
 0x105   : > { %12630 = vmatprep.subr.bf16.mxu0 %v13774_v41 }
 0x106   : > { %12095 = vmatmul.mubr.msk.bf16.gmra.mrb[20].mxu1 %vm255_vm0, %v14162_v25  ;;  %v14620_v25 = vpack.c.bf16 %v14357_v45, %v14325_v26  ;;  %v14640_v45 = vpack.c.bf16 %v10878_v28, %v14360_v0  ;;  %v1658_v26 = vld [vmem:[%s13895_s29 + $0x32] sm:$0xff] }
 0x107   : > { %12599 = vmatmul.mubr.msk.bf16.gmra.mrb[4].mxu0 %vm255_vm0, %v5946_v23  ;;  %12098 = vmatprep.mubr.msk.bf16.mxu1 %vm255_vm0, %v1313_v48  ;;  %v14656_v0 = vld [vmem:[%s13895_s29 + $0xf0] sm:$0xff]  ;;  %v14666_v40 = vpack.c.bf16 %v1658_v26, %v1657_v35  ;;  %v16187_v23 = vld [vmem:[#allocation4_spill] sm:$0xff] }
 0x108   : > { %12602 = vmatprep.mubr.msk.bf16.mxu0 %vm255_vm0, %v14594_v50  ;;  %12631 = vmatpush3.bf16.msra.mxu0 %v13774_v41  ;;  %v6334_v61 = vpack.c.bf16 %v14656_v0, %v14653_v17  ;;  %v1691_v11 = vpack.c.bf16 %v16187_v23, %v10151_v13  ;;  %v14740_v41 = vpack.c.bf16 %v14723_v42, %v14720_v30  ;;  %v10894_v48 = vld [vmem:[%s13895_s29 + $0x91] sm:$0xff]  ;;  %v13780_v35 = vld [vmem:[%s16158_s1 + $0x248] sm:$0xff]  }
 0x109   : > { %12632 = vmatprep.subr.bf16.mxu0 %v13776_v52  ;;  %v14759_v28 = vpack.c.bf16 %v10894_v48, %v14750_v33  ;;  %v14796_v26 = vld [vmem:[%s13895_s29 + $0x1b2] sm:$0xff]  ;;  %v14837_v13 = vld [vmem:[%s13895_s29 + $0x241] sm:$0xff] }
 0x10a   : > { %v14854_v31 = vpack.c.bf16 %v14837_v13, %v14834_v15  ;;  %v10205_v48 = vld [vmem:[%s13895_s29 + $0x160] sm:$0xff] }
 0x10c   : > { %12633 = vmatpush3.bf16.msra.mxu0 %v13776_v52  ;;  %v14754_v52 = vld [vmem:[%s13895_s29 + $0x152] sm:$0xff] }
 0x10d   : > { %12666 = vmatprep.subr.bf16.mxu0 %v14608_v1  ;;  %v1695_v44 = vpack.c.bf16 %v14754_v52, %v14585_v7  ;;  %v14779_v7 = vld [vmem:[%s13895_s29 + $0x192] sm:$0xff] }
 0x10e   : > { %12099 = vmatmul.mubr.msk.bf16.gmra.mrb[24].mxu1 %vm255_vm0, %v1314_v3  ;;  %v16191_v3 = vld [vmem:[#allocation8_spill] sm:$0xff] }
 0x10f   : > { %12603 = vmatmul.mubr.msk.bf16.gmra.mrb[8].mxu0 %vm255_vm0, %v14614_v18  ;;  %12102 = vmatprep.mubr.msk.bf16.mxu1 %vm255_vm0, %v1315_v19  ;;  %v1694_v19 = vpack.c.bf16 %v14364_v37, %v16191_v3  ;;  %v14771_v37 = vld [vmem:[%s13895_s29 + $0x172] sm:$0xff] }
 0x110   : > { %12606 = vmatprep.mubr.msk.bf16.mxu0 %vm255_vm0, %v14620_v25  ;;  %v10206_v3 = vld [vmem:[%s13895_s29 + $0x170] sm:$0xff] }
 0x116   : > { %12103 = vmatmul.mubr.msk.bf16.gmra.mrb[28].mxu1 %vm255_vm0, %v1316_v9  ;;  %v14776_v9 = vld [vmem:[%s13895_s29 + $0x182] sm:$0xff] }
 0x117   : > { %12607 = vmatmul.mubr.msk.bf16.gmra.mrb[12].mxu0 %vm255_vm0, %v14640_v45  ;;  %12114 = vmatprep.mubr.msk.bf16.mxu1 %vm255_vm0, %v1687_v47  ;;  %v1696_v47 = vpack.c.bf16 %v14771_v37, %v14768_v10 }
 0x118   : > { %12610 = vmatprep.mubr.msk.bf16.mxu0 %vm255_vm0, %v6333_v36  ;;  %v1697_v36 = vpack.c.bf16 %v14779_v7, %v14776_v9 }
 0x11e   : > { %12115 = vmatmul.mubr.msk.bf16.vlgmr.msra.gmra.mrb[0].mxu1 %vm255_vm0, %v14666_v40 }
 0x11f   : > { %12611 = vmatmul.mubr.msk.bf16.gmra.mrb[16].mxu0 %vm255_vm0, %v6334_v61  ;;  %12147 = vmatpush3.bf16.msra.mxu1 %v14543_v2  ;;  %v14728_v2 = vld [vmem:[%s16158_s1 + $0xc0] sm:$0xff]  }
 0x120   : > { %12118 = vmatprep.mubr.msk.bf16.mxu1 %vm255_vm0, %v14670_v62  ;;  %12614 = vmatprep.mubr.msk.bf16.mxu0 %vm255_vm0, %v6335_v5  ;;  %v14806_v61 = vld [vmem:[%s13895_s29 + $0x201] sm:$0xff]  ;;  %v1699_v5 = vpack.c.bf16 %v14396_v20, %v10167_v34  ;;  %v14828_v20 = vld [vmem:[%s13895_s29 + $0x211] sm:$0xff] }
 0x121   : > { %12148 = vmatprep.subr.bf16.mxu1 %v13775_v12  ;;  %v14848_v23 = vpack.c.bf16 %v14831_v56, %v14828_v20  ;;  %v10212_v34 = vld [vmem:[%s13895_s29 + $0x1f0] sm:$0xff] }
 0x123   : > { %12149 = vmatpush3.bf16.msra.mxu1 %v13775_v12  ;;  %v13784_v12 = vld [vmem:[%s16158_s1 + $0x258] sm:$0xff]  }
 0x124   : > { %12150 = vmatprep.subr.bf16.mxu1 %v13777_v14 }
 0x126   : > { %12119 = vmatmul.mubr.msk.bf16.gmra.mrb[4].mxu1 %vm255_vm0, %v14696_v21 }
 0x127   : > { %12615 = vmatmul.mubr.msk.bf16.gmra.mrb[20].mxu0 %vm255_vm0, %v14562_v51  ;;  %12122 = vmatprep.mubr.msk.bf16.mxu1 %vm255_vm0, %v1691_v11  ;;  %v14734_v51 = vpack.c.bf16 %v14717_v54, %v14714_v53  ;;  %v16192_v11 = vld [vmem:[#allocation9_spill] sm:$0xff] }
 0x128   : > { %12618 = vmatprep.mubr.msk.bf16.mxu0 %vm255_vm0, %v14701_v24  ;;  %12151 = vmatpush3.bf16.msra.mxu1 %v13777_v14  ;;  %v1700_v14 = vpack.c.bf16 %v14417_v39, %v14399_v38  ;;  %v14862_v38 = vld [vmem:[%s13895_s29 + $0x251] sm:$0xff]  ;;  %v10938_v39 = vld [vmem:[%s13895_s29 + $0x261] sm:$0xff] }
 0x129   : > { %12152 = vmatprep.subr.bf16.mxu1 %v13779_v57  ;;  %v14872_v32 = vpack.c.bf16 %v10938_v39, %v14862_v38  ;;  %v14938_v39 = vld [vmem:[%s13895_s29 + $0xf1] sm:$0xff] }
 0x12c   : > { %12153 = vmatpush3.bf16.msra.mxu1 %v13779_v57  ;;  %v1701_v57 = vpack.c.bf16 %v14423_v55, %v16192_v11  ;;  %v10203_v55 = vld [vmem:[%s13895_s29 + $0x140] sm:$0xff]  ;;  %v10214_v11 = vld [vmem:[%s13895_s29 + $0x210] sm:$0xff] }
 0x12d   : > { %12186 = vmatprep.subr.bf16.mxu1 %v14728_v2 }
 0x12e   : > { %12123 = vmatmul.mubr.msk.bf16.gmra.mrb[8].mxu1 %vm255_vm0, %v1692_v43  ;;  %v1702_v43 = vpack.c.bf16 %v14442_v8, %v14426_v46  ;;  %v10207_v46 = vld [vmem:[%s13895_s29 + $0x180] sm:$0xff]  ;;  %v10208_v8 = vld [vmem:[%s13895_s29 + $0x190] sm:$0xff] }
 0x12f   : > { %12619 = vmatmul.mubr.msk.bf16.gmra.mrb[24].mxu0 %vm255_vm0, %v14734_v51  ;;  %12126 = vmatprep.mubr.msk.bf16.mxu1 %vm255_vm0, %v1693_v60  ;;  %v2075_v60 = vpack.c.bf16 %v10204_v6, %v10203_v55  ;;  %v10215_v55 = vld [vmem:[%s13895_s29 + $0x220] sm:$0xff]  ;;  %v10216_v6 = vld [vmem:[%s13895_s29 + $0x230] sm:$0xff] }
 0x130   : > { %12622 = vmatprep.mubr.msk.bf16.mxu0 %vm255_vm0, %v14740_v41 }
 0x136   : > { %12127 = vmatmul.mubr.msk.bf16.gmra.mrb[12].mxu1 %vm255_vm0, %v1694_v19  ;;  %v14884_v19 = vpack.c.bf16 %v10206_v3, %v10205_v48 }
 0x137   : > { %12623 = vmatmul.mubr.msk.bf16.gmra.mrb[28].mxu0 %vm255_vm0, %v14759_v28  ;;  %12130 = vmatprep.mubr.msk.bf16.mxu1 %vm255_vm0, %v1695_v44  ;;  %v14886_v44 = vpack.c.bf16 %v10208_v8, %v10207_v46  ;;  %v14959_v46 = vpack.c.bf16 %v10216_v6, %v10215_v55  ;;  %v14996_v55 = vld [vmem:[%s13895_s29 + $0x30] sm:$0xff]  ;;  %v14999_v6 = vld [vmem:[%s13895_s29 + $0x40] sm:$0xff] }
 0x138   : > { %12634 = vmatprep.mubr.msk.bf16.mxu0 %vm255_vm0, %v14594_v50  ;;  %v14793_v50 = vld [vmem:[%s13895_s29 + $0x1a2] sm:$0xff] }
 0x139   : > { %16193 = vst [vmem:[#allocation3_spill] sm:$0xff] %v14886_v44 }
 0x13e   : > { %12131 = vmatmul.mubr.msk.bf16.gmra.mrb[16].mxu1 %vm255_vm0, %v1696_v47  ;;  %v13783_v47 = vld [vmem:[%s16158_s1 + $0xc8] sm:$0xff]  }
 0x13f   : > { %12635 = vmatmul.mubr.msk.bf16.vlgmr.msra.gmra.mrb[0].mxu0 %vm255_vm0, %v14614_v18  ;;  %12134 = vmatprep.mubr.msk.bf16.mxu1 %vm255_vm0, %v1697_v36  ;;  %v13782_v18 = vld [vmem:[%s16158_s1 + $0x250] sm:$0xff]  }
 0x140   : > { %12667 = vmatpush3.bf16.msra.mxu0 %v14608_v1  ;;  %12638 = vmatprep.mubr.msk.bf16.mxu0 %vm255_vm0, %v14620_v25  ;;  %v1698_v1 = vpack.c.bf16 %v14796_v26, %v14793_v50  ;;  %v14816_v25 = vpack.c.bf16 %v14806_v61, %v14803_v59  ;;  %v10210_v36 = vld [vmem:[%s13895_s29 + $0x1b0] sm:$0xff] }
 0x141   : > { %12668 = vmatprep.subr.bf16.mxu0 %v13780_v35 }
 0x144   : > { %12669 = vmatpush3.bf16.msra.mxu0 %v13780_v35  ;;  %v10211_v35 = vld [vmem:[%s13895_s29 + $0x1e0] sm:$0xff] }
 0x145   : > { %12670 = vmatprep.subr.bf16.mxu0 %v13782_v18 }
 0x146   : > { %12135 = vmatmul.mubr.msk.bf16.gmra.mrb[20].mxu1 %vm255_vm0, %v1698_v1 }
 0x147   : > { %12639 = vmatmul.mubr.msk.bf16.gmra.mrb[4].mxu0 %vm255_vm0, %v14640_v45  ;;  %12138 = vmatprep.mubr.msk.bf16.mxu1 %vm255_vm0, %v1699_v5  ;;  %v14842_v45 = vld [vmem:[%s16158_s1 + $0x260] sm:$0xff]  }
 0x148   : > { %12642 = vmatprep.mubr.msk.bf16.mxu0 %vm255_vm0, %v14816_v25  ;;  %12671 = vmatpush3.bf16.msra.mxu0 %v13782_v18  ;;  %v13785_v18 = vld [vmem:[%s16158_s1 + $0xd0] sm:$0xff]  }
 0x149   : > { %12672 = vmatprep.subr.bf16.mxu0 %v13784_v12 }
 0x14c   : > { %12673 = vmatpush3.bf16.msra.mxu0 %v13784_v12  ;;  %v13787_v12 = vld [vmem:[%s16158_s1 + $0xd8] sm:$0xff]  }
 0x14d   : > { %12706 = vmatprep.subr.bf16.mxu0 %v14842_v45 }
 0x14e   : > { %12139 = vmatmul.mubr.msk.bf16.gmra.mrb[24].mxu1 %vm255_vm0, %v1700_v14  ;;  %v10213_v14 = vld [vmem:[%s13895_s29 + $0x200] sm:$0xff] }
 0x14f   : > { %12643 = vmatmul.mubr.msk.bf16.gmra.mrb[8].mxu0 %vm255_vm0, %v14848_v23  ;;  %12142 = vmatprep.mubr.msk.bf16.mxu1 %vm255_vm0, %v1701_v57  ;;  %v14933_v57 = vld [vmem:[%s13895_s29 + $0xe1] sm:$0xff]  ;;  %v14953_v48 = vpack.c.bf16 %v10214_v11, %v10213_v14 }
 0x150   : > { %12646 = vmatprep.mubr.msk.bf16.mxu0 %vm255_vm0, %v14854_v31  ;;  %v14957_v3 = vpack.c.bf16 %v14938_v39, %v14933_v57 }
 0x156   : > { %12143 = vmatmul.mubr.msk.bf16.gmra.mrb[28].mxu1 %vm255_vm0, %v1702_v43  ;;  %v14943_v43 = vld [vmem:[%s13895_s29 + $0x101] sm:$0xff] }
 0x157   : > { %12647 = vmatmul.mubr.msk.bf16.gmra.mrb[12].mxu0 %vm255_vm0, %v14872_v32  ;;  %12154 = vmatprep.mubr.msk.bf16.mxu1 %vm255_vm0, %v2075_v60  ;;  %v14951_v60 = vld [vmem:[%s16158_s1 + $0xe0] sm:$0xff]  }
 0x158   : > { %12650 = vmatprep.mubr.msk.bf16.mxu0 %vm255_vm0, %v14701_v24  ;;  %v10209_v24 = vld [vmem:[%s13895_s29 + $0x1a0] sm:$0xff] }
 0x159   : > { %v14913_v1 = vpack.c.bf16 %v10210_v36, %v10209_v24  ;;  %v10218_v24 = vld [vmem:[%s13895_s29 + $0x250] sm:$0xff]  ;;  %v14975_v36 = vld [vmem:[%s13895_s29 + $0x121] sm:$0xff] }
 0x15b   : > { %16194 = vst [vmem:[#allocation4_spill] sm:$0xff] %v14913_v1 }
 0x15e   : > { %12155 = vmatmul.mubr.msk.bf16.vlgmr.msra.gmra.mrb[0].mxu1 %vm255_vm0, %v14884_v19 }
 0x15f   : > { %12651 = vmatmul.mubr.msk.bf16.gmra.mrb[16].mxu0 %vm255_vm0, %v14734_v51  ;;  %12187 = vmatpush3.bf16.msra.mxu1 %v14728_v2  ;;  %v14908_v51 = vld [vmem:[%s13895_s29 + $0xc1] sm:$0xff]  ;;  %v14911_v2 = vld [vmem:[%s13895_s29 + $0xd1] sm:$0xff] }
 0x160   : > { %12158 = vmatprep.mubr.msk.bf16.mxu1 %vm255_vm0, %v14886_v44  ;;  %12654 = vmatprep.mubr.msk.bf16.mxu0 %vm255_vm0, %v14740_v41  ;;  %v14915_v41 = vpack.c.bf16 %v10212_v34, %v10211_v35  ;;  %v14919_v5 = vpack.c.bf16 %v14911_v2, %v14908_v51  ;;  %v10954_v35 = vld [vmem:[%s13895_s29 + $0x131] sm:$0xff] }
 0x161   : > { %12188 = vmatprep.subr.bf16.mxu1 %v13783_v47  ;;  %v10219_v34 = vld [vmem:[%s13895_s29 + $0x10] sm:$0xff]  ;;  %v14987_v14 = vpack.c.bf16 %v10954_v35, %v14975_v36  ;;  %v2084_v35 = vpack.c.bf16 %v14999_v6, %v14996_v55 }
 0x162   : > { %v13790_v44 = vld [vmem:[%s16158_s1 + $0x270] sm:$0xff]  }
 0x163   : > { %12189 = vmatpush3.bf16.msra.mxu1 %v13783_v47  ;;  %v10217_v47 = vld [vmem:[%s13895_s29 + $0x240] sm:$0xff] }
 0x164   : > { %12190 = vmatprep.subr.bf16.mxu1 %v13785_v18 }
 0x166   : > { %12159 = vmatmul.mubr.msk.bf16.gmra.mrb[4].mxu1 %vm255_vm0, %v14913_v1  ;;  %v10227_v1 = vld [vmem:[%s13895_s29 + $0xb0] sm:$0xff] }
 0x167   : > { %12655 = vmatmul.mubr.msk.bf16.gmra.mrb[20].mxu0 %vm255_vm0, %v14759_v28  ;;  %12162 = vmatprep.mubr.msk.bf16.mxu1 %vm255_vm0, %v14915_v41  ;;  %v14946_v28 = vld [vmem:[%s13895_s29 + $0x111] sm:$0xff] }
 0x168   : > { %12658 = vmatprep.mubr.msk.bf16.mxu0 %vm255_vm0, %v14919_v5  ;;  %12191 = vmatpush3.bf16.msra.mxu1 %v13785_v18  ;;  %v14963_v8 = vpack.c.bf16 %v14946_v28, %v14943_v43  ;;  %v14982_v18 = vld [vmem:[%s13895_s29 + $0x20] sm:$0xff] }
 0x169   : > { %12192 = vmatprep.subr.bf16.mxu1 %v13787_v12  ;;  %v2083_v11 = vpack.c.bf16 %v14982_v18, %v10219_v34 }
 0x16c   : > { %12193 = vmatpush3.bf16.msra.mxu1 %v13787_v12  ;;  %v14984_v12 = vpack.c.bf16 %v10218_v24, %v10217_v47  ;;  %v15004_v47 = vld [vmem:[%s13895_s29 + $0x50] sm:$0xff]  ;;  %v15007_v24 = vld [vmem:[%s13895_s29 + $0x60] sm:$0xff] }
 0x16d   : > { %12226 = vmatprep.subr.bf16.mxu1 %v14951_v60  ;;  %v2085_v34 = vpack.c.bf16 %v15007_v24, %v15004_v47 }
 0x16e   : > { %12163 = vmatmul.mubr.msk.bf16.gmra.mrb[8].mxu1 %vm255_vm0, %v14953_v48 }
 0x16f   : > { %12659 = vmatmul.mubr.msk.bf16.gmra.mrb[24].mxu0 %vm255_vm0, %v14957_v3  ;;  %12166 = vmatprep.mubr.msk.bf16.mxu1 %vm255_vm0, %v14959_v46 }
 0x170   : > { %12662 = vmatprep.mubr.msk.bf16.mxu0 %vm255_vm0, %v14963_v8 }
 0x176   : > { %12167 = vmatmul.mubr.msk.bf16.gmra.mrb[12].mxu1 %vm255_vm0, %v14984_v12 }
 0x177   : > { %12663 = vmatmul.mubr.msk.bf16.gmra.mrb[28].mxu0 %vm255_vm0, %v14987_v14  ;;  %12170 = vmatprep.mubr.msk.bf16.mxu1 %vm255_vm0, %v2083_v11  ;;  %v13788_v11 = vld [vmem:[%s16158_s1 + $0x268] sm:$0xff]  }
 0x178   : > { %12674 = vmatprep.mubr.msk.bf16.mxu0 %vm255_vm0, %v14816_v25  ;;  %v15021_v25 = vld [vmem:[%s13895_s29 + $0x70] sm:$0xff] }
 0x17e   : > { %12171 = vmatmul.mubr.msk.bf16.gmra.mrb[16].mxu1 %vm255_vm0, %v2084_v35  ;;  %v2086_v35 = vpack.c.bf16 %v14515_v63, %v15021_v25  ;;  %v15052_v63 = vld [vmem:[%s16158_s1 + $0x280] sm:$0xff]  }
 0x17f   : > { %12675 = vmatmul.mubr.msk.bf16.vlgmr.msra.gmra.mrb[0].mxu0 %vm255_vm0, %v14848_v23  ;;  %12174 = vmatprep.mubr.msk.bf16.mxu1 %vm255_vm0, %v2085_v34  ;;  %v15033_v23 = vpack.c.bf16 %v14632_v49, %v10227_v1  ;;  %v15037_v34 = vpack.c.bf16 %v14768_v10, %v14754_v52  ;;  %v2088_v49 = vpack.c.bf16 %v14653_v17, %v14635_v4  ;;  %v10998_v4 = vld [vmem:[%s13895_s29 + $0x1c2] sm:$0xff]  ;;  %v10276_v1 = vld [vmem:[%s13895_s29 + $0x191] sm:$0xff] }
 0x180   : > { %12707 = vmatpush3.bf16.msra.mxu0 %v14842_v45  ;;  %12678 = vmatprep.mubr.msk.bf16.mxu0 %vm255_vm0, %v14854_v31  ;;  %v13792_v45 = vld [vmem:[%s16158_s1 + $0x278] sm:$0xff]   ;;  %v7102_v52 = vpack.c.bf16 %v14776_v9, %v14771_v37  ;;  %v2089_v10 = vpack.c.bf16 %v14661_v29, %v14656_v0  ;;  %v15062_v31 = vpack.c.bf16 %v14793_v50, %v14779_v7  ;;  %v13791_v29 = vld [vmem:[%s16158_s1 + $0xe8] sm:$0xff]   ;;  %v13793_v9 = vld [vmem:[%s16158_s1 + $0xf0] sm:$0xff]  }
 0x181   : > { %12708 = vmatprep.subr.bf16.mxu0 %v13788_v11  ;;  %v2090_v17 = vpack.c.bf16 %v14558_v58, %v14664_v27  ;;  %v15074_v0 = vpack.c.bf16 %v10998_v4, %v14796_v26  ;;  %v10271_v58 = vld [vmem:[%s13895_s29 + $0x141] sm:$0xff]  ;;  %v10272_v37 = vld [vmem:[%s13895_s29 + $0x151] sm:$0xff] }
 0x182   : > { %v15100_v7 = vpack.c.bf16 %v10272_v37, %v10271_v58  ;;  %v13795_v50 = vld [vmem:[%s16158_s1 + $0xf8] sm:$0xff]   ;;  %v10273_v26 = vld [vmem:[%s13895_s29 + $0x161] sm:$0xff] }
 0x183   : > { %v13796_v4 = vld [vmem:[%s16158_s1 + $0x288] sm:$0xff]   ;;  %v15199_v58 = vld [vmem:[%s13895_s29 + $0x232] sm:$0xff] }
 0x184   : > { %12709 = vmatpush3.bf16.msra.mxu0 %v13788_v11  ;;  %v11014_v11 = vld [vmem:[%s13895_s29 + $0x92] sm:$0xff]  ;;  %v15202_v37 = vld [vmem:[%s13895_s29 + $0x242] sm:$0xff] }
 0x185   : > { %12710 = vmatprep.subr.bf16.mxu0 %v13790_v44 }
 0x186   : > { %12175 = vmatmul.mubr.msk.bf16.gmra.mrb[20].mxu1 %vm255_vm0, %v2086_v35 }
 0x187   : > { %12679 = vmatmul.mubr.msk.bf16.gmra.mrb[4].mxu0 %vm255_vm0, %v14872_v32  ;;  %12178 = vmatprep.mubr.msk.bf16.mxu1 %vm255_vm0, %v15033_v23  ;;  %v10274_v32 = vld [vmem:[%s13895_s29 + $0x171] sm:$0xff] }
 0x188   : > { %12682 = vmatprep.mubr.msk.bf16.mxu0 %vm255_vm0, %v15037_v34  ;;  %12711 = vmatpush3.bf16.msra.mxu0 %v13790_v44  ;;  %v10275_v44 = vld [vmem:[%s13895_s29 + $0x181] sm:$0xff] }
 0x189   : > { %12712 = vmatprep.subr.bf16.mxu0 %v13792_v45 }
 0x18c   : > { %12713 = vmatpush3.bf16.msra.mxu0 %v13792_v45 }
 0x18d   : > { %12746 = vmatprep.subr.bf16.mxu0 %v15052_v63 }
 0x18e   : > { %12179 = vmatmul.mubr.msk.bf16.gmra.mrb[24].mxu1 %vm255_vm0, %v2088_v49 }
 0x18f   : > { %12683 = vmatmul.mubr.msk.bf16.gmra.mrb[8].mxu0 %vm255_vm0, %v7102_v52  ;;  %12182 = vmatprep.mubr.msk.bf16.mxu1 %vm255_vm0, %v2089_v10 }
 0x190   : > { %12686 = vmatprep.mubr.msk.bf16.mxu0 %vm255_vm0, %v15062_v31 }
 0x196   : > { %12183 = vmatmul.mubr.msk.bf16.gmra.mrb[28].mxu1 %vm255_vm0, %v2090_v17  ;;  %v15161_v17 = vld [vmem:[%s13895_s29 + $0x120] sm:$0xff] }
 0x197   : > { %12687 = vmatmul.mubr.msk.bf16.gmra.mrb[12].mxu0 %vm255_vm0, %v15074_v0  ;;  %12194 = vmatprep.mubr.msk.bf16.mxu1 %vm255_vm0, %v14915_v41  ;;  %v15120_v41 = vld [vmem:[%s16158_s1 + $0x100] sm:$0xff]  }
 0x198   : > { %12690 = vmatprep.mubr.msk.bf16.mxu0 %vm255_vm0, %v14919_v5  ;;  %v15122_v5 = vpack.c.bf16 %v10274_v32, %v10273_v26  ;;  %v2475_v26 = vpack.c.bf16 %v14720_v30, %v14717_v54  ;;  %v7489_v32 = vpack.c.bf16 %v15202_v37, %v15199_v58  ;;  %v2476_v54 = vpack.c.bf16 %v14750_v33, %v14723_v42  ;;  %v13801_v42 = vld [vmem:[%s16158_s1 + $0x110] sm:$0xff]   ;;  %v15254_v33 = vld [vmem:[%s13895_s29 + $0xc2] sm:$0xff] }
 0x19e   : > { %12195 = vmatmul.mubr.msk.bf16.vlgmr.msra.gmra.mrb[0].mxu1 %vm255_vm0, %v14953_v48 }
 0x19f   : > { %12691 = vmatmul.mubr.msk.bf16.gmra.mrb[16].mxu0 %vm255_vm0, %v14957_v3  ;;  %12227 = vmatpush3.bf16.msra.mxu1 %v14951_v60  ;;  %v15124_v60 = vpack.c.bf16 %v10276_v1, %v10275_v44  ;;  %v10277_v3 = vld [vmem:[%s13895_s29 + $0x1a1] sm:$0xff]  ;;  %v13803_v1 = vld [vmem:[%s16158_s1 + $0x118] sm:$0xff]  }
 0x1a0   : > { %12198 = vmatprep.mubr.msk.bf16.mxu1 %vm255_vm0, %v14959_v46  ;;  %12694 = vmatprep.mubr.msk.bf16.mxu0 %vm255_vm0, %v14963_v8  ;;  %v10278_v8 = vld [vmem:[%s13895_s29 + $0x1b1] sm:$0xff]  ;;  %v13799_v44 = vld [vmem:[%s16158_s1 + $0x108] sm:$0xff]  }
 0x1a1   : > { %12228 = vmatprep.subr.bf16.mxu1 %v13791_v29  ;;  %v15141_v35 = vpack.c.bf16 %v10278_v8, %v10277_v3  ;;  %v15279_v3 = vld [vmem:[%s13895_s29 + $0x102] sm:$0xff]  ;;  %v15282_v8 = vld [vmem:[%s13895_s29 + $0x112] sm:$0xff] }
 0x1a3   : > { %12229 = vmatpush3.bf16.msra.mxu1 %v13791_v29  ;;  %v15173_v29 = vld [vmem:[%s13895_s29 + $0x202] sm:$0xff] }
 0x1a4   : > { %12230 = vmatprep.subr.bf16.mxu1 %v13793_v9 }
 0x1a6   : > { %12199 = vmatmul.mubr.msk.bf16.gmra.mrb[4].mxu1 %vm255_vm0, %v14984_v12 }
 0x1a7   : > { %12695 = vmatmul.mubr.msk.bf16.gmra.mrb[20].mxu0 %vm255_vm0, %v14987_v14  ;;  %12202 = vmatprep.mubr.msk.bf16.mxu1 %vm255_vm0, %v15100_v7  ;;  %v15138_v14 = vld [vmem:[%s13895_s29 + $0x82] sm:$0xff] }
 0x1a8   : > { %12698 = vmatprep.mubr.msk.bf16.mxu0 %vm255_vm0, %v14666_v40  ;;  %12231 = vmatpush3.bf16.msra.mxu1 %v13793_v9  ;;  %v15144_v45 = vpack.c.bf16 %v11014_v11, %v15138_v14  ;;  %v2474_v9 = vpack.c.bf16 %v14714_v53, %v14694_v22  ;;  %v15223_v22 = vld [vmem:[%s13895_s29 + $0x252] sm:$0xff]  ;;  %v11058_v53 = vld [vmem:[%s13895_s29 + $0x262] sm:$0xff] }
 0x1a9   : > { %12232 = vmatprep.subr.bf16.mxu1 %v13795_v50  ;;  %v7490_v30 = vpack.c.bf16 %v11058_v53, %v15223_v22  ;;  %v15287_v11 = vld [vmem:[%s16158_s1 + $0x120] sm:$0xff]   ;;  %v15347_v53 = vld [vmem:[%s13895_s29 + $0x71] sm:$0xff] }
 0x1ac   : > { %12233 = vmatpush3.bf16.msra.mxu1 %v13795_v50 }
 0x1ad   : > { %12266 = vmatprep.subr.bf16.mxu1 %v15120_v41 }
 0x1ae   : > { %12203 = vmatmul.mubr.msk.bf16.gmra.mrb[8].mxu1 %vm255_vm0, %v15122_v5 }
 0x1af   : > { %12699 = vmatmul.mubr.msk.bf16.gmra.mrb[24].mxu0 %vm255_vm0, %v14670_v62  ;;  %12206 = vmatprep.mubr.msk.bf16.mxu1 %vm255_vm0, %v15124_v60 }
 0x1b0   : > { %12702 = vmatprep.mubr.msk.bf16.mxu0 %vm255_vm0, %v14696_v21 }
 0x1b6   : > { %12207 = vmatmul.mubr.msk.bf16.gmra.mrb[12].mxu1 %vm255_vm0, %v15141_v35 }
 0x1b7   : > { %12703 = vmatmul.mubr.msk.bf16.gmra.mrb[28].mxu0 %vm255_vm0, %v15144_v45  ;;  %12210 = vmatprep.mubr.msk.bf16.mxu1 %vm255_vm0, %v15033_v23  ;;  %v15167_v23 = vld [vmem:[%s13895_s29 + $0x11] sm:$0xff] }
 0x1b8   : > { %12714 = vmatprep.mubr.msk.bf16.mxu0 %vm255_vm0, %v15037_v34  ;;  %v15170_v34 = vld [vmem:[%s13895_s29 + $0x1f2] sm:$0xff] }
 0x1be   : > { %12211 = vmatmul.mubr.msk.bf16.gmra.mrb[16].mxu1 %vm255_vm0, %v2088_v49  ;;  %v13798_v49 = vld [vmem:[%s16158_s1 + $0x290] sm:$0xff]  }
 0x1bf   : > { %12715 = vmatmul.mubr.msk.bf16.vlgmr.msra.gmra.mrb[0].mxu0 %vm255_vm0, %v7102_v52  ;;  %12214 = vmatprep.mubr.msk.bf16.mxu1 %vm255_vm0, %v2089_v10  ;;  %v2473_v52 = vpack.c.bf16 %v14691_v16, %v15167_v23  ;;  %v7487_v10 = vpack.c.bf16 %v15173_v29, %v15170_v34  ;;  %v15196_v16 = vld [vmem:[%s13895_s29 + $0x222] sm:$0xff] }
 0x1c0   : > { %12747 = vmatpush3.bf16.msra.mxu0 %v15052_v63  ;;  %12718 = vmatprep.mubr.msk.bf16.mxu0 %vm255_vm0, %v15062_v31  ;;  %v2472_v63 = vpack.c.bf16 %v15161_v17, %v14664_v27  ;;  %v13800_v31 = vld [vmem:[%s16158_s1 + $0x298] sm:$0xff]  }
 0x1c1   : > { %12748 = vmatprep.subr.bf16.mxu0 %v13796_v4  ;;  %v15193_v27 = vld [vmem:[%s13895_s29 + $0x212] sm:$0xff] }
 0x1c2   : > { %v7488_v50 = vpack.c.bf16 %v15196_v16, %v15193_v27 }
 0x1c4   : > { %12749 = vmatpush3.bf16.msra.mxu0 %v13796_v4 }
 0x1c5   : > { %12750 = vmatprep.subr.bf16.mxu0 %v13798_v49 }
 0x1c6   : > { %12215 = vmatmul.mubr.msk.bf16.gmra.mrb[20].mxu1 %vm255_vm0, %v2472_v63  ;;  %v7497_v63 = vpack.c.bf16 %v15282_v8, %v15279_v3 }
 0x1c7   : > { %12719 = vmatmul.mubr.msk.bf16.gmra.mrb[4].mxu0 %vm255_vm0, %v15074_v0  ;;  %12218 = vmatprep.mubr.msk.bf16.mxu1 %vm255_vm0, %v2473_v52  ;;  %v15207_v0 = vld [vmem:[%s16158_s1 + $0x2a0] sm:$0xff]  }
 0x1c8   : > { %12722 = vmatprep.mubr.msk.bf16.mxu0 %vm255_vm0, %v7487_v10  ;;  %12751 = vmatpush3.bf16.msra.mxu0 %v13798_v49  ;;  %v2853_v49 = vpack.c.bf16 %v14834_v15, %v14831_v56  ;;  %v15307_v56 = vld [vmem:[%s13895_s29 + $0x21] sm:$0xff]  ;;  %v2854_v15 = vpack.c.bf16 %v14862_v38, %v14837_v13  ;;  %v15327_v13 = vld [vmem:[%s13895_s29 + $0x51] sm:$0xff] }
 0x1c9   : > { %12752 = vmatprep.subr.bf16.mxu0 %v13800_v31  ;;  %v2855_v10 = vpack.c.bf16 %v15307_v56, %v15167_v23  ;;  %v15330_v38 = vld [vmem:[%s13895_s29 + $0x61] sm:$0xff] }
 0x1ca   : > { %v2857_v23 = vpack.c.bf16 %v15330_v38, %v15327_v13 }
 0x1cc   : > { %12753 = vmatpush3.bf16.msra.mxu0 %v13800_v31  ;;  %v7871_v31 = vpack.c.bf16 %v14996_v55, %v14982_v18  ;;  %v7872_v55 = vpack.c.bf16 %v15004_v47, %v14999_v6  ;;  %v15355_v6 = vld [vmem:[%s13895_s29 + $0x80] sm:$0xff]  ;;  %v11110_v47 = vld [vmem:[%s13895_s29 + $0x90] sm:$0xff] }
 0x1cd   : > { %12786 = vmatprep.subr.bf16.mxu0 %v15207_v0 }
 0x1ce   : > { %12219 = vmatmul.mubr.msk.bf16.gmra.mrb[24].mxu1 %vm255_vm0, %v2474_v9  ;;  %v15320_v9 = vld [vmem:[%s13895_s29 + $0x31] sm:$0xff] }
 0x1cf   : > { %12723 = vmatmul.mubr.msk.bf16.gmra.mrb[8].mxu0 %vm255_vm0, %v7488_v50  ;;  %12222 = vmatprep.mubr.msk.bf16.mxu1 %vm255_vm0, %v2475_v26  ;;  %v15323_v50 = vld [vmem:[%s13895_s29 + $0x41] sm:$0xff]  ;;  %v7873_v26 = vpack.c.bf16 %v15021_v25, %v15007_v24  ;;  %v15359_v24 = vld [vmem:[%s13895_s29 + $0xb1] sm:$0xff] }
 0x1d0   : > { %12726 = vmatprep.mubr.msk.bf16.mxu0 %vm255_vm0, %v7489_v32  ;;  %v2856_v18 = vpack.c.bf16 %v15323_v50, %v15320_v9  ;;  %v13804_v32 = vld [vmem:[%s16158_s1 + $0x2a8] sm:$0xff]   ;;  %v15362_v25 = vld [vmem:[%s13895_s29 + $0xc0] sm:$0xff] }
 0x1d6   : > { %12223 = vmatmul.mubr.msk.bf16.gmra.mrb[28].mxu1 %vm255_vm0, %v2476_v54  ;;  %v15350_v54 = vld [vmem:[%s13895_s29 + $0x81] sm:$0xff] }
 0x1d7   : > { %12727 = vmatmul.mubr.msk.bf16.gmra.mrb[12].mxu0 %vm255_vm0, %v7490_v30  ;;  %12234 = vmatprep.mubr.msk.bf16.mxu1 %vm255_vm0, %v15100_v7  ;;  %v15365_v30 = vld [vmem:[%s13895_s29 + $0xd0] sm:$0xff] }
 0x1d8   : > { %12730 = vmatprep.mubr.msk.bf16.mxu0 %vm255_vm0, %v14666_v40  ;;  %v15248_v40 = vld [vmem:[%s13895_s29 + $0x1e1] sm:$0xff] }
 0x1d9   : > { %v2851_v7 = vpack.c.bf16 %v14803_v59, %v15248_v40  ;;  %v15273_v59 = vld [vmem:[%s13895_s29 + $0xe2] sm:$0xff] }
 0x1de   : > { %12235 = vmatmul.mubr.msk.bf16.vlgmr.msra.gmra.mrb[0].mxu1 %vm255_vm0, %v15122_v5 }
 0x1df   : > { %12731 = vmatmul.mubr.msk.bf16.gmra.mrb[16].mxu0 %vm255_vm0, %v14670_v62  ;;  %12267 = vmatpush3.bf16.msra.mxu1 %v15120_v41  ;;  %v15257_v62 = vld [vmem:[%s13895_s29 + $0xd2] sm:$0xff] }
 0x1e0   : > { %12238 = vmatprep.mubr.msk.bf16.mxu1 %vm255_vm0, %v15124_v60  ;;  %12734 = vmatprep.mubr.msk.bf16.mxu0 %vm255_vm0, %v14696_v21  ;;  %v7495_v21 = vpack.c.bf16 %v15257_v62, %v15254_v33  ;;  %v15276_v41 = vld [vmem:[%s13895_s29 + $0xf2] sm:$0xff] }
 0x1e1   : > { %12268 = vmatprep.subr.bf16.mxu1 %v13799_v44  ;;  %v7496_v4 = vpack.c.bf16 %v15276_v41, %v15273_v59 }
 0x1e3   : > { %12269 = vmatpush3.bf16.msra.mxu1 %v13799_v44  ;;  %v13806_v44 = vld [vmem:[%s16158_s1 + $0x2b0] sm:$0xff]  }
 0x1e4   : > { %12270 = vmatprep.subr.bf16.mxu1 %v13801_v42 }
 0x1e6   : > { %12239 = vmatmul.mubr.msk.bf16.gmra.mrb[4].mxu1 %vm255_vm0, %v15141_v35 }
 0x1e7   : > { %12735 = vmatmul.mubr.msk.bf16.gmra.mrb[20].mxu0 %vm255_vm0, %v15144_v45  ;;  %12242 = vmatprep.mubr.msk.bf16.mxu1 %vm255_vm0, %v2851_v7  ;;  %v2852_v45 = vpack.c.bf16 %v14828_v20, %v14806_v61  ;;  %v15303_v61 = vld [vmem:[%s13895_s29 + $0x122] sm:$0xff]  ;;  %v11074_v20 = vld [vmem:[%s13895_s29 + $0x132] sm:$0xff]  ;;  %v2859_v7 = vpack.c.bf16 %v14908_v51, %v15359_v24 }
 0x1e8   : > { %12738 = vmatprep.mubr.msk.bf16.mxu0 %vm255_vm0, %v7495_v21  ;;  %12271 = vmatpush3.bf16.msra.mxu1 %v13801_v42  ;;  %v7498_v52 = vpack.c.bf16 %v11074_v20, %v15303_v61  ;;  %v7874_v42 = vpack.c.bf16 %v11110_v47, %v15355_v6  ;;  %v15377_v21 = vpack.c.bf16 %v15365_v30, %v15362_v25  ;;  %v15388_v51 = vld [vmem:[%s13895_s29 + $0xe0] sm:$0xff] }
 0x1e9   : > { %12272 = vmatprep.subr.bf16.mxu1 %v13803_v1  ;;  %v2860_v20 = vpack.c.bf16 %v14933_v57, %v14911_v2  ;;  %v11118_v2 = vld [vmem:[%s13895_s29 + $0x130] sm:$0xff]  ;;  %v15456_v47 = vld [vmem:[%s13895_s29 + $0x1c0] sm:$0xff] }
 0x1ea   : > { %v10384_v57 = vld [vmem:[%s13895_s29 + $0x1f1] sm:$0xff] }
 0x1ec   : > { %12273 = vmatpush3.bf16.msra.mxu1 %v13803_v1  ;;  %v13808_v1 = vld [vmem:[%s16158_s1 + $0x2b8] sm:$0xff]  }
 0x1ed   : > { %12306 = vmatprep.subr.bf16.mxu1 %v15287_v11 }
 0x1ee   : > { %12243 = vmatmul.mubr.msk.bf16.gmra.mrb[8].mxu1 %vm255_vm0, %v2852_v45  ;;  %v15391_v45 = vld [vmem:[%s13895_s29 + $0xf0] sm:$0xff] }
 0x1ef   : > { %12739 = vmatmul.mubr.msk.bf16.gmra.mrb[24].mxu0 %vm255_vm0, %v7496_v4  ;;  %12246 = vmatprep.mubr.msk.bf16.mxu1 %vm255_vm0, %v2853_v49  ;;  %v15394_v4 = vld [vmem:[%s13895_s29 + $0x100] sm:$0xff]  ;;  %v15397_v49 = vld [vmem:[%s13895_s29 + $0x110] sm:$0xff] }
 0x1f0   : > { %12742 = vmatprep.mubr.msk.bf16.mxu0 %vm255_vm0, %v7497_v63  ;;  %v15402_v63 = vld [vmem:[%s16158_s1 + $0x2c0] sm:$0xff]  }
 0x1f6   : > { %12247 = vmatmul.mubr.msk.bf16.gmra.mrb[12].mxu1 %vm255_vm0, %v2854_v15  ;;  %v15408_v15 = vpack.c.bf16 %v15391_v45, %v15388_v51 }
 0x1f7   : > { %12743 = vmatmul.mubr.msk.bf16.gmra.mrb[28].mxu0 %vm255_vm0, %v7498_v52  ;;  %12250 = vmatprep.mubr.msk.bf16.mxu1 %vm255_vm0, %v2855_v10  ;;  %v2861_v52 = vpack.c.bf16 %v14943_v43, %v14938_v39  ;;  %v15414_v10 = vpack.c.bf16 %v15397_v49, %v15394_v4  ;;  %v2862_v39 = vpack.c.bf16 %v14975_v36, %v14946_v28  ;;  %v10387_v28 = vld [vmem:[%s13895_s29 + $0x221] sm:$0xff]  ;;  %v10388_v36 = vld [vmem:[%s13895_s29 + $0x231] sm:$0xff] }
 0x1f8   : > { %12754 = vmatprep.mubr.msk.bf16.mxu0 %vm255_vm0, %v7871_v31  ;;  %v15428_v43 = vpack.c.bf16 %v11118_v2, %v15161_v17  ;;  %v3233_v31 = vpack.c.bf16 %v10384_v57, %v15248_v40  ;;  %v15443_v40 = vpack.c.bf16 %v10388_v36, %v10387_v28  ;;  %v13811_v2 = vld [vmem:[%s16158_s1 + $0x138] sm:$0xff]   ;;  %v10393_v57 = vld [vmem:[%s13895_s29 + $0x162] sm:$0xff] }
 0x1fe   : > { %12251 = vmatmul.mubr.msk.bf16.gmra.mrb[16].mxu1 %vm255_vm0, %v2856_v18  ;;  %v10385_v18 = vld [vmem:[%s13895_s29 + $0x201] sm:$0xff] }
 0x1ff   : > { %12755 = vmatmul.mubr.msk.bf16.vlgmr.msra.gmra.mrb[0].mxu0 %vm255_vm0, %v7872_v55  ;;  %12254 = vmatprep.mubr.msk.bf16.mxu1 %vm255_vm0, %v2857_v23  ;;  %v10386_v55 = vld [vmem:[%s13895_s29 + $0x211] sm:$0xff]  ;;  %v13807_v23 = vld [vmem:[%s16158_s1 + $0x128] sm:$0xff]  }
 0x200   : > { %12787 = vmatpush3.bf16.msra.mxu0 %v15207_v0  ;;  %12758 = vmatprep.mubr.msk.bf16.mxu0 %vm255_vm0, %v7873_v26  ;;  %v2858_v0 = vpack.c.bf16 %v15350_v54, %v15347_v53  ;;  %v15441_v17 = vpack.c.bf16 %v10386_v55, %v10385_v18  ;;  %v10389_v26 = vld [vmem:[%s13895_s29 + $0x241] sm:$0xff]  ;;  %v10396_v18 = vld [vmem:[%s13895_s29 + $0x192] sm:$0xff] }
 0x201   : > { %12788 = vmatprep.subr.bf16.mxu0 %v13804_v32  ;;  %v15490_v55 = vld [vmem:[%s16158_s1 + $0x140] sm:$0xff]  }
 0x204   : > { %12789 = vmatpush3.bf16.msra.mxu0 %v13804_v32  ;;  %v16195_v32 = vld [vmem:[#allocation3_spill] sm:$0xff] }
 0x205   : > { %12790 = vmatprep.subr.bf16.mxu0 %v13806_v44 }
 0x206   : > { %12255 = vmatmul.mubr.msk.bf16.gmra.mrb[20].mxu1 %vm255_vm0, %v2858_v0  ;;  %v16196_v0 = vld [vmem:[#allocation4_spill] sm:$0xff] }
 0x207   : > { %12759 = vmatmul.mubr.msk.bf16.gmra.mrb[4].mxu0 %vm255_vm0, %v7874_v42  ;;  %12258 = vmatprep.mubr.msk.bf16.mxu1 %vm255_vm0, %v2859_v7  ;;  %v10391_v42 = vld [vmem:[%s13895_s29 + $0x142] sm:$0xff]  ;;  %v10392_v7 = vld [vmem:[%s13895_s29 + $0x152] sm:$0xff] }
 0x208   : > { %12762 = vmatprep.mubr.msk.bf16.mxu0 %vm255_vm0, %v15377_v21  ;;  %12791 = vmatpush3.bf16.msra.mxu0 %v13806_v44  ;;  %v11126_v44 = vld [vmem:[%s13895_s29 + $0x1d0] sm:$0xff] }
 0x209   : > { %12792 = vmatprep.subr.bf16.mxu0 %v13808_v1 }
 0x20c   : > { %12793 = vmatpush3.bf16.msra.mxu0 %v13808_v1 }
 0x20d   : > { %12826 = vmatprep.subr.bf16.mxu0 %v15402_v63 }
 0x20e   : > { %12259 = vmatmul.mubr.msk.bf16.gmra.mrb[24].mxu1 %vm255_vm0, %v2860_v20  ;;  %v7882_v20 = vpack.c.bf16 %v11126_v44, %v15456_v47 }
 0x20f   : > { %12763 = vmatmul.mubr.msk.bf16.gmra.mrb[8].mxu0 %vm255_vm0, %v15408_v15  ;;  %12262 = vmatprep.mubr.msk.bf16.mxu1 %vm255_vm0, %v2861_v52  ;;  %v15471_v52 = vpack.c.bf16 %v10392_v7, %v10391_v42  ;;  %v15530_v42 = vld [vmem:[%s13895_s29 + $0xe1] sm:$0xff]  ;;  %v15535_v7 = vld [vmem:[%s13895_s29 + $0xf1] sm:$0xff] }
 0x210   : > { %12766 = vmatprep.mubr.msk.bf16.mxu0 %vm255_vm0, %v15414_v10 }
 0x216   : > { %12263 = vmatmul.mubr.msk.bf16.gmra.mrb[28].mxu1 %vm255_vm0, %v2862_v39  ;;  %v10394_v39 = vld [vmem:[%s13895_s29 + $0x172] sm:$0xff] }
 0x217   : > { %12767 = vmatmul.mubr.msk.bf16.gmra.mrb[12].mxu0 %vm255_vm0, %v15428_v43  ;;  %12274 = vmatprep.mubr.msk.bf16.mxu1 %vm255_vm0, %v3233_v31  ;;  %v10395_v31 = vld [vmem:[%s13895_s29 + $0x182] sm:$0xff]  ;;  %v15492_v28 = vpack.c.bf16 %v10394_v39, %v10393_v57  ;;  %v10407_v39 = vld [vmem:[%s13895_s29 + $0x12] sm:$0xff] }
 0x218   : > { %12770 = vmatprep.mubr.msk.bf16.mxu0 %vm255_vm0, %v14884_v19  ;;  %v10390_v19 = vld [vmem:[%s13895_s29 + $0x251] sm:$0xff]  ;;  %v15494_v36 = vpack.c.bf16 %v10396_v18, %v10395_v31  ;;  %v15555_v57 = vld [vmem:[%s13895_s29 + $0x121] sm:$0xff] }
 0x219   : > { %v15468_v1 = vpack.c.bf16 %v10390_v19, %v10389_v26  ;;  %v15508_v26 = vld [vmem:[%s13895_s29 + $0x260] sm:$0xff] }
 0x21a   : > { %16197 = vst [vmem:[#allocation5_spill] sm:$0xff] %v15508_v26  ;;  %v15512_v19 = vld [vmem:[%s13895_s29 + $0xc1] sm:$0xff] }
 0x21b   : > { %v15562_v31 = vld [vmem:[%s13895_s29 + $0x22] sm:$0xff] }
 0x21e   : > { %12275 = vmatmul.mubr.msk.bf16.vlgmr.msra.gmra.mrb[0].mxu1 %vm255_vm0, %v15441_v17 }
 0x21f   : > { %12771 = vmatmul.mubr.msk.bf16.gmra.mrb[16].mxu0 %vm255_vm0, %v16195_v32  ;;  %12307 = vmatpush3.bf16.msra.mxu1 %v15287_v11  ;;  %v13809_v11 = vld [vmem:[%s16158_s1 + $0x130] sm:$0xff]  }
 0x220   : > { %12278 = vmatprep.mubr.msk.bf16.mxu1 %vm255_vm0, %v15443_v40  ;;  %12774 = vmatprep.mubr.msk.bf16.mxu0 %vm255_vm0, %v16196_v0  ;;  %v11134_v32 = vld [vmem:[%s13895_s29 + $0x270] sm:$0xff] }
 0x221   : > { %12308 = vmatprep.subr.bf16.mxu1 %v13807_v23  ;;  %v15517_v0 = vpack.c.bf16 %v11134_v32, %v15508_v26  ;;  %v15588_v32 = vld [vmem:[%s13895_s29 + $0x42] sm:$0xff] }
 0x223   : > { %12309 = vmatpush3.bf16.msra.mxu1 %v13807_v23  ;;  %v10398_v23 = vld [vmem:[%s13895_s29 + $0x1b2] sm:$0xff] }
 0x224   : > { %12310 = vmatprep.subr.bf16.mxu1 %v13809_v11 }
 0x226   : > { %12279 = vmatmul.mubr.msk.bf16.gmra.mrb[4].mxu1 %vm255_vm0, %v15468_v1 }
 0x227   : > { %12775 = vmatmul.mubr.msk.bf16.gmra.mrb[20].mxu0 %vm255_vm0, %v7882_v20  ;;  %12282 = vmatprep.mubr.msk.bf16.mxu1 %vm255_vm0, %v15471_v52 }
 0x228   : > { %12778 = vmatprep.mubr.msk.bf16.mxu0 %vm255_vm0, %v14953_v48  ;;  %12311 = vmatpush3.bf16.msra.mxu1 %v13809_v11  ;;  %v10397_v48 = vld [vmem:[%s13895_s29 + $0x1a2] sm:$0xff] }
 0x229   : > { %12312 = vmatprep.subr.bf16.mxu1 %v13811_v2  ;;  %v15514_v44 = vpack.c.bf16 %v10398_v23, %v10397_v48  ;;  %v15570_v48 = vpack.c.bf16 %v15562_v31, %v10407_v39  ;;  %v15585_v23 = vld [vmem:[%s13895_s29 + $0x32] sm:$0xff] }
 0x22c   : > { %12313 = vmatpush3.bf16.msra.mxu1 %v13811_v2  ;;  %v13812_v2 = vld [vmem:[%s16158_s1 + $0x2c8] sm:$0xff]  }
 0x22d   : > { %12346 = vmatprep.subr.bf16.mxu1 %v15490_v55 }
 0x22e   : > { %12283 = vmatmul.mubr.msk.bf16.gmra.mrb[8].mxu1 %vm255_vm0, %v15492_v28 }
 0x22f   : > { %12779 = vmatmul.mubr.msk.bf16.gmra.mrb[24].mxu0 %vm255_vm0, %v14959_v46  ;;  %12286 = vmatprep.mubr.msk.bf16.mxu1 %vm255_vm0, %v15494_v36  ;;  %v3241_v46 = vpack.c.bf16 %v15512_v19, %v15359_v24  ;;  %v15538_v24 = vld [vmem:[%s13895_s29 + $0x101] sm:$0xff] }
 0x230   : > { %12782 = vmatprep.mubr.msk.bf16.mxu0 %vm255_vm0, %v14984_v12  ;;  %v15527_v12 = vld [vmem:[%s13895_s29 + $0xd1] sm:$0xff]  ;;  %v3243_v20 = vpack.c.bf16 %v15538_v24, %v15535_v7 }
 0x231   : > { %v3242_v11 = vpack.c.bf16 %v15530_v42, %v15527_v12 }
 0x236   : > { %12287 = vmatmul.mubr.msk.bf16.gmra.mrb[12].mxu1 %vm255_vm0, %v15514_v44 }
 0x237   : > { %12783 = vmatmul.mubr.msk.bf16.gmra.mrb[28].mxu0 %vm255_vm0, %v15517_v0  ;;  %12290 = vmatprep.mubr.msk.bf16.mxu1 %vm255_vm0, %v3241_v46  ;;  %v15605_v46 = vpack.c.bf16 %v15588_v32, %v15585_v23 }
 0x238   : > { %12794 = vmatprep.mubr.msk.bf16.mxu0 %vm255_vm0, %v15377_v21  ;;  %v15552_v21 = vld [vmem:[%s13895_s29 + $0x111] sm:$0xff] }
 0x239   : > { %v3244_v18 = vpack.c.bf16 %v15555_v57, %v15552_v21 }
 0x23e   : > { %12291 = vmatmul.mubr.msk.bf16.gmra.mrb[16].mxu1 %vm255_vm0, %v3242_v11  ;;  %v15609_v11 = vpack.c.bf16 %v15327_v13, %v15323_v50  ;;  %v15627_v50 = vld [vmem:[%s13895_s29 + $0x72] sm:$0xff] }
 0x23f   : > { %12795 = vmatmul.mubr.msk.bf16.vlgmr.msra.gmra.mrb[0].mxu0 %vm255_vm0, %v15408_v15  ;;  %12294 = vmatprep.mubr.msk.bf16.mxu1 %vm255_vm0, %v3243_v20  ;;  %v13814_v15 = vld [vmem:[%s16158_s1 + $0x2d0] sm:$0xff]   ;;  %v3248_v39 = vpack.c.bf16 %v15138_v14, %v15627_v50 }
 0x240   : > { %12827 = vmatpush3.bf16.msra.mxu0 %v15402_v63  ;;  %12798 = vmatprep.mubr.msk.bf16.mxu0 %vm255_vm0, %v15414_v10  ;;  %v15574_v63 = vpack.c.bf16 %v15320_v9, %v15307_v56  ;;  %v13816_v10 = vld [vmem:[%s16158_s1 + $0x2d8] sm:$0xff]   ;;  %v15596_v9 = vld [vmem:[%s13895_s29 + $0x62] sm:$0xff]  ;;  %v15655_v14 = vld [vmem:[%s13895_s29 + $0x230] sm:$0xff] }
 0x241   : > { %12828 = vmatprep.subr.bf16.mxu0 %v13812_v2  ;;  %v15593_v56 = vld [vmem:[%s13895_s29 + $0x52] sm:$0xff]  ;;  %16198 = vst [vmem:[#allocation6_spill] sm:$0xff] %v15596_v9 }
 0x242   : > { %v15613_v20 = vpack.c.bf16 %v15596_v9, %v15593_v56  ;;  %v11178_v13 = vld [vmem:[%s13895_s29 + $0x91] sm:$0xff] }
 0x244   : > { %12829 = vmatpush3.bf16.msra.mxu0 %v13812_v2  ;;  %v15617_v2 = vpack.c.bf16 %v15347_v53, %v15330_v38  ;;  %v15633_v38 = vld [vmem:[%s13895_s29 + $0x200] sm:$0xff]  ;;  %v15636_v53 = vld [vmem:[%s13895_s29 + $0x210] sm:$0xff] }
 0x245   : > { %12830 = vmatprep.subr.bf16.mxu0 %v13814_v15 }
 0x246   : > { %12295 = vmatmul.mubr.msk.bf16.gmra.mrb[20].mxu1 %vm255_vm0, %v3244_v18  ;;  %v8265_v18 = vpack.c.bf16 %v15636_v53, %v15633_v38 }
 0x247   : > { %12799 = vmatmul.mubr.msk.bf16.gmra.mrb[4].mxu0 %vm255_vm0, %v15428_v43  ;;  %12298 = vmatprep.mubr.msk.bf16.mxu1 %vm255_vm0, %v15570_v48  ;;  %v15601_v43 = vld [vmem:[%s16158_s1 + $0x2e0] sm:$0xff]  }
 0x248   : > { %12802 = vmatprep.mubr.msk.bf16.mxu0 %vm255_vm0, %v15574_v63  ;;  %12831 = vmatpush3.bf16.msra.mxu0 %v13814_v15  ;;  %v15641_v15 = vpack.c.bf16 %v11178_v13, %v15350_v54  ;;  %v15658_v54 = vld [vmem:[%s13895_s29 + $0x240] sm:$0xff]  ;;  %v15661_v13 = vld [vmem:[%s13895_s29 + $0x250] sm:$0xff] }
 0x249   : > { %12832 = vmatprep.subr.bf16.mxu0 %v13816_v10  ;;  %16199 = vst [vmem:[#allocation7_spill] sm:$0xff] %v15661_v13  ;;  %v8267_v26 = vpack.c.bf16 %v15661_v13, %v15658_v54  ;;  %v13817_v13 = vld [vmem:[%s16158_s1 + $0x150] sm:$0xff]  }
 0x24c   : > { %12833 = vmatpush3.bf16.msra.mxu0 %v13816_v10  ;;  %v15652_v10 = vld [vmem:[%s13895_s29 + $0x220] sm:$0xff] }
 0x24d   : > { %12866 = vmatprep.subr.bf16.mxu0 %v15601_v43 }
 0x24e   : > { %12299 = vmatmul.mubr.msk.bf16.gmra.mrb[24].mxu1 %vm255_vm0, %v15605_v46 }
 0x24f   : > { %12803 = vmatmul.mubr.msk.bf16.gmra.mrb[8].mxu0 %vm255_vm0, %v15609_v11  ;;  %12302 = vmatprep.mubr.msk.bf16.mxu1 %vm255_vm0, %v15613_v20 }
 0x250   : > { %12806 = vmatprep.mubr.msk.bf16.mxu0 %vm255_vm0, %v15617_v2 }
 0x256   : > { %12303 = vmatmul.mubr.msk.bf16.gmra.mrb[28].mxu1 %vm255_vm0, %v3248_v39  ;;  %v8266_v39 = vpack.c.bf16 %v15655_v14, %v15652_v10 }
 0x257   : > { %12807 = vmatmul.mubr.msk.bf16.gmra.mrb[12].mxu0 %vm255_vm0, %v15641_v15  ;;  %12314 = vmatprep.mubr.msk.bf16.mxu1 %vm255_vm0, %v15471_v52  ;;  %v13815_v52 = vld [vmem:[%s16158_s1 + $0x148] sm:$0xff]  }
 0x258   : > { %12810 = vmatprep.mubr.msk.bf16.mxu0 %vm255_vm0, %v8265_v18  ;;  %v10451_v18 = vld [vmem:[%s13895_s29 + $0x1e2] sm:$0xff] }
 0x259   : > { %v3623_v9 = vpack.c.bf16 %v15170_v34, %v10451_v18  ;;  %v15695_v34 = vld [vmem:[%s16158_s1 + $0x160] sm:$0xff]  }
 0x25e   : > { %12315 = vmatmul.mubr.msk.bf16.vlgmr.msra.gmra.mrb[0].mxu1 %vm255_vm0, %v15492_v28 }
 0x25f   : > { %12811 = vmatmul.mubr.msk.bf16.gmra.mrb[16].mxu0 %vm255_vm0, %v8266_v39  ;;  %12347 = vmatpush3.bf16.msra.mxu1 %v15490_v55  ;;  %v13819_v39 = vld [vmem:[%s16158_s1 + $0x158] sm:$0xff]   ;;  %v3624_v55 = vpack.c.bf16 %v15193_v27, %v15173_v29  ;;  %v3626_v27 = vpack.c.bf16 %v15223_v22, %v15202_v37  ;;  %v13822_v37 = vld [vmem:[%s16158_s1 + $0x2f0] sm:$0xff]  }
 0x260   : > { %12318 = vmatprep.mubr.msk.bf16.mxu1 %vm255_vm0, %v15494_v36  ;;  %12814 = vmatprep.mubr.msk.bf16.mxu0 %vm255_vm0, %v8267_v26  ;;  %v3625_v26 = vpack.c.bf16 %v15199_v58, %v15196_v16  ;;  %v11194_v29 = vld [vmem:[%s13895_s29 + $0x1d1] sm:$0xff] }
 0x261   : > { %12348 = vmatprep.subr.bf16.mxu1 %v13815_v52  ;;  %v10467_v58 = vld [vmem:[%s13895_s29 + $0xb2] sm:$0xff] }
 0x263   : > { %12349 = vmatpush3.bf16.msra.mxu1 %v13815_v52 }
 0x264   : > { %12350 = vmatprep.subr.bf16.mxu1 %v13817_v13 }
 0x266   : > { %12319 = vmatmul.mubr.msk.bf16.gmra.mrb[4].mxu1 %vm255_vm0, %v15514_v44 }
 0x267   : > { %12815 = vmatmul.mubr.msk.bf16.gmra.mrb[20].mxu0 %vm255_vm0, %v15517_v0  ;;  %12322 = vmatprep.mubr.msk.bf16.mxu1 %vm255_vm0, %v3623_v9  ;;  %v3631_v0 = vpack.c.bf16 %v15254_v33, %v10467_v58  ;;  %v15762_v33 = vld [vmem:[%s16158_s1 + $0x300] sm:$0xff]   ;;  %v3633_v9 = vpack.c.bf16 %v15279_v3, %v15276_v41 }
 0x268   : > { %12818 = vmatprep.mubr.msk.bf16.mxu0 %vm255_vm0, %v15122_v5  ;;  %12351 = vmatpush3.bf16.msra.mxu1 %v13817_v13  ;;  %v15709_v5 = vld [vmem:[%s13895_s29 + $0x1c1] sm:$0xff]  ;;  %v15818_v13 = vld [vmem:[%s13895_s29 + $0x1b1] sm:$0xff] }
 0x269   : > { %12352 = vmatprep.subr.bf16.mxu1 %v13819_v39  ;;  %v15715_v16 = vpack.c.bf16 %v11194_v29, %v15709_v5  ;;  %v10504_v41 = vld [vmem:[%s13895_s29 + $0x20] sm:$0xff]  ;;  %v10509_v29 = vld [vmem:[%s13895_s29 + $0x70] sm:$0xff] }
 0x26a   : > { %v15787_v3 = vld [vmem:[%s13895_s29 + $0x161] sm:$0xff]  ;;  %v4010_v58 = vpack.c.bf16 %v15355_v6, %v10509_v29  ;;  %v4012_v6 = vpack.c.bf16 %v15388_v51, %v15365_v30 }
 0x26b   : > { %v15866_v30 = vld [vmem:[%s13895_s29 + $0x120] sm:$0xff]  ;;  %v13832_v29 = vld [vmem:[%s16158_s1 + $0x188] sm:$0xff]  }
 0x26c   : > { %12353 = vmatpush3.bf16.msra.mxu1 %v13819_v39  ;;  %v15869_v51 = vld [vmem:[%s13895_s29 + $0x261] sm:$0xff] }
 0x26d   : > { %12386 = vmatprep.subr.bf16.mxu1 %v15695_v34 }
 0x26e   : > { %12323 = vmatmul.mubr.msk.bf16.gmra.mrb[8].mxu1 %vm255_vm0, %v3624_v55 }
 0x26f   : > { %12819 = vmatmul.mubr.msk.bf16.gmra.mrb[24].mxu0 %vm255_vm0, %v15124_v60  ;;  %12326 = vmatprep.mubr.msk.bf16.mxu1 %vm255_vm0, %v3625_v26  ;;  %v13820_v60 = vld [vmem:[%s16158_s1 + $0x2e8] sm:$0xff]  }
 0x270   : > { %12822 = vmatprep.mubr.msk.bf16.mxu0 %vm255_vm0, %v15141_v35  ;;  %v15734_v35 = vld [vmem:[%s13895_s29 + $0x82] sm:$0xff] }
 0x271   : > { %v3630_v22 = vpack.c.bf16 %v15734_v35, %v15627_v50  ;;  %v13823_v26 = vld [vmem:[%s16158_s1 + $0x168] sm:$0xff]  }
 0x276   : > { %12327 = vmatmul.mubr.msk.bf16.gmra.mrb[12].mxu1 %vm255_vm0, %v3626_v27  ;;  %v15834_v27 = vld [vmem:[%s13895_s29 + $0xb0] sm:$0xff] }
 0x277   : > { %12823 = vmatmul.mubr.msk.bf16.gmra.mrb[28].mxu0 %vm255_vm0, %v15715_v16  ;;  %12330 = vmatprep.mubr.msk.bf16.mxu1 %vm255_vm0, %v15570_v48  ;;  %v15748_v48 = vpack.c.bf16 %v15527_v12, %v15512_v19  ;;  %v3632_v19 = vpack.c.bf16 %v15273_v59, %v15257_v62  ;;  %v15768_v12 = vpack.c.bf16 %v15535_v7, %v15530_v42  ;;  %v11238_v62 = vld [vmem:[%s13895_s29 + $0x131] sm:$0xff] }
 0x278   : > { %12834 = vmatprep.mubr.msk.bf16.mxu0 %vm255_vm0, %v15574_v63  ;;  %v13824_v63 = vld [vmem:[%s16158_s1 + $0x2f8] sm:$0xff]   ;;  %v10503_v59 = vld [vmem:[%s13895_s29 + $0x10] sm:$0xff]  ;;  %v3634_v7 = vpack.c.bf16 %v15303_v61, %v15282_v8  ;;  %v15807_v8 = vld [vmem:[%s13895_s29 + $0x181] sm:$0xff] }
 0x279   : > { %v15790_v42 = vld [vmem:[%s13895_s29 + $0x171] sm:$0xff] }
 0x27a   : > { %v15810_v61 = vld [vmem:[%s13895_s29 + $0x191] sm:$0xff] }
 0x27b   : > { %v8652_v18 = vpack.c.bf16 %v15810_v61, %v15807_v8 }
 0x27e   : > { %12331 = vmatmul.mubr.msk.bf16.gmra.mrb[16].mxu1 %vm255_vm0, %v15605_v46  ;;  %v8651_v46 = vpack.c.bf16 %v15790_v42, %v15787_v3 }
 0x27f   : > { %12835 = vmatmul.mubr.msk.bf16.vlgmr.msra.gmra.mrb[0].mxu0 %vm255_vm0, %v15609_v11  ;;  %12334 = vmatprep.mubr.msk.bf16.mxu1 %vm255_vm0, %v15613_v20  ;;  %v10505_v11 = vld [vmem:[%s13895_s29 + $0x30] sm:$0xff]  ;;  %v10506_v20 = vld [vmem:[%s13895_s29 + $0x40] sm:$0xff] }
 0x280   : > { %12867 = vmatpush3.bf16.msra.mxu0 %v15601_v43  ;;  %12838 = vmatprep.mubr.msk.bf16.mxu0 %vm255_vm0, %v15617_v2  ;;  %v15774_v43 = vpack.c.bf16 %v15552_v21, %v15538_v24  ;;  %v15795_v24 = vpack.c.bf16 %v11238_v62, %v15555_v57  ;;  %v4007_v21 = vpack.c.bf16 %v10504_v41, %v10503_v59  ;;  %v10507_v57 = vld [vmem:[%s13895_s29 + $0x50] sm:$0xff]  ;;  %v10508_v2 = vld [vmem:[%s13895_s29 + $0x60] sm:$0xff] }
 0x281   : > { %12868 = vmatprep.subr.bf16.mxu0 %v13820_v60  ;;  %v4008_v52 = vpack.c.bf16 %v10506_v20, %v10505_v11  ;;  %v4009_v39 = vpack.c.bf16 %v10508_v2, %v10507_v57  ;;  %v10522_v62 = vld [vmem:[%s13895_s29 + $0x180] sm:$0xff]  ;;  %v10523_v59 = vld [vmem:[%s13895_s29 + $0x190] sm:$0xff] }
 0x282   : > { %v13829_v11 = vld [vmem:[%s16158_s1 + $0x310] sm:$0xff]   ;;  %v10566_v2 = vld [vmem:[%s13895_s29 + $0xe0] sm:$0xff] }
 0x284   : > { %12869 = vmatpush3.bf16.msra.mxu0 %v13820_v60  ;;  %v13825_v60 = vld [vmem:[%s16158_s1 + $0x170] sm:$0xff]  }
 0x285   : > { %12870 = vmatprep.subr.bf16.mxu0 %v13822_v37 }
 0x286   : > { %12335 = vmatmul.mubr.msk.bf16.gmra.mrb[20].mxu1 %vm255_vm0, %v3630_v22  ;;  %v10520_v22 = vld [vmem:[%s13895_s29 + $0x160] sm:$0xff] }
 0x287   : > { %12839 = vmatmul.mubr.msk.bf16.gmra.mrb[4].mxu0 %vm255_vm0, %v15641_v15  ;;  %12338 = vmatprep.mubr.msk.bf16.mxu1 %vm255_vm0, %v3631_v0  ;;  %v15815_v15 = vld [vmem:[%s13895_s29 + $0x1a1] sm:$0xff]  ;;  %v4014_v0 = vpack.c.bf16 %v15866_v30, %v15397_v49 }
 0x288   : > { %12842 = vmatprep.mubr.msk.bf16.mxu0 %vm255_vm0, %v15748_v48  ;;  %12871 = vmatpush3.bf16.msra.mxu0 %v13822_v37  ;;  %v8653_v55 = vpack.c.bf16 %v15818_v13, %v15815_v15  ;;  %v4011_v37 = vpack.c.bf16 %v15362_v25, %v15834_v27  ;;  %v4013_v25 = vpack.c.bf16 %v15394_v4, %v15391_v45  ;;  %v11254_v45 = vld [vmem:[%s13895_s29 + $0x271] sm:$0xff]  ;;  %v10524_v49 = vld [vmem:[%s13895_s29 + $0x1a0] sm:$0xff] }
 0x289   : > { %12872 = vmatprep.subr.bf16.mxu0 %v13824_v63  ;;  %v10519_v4 = vld [vmem:[%s13895_s29 + $0x150] sm:$0xff] }
 0x28c   : > { %12873 = vmatpush3.bf16.msra.mxu0 %v13824_v63  ;;  %v15879_v63 = vpack.c.bf16 %v11254_v45, %v15869_v51  ;;  %v11313_v45 = vld [vmem:[%s13895_s29 + $0x1c2] sm:$0xff] }
 0x28d   : > { %12906 = vmatprep.subr.bf16.mxu0 %v15762_v33 }
 0x28e   : > { %12339 = vmatmul.mubr.msk.bf16.gmra.mrb[24].mxu1 %vm255_vm0, %v3632_v19  ;;  %v4015_v19 = vpack.c.bf16 %v10520_v22, %v10519_v4  ;;  %v11314_v4 = vld [vmem:[%s13895_s29 + $0x1d2] sm:$0xff] }
 0x28f   : > { %12843 = vmatmul.mubr.msk.bf16.gmra.mrb[8].mxu0 %vm255_vm0, %v15768_v12  ;;  %12342 = vmatprep.mubr.msk.bf16.mxu1 %vm255_vm0, %v3633_v9  ;;  %v10521_v9 = vld [vmem:[%s13895_s29 + $0x170] sm:$0xff] }
 0x290   : > { %12846 = vmatprep.mubr.msk.bf16.mxu0 %vm255_vm0, %v15774_v43  ;;  %v4016_v41 = vpack.c.bf16 %v10522_v62, %v10521_v9 }
 0x296   : > { %12343 = vmatmul.mubr.msk.bf16.gmra.mrb[28].mxu1 %vm255_vm0, %v3634_v7  ;;  %v4017_v7 = vpack.c.bf16 %v10524_v49, %v10523_v59  ;;  %v11353_v49 = vld [vmem:[%s13895_s29 + $0xe2] sm:$0xff] }
 0x297   : > { %12847 = vmatmul.mubr.msk.bf16.gmra.mrb[12].mxu0 %vm255_vm0, %v15795_v24  ;;  %12354 = vmatprep.mubr.msk.bf16.mxu1 %vm255_vm0, %v4007_v21  ;;  %v13828_v21 = vld [vmem:[%s16158_s1 + $0x308] sm:$0xff]  }
 0x298   : > { %12850 = vmatprep.mubr.msk.bf16.mxu0 %vm255_vm0, %v8651_v46  ;;  %v10525_v46 = vld [vmem:[%s13895_s29 + $0x1b0] sm:$0xff] }
 0x299   : > { %v4018_v20 = vpack.c.bf16 %v15456_v47, %v10525_v46  ;;  %v15926_v47 = vpack.c.bf16 %v15652_v10, %v15636_v53  ;;  %v16201_v53 = vld [vmem:[#allocation7_spill] sm:$0xff] }
 0x29e   : > { %12355 = vmatmul.mubr.msk.bf16.vlgmr.msra.gmra.mrb[0].mxu1 %vm255_vm0, %v4008_v52  ;;  %v10567_v52 = vld [vmem:[%s13895_s29 + $0xf0] sm:$0xff] }
 0x29f   : > { %12851 = vmatmul.mubr.msk.bf16.gmra.mrb[16].mxu0 %vm255_vm0, %v8652_v18  ;;  %12387 = vmatpush3.bf16.msra.mxu1 %v15695_v34  ;;  %v13827_v34 = vld [vmem:[%s16158_s1 + $0x178] sm:$0xff]   ;;  %v10568_v18 = vld [vmem:[%s13895_s29 + $0x100] sm:$0xff] }
 0x2a0   : > { %12358 = vmatprep.mubr.msk.bf16.mxu1 %vm255_vm0, %v4009_v39  ;;  %12854 = vmatprep.mubr.msk.bf16.mxu0 %vm255_vm0, %v8653_v55  ;;  %v4395_v39 = vpack.c.bf16 %v10568_v18, %v10567_v52  ;;  %v10569_v55 = vld [vmem:[%s13895_s29 + $0x110] sm:$0xff]  ;;  %v10652_v52 = vld [vmem:[%s13895_s29 + $0x241] sm:$0xff] }
 0x2a1   : > { %12388 = vmatprep.subr.bf16.mxu1 %v13823_v26  ;;  %v11371_v18 = vld [vmem:[%s13895_s29 + $0x242] sm:$0xff] }
 0x2a3   : > { %12389 = vmatpush3.bf16.msra.mxu1 %v13823_v26  ;;  %v10572_v26 = vld [vmem:[%s13895_s29 + $0x21] sm:$0xff] }
 0x2a4   : > { %12390 = vmatprep.subr.bf16.mxu1 %v13825_v60 }
 0x2a6   : > { %12359 = vmatmul.mubr.msk.bf16.gmra.mrb[4].mxu1 %vm255_vm0, %v4010_v58  ;;  %v10574_v58 = vld [vmem:[%s13895_s29 + $0x41] sm:$0xff] }
 0x2a7   : > { %12855 = vmatmul.mubr.msk.bf16.gmra.mrb[20].mxu0 %vm255_vm0, %v15715_v16  ;;  %12362 = vmatprep.mubr.msk.bf16.mxu1 %vm255_vm0, %v4011_v37  ;;  %v15858_v16 = vld [vmem:[%s16158_s1 + $0x180] sm:$0xff]   ;;  %v10575_v37 = vld [vmem:[%s13895_s29 + $0x51] sm:$0xff] }
 0x2a8   : > { %12858 = vmatprep.mubr.msk.bf16.mxu0 %vm255_vm0, %v15441_v17  ;;  %12391 = vmatpush3.bf16.msra.mxu1 %v13825_v60  ;;  %v13833_v60 = vld [vmem:[%s16158_s1 + $0x190] sm:$0xff]  }
 0x2a9   : > { %12392 = vmatprep.subr.bf16.mxu1 %v13827_v34 }
 0x2ac   : > { %12393 = vmatpush3.bf16.msra.mxu1 %v13827_v34  ;;  %v10576_v34 = vld [vmem:[%s13895_s29 + $0x61] sm:$0xff] }
 0x2ad   : > { %12946 = vmatprep.subr.bf16.mxu1 %v15858_v16 }
 0x2ae   : > { %12363 = vmatmul.mubr.msk.bf16.gmra.mrb[8].mxu1 %vm255_vm0, %v4012_v6  ;;  %v13834_v6 = vld [vmem:[%s16158_s1 + $0x198] sm:$0xff]  }
 0x2af   : > { %12859 = vmatmul.mubr.msk.bf16.gmra.mrb[24].mxu0 %vm255_vm0, %v15443_v40  ;;  %12366 = vmatprep.mubr.msk.bf16.mxu1 %vm255_vm0, %v4013_v25 }
 0x2b0   : > { %12862 = vmatprep.mubr.msk.bf16.mxu0 %vm255_vm0, %v15468_v1 }
 0x2b6   : > { %12367 = vmatmul.mubr.msk.bf16.gmra.mrb[12].mxu1 %vm255_vm0, %v4014_v0  ;;  %v9044_v0 = vpack.c.bf16 %v11314_v4, %v11313_v45 }
 0x2b7   : > { %12863 = vmatmul.mubr.msk.bf16.gmra.mrb[28].mxu0 %vm255_vm0, %v15879_v63  ;;  %12370 = vmatprep.mubr.msk.bf16.mxu1 %vm255_vm0, %v4015_v19  ;;  %v11352_v19 = vld [vmem:[%s13895_s29 + $0xd2] sm:$0xff] }
 0x2b8   : > { %12874 = vmatprep.mubr.msk.bf16.mxu0 %vm255_vm0, %v15748_v48  ;;  %v10527_v48 = vld [vmem:[%s13895_s29 + $0x1f0] sm:$0xff] }
 0x2b9   : > { %v15908_v57 = vpack.c.bf16 %v15633_v38, %v10527_v48  ;;  %v16200_v38 = vld [vmem:[#allocation6_spill] sm:$0xff]  ;;  %v4407_v48 = vpack.c.bf16 %v15815_v15, %v15810_v61  ;;  %v4408_v61 = vpack.c.bf16 %v15709_v5, %v15818_v13 }
 0x2be   : > { %12371 = vmatmul.mubr.msk.bf16.gmra.mrb[16].mxu1 %vm255_vm0, %v4016_v41  ;;  %v11354_v41 = vld [vmem:[%s13895_s29 + $0xf2] sm:$0xff] }
 0x2bf   : > { %12875 = vmatmul.mubr.msk.bf16.vlgmr.msra.gmra.mrb[0].mxu0 %vm255_vm0, %v15768_v12  ;;  %12374 = vmatprep.mubr.msk.bf16.mxu1 %vm255_vm0, %v4017_v7  ;;  %v15912_v12 = vpack.c.bf16 %v15585_v23, %v15562_v31  ;;  %v15930_v31 = vpack.c.bf16 %v15593_v56, %v15588_v32  ;;  %v15934_v23 = vpack.c.bf16 %v15658_v54, %v15655_v14  ;;  %v11298_v32 = vld [vmem:[%s13895_s29 + $0x92] sm:$0xff]  ;;  %v10564_v56 = vld [vmem:[%s13895_s29 + $0xc0] sm:$0xff] }
 0x2c0   : > { %12907 = vmatpush3.bf16.msra.mxu0 %v15762_v33  ;;  %12878 = vmatprep.mubr.msk.bf16.mxu0 %vm255_vm0, %v15774_v43  ;;  %v13830_v33 = vld [vmem:[%s16158_s1 + $0x318] sm:$0xff]   ;;  %v15938_v43 = vpack.c.bf16 %v15627_v50, %v16200_v38  ;;  %v16202_v50 = vld [vmem:[#allocation5_spill] sm:$0xff]  ;;  %v15953_v14 = vpack.c.bf16 %v11298_v32, %v15734_v35  ;;  %v4393_v54 = vpack.c.bf16 %v10564_v56, %v15834_v27  ;;  %v11355_v7 = vld [vmem:[%s13895_s29 + $0x102] sm:$0xff] }
 0x2c1   : > { %12908 = vmatprep.subr.bf16.mxu0 %v13828_v21  ;;  %v4022_v10 = vpack.c.bf16 %v16202_v50, %v16201_v53  ;;  %v9420_v46 = vpack.c.bf16 %v11354_v41, %v11353_v49  ;;  %v10647_v38 = vld [vmem:[%s13895_s29 + $0x1f1] sm:$0xff]  ;;  %v11367_v32 = vld [vmem:[%s13895_s29 + $0x202] sm:$0xff] }
 0x2c2   : > { %v11368_v56 = vld [vmem:[%s13895_s29 + $0x212] sm:$0xff] }
 0x2c3   : > { %v9427_v50 = vpack.c.bf16 %v11368_v56, %v11367_v32 }
 0x2c4   : > { %12909 = vmatpush3.bf16.msra.mxu0 %v13828_v21  ;;  %v11356_v21 = vld [vmem:[%s13895_s29 + $0x112] sm:$0xff] }
 0x2c5   : > { %12910 = vmatprep.subr.bf16.mxu0 %v13829_v11 }
 0x2c6   : > { %12375 = vmatmul.mubr.msk.bf16.gmra.mrb[20].mxu1 %vm255_vm0, %v4018_v20  ;;  %v11357_v20 = vld [vmem:[%s13895_s29 + $0x122] sm:$0xff] }
 0x2c7   : > { %12879 = vmatmul.mubr.msk.bf16.gmra.mrb[4].mxu0 %vm255_vm0, %v15795_v24  ;;  %12378 = vmatprep.mubr.msk.bf16.mxu1 %vm255_vm0, %v15908_v57  ;;  %v10565_v24 = vld [vmem:[%s13895_s29 + $0xd0] sm:$0xff] }
 0x2c8   : > { %12882 = vmatprep.mubr.msk.bf16.mxu0 %vm255_vm0, %v15912_v12  ;;  %12911 = vmatpush3.bf16.msra.mxu0 %v13829_v11  ;;  %v4394_v35 = vpack.c.bf16 %v10566_v2, %v10565_v24  ;;  %v9421_v11 = vpack.c.bf16 %v11356_v21, %v11355_v7  ;;  %v11370_v24 = vld [vmem:[%s13895_s29 + $0x232] sm:$0xff] }
 0x2c9   : > { %12912 = vmatprep.subr.bf16.mxu0 %v13830_v33  ;;  %v10651_v2 = vld [vmem:[%s13895_s29 + $0x231] sm:$0xff] }
 0x2cc   : > { %12913 = vmatpush3.bf16.msra.mxu0 %v13830_v33  ;;  %v11361_v33 = vld [vmem:[%s13895_s29 + $0x182] sm:$0xff] }
 0x2ce   : > { %12379 = vmatmul.mubr.msk.bf16.gmra.mrb[24].mxu1 %vm255_vm0, %v15926_v47 }
 0x2cf   : > { %12883 = vmatmul.mubr.msk.bf16.gmra.mrb[8].mxu0 %vm255_vm0, %v15930_v31  ;;  %12382 = vmatprep.mubr.msk.bf16.mxu1 %vm255_vm0, %v15934_v23 }
 0x2d0   : > { %12886 = vmatprep.mubr.msk.bf16.mxu0 %vm255_vm0, %v15938_v43 }
 0x2d6   : > { %12383 = vmatmul.mubr.msk.bf16.gmra.mrb[28].mxu1 %vm255_vm0, %v4022_v10  ;;  %v10649_v10 = vld [vmem:[%s13895_s29 + $0x211] sm:$0xff] }
 0x2d7   : > { %12887 = vmatmul.mubr.msk.bf16.gmra.mrb[12].mxu0 %vm255_vm0, %v15953_v14  ;;  %12394 = vmatprep.mubr.msk.bf16.mxu1 %vm255_vm0, %v4393_v54  ;;  %v11369_v54 = vld [vmem:[%s13895_s29 + $0x222] sm:$0xff] }
 0x2d8   : > { %12890 = vmatprep.mubr.msk.bf16.mxu0 %vm255_vm0, %v15441_v17  ;;  %v10571_v17 = vld [vmem:[%s13895_s29 + $0x11] sm:$0xff] }
 0x2d9   : > { %v4397_v27 = vpack.c.bf16 %v10572_v26, %v10571_v17  ;;  %v4793_v17 = vpack.c.bf16 %v10652_v52, %v10651_v2 }
 0x2de   : > { %12395 = vmatmul.mubr.msk.bf16.vlgmr.msra.gmra.mrb[0].mxu1 %vm255_vm0, %v4394_v35  ;;  %v11372_v35 = vld [vmem:[%s13895_s29 + $0x252] sm:$0xff] }
 0x2df   : > { %12891 = vmatmul.mubr.msk.bf16.gmra.mrb[16].mxu0 %vm255_vm0, %v15443_v40  ;;  %12950 = vmatpush3.bf16.msra.mxu1 %v15858_v16  ;;  %v4396_v40 = vpack.c.bf16 %v15866_v30, %v10569_v55  ;;  %v4399_v16 = vpack.c.bf16 %v10576_v34, %v10575_v37  ;;  %v10578_v30 = vld [vmem:[%s13895_s29 + $0x81] sm:$0xff]  ;;  %v9428_v55 = vpack.c.bf16 %v11370_v24, %v11369_v54 }
 0x2e0   : > { %12398 = vmatprep.mubr.msk.bf16.mxu1 %vm255_vm0, %v4395_v39  ;;  %12894 = vmatprep.mubr.msk.bf16.mxu0 %vm255_vm0, %v15468_v1  ;;  %v10573_v1 = vld [vmem:[%s13895_s29 + $0x31] sm:$0xff]  ;;  %v9429_v26 = vpack.c.bf16 %v11372_v35, %v11371_v18 }
 0x2e1   : > { %12947 = vmatprep.subr.bf16.mxu1 %v13832_v29  ;;  %v4398_v25 = vpack.c.bf16 %v10574_v58, %v10573_v1 }
 0x2e3   : > { %12951 = vmatpush3.bf16.msra.mxu1 %v13832_v29  ;;  %v10653_v29 = vld [vmem:[%s13895_s29 + $0x251] sm:$0xff] }
 0x2e4   : > { %12948 = vmatprep.subr.bf16.mxu1 %v13833_v60 }
 0x2e6   : > { %12399 = vmatmul.mubr.msk.bf16.gmra.mrb[4].mxu1 %vm255_vm0, %v4396_v40  ;;  %v11373_v40 = vld [vmem:[%s13895_s29 + $0x262] sm:$0xff] }
 0x2e7   : > { %12895 = vmatmul.mubr.msk.bf16.gmra.mrb[20].mxu0 %vm255_vm0, %v15879_v63  ;;  %12402 = vmatprep.mubr.msk.bf16.mxu1 %vm255_vm0, %v4397_v27  ;;  %v11351_v63 = vld [vmem:[%s13895_s29 + $0xc2] sm:$0xff]  ;;  %v11374_v27 = vld [vmem:[%s13895_s29 + $0x272] sm:$0xff] }
 0x2e8   : > { %12898 = vmatprep.mubr.msk.bf16.mxu0 %vm255_vm0, %v15492_v28  ;;  %12952 = vmatpush3.bf16.msra.mxu1 %v13833_v60  ;;  %v10577_v28 = vld [vmem:[%s13895_s29 + $0x71] sm:$0xff]  ;;  %v9419_v59 = vpack.c.bf16 %v11352_v19, %v11351_v63  ;;  %v4794_v60 = vpack.c.bf16 %v15869_v51, %v10653_v29  ;;  %v9430_v1 = vpack.c.bf16 %v11374_v27, %v11373_v40 }
 0x2e9   : > { %12949 = vmatprep.subr.bf16.mxu1 %v13834_v6  ;;  %v4400_v22 = vpack.c.bf16 %v10578_v30, %v10577_v28 }
 0x2ec   : > { %12953 = vmatpush3.bf16.msra.mxu1 %v13834_v6 }
 0x2ee   : > { %12403 = vmatmul.mubr.msk.bf16.gmra.mrb[8].mxu1 %vm255_vm0, %v4398_v25 }
 0x2ef   : > { %12899 = vmatmul.mubr.msk.bf16.gmra.mrb[24].mxu0 %vm255_vm0, %v15494_v36  ;;  %12406 = vmatprep.mubr.msk.bf16.mxu1 %vm255_vm0, %v4399_v16  ;;  %v10586_v36 = vld [vmem:[%s13895_s29 + $0x260] sm:$0xff] }
 0x2f0   : > { %12902 = vmatprep.mubr.msk.bf16.mxu0 %vm255_vm0, %v15514_v44  ;;  %v10587_v44 = vld [vmem:[%s13895_s29 + $0x151] sm:$0xff]  ;;  %v4404_v9 = vpack.c.bf16 %v10586_v36, %v16201_v53 }
 0x2f1   : > { %v4405_v62 = vpack.c.bf16 %v15787_v3, %v10587_v44  ;;  %v4406_v3 = vpack.c.bf16 %v15807_v8, %v15790_v42  ;;  %v11359_v42 = vld [vmem:[%s13895_s29 + $0x162] sm:$0xff]  ;;  %v11360_v8 = vld [vmem:[%s13895_s29 + $0x172] sm:$0xff] }
 0x2f6   : > { %12407 = vmatmul.mubr.msk.bf16.gmra.mrb[12].mxu1 %vm255_vm0, %v4400_v22 }
 0x2f7   : > { %12903 = vmatmul.mubr.msk.bf16.gmra.mrb[28].mxu0 %vm255_vm0, %v9044_v0  ;;  %12410 = vmatprep.mubr.msk.bf16.mxu1 %vm255_vm0, %v15908_v57  ;;  %v11358_v57 = vld [vmem:[%s13895_s29 + $0x132] sm:$0xff] }
 0x2f8   : > { %12914 = vmatprep.mubr.msk.bf16.mxu0 %vm255_vm0, %v15912_v12  ;;  %v9422_v15 = vpack.c.bf16 %v11358_v57, %v11357_v20  ;;  %v9423_v12 = vpack.c.bf16 %v11360_v8, %v11359_v42 }
 0x2fe   : > { %12411 = vmatmul.mubr.msk.bf16.gmra.mrb[16].mxu1 %vm255_vm0, %v15926_v47  ;;  %v11362_v47 = vld [vmem:[%s13895_s29 + $0x192] sm:$0xff] }
 0x2ff   : > { %12915 = vmatmul.mubr.msk.bf16.vlgmr.msra.gmra.mrb[0].mxu0 %vm255_vm0, %v15930_v31  ;;  %12414 = vmatprep.mubr.msk.bf16.mxu1 %vm255_vm0, %v15934_v23  ;;  %v11363_v31 = vld [vmem:[%s13895_s29 + $0x1a2] sm:$0xff]  ;;  %v11364_v23 = vld [vmem:[%s13895_s29 + $0x1b2] sm:$0xff]  ;;  %v9424_v5 = vpack.c.bf16 %v11362_v47, %v11361_v33 }
 0x300   : > { %12918 = vmatprep.mubr.msk.bf16.mxu0 %vm255_vm0, %v15938_v43  ;;  %v9425_v13 = vpack.c.bf16 %v11364_v23, %v11363_v31  ;;  %v10648_v43 = vld [vmem:[%s13895_s29 + $0x201] sm:$0xff] }
 0x301   : > { %v4791_v53 = vpack.c.bf16 %v10648_v43, %v10647_v38 }
 0x306   : > { %12415 = vmatmul.mubr.msk.bf16.gmra.mrb[20].mxu1 %vm255_vm0, %v4404_v9 }
 0x307   : > { %12919 = vmatmul.mubr.msk.bf16.gmra.mrb[4].mxu0 %vm255_vm0, %v15953_v14  ;;  %12418 = vmatprep.mubr.msk.bf16.mxu1 %vm255_vm0, %v4405_v62  ;;  %v10650_v14 = vld [vmem:[%s13895_s29 + $0x221] sm:$0xff] }
 0x308   : > { %12922 = vmatprep.mubr.msk.bf16.mxu0 %vm255_vm0, %v9419_v59  ;;  %v4792_v39 = vpack.c.bf16 %v10650_v14, %v10649_v10 }
 0x30e   : > { %12419 = vmatmul.mubr.msk.bf16.gmra.mrb[24].mxu1 %vm255_vm0, %v4406_v3 }
 0x30f   : > { %12923 = vmatmul.mubr.msk.bf16.gmra.mrb[8].mxu0 %vm255_vm0, %v9420_v46  ;;  %12422 = vmatprep.mubr.msk.bf16.mxu1 %vm255_vm0, %v4407_v48 }
 0x310   : > { %12926 = vmatprep.mubr.msk.bf16.mxu0 %vm255_vm0, %v9421_v11 }
 0x316   : > { %12423 = vmatmul.mubr.msk.bf16.gmra.mrb[28].mxu1 %vm255_vm0, %v4408_v61 }
 0x317   : > { %12927 = vmatmul.mubr.msk.bf16.gmra.mrb[12].mxu0 %vm255_vm0, %v9422_v15  ;;  %12450 = vmatprep.mubr.msk.bf16.mxu1 %vm255_vm0, %v4405_v62 }
 0x318   : > { %12930 = vmatprep.mubr.msk.bf16.mxu0 %vm255_vm0, %v9423_v12 }
 0x31e   : > { %12451 = vmatmul.mubr.msk.bf16.vlgmr.msra.gmra.mrb[16].mxu1 %vm255_vm0, %v4406_v3 }
 0x31f   : > { %12931 = vmatmul.mubr.msk.bf16.gmra.mrb[16].mxu0 %vm255_vm0, %v9424_v5  ;;  %12454 = vmatprep.mubr.msk.bf16.mxu1 %vm255_vm0, %v4407_v48 }
 0x320   : > { %12934 = vmatprep.mubr.msk.bf16.mxu0 %vm255_vm0, %v9425_v13 }
 0x326   : > { %12455 = vmatmul.mubr.msk.bf16.gmra.mrb[20].mxu1 %vm255_vm0, %v4408_v61 }
 0x327   : > { %12935 = vmatmul.mubr.msk.bf16.gmra.mrb[20].mxu0 %vm255_vm0, %v9044_v0  ;;  %12458 = vmatprep.mubr.msk.bf16.mxu1 %vm255_vm0, %v4791_v53 }
 0x328   : > { %12938 = vmatprep.mubr.msk.bf16.mxu0 %vm255_vm0, %v9427_v50 }
 0x32e   : > { %12459 = vmatmul.mubr.msk.bf16.gmra.mrb[24].mxu1 %vm255_vm0, %v4792_v39 }
 0x32f   : > { %12939 = vmatmul.mubr.msk.bf16.gmra.mrb[24].mxu0 %vm255_vm0, %v9428_v55  ;;  %12462 = vmatprep.mubr.msk.bf16.mxu1 %vm255_vm0, %v4793_v17 }
 0x330   : > { %12942 = vmatprep.mubr.msk.bf16.mxu0 %vm255_vm0, %v9429_v26 }
 0x336   : > { %12463 = vmatmul.mubr.msk.bf16.gmra.mrb[28].mxu1 %vm255_vm0, %v4794_v60 }
 0x337   : > { %12943 = vmatmul.mubr.msk.bf16.gmra.mrb[28].mxu0 %vm255_vm0, %v9430_v1 }
 0x3b1   : > { %v12396_v58 = vpop.f32.mrb[0].mxu1 }
 0x3b2   : > { %v4524_v37 = vpop.f32.mrb[1].mxu1 }
 0x3b3   : > { %v12397_v34 = vpop.f32.mrb[2].mxu1 }
 0x3b4   : > { %v4527_v6 = vpop.f32.mrb[3].mxu1 }
 0x3b9   : > { %v12400_v25 = vpop.f32.mrb[4].mxu1 }
 0x3ba   : > { %v4540_v16 = vpop.f32.mrb[5].mxu1 }
 0x3bb   : > { %v12401_v28 = vpop.f32.mrb[6].mxu1 }
 0x3bc   : > { %v4543_v30 = vpop.f32.mrb[7].mxu1 }
 0x3c1   : > { %v12404_v45 = vpop.f32.mrb[8].mxu1 }
 0x3c2   : > { %v4556_v4 = vpop.f32.mrb[9].mxu1 }
 0x3c3   : > { %v12405_v22 = vpop.f32.mrb[10].mxu1 }
 0x3c4   : > { %v4559_v0 = vpop.f32.mrb[11].mxu1 }
 0x3c9   : > { %v12408_v36 = vpop.f32.mrb[12].mxu1 }
 0x3ca   : > { %v4572_v44 = vpop.f32.mrb[13].mxu1 }
 0x3cb   : > { %v12409_v51 = vpop.f32.mrb[14].mxu1 }
 0x3cc   : > { %v4575_v63 = vpop.f32.mrb[15].mxu1 }
 0x3d2   : > { %v12916_v19 = vpop.f32.mrb[0].mxu0 }
 0x3d3   : > { %v16087_v9 = vadd.f32 %v12916_v19, %v12396_v58  ;;  %v9546_v62 = vpop.f32.mrb[1].mxu0 }
 0x3d4   : > { %v16089_v59 = vadd.f32 %v9546_v62, %v4524_v37  ;;  %v12917_v49 = vpop.f32.mrb[2].mxu0 }
 0x3d5   : > { %v16091_v41 = vadd.f32 %v12917_v49, %v12397_v34  ;;  %v9549_v7 = vpop.f32.mrb[3].mxu0 }
 0x3d6   : > { %v16093_v21 = vadd.f32 %v9549_v7, %v4527_v6 }
 0x3da   : > { %v12920_v3 = vpop.f32.mrb[4].mxu0 }
 0x3db   : > { %v16095_v46 = vadd.f32 %v12920_v3, %v12400_v25  ;;  %v9562_v48 = vpop.f32.mrb[5].mxu0 }
 0x3dc   : > { %v16097_v11 = vadd.f32 %v9562_v48, %v4540_v16  ;;  %v12921_v20 = vpop.f32.mrb[6].mxu0 }
 0x3dd   : > { %v16099_v57 = vadd.f32 %v12921_v20, %v12401_v28  ;;  %v9565_v42 = vpop.f32.mrb[7].mxu0 }
 0x3de   : > { %v16101_v8 = vadd.f32 %v9565_v42, %v4543_v30 }
 0x3e2   : > { %v12924_v61 = vpop.f32.mrb[8].mxu0 }
 0x3e3   : > { %v16103_v15 = vadd.f32 %v12924_v61, %v12404_v45  ;;  %v9578_v12 = vpop.f32.mrb[9].mxu0  ;;  %v11403_v61 = vld [vmem:[%s16159_s2] ss:$0 sm:$0xff] }
 0x3e4   : > { %v16105_v33 = vadd.f32 %v9578_v12, %v4556_v4  ;;  %v12925_v47 = vpop.f32.mrb[10].mxu0 }
 0x3e5   : > { %v9803_v31 = vmax.f32 %v16087_v9, %v16103_v15  ;;  %v16109_v23 = vadd.f32 %v12925_v47, %v12405_v22  ;;  %v9581_v5 = vpop.f32.mrb[11].mxu0 }
 0x3e6   : > { %v9801_v13 = vmax.f32 %v16089_v59, %v16105_v33  ;;  %v16113_v38 = vadd.f32 %v9581_v5, %v4559_v0 }
 0x3e7   : > { %v9804_v43 = vmax.f32 %v16091_v41, %v16109_v23 }
 0x3e8   : > { %v9802_v32 = vmax.f32 %v16093_v21, %v16113_v38 }
 0x3ea   : > { %v12928_v56 = vpop.f32.mrb[12].mxu0 }
 0x3eb   : > { %v16119_v53 = vadd.f32 %v12928_v56, %v12408_v36  ;;  %v9594_v50 = vpop.f32.mrb[13].mxu0 }
 0x3ec   : > { %v16121_v10 = vadd.f32 %v9594_v50, %v4572_v44  ;;  %v12929_v14 = vpop.f32.mrb[14].mxu0 }
 0x3ed   : > { %v9807_v54 = vmax.f32 %v16095_v46, %v16119_v53  ;;  %v16125_v24 = vadd.f32 %v12929_v14, %v12409_v51  ;;  %v9597_v2 = vpop.f32.mrb[15].mxu0 }
 0x3ee   : > { %v9805_v52 = vmax.f32 %v16097_v11, %v16121_v10  ;;  %v16129_v18 = vadd.f32 %v9597_v2, %v4575_v63 }
 0x3ef   : > { %v9808_v35 = vmax.f32 %v16099_v57, %v16125_v24 }
 0x3f0   : > { %v9806_v39 = vmax.f32 %v16101_v8, %v16129_v18 }
 0x3f1   : > { %v12452_v55 = vpop.f32.mrb[16].mxu1 }
 0x3f2   : > { %v12932_v17 = vpop.f32.mrb[16].mxu0  ;;  %v4974_v26 = vpop.f32.mrb[17].mxu1 }
 0x3f3   : > { %v12970_v29 = vadd.f32 %v12932_v17, %v12452_v55  ;;  %v9610_v40 = vpop.f32.mrb[17].mxu0  ;;  %v12453_v27 = vpop.f32.mrb[18].mxu1 }
 0x3f4   : > { %v12971_v60 = vadd.f32 %v9610_v40, %v4974_v26  ;;  %v12933_v1 = vpop.f32.mrb[18].mxu0  ;;  %v4977_v58 = vpop.f32.mrb[19].mxu1 }
 0x3f5   : > { %v12972_v37 = vadd.f32 %v12933_v1, %v12453_v27  ;;  %v9613_v34 = vpop.f32.mrb[19].mxu0 }
 0x3f6   : > { %v12973_v6 = vadd.f32 %v9613_v34, %v4977_v58 }
 0x3f9   : > { %v12456_v25 = vpop.f32.mrb[20].mxu1 }
 0x3fa   : > { %v12936_v16 = vpop.f32.mrb[20].mxu0  ;;  %v4990_v28 = vpop.f32.mrb[21].mxu1 }
 0x3fb   : > { %v12974_v30 = vadd.f32 %v12936_v16, %v12456_v25  ;;  %v9626_v45 = vpop.f32.mrb[21].mxu0  ;;  %v12457_v4 = vpop.f32.mrb[22].mxu1 }
 0x3fc   : > { %v12975_v22 = vadd.f32 %v9626_v45, %v4990_v28  ;;  %v12937_v0 = vpop.f32.mrb[22].mxu0  ;;  %v4993_v36 = vpop.f32.mrb[23].mxu1 }
 0x3fd   : > { %v12976_v44 = vadd.f32 %v12937_v0, %v12457_v4  ;;  %v9629_v51 = vpop.f32.mrb[23].mxu0 }
 0x3fe   : > { %v12977_v63 = vadd.f32 %v9629_v51, %v4993_v36 }
 0x401   : > { %v12460_v19 = vpop.f32.mrb[24].mxu1 }
 0x402   : > { %v12940_v9 = vpop.f32.mrb[24].mxu0  ;;  %v5006_v62 = vpop.f32.mrb[25].mxu1 }
 0x403   : > { %v12978_v59 = vadd.f32 %v12940_v9, %v12460_v19  ;;  %v9642_v49 = vpop.f32.mrb[25].mxu0  ;;  %v12461_v41 = vpop.f32.mrb[26].mxu1 }
 0x404   : > { %v12979_v7 = vadd.f32 %v9642_v49, %v5006_v62  ;;  %v12941_v21 = vpop.f32.mrb[26].mxu0  ;;  %v5009_v3 = vpop.f32.mrb[27].mxu1 }
 0x405   : > { %v9811_v48 = vmax.f32 %v12970_v29, %v12978_v59  ;;  %v12980_v20 = vadd.f32 %v12941_v21, %v12461_v41  ;;  %v9645_v42 = vpop.f32.mrb[27].mxu0 }
 0x406   : > { %v9809_v15 = vmax.f32 %v12971_v60, %v12979_v7  ;;  %v12981_v12 = vadd.f32 %v9645_v42, %v5009_v3 }
 0x407   : > { %v9819_v33 = vmax.f32 %v9803_v31, %v9811_v48  ;;  %v9812_v47 = vmax.f32 %v12972_v37, %v12980_v20 }
 0x408   : > { %v9817_v23 = vmax.f32 %v9801_v13, %v9809_v15  ;;  %v9810_v5 = vmax.f32 %v12973_v6, %v12981_v12 }
 0x409   : > { %v9834_v38 = vadd.f32 %v11403_v61, %v9819_v33  ;;  %v9820_v56 = vmax.f32 %v9804_v43, %v9812_v47  ;;  %v12464_v50 = vpop.f32.mrb[28].mxu1 }
 0x40a   : > { %v9832_v14 = vadd.f32 %v11403_v61, %v9817_v23  ;;  %v9818_v2 = vmax.f32 %v9802_v32, %v9810_v5  ;;  %v12944_v55 = vpop.f32.mrb[28].mxu0  ;;  %v5022_v17 = vpop.f32.mrb[29].mxu1 }
 0x40b   : > { %v9835_v26 = vadd.f32 %v11403_v61, %v9820_v56  ;;  %v12982_v29 = vadd.f32 %v12944_v55, %v12464_v50  ;;  %v9658_v40 = vpop.f32.mrb[29].mxu0  ;;  %v12465_v27 = vpop.f32.mrb[30].mxu1  ;;  %v9842_v31 = vmax.f32 %v9834_v38, 0.0 }
 0x40c   : > { %v9833_v1 = vadd.f32 %v11403_v61, %v9818_v2  ;;  %v12983_v58 = vadd.f32 %v9658_v40, %v5022_v17  ;;  %v12945_v60 = vpop.f32.mrb[30].mxu0  ;;  %v5025_v34 = vpop.f32.mrb[31].mxu1  ;;  %v9840_v43 = vmax.f32 %v9832_v14, 0.0 }
 0x40d   : > { %v9843_v37 = vmax.f32 %v9835_v26, 0.0  ;;  %v9815_v13 = vmax.f32 %v12974_v30, %v12982_v29  ;;  %v12984_v6 = vadd.f32 %v12945_v60, %v12465_v27  ;;  %v9661_v25 = vpop.f32.mrb[31].mxu0 }
 0x40e   : > { %v9841_v32 = vmax.f32 %v9833_v1, 0.0  ;;  %v9813_v16 = vmax.f32 %v12975_v22, %v12983_v58  ;;  %v12985_v28 = vadd.f32 %v9661_v25, %v5025_v34 }
 0x40f   : > { %v11431_v45 = vpack.c.bf16 %v9843_v37, %v9842_v31  ;;  %v9823_v4 = vmax.f32 %v9807_v54, %v9815_v13  ;;  %v9816_v0 = vmax.f32 %v12976_v44, %v12984_v6 }
 0x410   : > { %v11426_v36 = vpack.c.bf16 %v9841_v32, %v9840_v43  ;;  %v9821_v30 = vmax.f32 %v9805_v52, %v9813_v16  ;;  %v9814_v51 = vmax.f32 %v12977_v63, %v12985_v28 }
 0x411   : > { %11443 = vst [vmem:[%s170_s11 + $0x8] sm:$0xff] %v11431_v45   ;;  %v9838_v19 = vadd.f32 %v11403_v61, %v9823_v4  ;;  %v9824_v9 = vmax.f32 %v9808_v35, %v9816_v0 }
 0x412   : > { %11427 = vst [vmem:[%s170_s11] sm:$0xff] %v11426_v36   ;;  %v9836_v22 = vadd.f32 %v11403_v61, %v9821_v30  ;;  %v9822_v46 = vmax.f32 %v9806_v39, %v9814_v51 }
 0x413   : > { %v9839_v53 = vadd.f32 %v11403_v61, %v9824_v9  ;;  %v9846_v44 = vmax.f32 %v9838_v19, 0.0 }
 0x414   : > { %v9837_v54 = vadd.f32 %v11403_v61, %v9822_v46  ;;  %v9844_v59 = vmax.f32 %v9836_v22, 0.0 }
 0x415   : > { %v9847_v62 = vmax.f32 %v9839_v53, 0.0 }
 0x416   : > { %v9845_v11 = vmax.f32 %v9837_v54, 0.0 }
 0x417   : > { %v11441_v10 = vpack.c.bf16 %v9847_v62, %v9846_v44 }
 0x418   : > { %v11436_v52 = vpack.c.bf16 %v9845_v11, %v9844_v59 }
 0x419   : > { %11445 = vst [vmem:[%s170_s11 + $0x18] sm:$0xff] %v11441_v10  }
 0x41a   : > { %11444 = vst [vmem:[%s170_s11 + $0x10] sm:$0xff] %v11436_v52  }
 0x41b PF: > { %s13_s12 = sadd.s32 1, %s13841_s12  }
 0x41c   : > { %p10_p4 = scmp.ge.s32.totalorder %s13_s12, 4  }
 0x41e   :  { %12 = sbr.rel (!%p10_p4) target bundleno = 1 (0x1), region = 97 }

</bundles_post_ra>
